<compile_context>
chip_gen: v6e
topology: v6e:2x2x1
jax: 0.10.0
libtpu: 0.0.40
codegen_flags: <defaults>
</compile_context>

<pallas_src>
import functools

import jax
import jax.numpy as jnp
from jax import lax
from jax.experimental import pallas as pl
from jax.experimental.pallas import tpu as pltpu

_LANE = 128


# --------------------------------- kernel ------------------------------------

def _flow_stack_kernel(x0_ref, x1_ref, m_ref,
                       wpre_ref, bpre_ref, win_ref, bin_ref,
                       wrs_ref, brs_ref, wpost_ref, bpost_ref,
                       y0_ref, y1_ref, hpad_ref, *,
                       n_flows, n_layers, kernel_size, dilation_rate,
                       hidden_p, pad):
    t = x0_ref.shape[1]
    hp = hidden_p
    halfk = (kernel_size - 1) // 2

    x0 = x0_ref[0]                           # (T, half_p)  f32
    x1 = x1_ref[0]                           # (T, half_p)  f32
    m = m_ref[0]                             # (T, 1)       f32

    # Zero the conv scratch once; only the padding rows must stay zero, the centre
    # rows are overwritten by every WN layer.
    hpad_ref[...] = jnp.zeros_like(hpad_ref)

    def mm(a_bf16, w_bf16):
        # bf16 operands on the MXU, f32 accumulation.
        return jnp.dot(a_bf16, w_bf16, preferred_element_type=jnp.float32)

    def sigmoid(z):
        # 1/(1+exp(-z)) with the reciprocal on the EUP slot (exp is EUP too).
        return pl.reciprocal(1.0 + jnp.exp(-z), approx=True)

    def wn_layer(h, skip, idx, dil, last):
        # h: masked residual state (T, Hp) f32. Store it once as bf16 into the
        # zero-padded scratch; the K dilated taps are then free window reads.
        hpad_ref[pl.ds(pad, t), :] = h.astype(jnp.bfloat16)
        taps = [hpad_ref[pl.ds(pad + (k - halfk) * dil, t), :]
                for k in range(kernel_size)]
        im2col = jnp.concatenate(taps, axis=-1)                  # (T, K*Hp) bf16
        x_in = mm(im2col, win_ref[idx]) + bin_ref[idx]           # (T, 2*Hp) f32
        acts = jnp.tanh(x_in[:, :hp]) * sigmoid(x_in[:, hp:])
        rs = mm(acts.astype(jnp.bfloat16), wrs_ref[idx]) + brs_ref[idx]
        if last:
            # last layer: res_skip conv has only a skip output.
            return h, skip + rs[:, :hp]
        return (h + rs[:, :hp]) * m, skip + rs[:, hp:]

    for f in range(n_flows):
        # Flip folded into the weights: even flows read x0 / update x1, odd flows
        # read x1 / update x0 with channel-reversed pre/post weights.
        src = x0 if f % 2 == 0 else x1

        # pre: 1x1 conv (half -> hidden), masked.
        h = (mm(src.astype(jnp.bfloat16), wpre_ref[f]) + bpre_ref[f]) * m
        skip = jnp.zeros((t, hp), jnp.float32)

        if dilation_rate == 1 and n_layers > 1:
            def layer_body(i, carry, f=f):
                return wn_layer(carry[0], carry[1], f * n_layers + i, 1, last=False)
            h, skip = lax.fori_loop(0, n_layers - 1, layer_body, (h, skip))
        else:
            for i in range(n_layers - 1):
                h, skip = wn_layer(h, skip, f * n_layers + i,
                                   dilation_rate ** i, last=False)
        h, skip = wn_layer(h, skip, f * n_layers + (n_layers - 1),
                           dilation_rate ** (n_layers - 1), last=True)
        skip = skip * m

        # post: 1x1 conv (hidden -> half); mean-only coupling => logs = 0.
        mean = (mm(skip.astype(jnp.bfloat16), wpost_ref[f]) + bpost_ref[f]) * m
        if f % 2 == 0:
            x1 = mean + x1 * m
        else:
            x0 = mean + x0 * m

    y0_ref[0] = x0
    y1_ref[0] = x1


# ------------------------------ pallas_call glue ------------------------------

def _round_up(n, mult):
    return ((n + mult - 1) // mult) * mult


def _pad_axis(a, axis, new_size):
    cur = a.shape[axis]
    if cur == new_size:
        return a
    cfg = [(0, 0)] * a.ndim
    cfg[axis] = (0, new_size - cur)
    return jnp.pad(a, cfg)


def _pad_gate(a, hidden, hidden_p):
    # last dim is [tanh-H | sigmoid-H]: pad each half to hidden_p independently.
    return jnp.concatenate([_pad_axis(a[..., :hidden], -1, hidden_p),
                            _pad_axis(a[..., hidden:], -1, hidden_p)], axis=-1)


def _rep_spec(shape):
    nd = len(shape)
    return pl.BlockSpec(shape, lambda b, nd=nd: (0,) * nd)


def residual_coupling_flow_forward(params, x, x_mask, *, dilation_rate):
    """x: (B, C, T), x_mask: (B, 1, T)  (PyTorch NCT layout). Returns (B, C, T)."""
    B, C, T = x.shape
    n_flows, half, hidden = params["w_pre"].shape
    n_layers = params["w_in"].shape[0] // n_flows
    K = params["w_in"].shape[1]
    assert half * 2 == C

    half_p = _round_up(half, _LANE)
    hidden_p = _round_up(hidden, _LANE)
    pad = ((K - 1) // 2) * (dilation_rate ** (n_layers - 1))

    # ---- fold the Flip into the weights (odd flows: reversed pre rows / post cols)
    odd = (jnp.arange(n_flows) % 2 == 1)[:, None, None]
    w_pre = jnp.where(odd, params["w_pre"][:, ::-1, :], params["w_pre"])
    w_post = jnp.where(odd, params["w_post"][:, :, ::-1], params["w_post"])
    b_post = jnp.where(odd, params["b_post"][:, :, ::-1], params["b_post"])

    # ---- lane-dense zero padding (half->half_p, hidden->hidden_p), bf16 weights.
    w_pre_p = _pad_axis(_pad_axis(w_pre, 1, half_p), 2, hidden_p).astype(jnp.bfloat16)
    b_pre_p = _pad_axis(params["b_pre"], 2, hidden_p)
    w_in_p = _pad_gate(_pad_axis(params["w_in"], 2, hidden_p), hidden, hidden_p)
    w_in_p = w_in_p.reshape(n_flows * n_layers, K * hidden_p,
                            2 * hidden_p).astype(jnp.bfloat16)       # im2col layout
    b_in_p = _pad_gate(params["b_in"], hidden, hidden_p)
    w_rs_p = _pad_gate(_pad_axis(params["w_rs"], 1, hidden_p),
                       hidden, hidden_p).astype(jnp.bfloat16)
    b_rs_p = _pad_gate(params["b_rs"], hidden, hidden_p)
    w_post_p = _pad_axis(_pad_axis(w_post, 1, hidden_p), 2, half_p).astype(jnp.bfloat16)
    b_post_p = _pad_axis(b_post, 2, half_p)

    # ---- activations: NTC layout, split halves, lane-pad.
    # TODO(synk): fold the NCT<->NTC transposes into the kernel (in-kernel XLU
    # transpose / pltpu.einshape) to drop the two wrapper HBM round-trips.
    xt = jnp.transpose(x, (0, 2, 1)).astype(jnp.float32)        # (B, T, C)
    mt = jnp.transpose(x_mask, (0, 2, 1)).astype(jnp.float32)   # (B, T, 1)
    x0 = _pad_axis(xt[..., :half], -1, half_p)
    x1 = _pad_axis(xt[..., half:], -1, half_p)

    # ---- explicit VMEM budget (replicated weights are double-buffered by default).
    # TODO(synk): single-buffer the replicated weight blocks (pl.Buffered(1) or a
    # one-shot DMA into persistent scratch) for production sizes on v7x (64 MiB).
    weights = (w_pre_p, b_pre_p, w_in_p, b_in_p, w_rs_p, b_rs_p, w_post_p, b_post_p)
    weight_bytes = sum(int(a.size) * a.dtype.itemsize for a in weights)
    io_block_bytes = (4 * T * half_p + T) * 4          # x0,x1,y0,y1 blocks + mask
    scratch_bytes = (T + 2 * pad) * hidden_p * 2
    vmem_est = 2 * (weight_bytes + io_block_bytes) + scratch_bytes + (4 << 20)
    vmem_limit = int(min(128 << 20, max(32 << 20, vmem_est)))

    kern = functools.partial(
        _flow_stack_kernel, n_flows=n_flows, n_layers=n_layers, kernel_size=K,
        dilation_rate=dilation_rate, hidden_p=hidden_p, pad=pad)

    # TODO(synk): tile T (with a (K-1)/2*dilation halo) and add a second 'parallel'
    # grid axis so both v7x TensorCores are used at B=1 / very long sequences.
    y0, y1 = pl.pallas_call(
        kern,
        grid=(B,),
        in_specs=[
            pl.BlockSpec((1, T, half_p), lambda b: (b, 0, 0)),
            pl.BlockSpec((1, T, half_p), lambda b: (b, 0, 0)),
            pl.BlockSpec((1, T, 1), lambda b: (b, 0, 0)),
            _rep_spec(w_pre_p.shape), _rep_spec(b_pre_p.shape),
            _rep_spec(w_in_p.shape), _rep_spec(b_in_p.shape),
            _rep_spec(w_rs_p.shape), _rep_spec(b_rs_p.shape),
            _rep_spec(w_post_p.shape), _rep_spec(b_post_p.shape),
        ],
        out_specs=[
            pl.BlockSpec((1, T, half_p), lambda b: (b, 0, 0)),
            pl.BlockSpec((1, T, half_p), lambda b: (b, 0, 0)),
        ],
        out_shape=[
            jax.ShapeDtypeStruct((B, T, half_p), jnp.float32),
            jax.ShapeDtypeStruct((B, T, half_p), jnp.float32),
        ],
        scratch_shapes=[pltpu.VMEM((T + 2 * pad, hidden_p), jnp.bfloat16)],
        compiler_params=pltpu.CompilerParams(
            dimension_semantics=("parallel",),
            vmem_limit_bytes=vmem_limit),
    )(x0, x1, mt, w_pre_p, b_pre_p, w_in_p, b_in_p, w_rs_p, b_rs_p,
      w_post_p, b_post_p)

    out0 = y0[..., :half]
    out1 = y1[..., :half]
    if n_flows % 2 == 1:
        # odd number of flows: one residual channel reversal remains.
        y = jnp.concatenate([out1[..., ::-1], out0[..., ::-1]], axis=-1)
    else:
        y = jnp.concatenate([out0, out1], axis=-1)
    return jnp.transpose(y, (0, 2, 1))                           # (B, C, T)


# ----------------------------- model parameters -------------------------------

def init_params(key, channels, hidden_channels, kernel_size, dilation_rate,
                n_layers, n_flows):
    half = channels // 2
    H = hidden_channels
    K = kernel_size
    state = [key]

    def nxt(shape, std):
        state[0], sub = jax.random.split(state[0])
        return jax.random.normal(sub, shape, jnp.float32) * std

    # NOTE: the reference zero-inits the `post` conv (identity flow at init);
    # we use small random init so the kernel path is numerically exercised.
    return dict(
        w_pre=nxt((n_flows, half, H), half ** -0.5),
        b_pre=nxt((n_flows, 1, H), 0.02),
        w_in=nxt((n_flows * n_layers, K, H, 2 * H), (H * K) ** -0.5),
        b_in=nxt((n_flows * n_layers, 1, 2 * H), 0.02),
        w_rs=nxt((n_flows * n_layers, H, 2 * H), H ** -0.5),
        b_rs=nxt((n_flows * n_layers, 1, 2 * H), 0.02),
        w_post=nxt((n_flows, H, half), H ** -0.5),
        b_post=nxt((n_flows, 1, half), 0.02),
    )


# ----------------------------------- main --------------------------------------

if __name__ == "__main__":
    channels, hidden_channels = 4, 32
    kernel_size, dilation_rate, n_layers, n_flows = 5, 1, 4, 4
    B, T = 2, 16

    key = jax.random.PRNGKey(0)
    kp, kx = jax.random.split(key)
    params = init_params(kp, channels, hidden_channels, kernel_size,
                         dilation_rate, n_layers, n_flows)

    x = jax.random.normal(kx, (B, channels, T), jnp.float32)
    lengths = jnp.array([T, 11], jnp.int32)
    x_mask = (lax.broadcasted_iota(jnp.int32, (B, 1, T), 2)
              < lengths[:, None, None]).astype(jnp.float32)

    y = residual_coupling_flow_forward(params, x, x_mask,
                                       dilation_rate=dilation_rate)
    jax.block_until_ready(y)

    assert y.shape == (B, channels, T)
    assert x_mask.shape == (B, 1, T)
    assert bool(jnp.all(jnp.isfinite(y)))
    print("KERNEL_OK")
</pallas_src>

<mosaic_0001>
module attributes {stable_mosaic.version = 11 : i64} {
  func.func @_flow_stack_kernel(%arg0: i32, %arg1: memref<1x16x128xf32, #tpu.memory_space<vmem>>, %arg2: memref<1x16x128xf32, #tpu.memory_space<vmem>>, %arg3: memref<1x16x1xf32, #tpu.memory_space<vmem>>, %arg4: memref<4x128x128xbf16, #tpu.memory_space<vmem>>, %arg5: memref<4x1x128xf32, #tpu.memory_space<vmem>>, %arg6: memref<16x640x256xbf16, #tpu.memory_space<vmem>>, %arg7: memref<16x1x256xf32, #tpu.memory_space<vmem>>, %arg8: memref<16x128x256xbf16, #tpu.memory_space<vmem>>, %arg9: memref<16x1x256xf32, #tpu.memory_space<vmem>>, %arg10: memref<4x128x128xbf16, #tpu.memory_space<vmem>>, %arg11: memref<4x1x128xf32, #tpu.memory_space<vmem>>, %arg12: memref<1x16x128xf32, #tpu.memory_space<vmem>>, %arg13: memref<1x16x128xf32, #tpu.memory_space<vmem>>, %arg14: memref<20x128xbf16, #tpu.memory_space<vmem>>) attributes {dimension_semantics = [#tpu.dimension_semantics<parallel>], iteration_bounds = array<i64: 2>, scalar_prefetch = 0 : i64, scratch_operands = 1 : i64, tpu.core_type = #tpu.core_type<tc>, window_params = [{transform_indices = @transform_0, window_bounds = array<i64: 1, 16, 128>}, {transform_indices = @transform_1, window_bounds = array<i64: 1, 16, 128>}, {transform_indices = @transform_2, window_bounds = array<i64: 1, 16, 1>}, {pipeline_mode = #tpu.pipeline_mode<synchronous>, transform_indices = @transform_3, window_bounds = array<i64: 4, 128, 128>}, {pipeline_mode = #tpu.pipeline_mode<synchronous>, transform_indices = @transform_4, window_bounds = array<i64: 4, 1, 128>}, {pipeline_mode = #tpu.pipeline_mode<synchronous>, transform_indices = @transform_5, window_bounds = array<i64: 16, 640, 256>}, {pipeline_mode = #tpu.pipeline_mode<synchronous>, transform_indices = @transform_6, window_bounds = array<i64: 16, 1, 256>}, {pipeline_mode = #tpu.pipeline_mode<synchronous>, transform_indices = @transform_7, window_bounds = array<i64: 16, 128, 256>}, {pipeline_mode = #tpu.pipeline_mode<synchronous>, transform_indices = @transform_8, window_bounds = array<i64: 16, 1, 256>}, {pipeline_mode = #tpu.pipeline_mode<synchronous>, transform_indices = @transform_9, window_bounds = array<i64: 4, 128, 128>}, {pipeline_mode = #tpu.pipeline_mode<synchronous>, transform_indices = @transform_10, window_bounds = array<i64: 4, 1, 128>}, {transform_indices = @transform_11, window_bounds = array<i64: 1, 16, 128>}, {transform_indices = @transform_12, window_bounds = array<i64: 1, 16, 128>}]} {
    %c0 = arith.constant 0 : index
    %c0_0 = arith.constant 0 : index
    %c0_1 = arith.constant 0 : index
    %0 = vector.load %arg1[%c0, %c0_0, %c0_1] : memref<1x16x128xf32, #tpu.memory_space<vmem>>, vector<1x16x128xf32>
    %1 = vector.shape_cast %0 : vector<1x16x128xf32> to vector<16x128xf32>
    %c0_2 = arith.constant 0 : index
    %c0_3 = arith.constant 0 : index
    %c0_4 = arith.constant 0 : index
    %2 = vector.load %arg2[%c0_2, %c0_3, %c0_4] : memref<1x16x128xf32, #tpu.memory_space<vmem>>, vector<1x16x128xf32>
    %3 = vector.shape_cast %2 : vector<1x16x128xf32> to vector<16x128xf32>
    %c0_5 = arith.constant 0 : index
    %c0_6 = arith.constant 0 : index
    %c0_7 = arith.constant 0 : index
    %4 = vector.load %arg3[%c0_5, %c0_6, %c0_7] : memref<1x16x1xf32, #tpu.memory_space<vmem>>, vector<1x16x1xf32>
    %5 = vector.shape_cast %4 : vector<1x16x1xf32> to vector<16x1xf32>
    %cst = arith.constant 0.000000e+00 : bf16
    %6 = vector.broadcast %cst : bf16 to vector<20x128xbf16>
    %c0_8 = arith.constant 0 : index
    %c0_9 = arith.constant 0 : index
    %7 = vector.load %arg14[%c0_8, %c0_9] : memref<20x128xbf16, #tpu.memory_space<vmem>>, vector<20x128xbf16>
    tpu.vector_store %arg14[%c0_8, %c0_9], %6 {strides = array<i32>} : memref<20x128xbf16, #tpu.memory_space<vmem>>, vector<20x128xbf16>,
    %8 = arith.truncf %1 : vector<16x128xf32> to vector<16x128xbf16>
    %c0_10 = arith.constant 0 : index
    %c0_11 = arith.constant 0 : index
    %c0_12 = arith.constant 0 : index
    %9 = vector.load %arg4[%c0_10, %c0_11, %c0_12] : memref<4x128x128xbf16, #tpu.memory_space<vmem>>, vector<1x128x128xbf16>
    %10 = vector.shape_cast %9 : vector<1x128x128xbf16> to vector<128x128xbf16>
    %cst_13 = arith.constant dense<0.000000e+00> : vector<16x128xf32>
    %11 = tpu.matmul %8, %10, %cst_13 {dimension_numbers = #tpu.dot_dimension_numbers<[1], [0], [0], [1], [0, 0, 1, 1], [], []>} : vector<16x128xbf16>, vector<128x128xbf16>, vector<16x128xf32> -> vector<16x128xf32>
    %c0_14 = arith.constant 0 : index
    %c0_15 = arith.constant 0 : index
    %c0_16 = arith.constant 0 : index
    %12 = vector.load %arg5[%c0_14, %c0_15, %c0_16] : memref<4x1x128xf32, #tpu.memory_space<vmem>>, vector<1x1x128xf32>
    %13 = vector.shape_cast %12 : vector<1x1x128xf32> to vector<1x128xf32>
    %14 = vector.broadcast %13 : vector<1x128xf32> to vector<16x128xf32>
    %15 = arith.addf %11, %14 : vector<16x128xf32>
    %16 = vector.broadcast %5 : vector<16x1xf32> to vector<16x128xf32>
    %17 = arith.mulf %15, %16 : vector<16x128xf32>
    %cst_17 = arith.constant 0.000000e+00 : f32
    %18 = vector.broadcast %cst_17 : f32 to vector<16x128xf32>
    %c0_i32 = arith.constant 0 : i32
    %c3_i32 = arith.constant 3 : i32
    %19 = arith.addi %c0_i32, %c3_i32 : i32
    %c1_i32 = arith.constant 1 : i32
    %20:2 = scf.for %arg15 = %c0_i32 to %19 step %c1_i32 iter_args(%arg16 = %17, %arg17 = %18) -> (vector<16x128xf32>, vector<16x128xf32>)  : i32 {
      %c0_i32_194 = arith.constant 0 : i32
      %266 = arith.addi %c0_i32_194, %arg15 : i32
      %267 = arith.truncf %arg16 : vector<16x128xf32> to vector<16x128xbf16>
      %c2_195 = arith.constant 2 : index
      %c0_196 = arith.constant 0 : index
      %268 = vector.load %arg14[%c2_195, %c0_196] : memref<20x128xbf16, #tpu.memory_space<vmem>>, vector<16x128xbf16>
      tpu.vector_store %arg14[%c2_195, %c0_196], %267 {strides = array<i32>} : memref<20x128xbf16, #tpu.memory_space<vmem>>, vector<16x128xbf16>,
      %c0_197 = arith.constant 0 : index
      %c0_198 = arith.constant 0 : index
      %269 = vector.load %arg14[%c0_197, %c0_198] : memref<20x128xbf16, #tpu.memory_space<vmem>>, vector<16x128xbf16>
      %c1_199 = arith.constant 1 : index
      %c0_200 = arith.constant 0 : index
      %270 = vector.load %arg14[%c1_199, %c0_200] : memref<20x128xbf16, #tpu.memory_space<vmem>>, vector<16x128xbf16>
      %c2_201 = arith.constant 2 : index
      %c0_202 = arith.constant 0 : index
      %271 = vector.load %arg14[%c2_201, %c0_202] : memref<20x128xbf16, #tpu.memory_space<vmem>>, vector<16x128xbf16>
      %c3_203 = arith.constant 3 : index
      %c0_204 = arith.constant 0 : index
      %272 = vector.load %arg14[%c3_203, %c0_204] : memref<20x128xbf16, #tpu.memory_space<vmem>>, vector<16x128xbf16>
      %c4_205 = arith.constant 4 : index
      %c0_206 = arith.constant 0 : index
      %273 = vector.load %arg14[%c4_205, %c0_206] : memref<20x128xbf16, #tpu.memory_space<vmem>>, vector<16x128xbf16>
      %274 = tpu.concatenate %269, %270, %271, %272, %273 in 1 : vector<16x128xbf16>, vector<16x128xbf16>, vector<16x128xbf16>, vector<16x128xbf16>, vector<16x128xbf16> -> vector<16x640xbf16>
      %275 = arith.index_cast %266 : i32 to index
      %c0_207 = arith.constant 0 : index
      %c0_208 = arith.constant 0 : index
      %276 = vector.load %arg6[%275, %c0_207, %c0_208] : memref<16x640x256xbf16, #tpu.memory_space<vmem>>, vector<1x640x256xbf16>
      %277 = vector.shape_cast %276 : vector<1x640x256xbf16> to vector<640x256xbf16>
      %cst_209 = arith.constant dense<0.000000e+00> : vector<16x256xf32>
      %278 = tpu.matmul %274, %277, %cst_209 {dimension_numbers = #tpu.dot_dimension_numbers<[1], [0], [0], [1], [0, 0, 1, 1], [], []>} : vector<16x640xbf16>, vector<640x256xbf16>, vector<16x256xf32> -> vector<16x256xf32>
      %279 = arith.index_cast %266 : i32 to index
      %c0_210 = arith.constant 0 : index
      %c0_211 = arith.constant 0 : index
      %280 = vector.load %arg7[%279, %c0_210, %c0_211] : memref<16x1x256xf32, #tpu.memory_space<vmem>>, vector<1x1x256xf32>
      %281 = vector.shape_cast %280 : vector<1x1x256xf32> to vector<1x256xf32>
      %282 = vector.broadcast %281 : vector<1x256xf32> to vector<16x256xf32>
      %283 = arith.addf %278, %282 : vector<16x256xf32>
      %284 = vector.extract_strided_slice %283 {offsets = [0, 0], sizes = [16, 128], strides = [1, 1]} : vector<16x256xf32> to vector<16x128xf32>
      %285 = math.tanh %284 : vector<16x128xf32>
      %286 = vector.extract_strided_slice %283 {offsets = [0, 128], sizes = [16, 128], strides = [1, 1]} : vector<16x256xf32> to vector<16x128xf32>
      %cst_212 = arith.constant 0.000000e+00 : f32
      %287 = vector.broadcast %cst_212 : f32 to vector<16x128xf32>
      %288 = arith.subf %287, %286 : vector<16x128xf32>
      %289 = math.exp %288 : vector<16x128xf32>
      %cst_213 = arith.constant 1.000000e+00 : f32
      %290 = vector.broadcast %cst_213 : f32 to vector<16x128xf32>
      %291 = arith.addf %290, %289 : vector<16x128xf32>
      %292 = tpu.reciprocal %291 {approx = true} : vector<16x128xf32> -> vector<16x128xf32>
      %293 = arith.mulf %285, %292 : vector<16x128xf32>
      %294 = arith.truncf %293 : vector<16x128xf32> to vector<16x128xbf16>
      %295 = arith.index_cast %266 : i32 to index
      %c0_214 = arith.constant 0 : index
      %c0_215 = arith.constant 0 : index
      %296 = vector.load %arg8[%295, %c0_214, %c0_215] : memref<16x128x256xbf16, #tpu.memory_space<vmem>>, vector<1x128x256xbf16>
      %297 = vector.shape_cast %296 : vector<1x128x256xbf16> to vector<128x256xbf16>
      %cst_216 = arith.constant dense<0.000000e+00> : vector<16x256xf32>
      %298 = tpu.matmul %294, %297, %cst_216 {dimension_numbers = #tpu.dot_dimension_numbers<[1], [0], [0], [1], [0, 0, 1, 1], [], []>} : vector<16x128xbf16>, vector<128x256xbf16>, vector<16x256xf32> -> vector<16x256xf32>
      %299 = arith.index_cast %266 : i32 to index
      %c0_217 = arith.constant 0 : index
      %c0_218 = arith.constant 0 : index
      %300 = vector.load %arg9[%299, %c0_217, %c0_218] : memref<16x1x256xf32, #tpu.memory_space<vmem>>, vector<1x1x256xf32>
      %301 = vector.shape_cast %300 : vector<1x1x256xf32> to vector<1x256xf32>
      %302 = vector.broadcast %301 : vector<1x256xf32> to vector<16x256xf32>
      %303 = arith.addf %298, %302 : vector<16x256xf32>
      %304 = vector.extract_strided_slice %303 {offsets = [0, 0], sizes = [16, 128], strides = [1, 1]} : vector<16x256xf32> to vector<16x128xf32>
      %305 = arith.addf %arg16, %304 : vector<16x128xf32>
      %306 = vector.broadcast %5 : vector<16x1xf32> to vector<16x128xf32>
      %307 = arith.mulf %305, %306 : vector<16x128xf32>
      %308 = vector.extract_strided_slice %303 {offsets = [0, 128], sizes = [16, 128], strides = [1, 1]} : vector<16x256xf32> to vector<16x128xf32>
      %309 = arith.addf %arg17, %308 : vector<16x128xf32>
      scf.yield %307, %309 : vector<16x128xf32>, vector<16x128xf32>
    }
    %c3_i32_18 = arith.constant 3 : i32
    %21 = arith.truncf %20#0 : vector<16x128xf32> to vector<16x128xbf16>
    %c2 = arith.constant 2 : index
    %c0_19 = arith.constant 0 : index
    %22 = vector.load %arg14[%c2, %c0_19] : memref<20x128xbf16, #tpu.memory_space<vmem>>, vector<16x128xbf16>
    tpu.vector_store %arg14[%c2, %c0_19], %21 {strides = array<i32>} : memref<20x128xbf16, #tpu.memory_space<vmem>>, vector<16x128xbf16>,
    %c0_20 = arith.constant 0 : index
    %c0_21 = arith.constant 0 : index
    %23 = vector.load %arg14[%c0_20, %c0_21] : memref<20x128xbf16, #tpu.memory_space<vmem>>, vector<16x128xbf16>
    %c1 = arith.constant 1 : index
    %c0_22 = arith.constant 0 : index
    %24 = vector.load %arg14[%c1, %c0_22] : memref<20x128xbf16, #tpu.memory_space<vmem>>, vector<16x128xbf16>
    %c2_23 = arith.constant 2 : index
    %c0_24 = arith.constant 0 : index
    %25 = vector.load %arg14[%c2_23, %c0_24] : memref<20x128xbf16, #tpu.memory_space<vmem>>, vector<16x128xbf16>
    %c3 = arith.constant 3 : index
    %c0_25 = arith.constant 0 : index
    %26 = vector.load %arg14[%c3, %c0_25] : memref<20x128xbf16, #tpu.memory_space<vmem>>, vector<16x128xbf16>
    %c4 = arith.constant 4 : index
    %c0_26 = arith.constant 0 : index
    %27 = vector.load %arg14[%c4, %c0_26] : memref<20x128xbf16, #tpu.memory_space<vmem>>, vector<16x128xbf16>
    %28 = tpu.concatenate %23, %24, %25, %26, %27 in 1 : vector<16x128xbf16>, vector<16x128xbf16>, vector<16x128xbf16>, vector<16x128xbf16>, vector<16x128xbf16> -> vector<16x640xbf16>
    %c3_27 = arith.constant 3 : index
    %c0_28 = arith.constant 0 : index
    %c0_29 = arith.constant 0 : index
    %29 = vector.load %arg6[%c3_27, %c0_28, %c0_29] : memref<16x640x256xbf16, #tpu.memory_space<vmem>>, vector<1x640x256xbf16>
    %30 = vector.shape_cast %29 : vector<1x640x256xbf16> to vector<640x256xbf16>
    %cst_30 = arith.constant dense<0.000000e+00> : vector<16x256xf32>
    %31 = tpu.matmul %28, %30, %cst_30 {dimension_numbers = #tpu.dot_dimension_numbers<[1], [0], [0], [1], [0, 0, 1, 1], [], []>} : vector<16x640xbf16>, vector<640x256xbf16>, vector<16x256xf32> -> vector<16x256xf32>
    %c3_31 = arith.constant 3 : index
    %c0_32 = arith.constant 0 : index
    %c0_33 = arith.constant 0 : index
    %32 = vector.load %arg7[%c3_31, %c0_32, %c0_33] : memref<16x1x256xf32, #tpu.memory_space<vmem>>, vector<1x1x256xf32>
    %33 = vector.shape_cast %32 : vector<1x1x256xf32> to vector<1x256xf32>
    %34 = vector.broadcast %33 : vector<1x256xf32> to vector<16x256xf32>
    %35 = arith.addf %31, %34 : vector<16x256xf32>
    %36 = vector.extract_strided_slice %35 {offsets = [0, 0], sizes = [16, 128], strides = [1, 1]} : vector<16x256xf32> to vector<16x128xf32>
    %37 = math.tanh %36 : vector<16x128xf32>
    %38 = vector.extract_strided_slice %35 {offsets = [0, 128], sizes = [16, 128], strides = [1, 1]} : vector<16x256xf32> to vector<16x128xf32>
    %cst_34 = arith.constant 0.000000e+00 : f32
    %39 = vector.broadcast %cst_34 : f32 to vector<16x128xf32>
    %40 = arith.subf %39, %38 : vector<16x128xf32>
    %41 = math.exp %40 : vector<16x128xf32>
    %cst_35 = arith.constant 1.000000e+00 : f32
    %42 = vector.broadcast %cst_35 : f32 to vector<16x128xf32>
    %43 = arith.addf %42, %41 : vector<16x128xf32>
    %44 = tpu.reciprocal %43 {approx = true} : vector<16x128xf32> -> vector<16x128xf32>
    %45 = arith.mulf %37, %44 : vector<16x128xf32>
    %46 = arith.truncf %45 : vector<16x128xf32> to vector<16x128xbf16>
    %c3_36 = arith.constant 3 : index
    %c0_37 = arith.constant 0 : index
    %c0_38 = arith.constant 0 : index
    %47 = vector.load %arg8[%c3_36, %c0_37, %c0_38] : memref<16x128x256xbf16, #tpu.memory_space<vmem>>, vector<1x128x256xbf16>
    %48 = vector.shape_cast %47 : vector<1x128x256xbf16> to vector<128x256xbf16>
    %cst_39 = arith.constant dense<0.000000e+00> : vector<16x256xf32>
    %49 = tpu.matmul %46, %48, %cst_39 {dimension_numbers = #tpu.dot_dimension_numbers<[1], [0], [0], [1], [0, 0, 1, 1], [], []>} : vector<16x128xbf16>, vector<128x256xbf16>, vector<16x256xf32> -> vector<16x256xf32>
    %c3_40 = arith.constant 3 : index
    %c0_41 = arith.constant 0 : index
    %c0_42 = arith.constant 0 : index
    %50 = vector.load %arg9[%c3_40, %c0_41, %c0_42] : memref<16x1x256xf32, #tpu.memory_space<vmem>>, vector<1x1x256xf32>
    %51 = vector.shape_cast %50 : vector<1x1x256xf32> to vector<1x256xf32>
    %52 = vector.broadcast %51 : vector<1x256xf32> to vector<16x256xf32>
    %53 = arith.addf %49, %52 : vector<16x256xf32>
    %54 = vector.extract_strided_slice %53 {offsets = [0, 0], sizes = [16, 128], strides = [1, 1]} : vector<16x256xf32> to vector<16x128xf32>
    %55 = arith.addf %20#1, %54 : vector<16x128xf32>
    %56 = vector.broadcast %5 : vector<16x1xf32> to vector<16x128xf32>
    %57 = arith.mulf %55, %56 : vector<16x128xf32>
    %58 = arith.truncf %57 : vector<16x128xf32> to vector<16x128xbf16>
    %c0_43 = arith.constant 0 : index
    %c0_44 = arith.constant 0 : index
    %c0_45 = arith.constant 0 : index
    %59 = vector.load %arg10[%c0_43, %c0_44, %c0_45] : memref<4x128x128xbf16, #tpu.memory_space<vmem>>, vector<1x128x128xbf16>
    %60 = vector.shape_cast %59 : vector<1x128x128xbf16> to vector<128x128xbf16>
    %cst_46 = arith.constant dense<0.000000e+00> : vector<16x128xf32>
    %61 = tpu.matmul %58, %60, %cst_46 {dimension_numbers = #tpu.dot_dimension_numbers<[1], [0], [0], [1], [0, 0, 1, 1], [], []>} : vector<16x128xbf16>, vector<128x128xbf16>, vector<16x128xf32> -> vector<16x128xf32>
    %c0_47 = arith.constant 0 : index
    %c0_48 = arith.constant 0 : index
    %c0_49 = arith.constant 0 : index
    %62 = vector.load %arg11[%c0_47, %c0_48, %c0_49] : memref<4x1x128xf32, #tpu.memory_space<vmem>>, vector<1x1x128xf32>
    %63 = vector.shape_cast %62 : vector<1x1x128xf32> to vector<1x128xf32>
    %64 = vector.broadcast %63 : vector<1x128xf32> to vector<16x128xf32>
    %65 = arith.addf %61, %64 : vector<16x128xf32>
    %66 = vector.broadcast %5 : vector<16x1xf32> to vector<16x128xf32>
    %67 = arith.mulf %65, %66 : vector<16x128xf32>
    %68 = vector.broadcast %5 : vector<16x1xf32> to vector<16x128xf32>
    %69 = arith.mulf %3, %68 : vector<16x128xf32>
    %70 = arith.addf %67, %69 : vector<16x128xf32>
    %71 = arith.truncf %70 : vector<16x128xf32> to vector<16x128xbf16>
    %c1_50 = arith.constant 1 : index
    %c0_51 = arith.constant 0 : index
    %c0_52 = arith.constant 0 : index
    %72 = vector.load %arg4[%c1_50, %c0_51, %c0_52] : memref<4x128x128xbf16, #tpu.memory_space<vmem>>, vector<1x128x128xbf16>
    %73 = vector.shape_cast %72 : vector<1x128x128xbf16> to vector<128x128xbf16>
    %cst_53 = arith.constant dense<0.000000e+00> : vector<16x128xf32>
    %74 = tpu.matmul %71, %73, %cst_53 {dimension_numbers = #tpu.dot_dimension_numbers<[1], [0], [0], [1], [0, 0, 1, 1], [], []>} : vector<16x128xbf16>, vector<128x128xbf16>, vector<16x128xf32> -> vector<16x128xf32>
    %c1_54 = arith.constant 1 : index
    %c0_55 = arith.constant 0 : index
    %c0_56 = arith.constant 0 : index
    %75 = vector.load %arg5[%c1_54, %c0_55, %c0_56] : memref<4x1x128xf32, #tpu.memory_space<vmem>>, vector<1x1x128xf32>
    %76 = vector.shape_cast %75 : vector<1x1x128xf32> to vector<1x128xf32>
    %77 = vector.broadcast %76 : vector<1x128xf32> to vector<16x128xf32>
    %78 = arith.addf %74, %77 : vector<16x128xf32>
    %79 = vector.broadcast %5 : vector<16x1xf32> to vector<16x128xf32>
    %80 = arith.mulf %78, %79 : vector<16x128xf32>
    %cst_57 = arith.constant 0.000000e+00 : f32
    %81 = vector.broadcast %cst_57 : f32 to vector<16x128xf32>
    %c0_i32_58 = arith.constant 0 : i32
    %c3_i32_59 = arith.constant 3 : i32
    %82 = arith.addi %c0_i32_58, %c3_i32_59 : i32
    %c1_i32_60 = arith.constant 1 : i32
    %83:2 = scf.for %arg15 = %c0_i32_58 to %82 step %c1_i32_60 iter_args(%arg16 = %80, %arg17 = %81) -> (vector<16x128xf32>, vector<16x128xf32>)  : i32 {
      %c4_i32 = arith.constant 4 : i32
      %266 = arith.addi %c4_i32, %arg15 : i32
      %267 = arith.truncf %arg16 : vector<16x128xf32> to vector<16x128xbf16>
      %c2_194 = arith.constant 2 : index
      %c0_195 = arith.constant 0 : index
      %268 = vector.load %arg14[%c2_194, %c0_195] : memref<20x128xbf16, #tpu.memory_space<vmem>>, vector<16x128xbf16>
      tpu.vector_store %arg14[%c2_194, %c0_195], %267 {strides = array<i32>} : memref<20x128xbf16, #tpu.memory_space<vmem>>, vector<16x128xbf16>,
      %c0_196 = arith.constant 0 : index
      %c0_197 = arith.constant 0 : index
      %269 = vector.load %arg14[%c0_196, %c0_197] : memref<20x128xbf16, #tpu.memory_space<vmem>>, vector<16x128xbf16>
      %c1_198 = arith.constant 1 : index
      %c0_199 = arith.constant 0 : index
      %270 = vector.load %arg14[%c1_198, %c0_199] : memref<20x128xbf16, #tpu.memory_space<vmem>>, vector<16x128xbf16>
      %c2_200 = arith.constant 2 : index
      %c0_201 = arith.constant 0 : index
      %271 = vector.load %arg14[%c2_200, %c0_201] : memref<20x128xbf16, #tpu.memory_space<vmem>>, vector<16x128xbf16>
      %c3_202 = arith.constant 3 : index
      %c0_203 = arith.constant 0 : index
      %272 = vector.load %arg14[%c3_202, %c0_203] : memref<20x128xbf16, #tpu.memory_space<vmem>>, vector<16x128xbf16>
      %c4_204 = arith.constant 4 : index
      %c0_205 = arith.constant 0 : index
      %273 = vector.load %arg14[%c4_204, %c0_205] : memref<20x128xbf16, #tpu.memory_space<vmem>>, vector<16x128xbf16>
      %274 = tpu.concatenate %269, %270, %271, %272, %273 in 1 : vector<16x128xbf16>, vector<16x128xbf16>, vector<16x128xbf16>, vector<16x128xbf16>, vector<16x128xbf16> -> vector<16x640xbf16>
      %275 = arith.index_cast %266 : i32 to index
      %c0_206 = arith.constant 0 : index
      %c0_207 = arith.constant 0 : index
      %276 = vector.load %arg6[%275, %c0_206, %c0_207] : memref<16x640x256xbf16, #tpu.memory_space<vmem>>, vector<1x640x256xbf16>
      %277 = vector.shape_cast %276 : vector<1x640x256xbf16> to vector<640x256xbf16>
      %cst_208 = arith.constant dense<0.000000e+00> : vector<16x256xf32>
      %278 = tpu.matmul %274, %277, %cst_208 {dimension_numbers = #tpu.dot_dimension_numbers<[1], [0], [0], [1], [0, 0, 1, 1], [], []>} : vector<16x640xbf16>, vector<640x256xbf16>, vector<16x256xf32> -> vector<16x256xf32>
      %279 = arith.index_cast %266 : i32 to index
      %c0_209 = arith.constant 0 : index
      %c0_210 = arith.constant 0 : index
      %280 = vector.load %arg7[%279, %c0_209, %c0_210] : memref<16x1x256xf32, #tpu.memory_space<vmem>>, vector<1x1x256xf32>
      %281 = vector.shape_cast %280 : vector<1x1x256xf32> to vector<1x256xf32>
      %282 = vector.broadcast %281 : vector<1x256xf32> to vector<16x256xf32>
      %283 = arith.addf %278, %282 : vector<16x256xf32>
      %284 = vector.extract_strided_slice %283 {offsets = [0, 0], sizes = [16, 128], strides = [1, 1]} : vector<16x256xf32> to vector<16x128xf32>
      %285 = math.tanh %284 : vector<16x128xf32>
      %286 = vector.extract_strided_slice %283 {offsets = [0, 128], sizes = [16, 128], strides = [1, 1]} : vector<16x256xf32> to vector<16x128xf32>
      %cst_211 = arith.constant 0.000000e+00 : f32
      %287 = vector.broadcast %cst_211 : f32 to vector<16x128xf32>
      %288 = arith.subf %287, %286 : vector<16x128xf32>
      %289 = math.exp %288 : vector<16x128xf32>
      %cst_212 = arith.constant 1.000000e+00 : f32
      %290 = vector.broadcast %cst_212 : f32 to vector<16x128xf32>
      %291 = arith.addf %290, %289 : vector<16x128xf32>
      %292 = tpu.reciprocal %291 {approx = true} : vector<16x128xf32> -> vector<16x128xf32>
      %293 = arith.mulf %285, %292 : vector<16x128xf32>
      %294 = arith.truncf %293 : vector<16x128xf32> to vector<16x128xbf16>
      %295 = arith.index_cast %266 : i32 to index
      %c0_213 = arith.constant 0 : index
      %c0_214 = arith.constant 0 : index
      %296 = vector.load %arg8[%295, %c0_213, %c0_214] : memref<16x128x256xbf16, #tpu.memory_space<vmem>>, vector<1x128x256xbf16>
      %297 = vector.shape_cast %296 : vector<1x128x256xbf16> to vector<128x256xbf16>
      %cst_215 = arith.constant dense<0.000000e+00> : vector<16x256xf32>
      %298 = tpu.matmul %294, %297, %cst_215 {dimension_numbers = #tpu.dot_dimension_numbers<[1], [0], [0], [1], [0, 0, 1, 1], [], []>} : vector<16x128xbf16>, vector<128x256xbf16>, vector<16x256xf32> -> vector<16x256xf32>
      %299 = arith.index_cast %266 : i32 to index
      %c0_216 = arith.constant 0 : index
      %c0_217 = arith.constant 0 : index
      %300 = vector.load %arg9[%299, %c0_216, %c0_217] : memref<16x1x256xf32, #tpu.memory_space<vmem>>, vector<1x1x256xf32>
      %301 = vector.shape_cast %300 : vector<1x1x256xf32> to vector<1x256xf32>
      %302 = vector.broadcast %301 : vector<1x256xf32> to vector<16x256xf32>
      %303 = arith.addf %298, %302 : vector<16x256xf32>
      %304 = vector.extract_strided_slice %303 {offsets = [0, 0], sizes = [16, 128], strides = [1, 1]} : vector<16x256xf32> to vector<16x128xf32>
      %305 = arith.addf %arg16, %304 : vector<16x128xf32>
      %306 = vector.broadcast %5 : vector<16x1xf32> to vector<16x128xf32>
      %307 = arith.mulf %305, %306 : vector<16x128xf32>
      %308 = vector.extract_strided_slice %303 {offsets = [0, 128], sizes = [16, 128], strides = [1, 1]} : vector<16x256xf32> to vector<16x128xf32>
      %309 = arith.addf %arg17, %308 : vector<16x128xf32>
      scf.yield %307, %309 : vector<16x128xf32>, vector<16x128xf32>
    }
    %c3_i32_61 = arith.constant 3 : i32
    %84 = arith.truncf %83#0 : vector<16x128xf32> to vector<16x128xbf16>
    %c2_62 = arith.constant 2 : index
    %c0_63 = arith.constant 0 : index
    %85 = vector.load %arg14[%c2_62, %c0_63] : memref<20x128xbf16, #tpu.memory_space<vmem>>, vector<16x128xbf16>
    tpu.vector_store %arg14[%c2_62, %c0_63], %84 {strides = array<i32>} : memref<20x128xbf16, #tpu.memory_space<vmem>>, vector<16x128xbf16>,
    %c0_64 = arith.constant 0 : index
    %c0_65 = arith.constant 0 : index
    %86 = vector.load %arg14[%c0_64, %c0_65] : memref<20x128xbf16, #tpu.memory_space<vmem>>, vector<16x128xbf16>
    %c1_66 = arith.constant 1 : index
    %c0_67 = arith.constant 0 : index
    %87 = vector.load %arg14[%c1_66, %c0_67] : memref<20x128xbf16, #tpu.memory_space<vmem>>, vector<16x128xbf16>
    %c2_68 = arith.constant 2 : index
    %c0_69 = arith.constant 0 : index
    %88 = vector.load %arg14[%c2_68, %c0_69] : memref<20x128xbf16, #tpu.memory_space<vmem>>, vector<16x128xbf16>
    %c3_70 = arith.constant 3 : index
    %c0_71 = arith.constant 0 : index
    %89 = vector.load %arg14[%c3_70, %c0_71] : memref<20x128xbf16, #tpu.memory_space<vmem>>, vector<16x128xbf16>
    %c4_72 = arith.constant 4 : index
    %c0_73 = arith.constant 0 : index
    %90 = vector.load %arg14[%c4_72, %c0_73] : memref<20x128xbf16, #tpu.memory_space<vmem>>, vector<16x128xbf16>
    %91 = tpu.concatenate %86, %87, %88, %89, %90 in 1 : vector<16x128xbf16>, vector<16x128xbf16>, vector<16x128xbf16>, vector<16x128xbf16>, vector<16x128xbf16> -> vector<16x640xbf16>
    %c7 = arith.constant 7 : index
    %c0_74 = arith.constant 0 : index
    %c0_75 = arith.constant 0 : index
    %92 = vector.load %arg6[%c7, %c0_74, %c0_75] : memref<16x640x256xbf16, #tpu.memory_space<vmem>>, vector<1x640x256xbf16>
    %93 = vector.shape_cast %92 : vector<1x640x256xbf16> to vector<640x256xbf16>
    %cst_76 = arith.constant dense<0.000000e+00> : vector<16x256xf32>
    %94 = tpu.matmul %91, %93, %cst_76 {dimension_numbers = #tpu.dot_dimension_numbers<[1], [0], [0], [1], [0, 0, 1, 1], [], []>} : vector<16x640xbf16>, vector<640x256xbf16>, vector<16x256xf32> -> vector<16x256xf32>
    %c7_77 = arith.constant 7 : index
    %c0_78 = arith.constant 0 : index
    %c0_79 = arith.constant 0 : index
    %95 = vector.load %arg7[%c7_77, %c0_78, %c0_79] : memref<16x1x256xf32, #tpu.memory_space<vmem>>, vector<1x1x256xf32>
    %96 = vector.shape_cast %95 : vector<1x1x256xf32> to vector<1x256xf32>
    %97 = vector.broadcast %96 : vector<1x256xf32> to vector<16x256xf32>
    %98 = arith.addf %94, %97 : vector<16x256xf32>
    %99 = vector.extract_strided_slice %98 {offsets = [0, 0], sizes = [16, 128], strides = [1, 1]} : vector<16x256xf32> to vector<16x128xf32>
    %100 = math.tanh %99 : vector<16x128xf32>
    %101 = vector.extract_strided_slice %98 {offsets = [0, 128], sizes = [16, 128], strides = [1, 1]} : vector<16x256xf32> to vector<16x128xf32>
    %cst_80 = arith.constant 0.000000e+00 : f32
    %102 = vector.broadcast %cst_80 : f32 to vector<16x128xf32>
    %103 = arith.subf %102, %101 : vector<16x128xf32>
    %104 = math.exp %103 : vector<16x128xf32>
    %cst_81 = arith.constant 1.000000e+00 : f32
    %105 = vector.broadcast %cst_81 : f32 to vector<16x128xf32>
    %106 = arith.addf %105, %104 : vector<16x128xf32>
    %107 = tpu.reciprocal %106 {approx = true} : vector<16x128xf32> -> vector<16x128xf32>
    %108 = arith.mulf %100, %107 : vector<16x128xf32>
    %109 = arith.truncf %108 : vector<16x128xf32> to vector<16x128xbf16>
    %c7_82 = arith.constant 7 : index
    %c0_83 = arith.constant 0 : index
    %c0_84 = arith.constant 0 : index
    %110 = vector.load %arg8[%c7_82, %c0_83, %c0_84] : memref<16x128x256xbf16, #tpu.memory_space<vmem>>, vector<1x128x256xbf16>
    %111 = vector.shape_cast %110 : vector<1x128x256xbf16> to vector<128x256xbf16>
    %cst_85 = arith.constant dense<0.000000e+00> : vector<16x256xf32>
    %112 = tpu.matmul %109, %111, %cst_85 {dimension_numbers = #tpu.dot_dimension_numbers<[1], [0], [0], [1], [0, 0, 1, 1], [], []>} : vector<16x128xbf16>, vector<128x256xbf16>, vector<16x256xf32> -> vector<16x256xf32>
    %c7_86 = arith.constant 7 : index
    %c0_87 = arith.constant 0 : index
    %c0_88 = arith.constant 0 : index
    %113 = vector.load %arg9[%c7_86, %c0_87, %c0_88] : memref<16x1x256xf32, #tpu.memory_space<vmem>>, vector<1x1x256xf32>
    %114 = vector.shape_cast %113 : vector<1x1x256xf32> to vector<1x256xf32>
    %115 = vector.broadcast %114 : vector<1x256xf32> to vector<16x256xf32>
    %116 = arith.addf %112, %115 : vector<16x256xf32>
    %117 = vector.extract_strided_slice %116 {offsets = [0, 0], sizes = [16, 128], strides = [1, 1]} : vector<16x256xf32> to vector<16x128xf32>
    %118 = arith.addf %83#1, %117 : vector<16x128xf32>
    %119 = vector.broadcast %5 : vector<16x1xf32> to vector<16x128xf32>
    %120 = arith.mulf %118, %119 : vector<16x128xf32>
    %121 = arith.truncf %120 : vector<16x128xf32> to vector<16x128xbf16>
    %c1_89 = arith.constant 1 : index
    %c0_90 = arith.constant 0 : index
    %c0_91 = arith.constant 0 : index
    %122 = vector.load %arg10[%c1_89, %c0_90, %c0_91] : memref<4x128x128xbf16, #tpu.memory_space<vmem>>, vector<1x128x128xbf16>
    %123 = vector.shape_cast %122 : vector<1x128x128xbf16> to vector<128x128xbf16>
    %cst_92 = arith.constant dense<0.000000e+00> : vector<16x128xf32>
    %124 = tpu.matmul %121, %123, %cst_92 {dimension_numbers = #tpu.dot_dimension_numbers<[1], [0], [0], [1], [0, 0, 1, 1], [], []>} : vector<16x128xbf16>, vector<128x128xbf16>, vector<16x128xf32> -> vector<16x128xf32>
    %c1_93 = arith.constant 1 : index
    %c0_94 = arith.constant 0 : index
    %c0_95 = arith.constant 0 : index
    %125 = vector.load %arg11[%c1_93, %c0_94, %c0_95] : memref<4x1x128xf32, #tpu.memory_space<vmem>>, vector<1x1x128xf32>
    %126 = vector.shape_cast %125 : vector<1x1x128xf32> to vector<1x128xf32>
    %127 = vector.broadcast %126 : vector<1x128xf32> to vector<16x128xf32>
    %128 = arith.addf %124, %127 : vector<16x128xf32>
    %129 = vector.broadcast %5 : vector<16x1xf32> to vector<16x128xf32>
    %130 = arith.mulf %128, %129 : vector<16x128xf32>
    %131 = vector.broadcast %5 : vector<16x1xf32> to vector<16x128xf32>
    %132 = arith.mulf %1, %131 : vector<16x128xf32>
    %133 = arith.addf %130, %132 : vector<16x128xf32>
    %134 = arith.truncf %133 : vector<16x128xf32> to vector<16x128xbf16>
    %c2_96 = arith.constant 2 : index
    %c0_97 = arith.constant 0 : index
    %c0_98 = arith.constant 0 : index
    %135 = vector.load %arg4[%c2_96, %c0_97, %c0_98] : memref<4x128x128xbf16, #tpu.memory_space<vmem>>, vector<1x128x128xbf16>
    %136 = vector.shape_cast %135 : vector<1x128x128xbf16> to vector<128x128xbf16>
    %cst_99 = arith.constant dense<0.000000e+00> : vector<16x128xf32>
    %137 = tpu.matmul %134, %136, %cst_99 {dimension_numbers = #tpu.dot_dimension_numbers<[1], [0], [0], [1], [0, 0, 1, 1], [], []>} : vector<16x128xbf16>, vector<128x128xbf16>, vector<16x128xf32> -> vector<16x128xf32>
    %c2_100 = arith.constant 2 : index
    %c0_101 = arith.constant 0 : index
    %c0_102 = arith.constant 0 : index
    %138 = vector.load %arg5[%c2_100, %c0_101, %c0_102] : memref<4x1x128xf32, #tpu.memory_space<vmem>>, vector<1x1x128xf32>
    %139 = vector.shape_cast %138 : vector<1x1x128xf32> to vector<1x128xf32>
    %140 = vector.broadcast %139 : vector<1x128xf32> to vector<16x128xf32>
    %141 = arith.addf %137, %140 : vector<16x128xf32>
    %142 = vector.broadcast %5 : vector<16x1xf32> to vector<16x128xf32>
    %143 = arith.mulf %141, %142 : vector<16x128xf32>
    %cst_103 = arith.constant 0.000000e+00 : f32
    %144 = vector.broadcast %cst_103 : f32 to vector<16x128xf32>
    %c0_i32_104 = arith.constant 0 : i32
    %c3_i32_105 = arith.constant 3 : i32
    %145 = arith.addi %c0_i32_104, %c3_i32_105 : i32
    %c1_i32_106 = arith.constant 1 : i32
    %146:2 = scf.for %arg15 = %c0_i32_104 to %145 step %c1_i32_106 iter_args(%arg16 = %143, %arg17 = %144) -> (vector<16x128xf32>, vector<16x128xf32>)  : i32 {
      %c8_i32 = arith.constant 8 : i32
      %266 = arith.addi %c8_i32, %arg15 : i32
      %267 = arith.truncf %arg16 : vector<16x128xf32> to vector<16x128xbf16>
      %c2_194 = arith.constant 2 : index
      %c0_195 = arith.constant 0 : index
      %268 = vector.load %arg14[%c2_194, %c0_195] : memref<20x128xbf16, #tpu.memory_space<vmem>>, vector<16x128xbf16>
      tpu.vector_store %arg14[%c2_194, %c0_195], %267 {strides = array<i32>} : memref<20x128xbf16, #tpu.memory_space<vmem>>, vector<16x128xbf16>,
      %c0_196 = arith.constant 0 : index
      %c0_197 = arith.constant 0 : index
      %269 = vector.load %arg14[%c0_196, %c0_197] : memref<20x128xbf16, #tpu.memory_space<vmem>>, vector<16x128xbf16>
      %c1_198 = arith.constant 1 : index
      %c0_199 = arith.constant 0 : index
      %270 = vector.load %arg14[%c1_198, %c0_199] : memref<20x128xbf16, #tpu.memory_space<vmem>>, vector<16x128xbf16>
      %c2_200 = arith.constant 2 : index
      %c0_201 = arith.constant 0 : index
      %271 = vector.load %arg14[%c2_200, %c0_201] : memref<20x128xbf16, #tpu.memory_space<vmem>>, vector<16x128xbf16>
      %c3_202 = arith.constant 3 : index
      %c0_203 = arith.constant 0 : index
      %272 = vector.load %arg14[%c3_202, %c0_203] : memref<20x128xbf16, #tpu.memory_space<vmem>>, vector<16x128xbf16>
      %c4_204 = arith.constant 4 : index
      %c0_205 = arith.constant 0 : index
      %273 = vector.load %arg14[%c4_204, %c0_205] : memref<20x128xbf16, #tpu.memory_space<vmem>>, vector<16x128xbf16>
      %274 = tpu.concatenate %269, %270, %271, %272, %273 in 1 : vector<16x128xbf16>, vector<16x128xbf16>, vector<16x128xbf16>, vector<16x128xbf16>, vector<16x128xbf16> -> vector<16x640xbf16>
      %275 = arith.index_cast %266 : i32 to index
      %c0_206 = arith.constant 0 : index
      %c0_207 = arith.constant 0 : index
      %276 = vector.load %arg6[%275, %c0_206, %c0_207] : memref<16x640x256xbf16, #tpu.memory_space<vmem>>, vector<1x640x256xbf16>
      %277 = vector.shape_cast %276 : vector<1x640x256xbf16> to vector<640x256xbf16>
      %cst_208 = arith.constant dense<0.000000e+00> : vector<16x256xf32>
      %278 = tpu.matmul %274, %277, %cst_208 {dimension_numbers = #tpu.dot_dimension_numbers<[1], [0], [0], [1], [0, 0, 1, 1], [], []>} : vector<16x640xbf16>, vector<640x256xbf16>, vector<16x256xf32> -> vector<16x256xf32>
      %279 = arith.index_cast %266 : i32 to index
      %c0_209 = arith.constant 0 : index
      %c0_210 = arith.constant 0 : index
      %280 = vector.load %arg7[%279, %c0_209, %c0_210] : memref<16x1x256xf32, #tpu.memory_space<vmem>>, vector<1x1x256xf32>
      %281 = vector.shape_cast %280 : vector<1x1x256xf32> to vector<1x256xf32>
      %282 = vector.broadcast %281 : vector<1x256xf32> to vector<16x256xf32>
      %283 = arith.addf %278, %282 : vector<16x256xf32>
      %284 = vector.extract_strided_slice %283 {offsets = [0, 0], sizes = [16, 128], strides = [1, 1]} : vector<16x256xf32> to vector<16x128xf32>
      %285 = math.tanh %284 : vector<16x128xf32>
      %286 = vector.extract_strided_slice %283 {offsets = [0, 128], sizes = [16, 128], strides = [1, 1]} : vector<16x256xf32> to vector<16x128xf32>
      %cst_211 = arith.constant 0.000000e+00 : f32
      %287 = vector.broadcast %cst_211 : f32 to vector<16x128xf32>
      %288 = arith.subf %287, %286 : vector<16x128xf32>
      %289 = math.exp %288 : vector<16x128xf32>
      %cst_212 = arith.constant 1.000000e+00 : f32
      %290 = vector.broadcast %cst_212 : f32 to vector<16x128xf32>
      %291 = arith.addf %290, %289 : vector<16x128xf32>
      %292 = tpu.reciprocal %291 {approx = true} : vector<16x128xf32> -> vector<16x128xf32>
      %293 = arith.mulf %285, %292 : vector<16x128xf32>
      %294 = arith.truncf %293 : vector<16x128xf32> to vector<16x128xbf16>
      %295 = arith.index_cast %266 : i32 to index
      %c0_213 = arith.constant 0 : index
      %c0_214 = arith.constant 0 : index
      %296 = vector.load %arg8[%295, %c0_213, %c0_214] : memref<16x128x256xbf16, #tpu.memory_space<vmem>>, vector<1x128x256xbf16>
      %297 = vector.shape_cast %296 : vector<1x128x256xbf16> to vector<128x256xbf16>
      %cst_215 = arith.constant dense<0.000000e+00> : vector<16x256xf32>
      %298 = tpu.matmul %294, %297, %cst_215 {dimension_numbers = #tpu.dot_dimension_numbers<[1], [0], [0], [1], [0, 0, 1, 1], [], []>} : vector<16x128xbf16>, vector<128x256xbf16>, vector<16x256xf32> -> vector<16x256xf32>
      %299 = arith.index_cast %266 : i32 to index
      %c0_216 = arith.constant 0 : index
      %c0_217 = arith.constant 0 : index
      %300 = vector.load %arg9[%299, %c0_216, %c0_217] : memref<16x1x256xf32, #tpu.memory_space<vmem>>, vector<1x1x256xf32>
      %301 = vector.shape_cast %300 : vector<1x1x256xf32> to vector<1x256xf32>
      %302 = vector.broadcast %301 : vector<1x256xf32> to vector<16x256xf32>
      %303 = arith.addf %298, %302 : vector<16x256xf32>
      %304 = vector.extract_strided_slice %303 {offsets = [0, 0], sizes = [16, 128], strides = [1, 1]} : vector<16x256xf32> to vector<16x128xf32>
      %305 = arith.addf %arg16, %304 : vector<16x128xf32>
      %306 = vector.broadcast %5 : vector<16x1xf32> to vector<16x128xf32>
      %307 = arith.mulf %305, %306 : vector<16x128xf32>
      %308 = vector.extract_strided_slice %303 {offsets = [0, 128], sizes = [16, 128], strides = [1, 1]} : vector<16x256xf32> to vector<16x128xf32>
      %309 = arith.addf %arg17, %308 : vector<16x128xf32>
      scf.yield %307, %309 : vector<16x128xf32>, vector<16x128xf32>
    }
    %c3_i32_107 = arith.constant 3 : i32
    %147 = arith.truncf %146#0 : vector<16x128xf32> to vector<16x128xbf16>
    %c2_108 = arith.constant 2 : index
    %c0_109 = arith.constant 0 : index
    %148 = vector.load %arg14[%c2_108, %c0_109] : memref<20x128xbf16, #tpu.memory_space<vmem>>, vector<16x128xbf16>
    tpu.vector_store %arg14[%c2_108, %c0_109], %147 {strides = array<i32>} : memref<20x128xbf16, #tpu.memory_space<vmem>>, vector<16x128xbf16>,
    %c0_110 = arith.constant 0 : index
    %c0_111 = arith.constant 0 : index
    %149 = vector.load %arg14[%c0_110, %c0_111] : memref<20x128xbf16, #tpu.memory_space<vmem>>, vector<16x128xbf16>
    %c1_112 = arith.constant 1 : index
    %c0_113 = arith.constant 0 : index
    %150 = vector.load %arg14[%c1_112, %c0_113] : memref<20x128xbf16, #tpu.memory_space<vmem>>, vector<16x128xbf16>
    %c2_114 = arith.constant 2 : index
    %c0_115 = arith.constant 0 : index
    %151 = vector.load %arg14[%c2_114, %c0_115] : memref<20x128xbf16, #tpu.memory_space<vmem>>, vector<16x128xbf16>
    %c3_116 = arith.constant 3 : index
    %c0_117 = arith.constant 0 : index
    %152 = vector.load %arg14[%c3_116, %c0_117] : memref<20x128xbf16, #tpu.memory_space<vmem>>, vector<16x128xbf16>
    %c4_118 = arith.constant 4 : index
    %c0_119 = arith.constant 0 : index
    %153 = vector.load %arg14[%c4_118, %c0_119] : memref<20x128xbf16, #tpu.memory_space<vmem>>, vector<16x128xbf16>
    %154 = tpu.concatenate %149, %150, %151, %152, %153 in 1 : vector<16x128xbf16>, vector<16x128xbf16>, vector<16x128xbf16>, vector<16x128xbf16>, vector<16x128xbf16> -> vector<16x640xbf16>
    %c11 = arith.constant 11 : index
    %c0_120 = arith.constant 0 : index
    %c0_121 = arith.constant 0 : index
    %155 = vector.load %arg6[%c11, %c0_120, %c0_121] : memref<16x640x256xbf16, #tpu.memory_space<vmem>>, vector<1x640x256xbf16>
    %156 = vector.shape_cast %155 : vector<1x640x256xbf16> to vector<640x256xbf16>
    %cst_122 = arith.constant dense<0.000000e+00> : vector<16x256xf32>
    %157 = tpu.matmul %154, %156, %cst_122 {dimension_numbers = #tpu.dot_dimension_numbers<[1], [0], [0], [1], [0, 0, 1, 1], [], []>} : vector<16x640xbf16>, vector<640x256xbf16>, vector<16x256xf32> -> vector<16x256xf32>
    %c11_123 = arith.constant 11 : index
    %c0_124 = arith.constant 0 : index
    %c0_125 = arith.constant 0 : index
    %158 = vector.load %arg7[%c11_123, %c0_124, %c0_125] : memref<16x1x256xf32, #tpu.memory_space<vmem>>, vector<1x1x256xf32>
    %159 = vector.shape_cast %158 : vector<1x1x256xf32> to vector<1x256xf32>
    %160 = vector.broadcast %159 : vector<1x256xf32> to vector<16x256xf32>
    %161 = arith.addf %157, %160 : vector<16x256xf32>
    %162 = vector.extract_strided_slice %161 {offsets = [0, 0], sizes = [16, 128], strides = [1, 1]} : vector<16x256xf32> to vector<16x128xf32>
    %163 = math.tanh %162 : vector<16x128xf32>
    %164 = vector.extract_strided_slice %161 {offsets = [0, 128], sizes = [16, 128], strides = [1, 1]} : vector<16x256xf32> to vector<16x128xf32>
    %cst_126 = arith.constant 0.000000e+00 : f32
    %165 = vector.broadcast %cst_126 : f32 to vector<16x128xf32>
    %166 = arith.subf %165, %164 : vector<16x128xf32>
    %167 = math.exp %166 : vector<16x128xf32>
    %cst_127 = arith.constant 1.000000e+00 : f32
    %168 = vector.broadcast %cst_127 : f32 to vector<16x128xf32>
    %169 = arith.addf %168, %167 : vector<16x128xf32>
    %170 = tpu.reciprocal %169 {approx = true} : vector<16x128xf32> -> vector<16x128xf32>
    %171 = arith.mulf %163, %170 : vector<16x128xf32>
    %172 = arith.truncf %171 : vector<16x128xf32> to vector<16x128xbf16>
    %c11_128 = arith.constant 11 : index
    %c0_129 = arith.constant 0 : index
    %c0_130 = arith.constant 0 : index
    %173 = vector.load %arg8[%c11_128, %c0_129, %c0_130] : memref<16x128x256xbf16, #tpu.memory_space<vmem>>, vector<1x128x256xbf16>
    %174 = vector.shape_cast %173 : vector<1x128x256xbf16> to vector<128x256xbf16>
    %cst_131 = arith.constant dense<0.000000e+00> : vector<16x256xf32>
    %175 = tpu.matmul %172, %174, %cst_131 {dimension_numbers = #tpu.dot_dimension_numbers<[1], [0], [0], [1], [0, 0, 1, 1], [], []>} : vector<16x128xbf16>, vector<128x256xbf16>, vector<16x256xf32> -> vector<16x256xf32>
    %c11_132 = arith.constant 11 : index
    %c0_133 = arith.constant 0 : index
    %c0_134 = arith.constant 0 : index
    %176 = vector.load %arg9[%c11_132, %c0_133, %c0_134] : memref<16x1x256xf32, #tpu.memory_space<vmem>>, vector<1x1x256xf32>
    %177 = vector.shape_cast %176 : vector<1x1x256xf32> to vector<1x256xf32>
    %178 = vector.broadcast %177 : vector<1x256xf32> to vector<16x256xf32>
    %179 = arith.addf %175, %178 : vector<16x256xf32>
    %180 = vector.extract_strided_slice %179 {offsets = [0, 0], sizes = [16, 128], strides = [1, 1]} : vector<16x256xf32> to vector<16x128xf32>
    %181 = arith.addf %146#1, %180 : vector<16x128xf32>
    %182 = vector.broadcast %5 : vector<16x1xf32> to vector<16x128xf32>
    %183 = arith.mulf %181, %182 : vector<16x128xf32>
    %184 = arith.truncf %183 : vector<16x128xf32> to vector<16x128xbf16>
    %c2_135 = arith.constant 2 : index
    %c0_136 = arith.constant 0 : index
    %c0_137 = arith.constant 0 : index
    %185 = vector.load %arg10[%c2_135, %c0_136, %c0_137] : memref<4x128x128xbf16, #tpu.memory_space<vmem>>, vector<1x128x128xbf16>
    %186 = vector.shape_cast %185 : vector<1x128x128xbf16> to vector<128x128xbf16>
    %cst_138 = arith.constant dense<0.000000e+00> : vector<16x128xf32>
    %187 = tpu.matmul %184, %186, %cst_138 {dimension_numbers = #tpu.dot_dimension_numbers<[1], [0], [0], [1], [0, 0, 1, 1], [], []>} : vector<16x128xbf16>, vector<128x128xbf16>, vector<16x128xf32> -> vector<16x128xf32>
    %c2_139 = arith.constant 2 : index
    %c0_140 = arith.constant 0 : index
    %c0_141 = arith.constant 0 : index
    %188 = vector.load %arg11[%c2_139, %c0_140, %c0_141] : memref<4x1x128xf32, #tpu.memory_space<vmem>>, vector<1x1x128xf32>
    %189 = vector.shape_cast %188 : vector<1x1x128xf32> to vector<1x128xf32>
    %190 = vector.broadcast %189 : vector<1x128xf32> to vector<16x128xf32>
    %191 = arith.addf %187, %190 : vector<16x128xf32>
    %192 = vector.broadcast %5 : vector<16x1xf32> to vector<16x128xf32>
    %193 = arith.mulf %191, %192 : vector<16x128xf32>
    %194 = vector.broadcast %5 : vector<16x1xf32> to vector<16x128xf32>
    %195 = arith.mulf %70, %194 : vector<16x128xf32>
    %196 = arith.addf %193, %195 : vector<16x128xf32>
    %197 = arith.truncf %196 : vector<16x128xf32> to vector<16x128xbf16>
    %c3_142 = arith.constant 3 : index
    %c0_143 = arith.constant 0 : index
    %c0_144 = arith.constant 0 : index
    %198 = vector.load %arg4[%c3_142, %c0_143, %c0_144] : memref<4x128x128xbf16, #tpu.memory_space<vmem>>, vector<1x128x128xbf16>
    %199 = vector.shape_cast %198 : vector<1x128x128xbf16> to vector<128x128xbf16>
    %cst_145 = arith.constant dense<0.000000e+00> : vector<16x128xf32>
    %200 = tpu.matmul %197, %199, %cst_145 {dimension_numbers = #tpu.dot_dimension_numbers<[1], [0], [0], [1], [0, 0, 1, 1], [], []>} : vector<16x128xbf16>, vector<128x128xbf16>, vector<16x128xf32> -> vector<16x128xf32>
    %c3_146 = arith.constant 3 : index
    %c0_147 = arith.constant 0 : index
    %c0_148 = arith.constant 0 : index
    %201 = vector.load %arg5[%c3_146, %c0_147, %c0_148] : memref<4x1x128xf32, #tpu.memory_space<vmem>>, vector<1x1x128xf32>
    %202 = vector.shape_cast %201 : vector<1x1x128xf32> to vector<1x128xf32>
    %203 = vector.broadcast %202 : vector<1x128xf32> to vector<16x128xf32>
    %204 = arith.addf %200, %203 : vector<16x128xf32>
    %205 = vector.broadcast %5 : vector<16x1xf32> to vector<16x128xf32>
    %206 = arith.mulf %204, %205 : vector<16x128xf32>
    %cst_149 = arith.constant 0.000000e+00 : f32
    %207 = vector.broadcast %cst_149 : f32 to vector<16x128xf32>
    %c0_i32_150 = arith.constant 0 : i32
    %c3_i32_151 = arith.constant 3 : i32
    %208 = arith.addi %c0_i32_150, %c3_i32_151 : i32
    %c1_i32_152 = arith.constant 1 : i32
    %209:2 = scf.for %arg15 = %c0_i32_150 to %208 step %c1_i32_152 iter_args(%arg16 = %206, %arg17 = %207) -> (vector<16x128xf32>, vector<16x128xf32>)  : i32 {
      %c12_i32 = arith.constant 12 : i32
      %266 = arith.addi %c12_i32, %arg15 : i32
      %267 = arith.truncf %arg16 : vector<16x128xf32> to vector<16x128xbf16>
      %c2_194 = arith.constant 2 : index
      %c0_195 = arith.constant 0 : index
      %268 = vector.load %arg14[%c2_194, %c0_195] : memref<20x128xbf16, #tpu.memory_space<vmem>>, vector<16x128xbf16>
      tpu.vector_store %arg14[%c2_194, %c0_195], %267 {strides = array<i32>} : memref<20x128xbf16, #tpu.memory_space<vmem>>, vector<16x128xbf16>,
      %c0_196 = arith.constant 0 : index
      %c0_197 = arith.constant 0 : index
      %269 = vector.load %arg14[%c0_196, %c0_197] : memref<20x128xbf16, #tpu.memory_space<vmem>>, vector<16x128xbf16>
      %c1_198 = arith.constant 1 : index
      %c0_199 = arith.constant 0 : index
      %270 = vector.load %arg14[%c1_198, %c0_199] : memref<20x128xbf16, #tpu.memory_space<vmem>>, vector<16x128xbf16>
      %c2_200 = arith.constant 2 : index
      %c0_201 = arith.constant 0 : index
      %271 = vector.load %arg14[%c2_200, %c0_201] : memref<20x128xbf16, #tpu.memory_space<vmem>>, vector<16x128xbf16>
      %c3_202 = arith.constant 3 : index
      %c0_203 = arith.constant 0 : index
      %272 = vector.load %arg14[%c3_202, %c0_203] : memref<20x128xbf16, #tpu.memory_space<vmem>>, vector<16x128xbf16>
      %c4_204 = arith.constant 4 : index
      %c0_205 = arith.constant 0 : index
      %273 = vector.load %arg14[%c4_204, %c0_205] : memref<20x128xbf16, #tpu.memory_space<vmem>>, vector<16x128xbf16>
      %274 = tpu.concatenate %269, %270, %271, %272, %273 in 1 : vector<16x128xbf16>, vector<16x128xbf16>, vector<16x128xbf16>, vector<16x128xbf16>, vector<16x128xbf16> -> vector<16x640xbf16>
      %275 = arith.index_cast %266 : i32 to index
      %c0_206 = arith.constant 0 : index
      %c0_207 = arith.constant 0 : index
      %276 = vector.load %arg6[%275, %c0_206, %c0_207] : memref<16x640x256xbf16, #tpu.memory_space<vmem>>, vector<1x640x256xbf16>
      %277 = vector.shape_cast %276 : vector<1x640x256xbf16> to vector<640x256xbf16>
      %cst_208 = arith.constant dense<0.000000e+00> : vector<16x256xf32>
      %278 = tpu.matmul %274, %277, %cst_208 {dimension_numbers = #tpu.dot_dimension_numbers<[1], [0], [0], [1], [0, 0, 1, 1], [], []>} : vector<16x640xbf16>, vector<640x256xbf16>, vector<16x256xf32> -> vector<16x256xf32>
      %279 = arith.index_cast %266 : i32 to index
      %c0_209 = arith.constant 0 : index
      %c0_210 = arith.constant 0 : index
      %280 = vector.load %arg7[%279, %c0_209, %c0_210] : memref<16x1x256xf32, #tpu.memory_space<vmem>>, vector<1x1x256xf32>
      %281 = vector.shape_cast %280 : vector<1x1x256xf32> to vector<1x256xf32>
      %282 = vector.broadcast %281 : vector<1x256xf32> to vector<16x256xf32>
      %283 = arith.addf %278, %282 : vector<16x256xf32>
      %284 = vector.extract_strided_slice %283 {offsets = [0, 0], sizes = [16, 128], strides = [1, 1]} : vector<16x256xf32> to vector<16x128xf32>
      %285 = math.tanh %284 : vector<16x128xf32>
      %286 = vector.extract_strided_slice %283 {offsets = [0, 128], sizes = [16, 128], strides = [1, 1]} : vector<16x256xf32> to vector<16x128xf32>
      %cst_211 = arith.constant 0.000000e+00 : f32
      %287 = vector.broadcast %cst_211 : f32 to vector<16x128xf32>
      %288 = arith.subf %287, %286 : vector<16x128xf32>
      %289 = math.exp %288 : vector<16x128xf32>
      %cst_212 = arith.constant 1.000000e+00 : f32
      %290 = vector.broadcast %cst_212 : f32 to vector<16x128xf32>
      %291 = arith.addf %290, %289 : vector<16x128xf32>
      %292 = tpu.reciprocal %291 {approx = true} : vector<16x128xf32> -> vector<16x128xf32>
      %293 = arith.mulf %285, %292 : vector<16x128xf32>
      %294 = arith.truncf %293 : vector<16x128xf32> to vector<16x128xbf16>
      %295 = arith.index_cast %266 : i32 to index
      %c0_213 = arith.constant 0 : index
      %c0_214 = arith.constant 0 : index
      %296 = vector.load %arg8[%295, %c0_213, %c0_214] : memref<16x128x256xbf16, #tpu.memory_space<vmem>>, vector<1x128x256xbf16>
      %297 = vector.shape_cast %296 : vector<1x128x256xbf16> to vector<128x256xbf16>
      %cst_215 = arith.constant dense<0.000000e+00> : vector<16x256xf32>
      %298 = tpu.matmul %294, %297, %cst_215 {dimension_numbers = #tpu.dot_dimension_numbers<[1], [0], [0], [1], [0, 0, 1, 1], [], []>} : vector<16x128xbf16>, vector<128x256xbf16>, vector<16x256xf32> -> vector<16x256xf32>
      %299 = arith.index_cast %266 : i32 to index
      %c0_216 = arith.constant 0 : index
      %c0_217 = arith.constant 0 : index
      %300 = vector.load %arg9[%299, %c0_216, %c0_217] : memref<16x1x256xf32, #tpu.memory_space<vmem>>, vector<1x1x256xf32>
      %301 = vector.shape_cast %300 : vector<1x1x256xf32> to vector<1x256xf32>
      %302 = vector.broadcast %301 : vector<1x256xf32> to vector<16x256xf32>
      %303 = arith.addf %298, %302 : vector<16x256xf32>
      %304 = vector.extract_strided_slice %303 {offsets = [0, 0], sizes = [16, 128], strides = [1, 1]} : vector<16x256xf32> to vector<16x128xf32>
      %305 = arith.addf %arg16, %304 : vector<16x128xf32>
      %306 = vector.broadcast %5 : vector<16x1xf32> to vector<16x128xf32>
      %307 = arith.mulf %305, %306 : vector<16x128xf32>
      %308 = vector.extract_strided_slice %303 {offsets = [0, 128], sizes = [16, 128], strides = [1, 1]} : vector<16x256xf32> to vector<16x128xf32>
      %309 = arith.addf %arg17, %308 : vector<16x128xf32>
      scf.yield %307, %309 : vector<16x128xf32>, vector<16x128xf32>
    }
    %c3_i32_153 = arith.constant 3 : i32
    %210 = arith.truncf %209#0 : vector<16x128xf32> to vector<16x128xbf16>
    %c2_154 = arith.constant 2 : index
    %c0_155 = arith.constant 0 : index
    %211 = vector.load %arg14[%c2_154, %c0_155] : memref<20x128xbf16, #tpu.memory_space<vmem>>, vector<16x128xbf16>
    tpu.vector_store %arg14[%c2_154, %c0_155], %210 {strides = array<i32>} : memref<20x128xbf16, #tpu.memory_space<vmem>>, vector<16x128xbf16>,
    %c0_156 = arith.constant 0 : index
    %c0_157 = arith.constant 0 : index
    %212 = vector.load %arg14[%c0_156, %c0_157] : memref<20x128xbf16, #tpu.memory_space<vmem>>, vector<16x128xbf16>
    %c1_158 = arith.constant 1 : index
    %c0_159 = arith.constant 0 : index
    %213 = vector.load %arg14[%c1_158, %c0_159] : memref<20x128xbf16, #tpu.memory_space<vmem>>, vector<16x128xbf16>
    %c2_160 = arith.constant 2 : index
    %c0_161 = arith.constant 0 : index
    %214 = vector.load %arg14[%c2_160, %c0_161] : memref<20x128xbf16, #tpu.memory_space<vmem>>, vector<16x128xbf16>
    %c3_162 = arith.constant 3 : index
    %c0_163 = arith.constant 0 : index
    %215 = vector.load %arg14[%c3_162, %c0_163] : memref<20x128xbf16, #tpu.memory_space<vmem>>, vector<16x128xbf16>
    %c4_164 = arith.constant 4 : index
    %c0_165 = arith.constant 0 : index
    %216 = vector.load %arg14[%c4_164, %c0_165] : memref<20x128xbf16, #tpu.memory_space<vmem>>, vector<16x128xbf16>
    %217 = tpu.concatenate %212, %213, %214, %215, %216 in 1 : vector<16x128xbf16>, vector<16x128xbf16>, vector<16x128xbf16>, vector<16x128xbf16>, vector<16x128xbf16> -> vector<16x640xbf16>
    %c15 = arith.constant 15 : index
    %c0_166 = arith.constant 0 : index
    %c0_167 = arith.constant 0 : index
    %218 = vector.load %arg6[%c15, %c0_166, %c0_167] : memref<16x640x256xbf16, #tpu.memory_space<vmem>>, vector<1x640x256xbf16>
    %219 = vector.shape_cast %218 : vector<1x640x256xbf16> to vector<640x256xbf16>
    %cst_168 = arith.constant dense<0.000000e+00> : vector<16x256xf32>
    %220 = tpu.matmul %217, %219, %cst_168 {dimension_numbers = #tpu.dot_dimension_numbers<[1], [0], [0], [1], [0, 0, 1, 1], [], []>} : vector<16x640xbf16>, vector<640x256xbf16>, vector<16x256xf32> -> vector<16x256xf32>
    %c15_169 = arith.constant 15 : index
    %c0_170 = arith.constant 0 : index
    %c0_171 = arith.constant 0 : index
    %221 = vector.load %arg7[%c15_169, %c0_170, %c0_171] : memref<16x1x256xf32, #tpu.memory_space<vmem>>, vector<1x1x256xf32>
    %222 = vector.shape_cast %221 : vector<1x1x256xf32> to vector<1x256xf32>
    %223 = vector.broadcast %222 : vector<1x256xf32> to vector<16x256xf32>
    %224 = arith.addf %220, %223 : vector<16x256xf32>
    %225 = vector.extract_strided_slice %224 {offsets = [0, 0], sizes = [16, 128], strides = [1, 1]} : vector<16x256xf32> to vector<16x128xf32>
    %226 = math.tanh %225 : vector<16x128xf32>
    %227 = vector.extract_strided_slice %224 {offsets = [0, 128], sizes = [16, 128], strides = [1, 1]} : vector<16x256xf32> to vector<16x128xf32>
    %cst_172 = arith.constant 0.000000e+00 : f32
    %228 = vector.broadcast %cst_172 : f32 to vector<16x128xf32>
    %229 = arith.subf %228, %227 : vector<16x128xf32>
    %230 = math.exp %229 : vector<16x128xf32>
    %cst_173 = arith.constant 1.000000e+00 : f32
    %231 = vector.broadcast %cst_173 : f32 to vector<16x128xf32>
    %232 = arith.addf %231, %230 : vector<16x128xf32>
    %233 = tpu.reciprocal %232 {approx = true} : vector<16x128xf32> -> vector<16x128xf32>
    %234 = arith.mulf %226, %233 : vector<16x128xf32>
    %235 = arith.truncf %234 : vector<16x128xf32> to vector<16x128xbf16>
    %c15_174 = arith.constant 15 : index
    %c0_175 = arith.constant 0 : index
    %c0_176 = arith.constant 0 : index
    %236 = vector.load %arg8[%c15_174, %c0_175, %c0_176] : memref<16x128x256xbf16, #tpu.memory_space<vmem>>, vector<1x128x256xbf16>
    %237 = vector.shape_cast %236 : vector<1x128x256xbf16> to vector<128x256xbf16>
    %cst_177 = arith.constant dense<0.000000e+00> : vector<16x256xf32>
    %238 = tpu.matmul %235, %237, %cst_177 {dimension_numbers = #tpu.dot_dimension_numbers<[1], [0], [0], [1], [0, 0, 1, 1], [], []>} : vector<16x128xbf16>, vector<128x256xbf16>, vector<16x256xf32> -> vector<16x256xf32>
    %c15_178 = arith.constant 15 : index
    %c0_179 = arith.constant 0 : index
    %c0_180 = arith.constant 0 : index
    %239 = vector.load %arg9[%c15_178, %c0_179, %c0_180] : memref<16x1x256xf32, #tpu.memory_space<vmem>>, vector<1x1x256xf32>
    %240 = vector.shape_cast %239 : vector<1x1x256xf32> to vector<1x256xf32>
    %241 = vector.broadcast %240 : vector<1x256xf32> to vector<16x256xf32>
    %242 = arith.addf %238, %241 : vector<16x256xf32>
    %243 = vector.extract_strided_slice %242 {offsets = [0, 0], sizes = [16, 128], strides = [1, 1]} : vector<16x256xf32> to vector<16x128xf32>
    %244 = arith.addf %209#1, %243 : vector<16x128xf32>
    %245 = vector.broadcast %5 : vector<16x1xf32> to vector<16x128xf32>
    %246 = arith.mulf %244, %245 : vector<16x128xf32>
    %247 = arith.truncf %246 : vector<16x128xf32> to vector<16x128xbf16>
    %c3_181 = arith.constant 3 : index
    %c0_182 = arith.constant 0 : index
    %c0_183 = arith.constant 0 : index
    %248 = vector.load %arg10[%c3_181, %c0_182, %c0_183] : memref<4x128x128xbf16, #tpu.memory_space<vmem>>, vector<1x128x128xbf16>
    %249 = vector.shape_cast %248 : vector<1x128x128xbf16> to vector<128x128xbf16>
    %cst_184 = arith.constant dense<0.000000e+00> : vector<16x128xf32>
    %250 = tpu.matmul %247, %249, %cst_184 {dimension_numbers = #tpu.dot_dimension_numbers<[1], [0], [0], [1], [0, 0, 1, 1], [], []>} : vector<16x128xbf16>, vector<128x128xbf16>, vector<16x128xf32> -> vector<16x128xf32>
    %c3_185 = arith.constant 3 : index
    %c0_186 = arith.constant 0 : index
    %c0_187 = arith.constant 0 : index
    %251 = vector.load %arg11[%c3_185, %c0_186, %c0_187] : memref<4x1x128xf32, #tpu.memory_space<vmem>>, vector<1x1x128xf32>
    %252 = vector.shape_cast %251 : vector<1x1x128xf32> to vector<1x128xf32>
    %253 = vector.broadcast %252 : vector<1x128xf32> to vector<16x128xf32>
    %254 = arith.addf %250, %253 : vector<16x128xf32>
    %255 = vector.broadcast %5 : vector<16x1xf32> to vector<16x128xf32>
    %256 = arith.mulf %254, %255 : vector<16x128xf32>
    %257 = vector.broadcast %5 : vector<16x1xf32> to vector<16x128xf32>
    %258 = arith.mulf %133, %257 : vector<16x128xf32>
    %259 = arith.addf %256, %258 : vector<16x128xf32>
    %c0_188 = arith.constant 0 : index
    %c0_189 = arith.constant 0 : index
    %c0_190 = arith.constant 0 : index
    %260 = vector.load %arg12[%c0_188, %c0_189, %c0_190] : memref<1x16x128xf32, #tpu.memory_space<vmem>>, vector<1x16x128xf32>
    %261 = vector.shape_cast %260 : vector<1x16x128xf32> to vector<16x128xf32>
    %262 = vector.shape_cast %259 : vector<16x128xf32> to vector<1x16x128xf32>
    tpu.vector_store %arg12[%c0_188, %c0_189, %c0_190], %262 {strides = array<i32>} : memref<1x16x128xf32, #tpu.memory_space<vmem>>, vector<1x16x128xf32>,
    %c0_191 = arith.constant 0 : index
    %c0_192 = arith.constant 0 : index
    %c0_193 = arith.constant 0 : index
    %263 = vector.load %arg13[%c0_191, %c0_192, %c0_193] : memref<1x16x128xf32, #tpu.memory_space<vmem>>, vector<1x16x128xf32>
    %264 = vector.shape_cast %263 : vector<1x16x128xf32> to vector<16x128xf32>
    %265 = vector.shape_cast %196 : vector<16x128xf32> to vector<1x16x128xf32>
    tpu.vector_store %arg13[%c0_191, %c0_192, %c0_193], %265 {strides = array<i32>} : memref<1x16x128xf32, #tpu.memory_space<vmem>>, vector<1x16x128xf32>,
    return
  }
  func.func @transform_0(%arg0: i32) -> (i32, i32, i32) {
    %c0_i32 = arith.constant 0 : i32
    %c0_i32_0 = arith.constant 0 : i32
    %c0_i32_1 = arith.constant 0 : i32
    return %arg0, %c0_i32, %c0_i32_0 : i32, i32, i32
  }
  func.func @transform_1(%arg0: i32) -> (i32, i32, i32) {
    %c0_i32 = arith.constant 0 : i32
    %c0_i32_0 = arith.constant 0 : i32
    %c0_i32_1 = arith.constant 0 : i32
    return %arg0, %c0_i32, %c0_i32_0 : i32, i32, i32
  }
  func.func @transform_2(%arg0: i32) -> (i32, i32, i32) {
    %c0_i32 = arith.constant 0 : i32
    %c0_i32_0 = arith.constant 0 : i32
    %c0_i32_1 = arith.constant 0 : i32
    return %arg0, %c0_i32, %c0_i32_0 : i32, i32, i32
  }
  func.func @transform_3(%arg0: i32) -> (i32, i32, i32) {
    %c0_i32 = arith.constant 0 : i32
    %c0_i32_0 = arith.constant 0 : i32
    %c0_i32_1 = arith.constant 0 : i32
    %c0_i32_2 = arith.constant 0 : i32
    return %c0_i32, %c0_i32_0, %c0_i32_1 : i32, i32, i32
  }
  func.func @transform_4(%arg0: i32) -> (i32, i32, i32) {
    %c0_i32 = arith.constant 0 : i32
    %c0_i32_0 = arith.constant 0 : i32
    %c0_i32_1 = arith.constant 0 : i32
    %c0_i32_2 = arith.constant 0 : i32
    return %c0_i32, %c0_i32_0, %c0_i32_1 : i32, i32, i32
  }
  func.func @transform_5(%arg0: i32) -> (i32, i32, i32) {
    %c0_i32 = arith.constant 0 : i32
    %c0_i32_0 = arith.constant 0 : i32
    %c0_i32_1 = arith.constant 0 : i32
    %c0_i32_2 = arith.constant 0 : i32
    return %c0_i32, %c0_i32_0, %c0_i32_1 : i32, i32, i32
  }
  func.func @transform_6(%arg0: i32) -> (i32, i32, i32) {
    %c0_i32 = arith.constant 0 : i32
    %c0_i32_0 = arith.constant 0 : i32
    %c0_i32_1 = arith.constant 0 : i32
    %c0_i32_2 = arith.constant 0 : i32
    return %c0_i32, %c0_i32_0, %c0_i32_1 : i32, i32, i32
  }
  func.func @transform_7(%arg0: i32) -> (i32, i32, i32) {
    %c0_i32 = arith.constant 0 : i32
    %c0_i32_0 = arith.constant 0 : i32
    %c0_i32_1 = arith.constant 0 : i32
    %c0_i32_2 = arith.constant 0 : i32
    return %c0_i32, %c0_i32_0, %c0_i32_1 : i32, i32, i32
  }
  func.func @transform_8(%arg0: i32) -> (i32, i32, i32) {
    %c0_i32 = arith.constant 0 : i32
    %c0_i32_0 = arith.constant 0 : i32
    %c0_i32_1 = arith.constant 0 : i32
    %c0_i32_2 = arith.constant 0 : i32
    return %c0_i32, %c0_i32_0, %c0_i32_1 : i32, i32, i32
  }
  func.func @transform_9(%arg0: i32) -> (i32, i32, i32) {
    %c0_i32 = arith.constant 0 : i32
    %c0_i32_0 = arith.constant 0 : i32
    %c0_i32_1 = arith.constant 0 : i32
    %c0_i32_2 = arith.constant 0 : i32
    return %c0_i32, %c0_i32_0, %c0_i32_1 : i32, i32, i32
  }
  func.func @transform_10(%arg0: i32) -> (i32, i32, i32) {
    %c0_i32 = arith.constant 0 : i32
    %c0_i32_0 = arith.constant 0 : i32
    %c0_i32_1 = arith.constant 0 : i32
    %c0_i32_2 = arith.constant 0 : i32
    return %c0_i32, %c0_i32_0, %c0_i32_1 : i32, i32, i32
  }
  func.func @transform_11(%arg0: i32) -> (i32, i32, i32) {
    %c0_i32 = arith.constant 0 : i32
    %c0_i32_0 = arith.constant 0 : i32
    %c0_i32_1 = arith.constant 0 : i32
    return %arg0, %c0_i32, %c0_i32_0 : i32, i32, i32
  }
  func.func @transform_12(%arg0: i32) -> (i32, i32, i32) {
    %c0_i32 = arith.constant 0 : i32
    %c0_i32_0 = arith.constant 0 : i32
    %c0_i32_1 = arith.constant 0 : i32
    return %arg0, %c0_i32, %c0_i32_0 : i32, i32, i32
  }
}

</mosaic_0001>

<bundles_post_ra>
// kernel: tpu_custom_call.1
= control target key start
LH: loop header
LB: loop body
LE: loop exit
PB: predicated region body
PF: predicated region fallthrough
CT: control target
= control target key end

     0   :  { %s14181_s0 = inlined_call_operand.hbm [shape: f32[2,16,128], index: 0, kind: input, shape index: {}]   ;;  %s14182_s1 = inlined_call_operand.hbm [shape: f32[2,16,128], index: 1, kind: input, shape index: {}]   ;;  %s14183_s2 = inlined_call_operand.vmem [shape: f32[2,16,1], index: 2, kind: input, shape index: {}]   ;;  %s14184_s3 = inlined_call_operand.hbm [shape: bf16[4,128,128], index: 3, kind: input, shape index: {}]   ;;  %s14185_s4 = inlined_call_operand.hbm [shape: f32[4,1,128], index: 4, kind: input, shape index: {}]   ;;  %s14186_s5 = inlined_call_operand.hbm [shape: bf16[16,640,256], index: 5, kind: input, shape index: {}]   ;;  %s14187_s6 = inlined_call_operand.hbm [shape: f32[16,1,256], index: 6, kind: input, shape index: {}]   ;;  %s14188_s7 = inlined_call_operand.hbm [shape: bf16[16,128,256], index: 7, kind: input, shape index: {}]   ;;  %s14189_s8 = inlined_call_operand.hbm [shape: f32[16,1,256], index: 8, kind: input, shape index: {}]   ;;  %s14190_s9 = inlined_call_operand.hbm [shape: bf16[4,128,128], index: 9, kind: input, shape index: {}]   ;;  %s14191_s10 = inlined_call_operand.hbm [shape: f32[4,1,128], index: 10, kind: input, shape index: {}]   ;;  %s14192_s11 = inlined_call_operand.hbm [shape: f32[2,16,128], index: 11, kind: output, shape index: {0}]   ;;  %s14193_s12 = inlined_call_operand.hbm [shape: f32[2,16,128], index: 12, kind: output, shape index: {1}]  }
   0x1   :  { %14205 = sst [smem:[#allocation32_spill]] %s14181_s0 }
   0x2   :  { %14206 = sst [smem:[#allocation33_spill]] %s14184_s3 }
   0x3   :  { %14207 = sst [smem:[#allocation34_spill]] %s14185_s4 }
   0x4   :  { %14208 = sst [smem:[#allocation35_spill]] %s14186_s5 }
   0x5   :  { %14209 = sst [smem:[#allocation36_spill]] %s14187_s6 }
   0x6   :  { %14210 = sst [smem:[#allocation37_spill]] %s14188_s7 }
   0x7   :  { %14211 = sst [smem:[#allocation38_spill]] %s14189_s8 }
   0x8   :  { %14212 = sst [smem:[#allocation39_spill]] %s14190_s9 }
   0x9   :  { %14213 = sst [smem:[#allocation40_spill]] %s14191_s10 }
   0xa   :  { %18 = vsyncpa [#allocation4], 0 }
   0xb   :  { %20 = vsyncpa [#allocation4 + $0x1], 0 }
   0xc   :  { %21 = vsyncpa [#allocation7], 0 }
   0xd   :  { %23 = vsyncpa [#allocation7 + $0x1], 0 }
   0xe   :  { %24 = vsyncpa [#allocation10], 0 }
   0xf   :  { %25 = vsyncpa [#allocation13], 0 }
  0x10   :  { %26 = vsyncpa [#allocation16], 0 }
  0x11   :  { %27 = vsyncpa [#allocation19], 0 }
  0x12   :  { %28 = vsyncpa [#allocation5], 0 }
  0x13   :  { %30 = vsyncpa [#allocation5 + $0x1], 0 }
  0x14   :  { %31 = vsyncpa [#allocation22], 0 }
  0x15   :  { %33 = vsyncpa [#allocation22 + $0x1], 0  ;;  %s12814_s21 = smov 0   ;;  %s12816_s22 = smov 0  }
  0x16   :  { %s12818_s23 = smov 0   ;;  %s12820_s24 = smov 0  }
  0x17 LB: > { %s12720_s25 = smov [#allocation8]   ;;  %s12835_s27 = sadd.s32 4294967295, %s12638_s24   ;;  %s12638_s24 = sphi %s12820_s24, %s14281_s24   ;;  %s12634_s23 = sphi %s12818_s23, %s14280_s23   ;;  %s12630_s22 = sphi %s12816_s22, %s14279_s22   ;;  %s12626_s21 = sphi %s12814_s21, %s14278_s21  }
  0x18   : > { %s354_s26 = sshll.u32 %s12720_s25, 4  ;;  %p9012_p0 = scmp.ge.s32.totalorder %s12638_s24, 1  ;;  %s355_s26 = int_to_ptr.vmem [resolvable:$true] %s354_s26 }
  0x19   : > { %p14198_p1 = scmp.eq.s32.totalorder %s12835_s27, 0  ;;  %p342_p2 = scmp.lt.s32.totalorder %s12638_s24, 3 }
  0x1a   : > { %s12721_s29 = smov [#allocation9]   ;;  %s12722_s14 = smov [#allocation12]  }
  0x1b   : > { %p12840_p3 = pnand %p9012_p0, %p342_p2  ;;  %s367_s30 = sshll.u32 %s12721_s29, 4  ;;  %s12853_s30 = int_to_ptr.vmem [resolvable:$true] %s367_s30 }
  0x1c   : > { %s12855_s15 = sshll.u32 %s12722_s14, 4  ;;  %s12187_s17 = scalar_lea.vmem %s355_s26, 4096  ;;  %s394_s15 = int_to_ptr.vmem [resolvable:$true] %s12855_s15 }
  0x1d   : > { %s14214_s28 = scalar_select %p12840_p3, 1, 0 }
  0x1e   : > { %p10549_p5 = pneg %p12840_p3  ;;  %p12188_p8 = scmp.ne.s32.totalorder %s355_s26, %s12187_s17 }
  0x1f   : > { %p12195_p11 = scmp.lt.s32.totalorder %s355_s26, %s355_s26  ;;  %p12196_p12 = scmp.lt.s32.totalorder %s12187_s17, %s12187_s17 }
  0x20   : > { %p12849_p6 = pnand %p10549_p5, %p14198_p1 }
  0x21   : > { %p12197_p13 = por %p12196_p12, %p12195_p11 }
  0x22   : > { %p12859_p7 = pneg %p12849_p6 }
  0x24   : > { %p12190_p9 = pnand %p12188_p8, %p12859_p7 }
  0x26   : > { %p12191_p10 = pneg %p12190_p9 }
  0x28   : > { %p12198_p0 = pnand %p12197_p13, %p12191_p10 }
  0x2a   : > { %12201 = shalt.err (!%p12198_p0)
}
  0x2b   : > { %s14194_s18 = smov 64   ;;  %s14195_s19 = smov 4  }
  0x2c   : > { %s14217_s3 = sld [smem:[#allocation33_spill]]  ;;  %s12213_s29 = scalar_lea.vmem %s12853_s30, 64 }
  0x2d   : > { %p12214_p2 = scmp.ne.s32.totalorder %s12853_s30, %s12213_s29  ;;  %p12221_p9 = scmp.lt.s32.totalorder %s12853_s30, %s12853_s30 }
  0x2e   : > { %p12222_p10 = scmp.lt.s32.totalorder %s12213_s29, %s12213_s29 }
  0x2f   : > { %p12216_p5 = pnand %p12214_p2, %p12859_p7 }
  0x30   : > { %p12223_p11 = por %p12222_p10, %p12221_p9 }
  0x31   : > { %p12217_p8 = pneg %p12216_p5 }
  0x32   : > { %10552 = dma.hbm_to_vmem [thread:$0]  (!%p12849_p6), %s14217_s3, 4096, %s355_s26, [#allocation7], %s14194_s18, %s14194_s18, %s14195_s19  }
  0x33   : > { %p12224_p12 = pnand %p12223_p11, %p12217_p8 }
  0x35   : > { %12227 = shalt.err (!%p12224_p12)
}
  0x36   : > { %s14196_s14 = smov 16   ;;  %s14197_s17 = smov 1  }
  0x37   : > { %s14218_s4 = sld [smem:[#allocation34_spill]]  ;;  %s12239_s25 = scalar_lea.vmem %s394_s15, 512 }
  0x38   : > { %p12240_p13 = scmp.ne.s32.totalorder %s394_s15, %s12239_s25  ;;  %p12247_p5 = scmp.lt.s32.totalorder %s394_s15, %s394_s15 }
  0x39   : > { %p12248_p8 = scmp.lt.s32.totalorder %s12239_s25, %s12239_s25 }
  0x3a   : > { %p12242_p0 = pnand %p12240_p13, %p12859_p7 }
  0x3b   : > { %p12249_p9 = por %p12248_p8, %p12247_p5 }
  0x3c   : > { %p12243_p2 = pneg %p12242_p0 }
  0x3d   : > { %10555 = dma.hbm_to_vmem [thread:$0]  (!%p12849_p6), %s14218_s4, 64, %s12853_s30, [#allocation10], %s14196_s14, %s14196_s14, %s14197_s17  }
  0x3e   : > { %p12250_p10 = pnand %p12249_p9, %p12243_p2 }
  0x40   : > { %12253 = shalt.err (!%p12250_p10)
}
  0x41   : > { %s12727_s29 = smov 32   ;;  %s12728_s18 = smov 2  }
  0x42   : > { %s14219_s6 = sld [smem:[#allocation36_spill]]  ;;  %s12729_s30 = smov [#allocation15]  }
  0x43   : > { %s419_s26 = sshll.u32 %s12729_s30, 4  ;;  %s12730_s20 = smov [#allocation11]   ;;  %s420_s26 = int_to_ptr.vmem [resolvable:$true] %s419_s26 }
  0x44   : > { %s380_s14 = sshll.u32 %s12730_s20, 4  ;;  %s12265_s17 = scalar_lea.vmem %s420_s26, 512  ;;  %s381_s14 = int_to_ptr.vmem [resolvable:$true] %s380_s14 }
  0x45   : > { %p12266_p11 = scmp.ne.s32.totalorder %s420_s26, %s12265_s17  ;;  %p12273_p0 = scmp.lt.s32.totalorder %s420_s26, %s420_s26 }
  0x46   : > { %p12274_p2 = scmp.lt.s32.totalorder %s12265_s17, %s12265_s17 }
  0x47   : > { %p12268_p12 = pnand %p12266_p11, %p12859_p7 }
  0x48   : > { %10561 = dma.hbm_to_vmem [thread:$0]  (!%p12849_p6), %s14219_s6, 512, %s394_s15, [#allocation13], %s12727_s29, %s12727_s29, %s12728_s18  }
  0x49   : > { %p12269_p13 = pneg %p12268_p12  ;;  %p12275_p5 = por %p12274_p2, %p12273_p0 }
  0x4b   : > { %p12276_p8 = pnand %p12275_p5, %p12269_p13 }
  0x4d   : > { %12279 = shalt.err (!%p12276_p8)
}
  0x4e   : > { %s14220_s8 = sld [smem:[#allocation38_spill]]  ;;  %s12291_s15 = scalar_lea.vmem %s381_s14, 163840 }
  0x4f   : > { %p12292_p9 = scmp.ne.s32.totalorder %s381_s14, %s12291_s15  ;;  %p12299_p11 = scmp.lt.s32.totalorder %s381_s14, %s381_s14 }
  0x50   : > { %p12300_p12 = scmp.lt.s32.totalorder %s12291_s15, %s12291_s15 }
  0x51   : > { %p12294_p10 = pnand %p12292_p9, %p12859_p7 }
  0x52   : > { %p12301_p1 = por %p12300_p12, %p12299_p11 }
  0x53   : > { %p12295_p4 = pneg %p12294_p10 }
  0x54   : > { %10567 = dma.hbm_to_vmem [thread:$0]  (!%p12849_p6), %s14220_s8, 512, %s420_s26, [#allocation16], %s12727_s29, %s12727_s29, %s12728_s18  }
  0x55   : > { %p12302_p3 = pnand %p12301_p1, %p12295_p4 }
  0x57   : > { %12305 = shalt.err (!%p12302_p3)
}
  0x58   : > { %s14200_s19 = smov 128   ;;  %s14202_s17 = smov 8  }
  0x59   : > { %s14221_s5 = sld [smem:[#allocation35_spill]]  ;;  %s12733_s30 = smov [#allocation14]  }
  0x5a   : > { %s406_s26 = sshll.u32 %s12733_s30, 4  ;;  %s12734_s20 = smov [#allocation17]   ;;  %s407_s26 = int_to_ptr.vmem [resolvable:$true] %s406_s26 }
  0x5b   : > { %s432_s25 = sshll.u32 %s12734_s20, 4  ;;  %s12317_s3 = scalar_lea.vmem %s407_s26, 32768  ;;  %s433_s25 = int_to_ptr.vmem [resolvable:$true] %s432_s25 }
  0x5c   : > { %p12318_p1 = scmp.ne.s32.totalorder %s407_s26, %s12317_s3  ;;  %p12325_p13 = scmp.lt.s32.totalorder %s407_s26, %s407_s26 }
  0x5d   : > { %p12326_p0 = scmp.lt.s32.totalorder %s12317_s3, %s12317_s3 }
  0x5e   : > { %p12320_p3 = pnand %p12318_p1, %p12859_p7 }
  0x5f   : > { %10558 = dma.hbm_to_vmem [thread:$0]  (!%p12849_p6), %s14221_s5, 163840, %s381_s14, [#allocation10], %s14200_s19, %s14200_s19, %s14202_s17  }
  0x60   : > { %p12321_p4 = pneg %p12320_p3  ;;  %p12327_p2 = por %p12326_p0, %p12325_p13 }
  0x62   : > { %p12328_p5 = pnand %p12327_p2, %p12321_p4 }
  0x64   : > { %12331 = shalt.err (!%p12328_p5)
}
  0x65   : > { %s14222_s7 = sld [smem:[#allocation37_spill]]  ;;  %s12343_s18 = scalar_lea.vmem %s433_s25, 4096 }
  0x66   : > { %p12344_p8 = scmp.ne.s32.totalorder %s433_s25, %s12343_s18  ;;  %p12351_p11 = scmp.lt.s32.totalorder %s433_s25, %s433_s25 }
  0x67   : > { %p12352_p12 = scmp.lt.s32.totalorder %s12343_s18, %s12343_s18 }
  0x68   : > { %p12346_p9 = pnand %p12344_p8, %p12859_p7 }
  0x69   : > { %p12353_p1 = por %p12352_p12, %p12351_p11 }
  0x6a   : > { %p12347_p10 = pneg %p12346_p9 }
  0x6b   : > { %10564 = dma.hbm_to_vmem [thread:$0]  (!%p12849_p6), %s14222_s7, 32768, %s407_s26, [#allocation13], %s14200_s19, %s14200_s19, %s14202_s17  }
  0x6c   : > { %p12354_p3 = pnand %p12353_p1, %p12347_p10 }
  0x6e   : > { %12357 = shalt.err (!%p12354_p3)
}
  0x6f   : > { %s14223_s29 = smov 4   ;;  %s14224_s30 = smov 64  }
  0x70   : > { %s14225_s9 = sld [smem:[#allocation39_spill]]  ;;  %s12735_s26 = smov [#allocation18]  }
  0x71   : > { %s445_s14 = sshll.u32 %s12735_s26, 4  ;;  %s446_s14 = int_to_ptr.vmem [resolvable:$true] %s445_s14 }
  0x72   : > { %s12369_s15 = scalar_lea.vmem %s446_s14, 64  ;;  %p12377_p2 = scmp.lt.s32.totalorder %s446_s14, %s446_s14 }
  0x73   : > { %p12370_p4 = scmp.ne.s32.totalorder %s446_s14, %s12369_s15  ;;  %p12378_p5 = scmp.lt.s32.totalorder %s12369_s15, %s12369_s15 }
  0x75   : > { %p12372_p13 = pnand %p12370_p4, %p12859_p7  ;;  %p12379_p8 = por %p12378_p5, %p12377_p2 }
  0x76   : > { %10570 = dma.hbm_to_vmem [thread:$0]  (!%p12849_p6), %s14225_s9, 4096, %s433_s25, [#allocation16], %s14224_s30, %s14224_s30, %s14223_s29  }
  0x77   : > { %p12373_p0 = pneg %p12372_p13 }
  0x79   : > { %p12380_p9 = pnand %p12379_p8, %p12373_p0 }
  0x7b   : > { %12383 = shalt.err (!%p12380_p9)
}
  0x7c   : > { %s14226_s18 = smov 1   ;;  %s14227_s19 = smov 16  }
  0x7d   : > { %s14228_s10 = sld [smem:[#allocation40_spill]]  ;;  %s9011_s13 = sadd.s32 4294967294, %s12638_s24  }
  0x7e   : > { %s12945_s16 = sadd.s32 1, %s12638_s24   ;;  %s46_s30 = sadd.s32 1, %s12634_s23 }
  0x7f   : > { %s43_s29 = ssub.s32 %s12638_s24, %s12945_s16  ;;  %p53_p10 = scmp.ne.s32.totalorder %s12634_s23, %s12630_s22 }
  0x80   : > { %p44_p7 = scmp.eq.s32.totalorder %s43_s29, 0  ;;  %p54_p11 = scmp.eq.s32.totalorder %s12638_s24, 0 }
  0x81   : > { %p59_p12 = scmp.ne.s32.totalorder %s12630_s22, %s12626_s21  ;;  %p14230_p3 = scmp.eq.s32.totalorder %s12835_s27, 0 }
  0x82   : > { %s12956_s3 = scalar_select %p44_p7, %s12634_s23, %s46_s30  }
  0x83   : > { %10573 = dma.hbm_to_vmem [thread:$0]  (!%p12849_p6), %s14228_s10, 64, %s446_s14, [#allocation19], %s14227_s19, %s14227_s19, %s14226_s18  }
  0x84   : > { %p12958_p1 = por %p54_p11, %p53_p10  ;;  %p12964_p6 = por %p14230_p3, %p59_p12 }
  0x85   : > { %p303_p4 = scmp.eq.s32.totalorder %s12835_s27, 1  ;;  %p309_p13 = scmp.eq.s32.totalorder %s9011_s13, 1 }
  0x86   : > { %p10596_p0 = scmp.lt.s32.totalorder %s12638_s24, 2  ;;  %s459_s14 = sand.u32 1, %s12634_s23  }
  0x87   : > { %p12971_p2 = por %p303_p4, %p53_p10  ;;  %p12975_p5 = por %p309_p13, %p59_p12 }
  0x88   : > { %s9022_s20 = sshll.u32 %s459_s14, 4  ;;  %s10254_s25 = sshll.u32 %s12638_s24, 8 }
  0x89   : > { %s14232_s15 = scalar_select %p12971_p2, 1, 0 }
  0x8a   : > { %s14233_s18 = scalar_select %p12975_p5, 1, 0 }
  0x8b   : > { %s14234_s0 = sld [smem:[#allocation32_spill]]  ;;  %s463_s13 = scalar_lea.vmem [#allocation3], %s9022_s20 }
  0x8c   : > { %s470_s4 = sshll.u32 %s463_s13, 4  ;;  %p12989_p8 = pnand %p10596_p0, %p12958_p1  ;;  %s12985_s4 = int_to_ptr.vmem [resolvable:$true] %s470_s4 }
  0x8d   : > { %s12996_s29 = scalar_lea.hbm %s14182_s1, %s10254_s25  ;;  %s484_s30 = scalar_lea.vmem [#allocation6], %s9022_s20 }
  0x8e   : > { %s12998_s8 = sshll.u32 %s484_s30, 4  ;;  %s13000_s9 = scalar_lea.sflag [#allocation4], %s459_s14  ;;  %s13031_s8 = int_to_ptr.vmem [resolvable:$true] %s12998_s8 }
  0x8f   : > { %p12386_p7 = pneg %p12989_p8 }
  0x91   : > { %s12983_s17 = scalar_lea.hbm %s14234_s0, %s10254_s25  ;;  %s12389_s6 = scalar_lea.hbm %s14234_s0, 512 }
  0x92   : > { %s12384_s13 = scalar_lea.hbm %s12983_s17, 256  ;;  %p12390_p12 = scmp.lt.s32.totalorder %s12983_s17, %s14234_s0 }
  0x93   : > { %p12385_p9 = scmp.ne.s32.totalorder %s12983_s17, %s12384_s13  ;;  %p12391_p1 = scmp.lt.s32.totalorder %s12389_s6, %s12384_s13 }
  0x95   : > { %p12387_p10 = pnand %p12386_p7, %p12385_p9  ;;  %p12392_p3 = por %p12391_p1, %p12390_p12 }
  0x97   : > { %p12388_p11 = pneg %p12387_p10 }
  0x99   : > { %p12393_p4 = pnand %p12392_p3, %p12388_p11 }
  0x9b   : > { %12396 = shalt.err (!%p12393_p4)
}
  0x9c   : > { %s12397_s14 = scalar_lea.vmem %s12985_s4, 256  ;;  %s12736_s10 = smov [#allocation3]  }
  0x9d   : > { %p12398_p13 = scmp.ne.s32.totalorder %s12985_s4, %s12397_s14  ;;  %s12402_s20 = sshll.u32 %s12736_s10, 4  ;;  %s12403_s20 = int_to_ptr.vmem [resolvable:$false] %s12402_s20 }
  0x9e   : > { %s12404_s30 = scalar_lea.vmem %s12403_s20, 512  ;;  %p12405_p10 = scmp.lt.s32.totalorder %s12985_s4, %s12403_s20 }
  0x9f   : > { %p12400_p0 = pnand %p12398_p13, %p12386_p7  ;;  %p12406_p5 = scmp.lt.s32.totalorder %s12404_s30, %s12397_s14 }
  0xa1   : > { %p12401_p9 = pneg %p12400_p0  ;;  %p12407_p2 = por %p12406_p5, %p12405_p10 }
  0xa3   : > { %p12408_p12 = pnand %p12407_p2, %p12401_p9 }
  0xa5   : > { %12411 = shalt.err (!%p12408_p12)
}
  0xa6   : > { %s14236_s13 = smov 8   ;;  %s14237_s26 = smov 128  }
  0xa7   : > { %10577 = dma.hbm_to_vmem [thread:$0]  (!%p12989_p8), %s12983_s17, 256, %s12985_s4, %s13000_s9, %s14237_s26, %s14237_s26, %s14236_s13  }
  0xa8   : > { %s480_s6 = sand.u32 1, %s12638_s24   ;;  %s12412_s25 = scalar_lea.hbm %s12996_s29, 256 }
  0xa9   : > { %s481_s7 = scalar_lea.sflag [#allocation7], %s480_s6  ;;  %p12413_p2 = scmp.ne.s32.totalorder %s12996_s29, %s12412_s25 }
  0xaa   : > { %s12417_s20 = scalar_lea.hbm %s14182_s1, 512  ;;  %p12418_p1 = scmp.lt.s32.totalorder %s12996_s29, %s14182_s1 }
  0xab   : > { %p12415_p5 = pnand %p12413_p2, %p12386_p7  ;;  %p12419_p3 = scmp.lt.s32.totalorder %s12417_s20, %s12412_s25 }
  0xad   : > { %p12416_p11 = pneg %p12415_p5  ;;  %p12420_p4 = por %p12419_p3, %p12418_p1 }
  0xaf   : > { %p12421_p13 = pnand %p12420_p4, %p12416_p11 }
  0xb1   : > { %12424 = shalt.err (!%p12421_p13)
}
  0xb2   : > { %s12425_s4 = scalar_lea.vmem %s13031_s8, 256  ;;  %s12737_s9 = smov [#allocation6]  }
  0xb3   : > { %p12426_p0 = scmp.ne.s32.totalorder %s13031_s8, %s12425_s4  ;;  %s12430_s17 = sshll.u32 %s12737_s9, 4  ;;  %s12431_s17 = int_to_ptr.vmem [resolvable:$false] %s12430_s17 }
  0xb4   : > { %s12432_s6 = scalar_lea.vmem %s12431_s17, 512  ;;  %p12433_p12 = scmp.lt.s32.totalorder %s13031_s8, %s12431_s17 }
  0xb5   : > { %p12428_p9 = pnand %p12426_p0, %p12386_p7  ;;  %p12434_p2 = scmp.lt.s32.totalorder %s12432_s6, %s12425_s4 }
  0xb7   : > { %p12429_p10 = pneg %p12428_p9  ;;  %p12435_p5 = por %p12434_p2, %p12433_p12 }
  0xb9   : > { %p12436_p1 = pnand %p12435_p5, %p12429_p10 }
  0xbb   : > { %12439 = shalt.err (!%p12436_p1)
}
  0xbc   : > { %10580 = dma.hbm_to_vmem [thread:$0]  (!%p12989_p8), %s12996_s29, 256, %s13031_s8, %s481_s7, %s14237_s26, %s14237_s26, %s14236_s13  }
  0xbd   : > { %p14238_p7 = scmp.ne.s32.totalorder %s14214_s28, 0 }
  0xbe   : > { %s13062_s0 = sand.u32 (!%p14238_p7), 1, %s12630_s22  }
  0xbf   : > { %511 = sbr.rel (%p14238_p7) target bundleno = 6201 (0x1839), region = 64  ;;  %s13065_s25 = sshll.u32 (!%p14238_p7), %s13062_s0, 4 }
  0xc0   : > { %s514_s14 = scalar_lea.sflag (!%p14238_p7), [#allocation4], %s13062_s0  ;;  %s517_s5 = scalar_lea.vmem (!%p14238_p7), [#allocation3], %s13065_s25 }
  0xc4   : > { %12589 = dma.done.wait (%p12964_p6), %s514_s14, 256  }
  0xc5   : > { %12591 = vsyncadd (%p12964_p6), %s514_s14, 4294967040  ;;  %s522_s8 = sand.u32 1, %s12835_s27   ;;  %s526_s29 = scalar_lea.vmem [#allocation6], %s13065_s25 }
  0xc6   : > { %s523_s28 = scalar_lea.sflag [#allocation7], %s522_s8 }
  0xc7   : > { %12593 = dma.done.wait (%p12964_p6), %s523_s28, 256  }
  0xc8   : > { %12595 = vsyncadd (%p12964_p6), %s523_s28, 4294967040  ;;  %p14239_p8 = scmp.eq.s32.totalorder %s12835_s27, 0 }
  0xca   : > { %12597 = dma.done.wait (%p14239_p8), [#allocation7], 4096   ;;  %p14240_p11 = pmov %p14239_p8 }
  0xcb   : > { %p14241_p3 = pmov %p14239_p8 }
  0xcc   : > { %12599 = vsyncadd (%p14240_p11), [#allocation7], 4294963200 }
  0xcd   : > { %12601 = dma.done.wait (%p14241_p3), [#allocation10], 163904   ;;  %p14242_p4 = pmov %p14241_p3 }
  0xce   : > { %p14243_p13 = pmov %p14241_p3 }
  0xcf   : > { %12603 = vsyncadd (%p14242_p4), [#allocation10], 4294803392 }
  0xd0   : > { %12605 = dma.done.wait (%p14243_p13), [#allocation13], 33280   ;;  %p14244_p0 = pmov %p14241_p3 }
  0xd2   : > { %12607 = vsyncadd (%p14244_p0), [#allocation13], 4294934016  ;;  %p14245_p6 = pmov %p14244_p0 }
  0xd3   : > { %p14246_p9 = pmov %p14244_p0 }
  0xd4   : > { %12609 = dma.done.wait (%p14245_p6), [#allocation16], 4608  }
  0xd5   : > { %12611 = vsyncadd (%p14246_p9), [#allocation16], 4294962688  ;;  %p14247_p10 = pmov %p14244_p0 }
  0xd6   : > { %p14248_p12 = pmov %p14244_p0 }
  0xd7   : > { %12613 = dma.done.wait (%p14247_p10), [#allocation19], 64  }
  0xd8   : > { %12615 = vsyncadd (%p14248_p12), [#allocation19], 4294967232  ;;  %v12738_v0 = vmov 0.0   ;;  %vm12739_vm0 = vmmov 0   ;;  %v12740_v1 = vmov 0   ;;  %p614_p2 = scmp.lt.s32.totalorder %s12835_s27, 1 }
  0xd9   : > { %10349 = vmatprep.subr.bf16.mxu0 %v12738_v0  ;;  %10365 = vmatprep.mubr.msk.bf16.mxu0 %vm12739_vm0, %v12738_v0  ;;  %626 = vst [vmem:[#allocation2] sm:$0xf] %v12740_v1  ;;  %627 = vst [vmem:[#allocation2 + $0x4] sm:$0xf] %v12740_v1  ;;  %v13108_v2 = vld [vmem:[%s526_s29] sm:$0xff]  ;;  %v13110_v3 = vld [vmem:[%s526_s29 + $0x8] sm:$0xff] }
  0xda   : > { %10823 = vset.pattern.permute.xlu0 %v12740_v1  ;;  %628 = vst [vmem:[#allocation2 + $0x8] sm:$0x3] %v12740_v1  ;;  %s615_s19 = scalar_select %p614_p2, %s12835_s27, 1  ;;  %v10824_v4 = vld [vmem:[#allocation8 + $0x38] sm:$0xff]   ;;  %v10825_v5 = vld [vmem:[#allocation8 + $0x30] sm:$0xff]   ;;  %v10826_v6 = vld [vmem:[#allocation8 + $0x28] sm:$0xff]  }
  0xdb   : > { %10350 = vmatpush3.bf16.msra.mxu0 %v10824_v4  ;;  %v10827_v8 = vld [vmem:[#allocation8 + $0x20] sm:$0xff]   ;;  %v10828_v10 = vld [vmem:[#allocation8 + $0x18] sm:$0xff]   ;;  %v10829_v11 = vld [vmem:[#allocation8 + $0x10] sm:$0xff]   ;;  %s13139_s20 = scalar_lea.vmem [#allocation20], %s13065_s25  ;;  %s13142_s30 = scalar_lea.vmem [#allocation21], %s13065_s25  ;;  %v13144_v28 = vmov 0.0  }
  0xdc   : > { %s10256_s13 = sshll.u32 %s615_s19, 4  ;;  %10351 = vmatprep.subr.bf16.mxu0 %v12738_v0  ;;  %v10830_v12 = vld [vmem:[#allocation8 + $0x8] sm:$0xff]   ;;  %v10831_v13 = vld [vmem:[#allocation8] sm:$0xff]   ;;  %v13146_v29 = vmov 0.0   ;;  %s13152_s4 = smov 0  }
  0xdd   : > { %s618_s10 = scalar_lea.vmem %s14183_s2, %s10256_s13  ;;  %v13123_v14 = vld [vmem:[%s517_s5] sm:$0xff]  ;;  %v13127_v15 = vld [vmem:[%s517_s5 + $0x8] sm:$0xff] }
  0xde   : > { %v624_v7 = vld [vmem:[%s618_s10] sm:$0xff]  ;;  %v625_v9 = vld [vmem:[%s618_s10 + $0x8] sm:$0xff]  ;;  %v629_v16 = vpack.c.bf16 %v13127_v15, %v13123_v14 }
  0xdf   : > { %10352 = vmatpush3.bf16.msra.mxu0 %v10825_v5  ;;  %744 = vperm.xlu0 %10823, %v624_v7   ;;  %v9043_v17 = vld [vmem:[#allocation9] ss:$0 sm:$0xff] }
  0xe0   : > { %10353 = vmatprep.subr.bf16.mxu0 %v12738_v0 }
  0xe3   : > { %10354 = vmatpush3.bf16.msra.mxu0 %v10826_v6  ;;  %749 = vperm.xlu0 %10823, %v625_v9  }
  0xe4   : > { %10355 = vmatprep.subr.bf16.mxu0 %v12738_v0 }
  0xe7   : > { %10356 = vmatpush3.bf16.msra.mxu0 %v10827_v8 }
  0xe8   : > { %10357 = vmatprep.subr.bf16.mxu0 %v12738_v0 }
  0xeb   : > { %10358 = vmatpush3.bf16.msra.mxu0 %v10828_v10 }
  0xec   : > { %10359 = vmatprep.subr.bf16.mxu0 %v12738_v0 }
  0xef   : > { %10360 = vmatpush3.bf16.msra.mxu0 %v10829_v11 }
  0xf0   : > { %10361 = vmatprep.subr.bf16.mxu0 %v12738_v0 }
  0xf3   : > { %10362 = vmatpush3.bf16.msra.mxu0 %v10830_v12 }
  0xf4   : > { %10363 = vmatprep.subr.bf16.mxu0 %v12738_v0 }
  0xf7   : > { %10364 = vmatpush3.bf16.msra.mxu0 %v10831_v13 }
  0xfa   : > { %10366 = vmatmul.mubr.bf16.vlgmr.msra.gmra.mxu0 %v629_v16 }
 0x15a   : > { %v13132_v18 = vpop.permute.xlu0 %744 }
 0x15e   : > { %v13135_v25 = vpop.permute.xlu0 %749 }
 0x1ba   : > { %v735_v19 = vpop.f32.mrf.mxu0 }
 0x1bb   : > { %v736_v20 = vadd.f32 %v9043_v17, %v735_v19 }
 0x1bc   : > { %v10367_v21 = vpop.f32.mrf.mxu0 }
 0x1bd   : > { %v752_v22 = vmul.f32 %v13132_v18, %v736_v20  }
 0x1be   : > { %v738_v23 = vpop.f32.mrf.mxu0 }
 0x1bf   : > { %v739_v24 = vadd.f32 %v9043_v17, %v738_v23 }
 0x1c0   : > { %v10368_v26 = vpop.f32.mrf.mxu0 }
 0x1c1   : > { %v753_v27 = vmul.f32 %v13135_v25, %v739_v24  }
 0x1c2 LB: >> { %vm770_vm1 = vcmask 1040384   ;;  %vm771_vm2 = vcmask 1044484   ;;  %s10259_s9 = smul.u32 640, %s12658_s4  ;;  %v10257_v30 = vpack.c.bf16 %v12654_v22, %v12654_v22  ;;  %v10258_v31 = vpack.c.bf16 %v12650_v27, %v12650_v27  ;;  %s10260_s6 = sshll.u32 %s12658_s4, 7  ;;  %s12658_s4 = sphi %s13152_s4, %s759_s4   ;;  %v12654_v22 = vphi %v752_v22, %v14256_v22   ;;  %v12650_v27 = vphi %v753_v27, %v14255_v27   ;;  %v12646_v29 = vphi %v13146_v29, %v14254_v29   ;;  %v12642_v28 = vphi %v13144_v28, %v14253_v28  }
 0x1c3   : >> { %vm13174_vm3 = vmor %vm770_vm1, %vm771_vm2  ;;  %vm799_vm4 = vsmask.f32 7424  ;;  %vm824_vm5 = vsmask.f32 6400  ;;  %vm816_vm6 = vcmask 1046528   ;;  %vm846_vm7 = vcmask 1045504  }
 0x1c4   : >> { %v773_v33 = vrot.slane %v10257_v30, 7  ;;  %v775_v34 = vrot.slane %v10258_v31, 7  ;;  %s13178_s17 = scalar_lea.vmem [#allocation11], %s10259_s9  ;;  %s1494_s25 = scalar_lea.vmem [#allocation14], %s10260_s6 }
 0x1c5   : >> { %v10832_v35 = vld [vmem:[%s13178_s17 + $0x74] ss:$8 sps:$4 sm:$0xff]   ;;  %v10834_v36 = vld [vmem:[%s13178_s17 + $0x70] ss:$8 sps:$4 sm:$0xff]   ;;  %v10838_v41 = vld [vmem:[%s13178_s17 + $0x64] ss:$8 sps:$4 sm:$0xff]  }
 0x1c6   : >> { %v774_v37 = vrot.slane %v773_v33, 4  ;;  %v777_v38 = vrot.slane %v775_v34, 4  ;;  %781 = vst [vmem:[#allocation2] sm:$0xe] %v773_v33  ;;  %1348 = vmatprep.subr.bf16.mxu0 %v10832_v35  ;;  %v10835_v39 = vld [vmem:[%s13178_s17 + $0x174] ss:$8 sps:$4 sm:$0xff]  }
 0x1c7   : >> { %v10837_v40 = vld [vmem:[%s13178_s17 + $0x170] ss:$8 sps:$4 sm:$0xff]   ;;  %1349 = vmatpush1.bf16.msra.mxu0 %v10834_v36  ;;  %v10840_v42 = vld [vmem:[%s13178_s17 + $0x60] ss:$8 sps:$4 sm:$0xff]   ;;  %1391 = vmatprep.subr.bf16.mxu1 %v10835_v39  ;;  %v10841_v44 = vld [vmem:[%s13178_s17 + $0x164] ss:$8 sps:$4 sm:$0xff]  }
 0x1c8   : >> { %v776_v43 = vsel %vm13174_vm3, %v774_v37, %v775_v34  ;;  %783 = vst [vmem:[#allocation2 + $0x8] sm:$0x1] %v777_v38  ;;  %1392 = vmatpush1.bf16.msra.mxu1 %v10837_v40  ;;  %1350 = vmatprep.subr.bf16.mxu0 %v10838_v41  ;;  %v10843_v45 = vld [vmem:[%s13178_s17 + $0x160] ss:$8 sps:$4 sm:$0xff]   ;;  %v10844_v46 = vld [vmem:[%s13178_s17 + $0x54] ss:$8 sps:$4 sm:$0xff]  }
 0x1c9   : >> { %782 = vst [vmem:[#allocation2 + $0x4] sm:$0xf] %v776_v43  ;;  %1393 = vmatprep.subr.bf16.mxu1 %v10841_v44  ;;  %v10846_v47 = vld [vmem:[%s13178_s17 + $0x50] ss:$8 sps:$4 sm:$0xff]   ;;  %v10847_v48 = vld [vmem:[%s13178_s17 + $0x154] ss:$8 sps:$4 sm:$0xff]  }
 0x1ca   : >> { %v10850_v49 = vld [vmem:[%s13178_s17 + $0x44] ss:$8 sps:$4 sm:$0xff]   ;;  %v10849_v50 = vld [vmem:[%s13178_s17 + $0x150] ss:$8 sps:$4 sm:$0xff]   ;;  %v10852_v52 = vld [vmem:[%s13178_s17 + $0x40] ss:$8 sps:$4 sm:$0xff]  }
 0x1cb   : >> { %1351 = vmatpush1.bf16.msra.mxu0 %v10840_v42  ;;  %v10853_v51 = vld [vmem:[%s13178_s17 + $0x144] ss:$8 sps:$4 sm:$0xff]   ;;  %v10856_v53 = vld [vmem:[%s13178_s17 + $0x34] ss:$8 sps:$4 sm:$0xff]   ;;  %v10855_v54 = vld [vmem:[%s13178_s17 + $0x140] ss:$8 sps:$4 sm:$0xff]  }
 0x1cc   : >> { %1352 = vmatprep.subr.bf16.mxu0 %v10844_v46  ;;  %1394 = vmatpush1.bf16.msra.mxu1 %v10843_v45  ;;  %v10859_v55 = vld [vmem:[%s13178_s17 + $0x134] ss:$8 sps:$4 sm:$0xff]   ;;  %v10858_v56 = vld [vmem:[%s13178_s17 + $0x30] ss:$8 sps:$4 sm:$0xff]   ;;  %v10862_v57 = vld [vmem:[%s13178_s17 + $0x24] ss:$8 sps:$4 sm:$0xff]  }
 0x1cd   : >> { %1395 = vmatprep.subr.bf16.mxu1 %v10847_v48  ;;  %v10861_v58 = vld [vmem:[%s13178_s17 + $0x130] ss:$8 sps:$4 sm:$0xff]   ;;  %v10865_v59 = vld [vmem:[%s13178_s17 + $0x124] ss:$8 sps:$4 sm:$0xff]   ;;  %v10864_v60 = vld [vmem:[%s13178_s17 + $0x20] ss:$8 sps:$4 sm:$0xff]  }
 0x1ce   : >> { %v10868_v61 = vld [vmem:[%s13178_s17 + $0x14] ss:$8 sps:$4 sm:$0xff]   ;;  %v10867_v62 = vld [vmem:[%s13178_s17 + $0x120] ss:$8 sps:$4 sm:$0xff]   ;;  %v10870_v4 = vld [vmem:[%s13178_s17 + $0x10] ss:$8 sps:$4 sm:$0xff]  }
 0x1cf   : >> { %1353 = vmatpush1.bf16.msra.mxu0 %v10846_v47  ;;  %v10871_v63 = vld [vmem:[%s13178_s17 + $0x114] ss:$8 sps:$4 sm:$0xff]   ;;  %v10874_v5 = vld [vmem:[%s13178_s17 + $0x4] ss:$8 sps:$4 sm:$0xff]   ;;  %v10873_v6 = vld [vmem:[%s13178_s17 + $0x110] ss:$8 sps:$4 sm:$0xff]  }
 0x1d0   : >> { %1354 = vmatprep.subr.bf16.mxu0 %v10850_v49  ;;  %1396 = vmatpush1.bf16.msra.mxu1 %v10849_v50  ;;  %v10877_v7 = vld [vmem:[%s13178_s17 + $0x104] ss:$8 sps:$4 sm:$0xff]   ;;  %v10876_v8 = vld [vmem:[%s13178_s17] ss:$8 sps:$4 sm:$0xff]   ;;  %v10880_v9 = vld [vmem:[%s13178_s17 + $0xf4] ss:$8 sps:$4 sm:$0xff]  }
 0x1d1   : >> { %1397 = vmatprep.subr.bf16.mxu1 %v10853_v51  ;;  %v10879_v10 = vld [vmem:[%s13178_s17 + $0x100] ss:$8 sps:$4 sm:$0xff]   ;;  %v10883_v11 = vld [vmem:[%s13178_s17 + $0x1f4] ss:$8 sps:$4 sm:$0xff]   ;;  %v10882_v12 = vld [vmem:[%s13178_s17 + $0xf0] ss:$8 sps:$4 sm:$0xff]  }
 0x1d2   : >> { %v10886_v13 = vld [vmem:[%s13178_s17 + $0xe4] ss:$8 sps:$4 sm:$0xff]   ;;  %v10885_v16 = vld [vmem:[%s13178_s17 + $0x1f0] ss:$8 sps:$4 sm:$0xff]   ;;  %v10888_v19 = vld [vmem:[%s13178_s17 + $0xe0] ss:$8 sps:$4 sm:$0xff]  }
 0x1d3   : >> { %1355 = vmatpush1.bf16.msra.mxu0 %v10852_v52  ;;  %v10889_v17 = vld [vmem:[%s13178_s17 + $0x1e4] ss:$8 sps:$4 sm:$0xff]   ;;  %v10892_v20 = vld [vmem:[%s13178_s17 + $0xd4] ss:$8 sps:$4 sm:$0xff]   ;;  %v10891_v21 = vld [vmem:[%s13178_s17 + $0x1e0] ss:$8 sps:$4 sm:$0xff]  }
 0x1d4   : >> { %1356 = vmatprep.subr.bf16.mxu0 %v10856_v53  ;;  %1398 = vmatpush1.bf16.msra.mxu1 %v10855_v54  ;;  %v10895_v23 = vld [vmem:[%s13178_s17 + $0x1d4] ss:$8 sps:$4 sm:$0xff]   ;;  %v10894_v24 = vld [vmem:[%s13178_s17 + $0xd0] ss:$8 sps:$4 sm:$0xff]   ;;  %v10898_v30 = vld [vmem:[%s13178_s17 + $0xc4] ss:$8 sps:$4 sm:$0xff]  }
 0x1d5   : >> { %1399 = vmatprep.subr.bf16.mxu1 %v10859_v55  ;;  %v10897_v26 = vld [vmem:[%s13178_s17 + $0x1d0] ss:$8 sps:$4 sm:$0xff]   ;;  %v10900_v31 = vld [vmem:[%s13178_s17 + $0xc0] ss:$8 sps:$4 sm:$0xff]   ;;  %v10901_v33 = vld [vmem:[%s13178_s17 + $0x1c4] ss:$8 sps:$4 sm:$0xff]  }
 0x1d6   : >> { %v784_v34 = vld [vmem:[#allocation2] sm:$0xf]  ;;  %v13229_v35 = vld [vmem:[#allocation2 + $0x4] sm:$0xf]  ;;  %v10904_v39 = vld [vmem:[%s13178_s17 + $0xb4] ss:$8 sps:$4 sm:$0xff]  }
 0x1d7   : >> { %1357 = vmatpush1.bf16.msra.mxu0 %v10858_v56  ;;  %v13232_v36 = vcombine.low %v784_v34, %v13229_v35  ;;  %v13234_v37 = vld [vmem:[#allocation2 + $0x8] ss:$0 sps:$4 sm:$0x11]   ;;  %v10906_v40 = vld [vmem:[%s13178_s17 + $0xb0] ss:$8 sps:$4 sm:$0xff]   ;;  %s9060_s14 = sshll.u32 %s12658_s4, 1 }
 0x1d8   : >> { %1358 = vmatprep.subr.bf16.mxu0 %v10862_v57  ;;  %1400 = vmatpush1.bf16.msra.mxu1 %v10861_v58  ;;  %v10903_v38 = vld [vmem:[%s13178_s17 + $0x1c0] ss:$8 sps:$4 sm:$0xff]   ;;  %v10907_v41 = vld [vmem:[%s13178_s17 + $0x1b4] ss:$8 sps:$4 sm:$0xff]   ;;  %v808_v44 = vshll.u32 %v13234_v37, 16  ;;  %s935_s5 = scalar_lea.vmem [#allocation12], %s9060_s14 }
 0x1d9   : >> { %1401 = vmatprep.subr.bf16.mxu1 %v10865_v59  ;;  %v801_v42 = vshrl.u32 %v13232_v36, 16  ;;  %v803_v43 = vshll.u32 %v13232_v36, 16  ;;  %v787_v45 = vld [vmem:[#allocation2] sm:$0xe]  ;;  %v10910_v50 = vld [vmem:[%s13178_s17 + $0xa4] ss:$8 sps:$4 sm:$0xff]  }
 0x1da   : >> { %v810_v47 = vrot.slane %v808_v44, 1  ;;  %v9056_v48 = vcombine.low %v787_v45, %v13229_v35  ;;  %v13244_v49 = vld [vmem:[#allocation2 + $0x8] ss:$0 sps:$4 sm:$0x33]   ;;  %v10909_v51 = vld [vmem:[%s13178_s17 + $0x1b0] ss:$8 sps:$4 sm:$0xff]  }
 0x1db   : >> { %1359 = vmatpush1.bf16.msra.mxu0 %v10864_v60  ;;  %v805_v46 = vrot.slane %v803_v43, 1  ;;  %v834_v55 = vshrl.u32 %v13244_v49, 16  ;;  %v10913_v56 = vld [vmem:[%s13178_s17 + $0x1a4] ss:$8 sps:$4 sm:$0xff]   ;;  %v837_v57 = vshll.u32 %v13244_v49, 16  ;;  %s1511_s8 = scalar_lea.vmem [#allocation15], %s9060_s14 }
 0x1dc   : >> { %1360 = vmatprep.subr.bf16.mxu0 %v10868_v61  ;;  %1402 = vmatpush1.bf16.msra.mxu1 %v10867_v62  ;;  %v826_v53 = vshrl.u32 %v9056_v48, 16  ;;  %v829_v54 = vshll.u32 %v9056_v48, 16  ;;  %v10912_v58 = vld [vmem:[%s13178_s17 + $0xa0] ss:$8 sps:$4 sm:$0xff]   ;;  %v10938_v34 = vld [vmem:[%s13178_s17 + $0x250] ss:$8 sps:$4 sm:$0xff]  }
 0x1dd   : >> { %1403 = vmatprep.subr.bf16.mxu1 %v10871_v63  ;;  %v806_v52 = vor.u32 %v805_v46, %v801_v42  ;;  %v836_v62 = vrot.slane %v834_v55, 1  ;;  %v10916_v63 = vld [vmem:[%s13178_s17 + $0x94] ss:$8 sps:$4 sm:$0xff]   ;;  %v789_v43 = vld [vmem:[#allocation2] sm:$0xc]  ;;  %s759_s4 = sadd.s32 1, %s12658_s4  }
 0x1de   : >> { %v828_v60 = vrot.slane %v826_v53, 1  ;;  %v831_v61 = vrot.slane %v829_v54, 2  ;;  %v10952_v42 = vld [vmem:[%s13178_s17 + $0x214] ss:$8 sps:$4 sm:$0xff]   ;;  %v10950_v44 = vld [vmem:[%s13178_s17 + $0x210] ss:$8 sps:$4 sm:$0xff]   ;;  %v9058_v45 = vcombine.low %v789_v43, %v13229_v35 }
 0x1df   : >> { %1361 = vmatpush1.bf16.msra.mxu0 %v10870_v4  ;;  %v811_v59 = vsel %vm799_vm4, %v806_v52, %v810_v47  ;;  %v839_v4 = vrot.slane %v837_v57, 2  ;;  %v10955_v46 = vld [vmem:[%s13178_s17 + $0x204] ss:$8 sps:$4 sm:$0xff]   ;;  %v10953_v47 = vld [vmem:[%s13178_s17 + $0x200] ss:$8 sps:$4 sm:$0xff]   ;;  %p756_p5 = scmp.ge.s32.totalorder %s759_s4, 3  }
 0x1e0   : >> { %1362 = vmatprep.subr.bf16.mxu0 %v10874_v5  ;;  %1404 = vmatpush1.bf16.msra.mxu1 %v10873_v6  ;;  %v10915_v5 = vld [vmem:[%s13178_s17 + $0x1a0] ss:$8 sps:$4 sm:$0xff]   ;;  %v832_v6 = vor.u32 %v831_v61, %v828_v60  ;;  %v10959_v52 = vld [vmem:[%s1494_s25 + $0x74] ss:$8 sps:$4 sm:$0xff]   ;;  %v10957_v53 = vld [vmem:[%s1494_s25 + $0x70] ss:$8 sps:$4 sm:$0xff]  }
 0x1e1   : >> { %1405 = vmatprep.subr.bf16.mxu1 %v10877_v7  ;;  %1380 = vmatprep.mubr.bf16.mxu0 %v811_v59  ;;  %v10919_v7 = vld [vmem:[%s13178_s17 + $0x194] ss:$8 sps:$4 sm:$0xff]   ;;  %v10962_v35 = vld [vmem:[%s1494_s25 + $0x64] ss:$8 sps:$4 sm:$0xff]   ;;  %v10960_v54 = vld [vmem:[%s1494_s25 + $0x60] ss:$8 sps:$4 sm:$0xff]  }
 0x1e2   : >> { %v10965_v55 = vld [vmem:[%s1494_s25 + $0x54] ss:$8 sps:$4 sm:$0xff]   ;;  %v10966_v57 = vld [vmem:[%s1494_s25 + $0x40] ss:$8 sps:$4 sm:$0xff]   ;;  %v10974_v60 = vld [vmem:[%s1494_s25 + $0x24] ss:$8 sps:$4 sm:$0xff]  }
 0x1e3   : >> { %1363 = vmatpush1.bf16.msra.mxu0 %v10876_v8  ;;  %v840_v8 = vor.u32 %v839_v4, %v836_v62  ;;  %v10971_v59 = vld [vmem:[%s1494_s25 + $0x34] ss:$8 sps:$4 sm:$0xff]   ;;  %v10972_v61 = vld [vmem:[%s1494_s25 + $0x20] ss:$8 sps:$4 sm:$0xff]   ;;  %v10980_v4 = vld [vmem:[%s1494_s25 + $0x4] ss:$8 sps:$4 sm:$0xff]  }
 0x1e4   : >> { %1364 = vmatprep.subr.bf16.mxu0 %v10880_v9  ;;  %1406 = vmatpush1.bf16.msra.mxu1 %v10879_v10  ;;  %v10918_v9 = vld [vmem:[%s13178_s17 + $0x90] ss:$8 sps:$4 sm:$0xff]   ;;  %v10922_v10 = vld [vmem:[%s13178_s17 + $0x84] ss:$8 sps:$4 sm:$0xff]   ;;  %v10977_v62 = vld [vmem:[%s1494_s25 + $0x14] ss:$8 sps:$4 sm:$0xff]  }
 0x1e5   : >> { %1407 = vmatprep.subr.bf16.mxu1 %v10883_v11  ;;  %v841_v11 = vsel %vm824_vm5, %v832_v6, %v840_v8  ;;  %v938_v6 = vlaneseq  ;;  %s13398_s28 = smov (%p756_p5), 0  }
 0x1e6   : >> { %1423 = vmatprep.mubr.bf16.mxu1 %v841_v11 }
 0x1e7   : >> { %1365 = vmatpush2.bf16.msra.mxu0 %v10882_v12  ;;  %v10921_v12 = vld [vmem:[%s13178_s17 + $0x190] ss:$8 sps:$4 sm:$0xff]  }
 0x1e8   : >> { %1366 = vmatprep.subr.bf16.mxu0 %v10886_v13  ;;  %1408 = vmatpush2.bf16.msra.mxu1 %v10885_v16  ;;  %v10925_v13 = vld [vmem:[%s13178_s17 + $0x184] ss:$8 sps:$4 sm:$0xff]   ;;  %v10924_v16 = vld [vmem:[%s13178_s17 + $0x80] ss:$8 sps:$4 sm:$0xff]  }
 0x1e9   : >> { %1409 = vmatprep.subr.bf16.mxu1 %v10889_v17  ;;  %v10932_v17 = vld [vmem:[%s13178_s17 + $0x274] ss:$8 sps:$4 sm:$0xff]  }
 0x1eb   : >> { %1367 = vmatpush2.bf16.msra.mxu0 %v10888_v19  ;;  %v10929_v19 = vld [vmem:[%s13178_s17 + $0x180] ss:$8 sps:$4 sm:$0xff]  }
 0x1ec   : >> { %1368 = vmatprep.subr.bf16.mxu0 %v10892_v20  ;;  %1410 = vmatpush2.bf16.msra.mxu1 %v10891_v21  ;;  %v817_v20 = vrot.slane %v9056_v48, 1  ;;  %v818_v21 = vrot.slane %v13234_v37, 1  ;;  %v10943_v37 = vld [vmem:[%s13178_s17 + $0x244] ss:$8 sps:$4 sm:$0xff]   ;;  %v847_v48 = vrot.slane %v9058_v45, 2 }
 0x1ed   : >> { %1411 = vmatprep.subr.bf16.mxu1 %v10895_v23  ;;  %v10930_v23 = vld [vmem:[%s13178_s17 + $0x270] ss:$8 sps:$4 sm:$0xff]  }
 0x1ef   : >> { %1369 = vmatpush2.bf16.msra.mxu0 %v10894_v24  ;;  %v10937_v24 = vld [vmem:[%s13178_s17 + $0x264] ss:$8 sps:$4 sm:$0xff]  }
 0x1f0   : >> { %1370 = vmatprep.subr.bf16.mxu0 %v10898_v30  ;;  %1412 = vmatpush2.bf16.msra.mxu1 %v10897_v26  ;;  %v819_v26 = vsel %vm816_vm6, %v817_v20, %v818_v21  ;;  %v10935_v30 = vld [vmem:[%s13178_s17 + $0x260] ss:$8 sps:$4 sm:$0xff]  }
 0x1f1   : >> { %1413 = vmatprep.subr.bf16.mxu1 %v10901_v33  ;;  %v10940_v33 = vld [vmem:[%s13178_s17 + $0x254] ss:$8 sps:$4 sm:$0xff]  }
 0x1f3   : >> { %1371 = vmatpush2.bf16.msra.mxu0 %v10900_v31  ;;  %v12741_v31 = vmov 0  }
 0x1f4   : >> { %1372 = vmatprep.subr.bf16.mxu0 %v10904_v39  ;;  %1414 = vmatpush2.bf16.msra.mxu1 %v10903_v38  ;;  %v10946_v38 = vld [vmem:[%s13178_s17 + $0x234] ss:$8 sps:$4 sm:$0xff]   ;;  %v10944_v39 = vld [vmem:[%s13178_s17 + $0x230] ss:$8 sps:$4 sm:$0xff]  }
 0x1f5   : >> { %1415 = vmatprep.subr.bf16.mxu1 %v10907_v41  ;;  %v10947_v41 = vld [vmem:[%s13178_s17 + $0x220] ss:$8 sps:$4 sm:$0xff]  }
 0x1f7   : >> { %1373 = vmatpush2.bf16.msra.mxu0 %v10906_v40  ;;  %v10949_v40 = vld [vmem:[%s13178_s17 + $0x224] ss:$8 sps:$4 sm:$0xff]  }
 0x1f8   : >> { %1374 = vmatprep.subr.bf16.mxu0 %v10910_v50  ;;  %1416 = vmatpush2.bf16.msra.mxu1 %v10909_v51  ;;  %v848_v50 = vrot.slane %v13244_v49, 2  ;;  %v10968_v49 = vld [vmem:[%s1494_s25 + $0x44] ss:$8 sps:$4 sm:$0xff]  }
 0x1f9   : >> { %1417 = vmatprep.subr.bf16.mxu1 %v10913_v56  ;;  %v10963_v56 = vld [vmem:[%s1494_s25 + $0x50] ss:$8 sps:$4 sm:$0xff]  }
 0x1fa   : >> { %v849_v51 = vsel %vm846_vm7, %v847_v48, %v848_v50 }
 0x1fb   : >> { %1375 = vmatpush2.bf16.msra.mxu0 %v10912_v58  ;;  %v10969_v58 = vld [vmem:[%s1494_s25 + $0x30] ss:$8 sps:$4 sm:$0xff]  }
 0x1fc   : >> { %1376 = vmatprep.subr.bf16.mxu0 %v10916_v63  ;;  %1418 = vmatpush2.bf16.msra.mxu1 %v10915_v5  ;;  %v10975_v63 = vld [vmem:[%s1494_s25 + $0x10] ss:$8 sps:$4 sm:$0xff]   ;;  %v10978_v5 = vld [vmem:[%s1494_s25] ss:$8 sps:$4 sm:$0xff]  }
 0x1fd   : >> { %1419 = vmatprep.subr.bf16.mxu1 %v10919_v7  ;;  %v939_v7 = vshrl.u32 %v938_v6, 7 }
 0x1ff   : >> { %1377 = vmatpush2.bf16.msra.mxu0 %v10918_v9  ;;  %v13287_v9 = vsub.s32 1, %v939_v7 }
 0x200   : >> { %1378 = vmatprep.subr.bf16.mxu0 %v10922_v10  ;;  %1420 = vmatpush2.bf16.msra.mxu1 %v10921_v12  ;;  %v936_v10 = vld [vmem:[%s935_s5] sm:$0x3] }
 0x201   : >> { %1421 = vmatprep.subr.bf16.mxu1 %v10925_v13  ;;  %v945_v13 = vrot.slane %v936_v10, %v13287_v9 }
 0x203   : >> { %1379 = vmatpush2.bf16.msra.mxu0 %v10924_v16 }
 0x204   : >> { %1434 = vmatprep.subr.bf16.mxu0 %v10932_v17  ;;  %1422 = vmatpush2.bf16.msra.mxu1 %v10929_v19 }
 0x205   : >> { %1604 = vmatprep.subr.bf16.mxu1 %v10959_v52 }
 0x206   : >> { %1381 = vmatmul.mubr.bf16.vlgmr.msra.gmra.mxu0 %v13232_v36  ;;  %v10941_v36 = vld [vmem:[%s13178_s17 + $0x240] ss:$8 sps:$4 sm:$0xff]  }
 0x207   : >> { %1435 = vmatpush1.bf16.msra.mxu0 %v10930_v23  ;;  %1466 = vmatprep.mubr.bf16.mxu0 %v12741_v31 }
 0x208   : >> { %1424 = vmatmul.mubr.bf16.vlgmr.msra.gmra.mxu1 %v819_v26  ;;  %1436 = vmatprep.subr.bf16.mxu0 %v10937_v24 }
 0x209   : >> { %1636 = vmatprep.mubr.bf16.mxu1 %v12741_v31  ;;  %1605 = vmatpush1.bf16.msra.mxu1 %v10957_v53 }
 0x20a   : >> { %1606 = vmatprep.subr.bf16.mxu1 %v10962_v35 }
 0x20b   : >> { %1437 = vmatpush1.bf16.msra.mxu0 %v10935_v30 }
 0x20c   : >> { %1438 = vmatprep.subr.bf16.mxu0 %v10940_v33 }
 0x20d   : >> { %1607 = vmatpush1.bf16.msra.mxu1 %v10960_v54 }
 0x20e   : >> { %1608 = vmatprep.subr.bf16.mxu1 %v10965_v55 }
 0x20f   : >> { %1439 = vmatpush1.bf16.msra.mxu0 %v10938_v34 }
 0x210   : >> { %1440 = vmatprep.subr.bf16.mxu0 %v10943_v37 }
 0x211   : >> { %1609 = vmatpush1.bf16.msra.mxu1 %v10963_v56 }
 0x212   : >> { %1610 = vmatprep.subr.bf16.mxu1 %v10968_v49 }
 0x213   : >> { %1441 = vmatpush1.bf16.msra.mxu0 %v10941_v36 }
 0x214   : >> { %1442 = vmatprep.subr.bf16.mxu0 %v10946_v38 }
 0x215   : >> { %1611 = vmatpush1.bf16.msra.mxu1 %v10966_v57 }
 0x216   : >> { %1612 = vmatprep.subr.bf16.mxu1 %v10971_v59 }
 0x217   : >> { %1443 = vmatpush1.bf16.msra.mxu0 %v10944_v39 }
 0x218   : >> { %1444 = vmatprep.subr.bf16.mxu0 %v10949_v40 }
 0x219   : >> { %1613 = vmatpush1.bf16.msra.mxu1 %v10969_v58 }
 0x21a   : >> { %1614 = vmatprep.subr.bf16.mxu1 %v10974_v60 }
 0x21b   : >> { %1445 = vmatpush1.bf16.msra.mxu0 %v10947_v41  ;;  %v13292_v41 = vsub.s32 0, %v939_v7 }
 0x21c   : >> { %1446 = vmatprep.subr.bf16.mxu0 %v10952_v42 }
 0x21d   : >> { %1615 = vmatpush1.bf16.msra.mxu1 %v10972_v61  ;;  %v1512_v61 = vld [vmem:[%s1511_s8] sm:$0x3] }
 0x21e   : >> { %1616 = vmatprep.subr.bf16.mxu1 %v10977_v62  ;;  %v1517_v62 = vrot.slane %v1512_v61, %v13292_v41 }
 0x21f   : >> { %1447 = vmatpush1.bf16.msra.mxu0 %v10950_v44  ;;  %v941_v44 = vrot.slane %v936_v10, %v13292_v41 }
 0x220   : >> { %1448 = vmatprep.subr.bf16.mxu0 %v10955_v46 }
 0x221   : >> { %1617 = vmatpush1.bf16.msra.mxu1 %v10975_v63  ;;  %v1521_v63 = vrot.slane %v1512_v61, %v13287_v9  ;;  %v11038_v61 = vld [vmem:[#allocation11 + $0x884] ss:$8 sps:$4 sm:$0xff] (%p756_p5)  }
 0x222   : >> { %1618 = vmatprep.subr.bf16.mxu1 %v10980_v4 }
 0x223   : >> { %1449 = vmatpush1.bf16.msra.mxu0 %v10953_v47 }
 0x225   : >> { %1619 = vmatpush1.bf16.msra.mxu1 %v10978_v5 }
 0x226   : >> { %1467 = vmatmul.mubr.bf16.vlgmr.msra.gmra.mxu0 %v849_v51 }
 0x2c6   : >> { %v1382_v8 = vpop.f32.mrf.mxu0 }
 0x2c7   : >> { %v1383_v45 = vadd.f32 %v1382_v8, %v941_v44 }
 0x2c8   : >> { %v1384_v11 = vpop.f32.mrf.mxu0  ;;  %v1425_v12 = vpop.f32.mrf.mxu1 }
 0x2c9   : >> { %v1385_v19 = vadd.f32 %v1384_v11, %v945_v13  ;;  %v1426_v47 = vadd.f32 %v1425_v12, %v1383_v45  ;;  %v11010_v45 = vld [vmem:[#allocation11 + $0x8d0] ss:$8 sps:$4 sm:$0xff] (%p756_p5)  }
 0x2ca   : >> { %v1386_v16 = vpop.f32.mrf.mxu0  ;;  %v1427_v17 = vpop.f32.mrf.mxu1 }
 0x2cb   : >> { %v1428_v24 = vadd.f32 %v1427_v17, %v1385_v19  ;;  %v1387_v46 = vadd.f32 %v1386_v16, %v941_v44  ;;  %v11011_v44 = vld [vmem:[#allocation11 + $0x7c4] ss:$8 sps:$4 sm:$0xff] (%p756_p5)  }
 0x2cc   : >> { %v1388_v20 = vpop.f32.mrf.mxu0  ;;  %v1429_v21 = vpop.f32.mrf.mxu1 }
 0x2cd   : >> { %v1389_v26 = vadd.f32 %v1388_v20, %v945_v13  ;;  %v1430_v50 = vadd.f32 %v1429_v21, %v1387_v46  ;;  %v11014_v46 = vld [vmem:[#allocation11 + $0x8c4] ss:$8 sps:$4 sm:$0xff] (%p756_p5)  }
 0x2ce   : >> { %v1431_v30 = vpop.f32.mrf.mxu1 }
 0x2cf   : >> { %v1432_v37 = vadd.f32 %v1431_v30, %v1389_v26  ;;  %v10995_v26 = vld [vmem:[#allocation11 + $0x7f0] ss:$8 sps:$4 sm:$0xff] (%p756_p5)   ;;  %v10996_v30 = vld [vmem:[#allocation11 + $0x8f4] ss:$8 sps:$4 sm:$0xff] (%p756_p5)  }
 0x2d0   : > { %2277 = vmatprep.subr.bf16.mxu1 (%p756_p5), %v10996_v30 }
 0x2e6   : >> { %v1468_v23 = vpop.f32.mrf.mxu0 }
 0x2e7   : >> { %v1469_v51 = vadd.f32 %v1468_v23, %v1426_v47  ;;  %v11013_v47 = vld [vmem:[#allocation11 + $0x7c0] ss:$8 sps:$4 sm:$0xff] (%p756_p5)  }
 0x2e8   : >> { %v1470_v31 = vpop.f32.mrf.mxu0 }
 0x2e9   : >> { %v1471_v33 = vadd.f32 %v1470_v31, %v1428_v24  ;;  %v10998_v31 = vld [vmem:[#allocation11 + $0x8f0] ss:$8 sps:$4 sm:$0xff] (%p756_p5)  }
 0x2ea   : >> { %v1472_v34 = vpop.f32.mrf.mxu0 }
 0x2eb   : >> { %v1479_v36 = vsub.f32 0.0, %v1471_v33  ;;  %v1473_v53 = vadd.f32 %v1472_v34, %v1430_v50  ;;  %v10999_v34 = vld [vmem:[#allocation11 + $0x7e4] ss:$8 sps:$4 sm:$0xff] (%p756_p5)   ;;  %v11016_v50 = vld [vmem:[#allocation11 + $0x8c0] ss:$8 sps:$4 sm:$0xff] (%p756_p5)  }
 0x2ec   : >> { %v1474_v38 = vpop.f32.mrf.mxu0 }
 0x2ed   : >> { %v1481_v39 = vmul.f32 1.442695, %v1479_v36  ;;  %v1475_v40 = vadd.f32 %v1474_v38, %v1432_v37  ;;  %v11001_v37 = vld [vmem:[#allocation11 + $0x7e0] ss:$8 sps:$4 sm:$0xff] (%p756_p5)   ;;  %v11002_v38 = vld [vmem:[#allocation11 + $0x8e4] ss:$8 sps:$4 sm:$0xff] (%p756_p5)  }
 0x2ef   : >> { %10981 = vpow2.f32 %v1481_v39  ;;  %v1480_v42 = vsub.f32 0.0, %v1475_v40  ;;  %v11004_v40 = vld [vmem:[#allocation11 + $0x8e0] ss:$8 sps:$4 sm:$0xff] (%p756_p5)  }
 0x2f1   : >> { %v1483_v43 = vmul.f32 1.442695, %v1480_v42 }
 0x2f3   : >> { %10983 = vpow2.f32 %v1483_v43  ;;  %v11008_v43 = vld [vmem:[#allocation11 + $0x8d4] ss:$8 sps:$4 sm:$0xff] (%p756_p5)  }
 0x2f4   : >> { %10985 = vtanh.f32 %v1469_v51  ;;  %v11020_v51 = vld [vmem:[#allocation11 + $0x8b4] ss:$8 sps:$4 sm:$0xff] (%p756_p5)  }
 0x2fc   : >> { %v10982_v48 = vpop.eup %10981 }
 0x2fd   : >> { %v1485_v52 = vadd.f32 1.0, %v10982_v48  ;;  %v11017_v48 = vld [vmem:[#allocation11 + $0x7b4] ss:$8 sps:$4 sm:$0xff] (%p756_p5)  }
 0x2ff   : >> { %10987 = vrcp.f32 %v1485_v52  ;;  %v11019_v52 = vld [vmem:[#allocation11 + $0x7b0] ss:$8 sps:$4 sm:$0xff] (%p756_p5)  }
 0x300   : >> { %v10984_v35 = vpop.eup %10983  ;;  %10989 = vtanh.f32 %v1473_v53  ;;  %v11023_v53 = vld [vmem:[#allocation11 + $0x7a4] ss:$8 sps:$4 sm:$0xff] (%p756_p5)  }
 0x301   : >> { %v1486_v54 = vadd.f32 1.0, %v10984_v35  ;;  %v10986_v55 = vpop.eup %10985  ;;  %v11022_v35 = vld [vmem:[#allocation11 + $0x8b0] ss:$8 sps:$4 sm:$0xff] (%p756_p5)  }
 0x303   : >> { %10991 = vrcp.f32 %v1486_v54  ;;  %v11026_v54 = vld [vmem:[#allocation11 + $0x8a4] ss:$8 sps:$4 sm:$0xff] (%p756_p5)  }
 0x30c   : >> { %v10988_v56 = vpop.eup %10987 }
 0x30d   : >> { %v10990_v49 = vpop.eup %10989  ;;  %v1489_v58 = vmul.f32 %v10988_v56, %v10986_v55  ;;  %v11025_v55 = vld [vmem:[#allocation11 + $0x7a0] ss:$8 sps:$4 sm:$0xff] (%p756_p5)   ;;  %v11029_v56 = vld [vmem:[#allocation11 + $0x794] ss:$8 sps:$4 sm:$0xff] (%p756_p5)  }
 0x310   : >> { %v10992_v57 = vpop.eup %10991 }
 0x311   : >> { %v1490_v59 = vmul.f32 %v10992_v57, %v10990_v49  ;;  %v11028_v49 = vld [vmem:[#allocation11 + $0x8a0] ss:$8 sps:$4 sm:$0xff] (%p756_p5)   ;;  %v11032_v57 = vld [vmem:[#allocation11 + $0x894] ss:$8 sps:$4 sm:$0xff] (%p756_p5)  }
 0x313   : >> { %v1491_v60 = vpack.c.bf16 %v1490_v59, %v1489_v58  ;;  %v11031_v58 = vld [vmem:[#allocation11 + $0x790] ss:$8 sps:$4 sm:$0xff] (%p756_p5)   ;;  %v11035_v59 = vld [vmem:[#allocation11 + $0x784] ss:$8 sps:$4 sm:$0xff] (%p756_p5)  }
 0x315   : >> { %1637 = vmatmul.mubr.bf16.vlgmr.msra.gmra.mxu1 %v1491_v60  ;;  %v11034_v60 = vld [vmem:[#allocation11 + $0x890] ss:$8 sps:$4 sm:$0xff] (%p756_p5)  }
 0x316   : > { %2278 = vmatpush1.bf16.msra.mxu1 (%p756_p5), %v10998_v31 }
 0x317   : > { %2279 = vmatprep.subr.bf16.mxu1 (%p756_p5), %v11002_v38  ;;  %v11068_v38 = vld [vmem:[#allocation11 + $0x934] ss:$8 sps:$4 sm:$0xff] (%p756_p5)  }
 0x31a   : > { %2280 = vmatpush1.bf16.msra.mxu1 (%p756_p5), %v11004_v40 }
 0x31b   : > { %2281 = vmatprep.subr.bf16.mxu1 (%p756_p5), %v11008_v43 }
 0x31e   : > { %2282 = vmatpush1.bf16.msra.mxu1 (%p756_p5), %v11010_v45  ;;  %v11071_v45 = vld [vmem:[#allocation11 + $0x824] ss:$8 sps:$4 sm:$0xff] (%p756_p5)  }
 0x31f   : > { %2283 = vmatprep.subr.bf16.mxu1 (%p756_p5), %v11014_v46  ;;  %v11070_v46 = vld [vmem:[#allocation11 + $0x930] ss:$8 sps:$4 sm:$0xff] (%p756_p5)  }
 0x322   : > { %2284 = vmatpush1.bf16.msra.mxu1 (%p756_p5), %v11016_v50 }
 0x323   : > { %2285 = vmatprep.subr.bf16.mxu1 (%p756_p5), %v11020_v51 }
 0x326   : > { %2286 = vmatpush1.bf16.msra.mxu1 (%p756_p5), %v11022_v35  ;;  %v11073_v35 = vld [vmem:[#allocation11 + $0x820] ss:$8 sps:$4 sm:$0xff] (%p756_p5)  }
 0x327   : > { %2287 = vmatprep.subr.bf16.mxu1 (%p756_p5), %v11026_v54 }
 0x32a   : > { %2288 = vmatpush1.bf16.msra.mxu1 (%p756_p5), %v11028_v49 }
 0x32b   : > { %2289 = vmatprep.subr.bf16.mxu1 (%p756_p5), %v11032_v57  ;;  %v11077_v57 = vld [vmem:[#allocation11 + $0x814] ss:$8 sps:$4 sm:$0xff] (%p756_p5)  }
 0x32e   : > { %2290 = vmatpush1.bf16.msra.mxu1 (%p756_p5), %v11034_v60 }
 0x32f   : > { %2291 = vmatprep.subr.bf16.mxu1 (%p756_p5), %v11038_v61  ;;  %v11080_v61 = vld [vmem:[#allocation11 + $0x914] ss:$8 sps:$4 sm:$0xff] (%p756_p5)  }
 0x3d5   : >> { %v1638_v4 = vpop.f32.mrf.mxu1 }
 0x3d6   : >> { %v1639_v5 = vadd.f32 %v1638_v4, %v1517_v62  ;;  %v11040_v4 = vld [vmem:[#allocation11 + $0x880] ss:$8 sps:$4 sm:$0xff] (%p756_p5)  }
 0x3d7   : >> { %v1640_v6 = vpop.f32.mrf.mxu1  ;;  %2292 = vmatpush1.bf16.msra.mxu1 (%p756_p5), %v11040_v4  ;;  %v11083_v4 = vld [vmem:[#allocation11 + $0x804] ss:$8 sps:$4 sm:$0xff] (%p756_p5)  }
 0x3d8   : >> { %v1647_v7 = vadd.f32 %v12654_v22, %v1639_v5  ;;  %v1641_v8 = vadd.f32 %v1640_v6, %v1521_v63  ;;  %v11044_v5 = vld [vmem:[#allocation11 + $0x974] ss:$8 sps:$4 sm:$0xff] (%p756_p5)   ;;  %v11043_v6 = vld [vmem:[#allocation11 + $0x870] ss:$8 sps:$4 sm:$0xff] (%p756_p5)  }
 0x3d9   : >> { %v1642_v10 = vpop.f32.mrf.mxu1  ;;  %2293 = vmatprep.subr.bf16.mxu1 (%p756_p5), %v11044_v5 }
 0x3da   : >> { %v1649_v11 = vmul.f32 %v1647_v7, %v13132_v18   ;;  %v13302_v29 = vadd.f32 %v12646_v29, %v1641_v8   ;;  %v1643_v13 = vadd.f32 %v1642_v10, %v1517_v62  ;;  %v11037_v62 = vld [vmem:[#allocation11 + $0x780] ss:$8 sps:$4 sm:$0xff] (%p756_p5)   ;;  %v11047_v7 = vld [vmem:[#allocation11 + $0x864] ss:$8 sps:$4 sm:$0xff] (%p756_p5)   ;;  %v11046_v8 = vld [vmem:[#allocation11 + $0x970] ss:$8 sps:$4 sm:$0xff] (%p756_p5)  }
 0x3db   : >> { %v1644_v16 = vpop.f32.mrf.mxu1  ;;  %v11050_v10 = vld [vmem:[#allocation11 + $0x964] ss:$8 sps:$4 sm:$0xff] (%p756_p5)   ;;  %2294 = vmatpush2.bf16.msra.mxu1 (%p756_p5), %v11046_v8 }
 0x3dc   : >> { %v14251_v12 = vmov %v13302_v29  ;;  %v1648_v17 = vadd.f32 %v12650_v27, %v1643_v13  ;;  %v1645_v19 = vadd.f32 %v1644_v16, %v1521_v63  ;;  %v14256_v22 = vmov %v1649_v11  ;;  %v11041_v63 = vld [vmem:[#allocation11 + $0x874] ss:$8 sps:$4 sm:$0xff] (%p756_p5)   ;;  %v11052_v16 = vld [vmem:[#allocation11 + $0x960] ss:$8 sps:$4 sm:$0xff] (%p756_p5)   ;;  %2295 = vmatprep.subr.bf16.mxu1 (%p756_p5), %v11050_v10  ;;  %v11086_v8 = vld [vmem:[#allocation11 + $0x904] ss:$8 sps:$4 sm:$0xff] (%p756_p5)  }
 0x3dd   : >> { %v14254_v29 = vmov %v14251_v12  ;;  %758 = sbr.rel (!%p756_p5) target bundleno = 450 (0x1c2), region = 246  ;;  %v10993_v22 = vld [vmem:[#allocation11 + $0x7f4] ss:$8 sps:$4 sm:$0xff] (%p756_p5)   ;;  %v10261_v23 = vpack.c.bf16 (%p756_p5), %v1649_v11, %v1649_v11  ;;  %v11049_v11 = vld [vmem:[#allocation11 + $0x860] ss:$8 sps:$4 sm:$0xff] (%p756_p5)  }
 0x3de   : >> { %v1650_v20 = vmul.f32 %v1648_v17, %v13135_v25   ;;  %v13307_v28 = vadd.f32 %v12642_v28, %v1645_v19   ;;  %2234 = vmatprep.subr.bf16.mxu0 (%p756_p5), %v10993_v22  ;;  %v11007_v29 = vld [vmem:[#allocation11 + $0x7d0] ss:$8 sps:$4 sm:$0xff] (%p756_p5)   ;;  %v11053_v13 = vld [vmem:[#allocation11 + $0x854] ss:$8 sps:$4 sm:$0xff] (%p756_p5)   ;;  %v11059_v22 = vld [vmem:[#allocation11 + $0x844] ss:$8 sps:$4 sm:$0xff] (%p756_p5)  }
 0x3df   : > { %v1662_v33 = vrot.slane (%p756_p5), %v10261_v23, 7  ;;  %2235 = vmatpush1.bf16.msra.mxu0 (%p756_p5), %v10995_v26  ;;  %v11056_v17 = vld [vmem:[#allocation11 + $0x954] ss:$8 sps:$4 sm:$0xff] (%p756_p5)   ;;  %v11055_v19 = vld [vmem:[#allocation11 + $0x850] ss:$8 sps:$4 sm:$0xff] (%p756_p5)   ;;  %2296 = vmatpush2.bf16.msra.mxu1 (%p756_p5), %v11052_v16 }
 0x3e0   : >> { %v14252_v21 = vmov %v13307_v28  ;;  %v14255_v27 = vmov %v1650_v20  ;;  %v10262_v24 = vpack.c.bf16 (%p756_p5), %v1650_v20, %v1650_v20  ;;  %2236 = vmatprep.subr.bf16.mxu0 (%p756_p5), %v10999_v34  ;;  %v11058_v20 = vld [vmem:[#allocation11 + $0x950] ss:$8 sps:$4 sm:$0xff] (%p756_p5)   ;;  %v11061_v23 = vld [vmem:[#allocation11 + $0x840] ss:$8 sps:$4 sm:$0xff] (%p756_p5)   ;;  %2297 = vmatprep.subr.bf16.mxu1 (%p756_p5), %v11056_v17  ;;  %v11093_v10 = vld [vmem:[#allocation11 + $0x9f4] ss:$8 sps:$4 sm:$0xff] (%p756_p5)  }
 0x3e1   : >> { %v14253_v28 = vmov %v14252_v21  ;;  %v1663_v39 = vrot.slane (%p756_p5), %v1662_v33, 4  ;;  %1670 = vst [vmem:[#allocation2] sm:$0xe] (%p756_p5), %v1662_v33  ;;  %v11005_v27 = vld [vmem:[#allocation11 + $0x7d4] ss:$8 sps:$4 sm:$0xff] (%p756_p5)  }
 0x3e2   : > { %v1664_v36 = vrot.slane %v10262_v24, 7  ;;  %v11062_v24 = vld [vmem:[#allocation11 + $0x944] ss:$8 sps:$4 sm:$0xff]   ;;  %v11064_v34 = vld [vmem:[#allocation11 + $0x940] ss:$8 sps:$4 sm:$0xff]  }
 0x3e3   : > { %2237 = vmatpush1.bf16.msra.mxu0 %v11001_v37  ;;  %v11065_v37 = vld [vmem:[#allocation11 + $0x834] ss:$8 sps:$4 sm:$0xff]   ;;  %2298 = vmatpush2.bf16.msra.mxu1 %v11058_v20 }
 0x3e4   : > { %v1666_v42 = vrot.slane %v1664_v36, 4  ;;  %v1665_v28 = vsel %vm13174_vm3, %v1663_v39, %v1664_v36  ;;  %2238 = vmatprep.subr.bf16.mxu0 %v11005_v27  ;;  %v11067_v36 = vld [vmem:[#allocation11 + $0x830] ss:$8 sps:$4 sm:$0xff]   ;;  %2299 = vmatprep.subr.bf16.mxu1 %v11062_v24 }
 0x3e5   : > { %1671 = vst [vmem:[#allocation2 + $0x4] sm:$0xf] %v1665_v28  ;;  %v11099_v24 = vld [vmem:[#allocation11 + $0x9d0] ss:$8 sps:$4 sm:$0xff]  }
 0x3e6   : > { %1672 = vst [vmem:[#allocation2 + $0x8] sm:$0x1] %v1666_v42 }
 0x3e7   : > { %2239 = vmatpush1.bf16.msra.mxu0 %v11007_v29  ;;  %2300 = vmatpush2.bf16.msra.mxu1 %v11064_v34  ;;  %v11107_v34 = vld [vmem:[#allocation11 + $0x9b4] ss:$8 sps:$4 sm:$0xff]  }
 0x3e8   : > { %2240 = vmatprep.subr.bf16.mxu0 %v11011_v44  ;;  %v1673_v26 = vld [vmem:[#allocation2] sm:$0xf]  ;;  %2301 = vmatprep.subr.bf16.mxu1 %v11068_v38  ;;  %v11113_v38 = vld [vmem:[#allocation11 + $0x994] ss:$8 sps:$4 sm:$0xff]  }
 0x3e9   : > { %v1676_v27 = vld [vmem:[#allocation2] sm:$0xe] }
 0x3eb   : > { %2241 = vmatpush1.bf16.msra.mxu0 %v11013_v47  ;;  %2302 = vmatpush2.bf16.msra.mxu1 %v11070_v46  ;;  %v11120_v46 = vld [vmem:[#allocation14 + $0x1f4] ss:$8 sps:$4 sm:$0xff]  }
 0x3ec   : > { %2242 = vmatprep.subr.bf16.mxu0 %v11017_v48  ;;  %v13324_v30 = vld [vmem:[#allocation2 + $0x4] sm:$0xf] }
 0x3ed   : > { %v13327_v31 = vcombine.low %v1673_v26, %v13324_v30  ;;  %v13329_v33 = vld [vmem:[#allocation2 + $0x8] ss:$0 sps:$4 sm:$0x11]   ;;  %v9163_v43 = vcombine.low %v1676_v27, %v13324_v30  ;;  %v11104_v26 = vld [vmem:[#allocation11 + $0x9c4] ss:$8 sps:$4 sm:$0xff]  }
 0x3ee   : > { %v1697_v42 = vshll.u32 %v13329_v33, 16  ;;  %v13335_v44 = vld [vmem:[#allocation2 + $0x8] ss:$0 sps:$4 sm:$0x33]   ;;  %v1707_v17 = vrot.slane %v13329_v33, 1 }
 0x3ef   : > { %2243 = vmatpush1.bf16.msra.mxu0 %v11019_v52  ;;  %v1690_v39 = vshrl.u32 %v13327_v31, 16  ;;  %v1692_v40 = vshll.u32 %v13327_v31, 16  ;;  %v1715_v48 = vshrl.u32 %v9163_v43, 16  ;;  %v1718_v50 = vshll.u32 %v9163_v43, 16  ;;  %v11074_v52 = vld [vmem:[#allocation11 + $0x924] ss:$8 sps:$4 sm:$0xff]  }
 0x3f0   : > { %2244 = vmatprep.subr.bf16.mxu0 %v11023_v53  ;;  %v1699_v29 = vrot.slane %v1697_v42, 1  ;;  %v1723_v51 = vshrl.u32 %v13335_v44, 16  ;;  %v1726_v53 = vshll.u32 %v13335_v44, 16  ;;  %2303 = vmatprep.subr.bf16.mxu1 %v11074_v52  ;;  %v1706_v16 = vrot.slane %v9163_v43, 1  ;;  %v11102_v33 = vld [vmem:[#allocation11 + $0x9c0] ss:$8 sps:$4 sm:$0xff]  }
 0x3f1   : > { %v1694_v28 = vrot.slane %v1692_v40, 1  ;;  %v11111_v40 = vld [vmem:[#allocation11 + $0x990] ss:$8 sps:$4 sm:$0xff]   ;;  %v11116_v27 = vld [vmem:[#allocation11 + $0x984] ss:$8 sps:$4 sm:$0xff]   ;;  %v1737_v43 = vrot.slane %v13335_v44, 2 }
 0x3f2   : > { %v1725_v49 = vrot.slane %v1723_v51, 1  ;;  %v1708_v20 = vsel %vm816_vm6, %v1706_v16, %v1707_v17  ;;  %v11124_v44 = vld [vmem:[#allocation14 + $0x1d0] ss:$8 sps:$4 sm:$0xff]   ;;  %v11129_v51 = vld [vmem:[#allocation14 + $0x1c4] ss:$8 sps:$4 sm:$0xff]  }
 0x3f3   : > { %2245 = vmatpush1.bf16.msra.mxu0 %v11025_v55  ;;  %v1695_v47 = vor.u32 %v1694_v28, %v1690_v39  ;;  %v1717_v55 = vrot.slane %v1715_v48, 1  ;;  %v1678_v39 = vld [vmem:[#allocation2] sm:$0xc]  ;;  %v11114_v28 = vld [vmem:[#allocation11 + $0x980] ss:$8 sps:$4 sm:$0xff]  }
 0x3f4   : > { %2246 = vmatprep.subr.bf16.mxu0 %v11029_v56  ;;  %v1720_v56 = vrot.slane %v1718_v50, 2  ;;  %v9165_v42 = vcombine.low %v1678_v39, %v13324_v30  ;;  %v11123_v30 = vld [vmem:[#allocation14 + $0x1e4] ss:$8 sps:$4 sm:$0xff]   ;;  %v11121_v48 = vld [vmem:[#allocation14 + $0x1e0] ss:$8 sps:$4 sm:$0xff]  }
 0x3f5   : > { %v1700_v54 = vsel %vm799_vm4, %v1695_v47, %v1699_v29  ;;  %v11118_v47 = vld [vmem:[#allocation14 + $0x1f0] ss:$8 sps:$4 sm:$0xff]   ;;  %v11126_v50 = vld [vmem:[#allocation14 + $0x1d4] ss:$8 sps:$4 sm:$0xff]   ;;  %v11127_v52 = vld [vmem:[#allocation14 + $0x1c0] ss:$8 sps:$4 sm:$0xff]  }
 0x3f6   : > { %2266 = vmatprep.mubr.bf16.mxu0 %v1700_v54  ;;  %v1721_v60 = vor.u32 %v1720_v56, %v1717_v55  ;;  %v1736_v29 = vrot.slane %v9165_v42, 2  ;;  %v11135_v54 = vld [vmem:[#allocation14 + $0x1a4] ss:$8 sps:$4 sm:$0xff]   ;;  %v11133_v55 = vld [vmem:[#allocation14 + $0x1a0] ss:$8 sps:$4 sm:$0xff]  }
 0x3f7   : > { %2247 = vmatpush1.bf16.msra.mxu0 %v11031_v58  ;;  %v1728_v58 = vrot.slane %v1726_v53, 2  ;;  %v11130_v53 = vld [vmem:[#allocation14 + $0x1b0] ss:$8 sps:$4 sm:$0xff]   ;;  %v11138_v56 = vld [vmem:[#allocation14 + $0x194] ss:$8 sps:$4 sm:$0xff]  }
 0x3f8   : > { %2248 = vmatprep.subr.bf16.mxu0 %v11035_v59  ;;  %v11076_v59 = vld [vmem:[#allocation11 + $0x920] ss:$8 sps:$4 sm:$0xff]  }
 0x3f9   : > { %2304 = vmatpush2.bf16.msra.mxu1 %v11076_v59  ;;  %v11142_v59 = vld [vmem:[#allocation17 + $0x38] sm:$0xff]  }
 0x3fa   : > { %2305 = vmatprep.subr.bf16.mxu1 %v11080_v61  ;;  %v11144_v61 = vld [vmem:[#allocation17 + $0x28] sm:$0xff]  }
 0x3fb   : > { %2249 = vmatpush1.bf16.msra.mxu0 %v11037_v62  ;;  %v1729_v62 = vor.u32 %v1728_v58, %v1725_v49  ;;  %v11136_v49 = vld [vmem:[#allocation14 + $0x190] ss:$8 sps:$4 sm:$0xff]   ;;  %v11139_v58 = vld [vmem:[#allocation14 + $0x180] ss:$8 sps:$4 sm:$0xff]  }
 0x3fc   : > { %2250 = vmatprep.subr.bf16.mxu0 %v11041_v63  ;;  %v11079_v63 = vld [vmem:[#allocation11 + $0x810] ss:$8 sps:$4 sm:$0xff]  }
 0x3fd   : > { %v1730_v5 = vsel %vm824_vm5, %v1721_v60, %v1729_v62  ;;  %v11143_v60 = vld [vmem:[#allocation17 + $0x30] sm:$0xff]   ;;  %v11145_v62 = vld [vmem:[#allocation17 + $0x20] sm:$0xff]  }
 0x3fe   : > { %2309 = vmatprep.mubr.bf16.mxu1 %v1730_v5  ;;  %v1822_v5 = vld [vmem:[#allocation12 + $0x6] sm:$0x3] }
 0x3ff   : > { %2251 = vmatpush2.bf16.msra.mxu0 %v11043_v6  ;;  %v11082_v6 = vld [vmem:[#allocation11 + $0x910] ss:$8 sps:$4 sm:$0xff]   ;;  %v1827_v42 = vrot.slane %v1822_v5, %v13292_v41 }
 0x400   : > { %2252 = vmatprep.subr.bf16.mxu0 %v11047_v7  ;;  %v11085_v7 = vld [vmem:[#allocation11 + $0x800] ss:$8 sps:$4 sm:$0xff]   ;;  %2306 = vmatpush2.bf16.msra.mxu1 %v11082_v6 }
 0x401   : > { %2307 = vmatprep.subr.bf16.mxu1 %v11086_v8  ;;  %v1831_v8 = vrot.slane %v1822_v5, %v13287_v9 }
 0x403   : > { %2253 = vmatpush2.bf16.msra.mxu0 %v11049_v11  ;;  %v11090_v11 = vld [vmem:[#allocation11 + $0x900] ss:$8 sps:$4 sm:$0xff]  }
 0x404   : > { %2254 = vmatprep.subr.bf16.mxu0 %v11053_v13  ;;  %v11091_v13 = vld [vmem:[#allocation11 + $0x9f0] ss:$8 sps:$4 sm:$0xff]   ;;  %2308 = vmatpush2.bf16.msra.mxu1 %v11090_v11 }
 0x405   : > { %2483 = vmatprep.subr.bf16.mxu1 %v11120_v46 }
 0x407   : > { %2255 = vmatpush2.bf16.msra.mxu0 %v11055_v19  ;;  %v11098_v19 = vld [vmem:[#allocation11 + $0x9e4] ss:$8 sps:$4 sm:$0xff]   ;;  %2310 = vmatmul.mubr.bf16.vlgmr.msra.gmra.mxu1 %v1708_v20 }
 0x408   : > { %2256 = vmatprep.subr.bf16.mxu0 %v11059_v22  ;;  %v11096_v22 = vld [vmem:[#allocation11 + $0x9e0] ss:$8 sps:$4 sm:$0xff]   ;;  %2515 = vmatprep.mubr.bf16.mxu1 %v12740_v1 }
 0x409   : > { %2484 = vmatpush1.bf16.msra.mxu1 %v11118_v47 }
 0x40a   : > { %2485 = vmatprep.subr.bf16.mxu1 %v11123_v30 }
 0x40b   : > { %2257 = vmatpush2.bf16.msra.mxu0 %v11061_v23  ;;  %v11101_v23 = vld [vmem:[#allocation11 + $0x9d4] ss:$8 sps:$4 sm:$0xff]  }
 0x40c   : > { %2258 = vmatprep.subr.bf16.mxu0 %v11065_v37  ;;  %v11105_v37 = vld [vmem:[#allocation11 + $0x9b0] ss:$8 sps:$4 sm:$0xff]  }
 0x40d   : > { %2486 = vmatpush1.bf16.msra.mxu1 %v11121_v48 }
 0x40e   : > { %2487 = vmatprep.subr.bf16.mxu1 %v11126_v50 }
 0x40f   : > { %2259 = vmatpush2.bf16.msra.mxu0 %v11067_v36  ;;  %v11108_v36 = vld [vmem:[#allocation11 + $0x9a0] ss:$8 sps:$4 sm:$0xff]  }
 0x410   : > { %2260 = vmatprep.subr.bf16.mxu0 %v11071_v45  ;;  %v1738_v45 = vsel %vm846_vm7, %v1736_v29, %v1737_v43 }
 0x411   : > { %2488 = vmatpush1.bf16.msra.mxu1 %v11124_v44 }
 0x412   : > { %2489 = vmatprep.subr.bf16.mxu1 %v11129_v51 }
 0x413   : > { %2261 = vmatpush2.bf16.msra.mxu0 %v11073_v35  ;;  %v11132_v35 = vld [vmem:[#allocation14 + $0x1b4] ss:$8 sps:$4 sm:$0xff]  }
 0x414   : > { %2262 = vmatprep.subr.bf16.mxu0 %v11077_v57  ;;  %v11141_v57 = vld [vmem:[#allocation14 + $0x184] ss:$8 sps:$4 sm:$0xff]  }
 0x415   : > { %2490 = vmatpush1.bf16.msra.mxu1 %v11127_v52 }
 0x416   : > { %2491 = vmatprep.subr.bf16.mxu1 %v11132_v35 }
 0x417   : > { %2263 = vmatpush2.bf16.msra.mxu0 %v11079_v63  ;;  %v11146_v63 = vld [vmem:[#allocation17 + $0x18] sm:$0xff]  }
 0x418   : > { %2264 = vmatprep.subr.bf16.mxu0 %v11083_v4 }
 0x419   : > { %2492 = vmatpush1.bf16.msra.mxu1 %v11130_v53 }
 0x41a   : > { %2493 = vmatprep.subr.bf16.mxu1 %v11135_v54 }
 0x41b   : > { %2265 = vmatpush2.bf16.msra.mxu0 %v11085_v7 }
 0x41c   : > { %2320 = vmatprep.subr.bf16.mxu0 %v11093_v10 }
 0x41d   : > { %2494 = vmatpush1.bf16.msra.mxu1 %v11133_v55 }
 0x41e   : > { %2267 = vmatmul.mubr.bf16.vlgmr.msra.gmra.mxu0 %v13327_v31  ;;  %v11110_v31 = vld [vmem:[#allocation11 + $0x9a4] ss:$8 sps:$4 sm:$0xff]   ;;  %2495 = vmatprep.subr.bf16.mxu1 %v11138_v56  ;;  %v11147_v56 = vld [vmem:[#allocation17 + $0x10] sm:$0xff]  }
 0x41f   : > { %2321 = vmatpush1.bf16.msra.mxu0 %v11091_v13  ;;  %2352 = vmatprep.mubr.bf16.mxu0 %v12740_v1 }
 0x420   : > { %2322 = vmatprep.subr.bf16.mxu0 %v11098_v19 }
 0x421   : > { %2496 = vmatpush1.bf16.msra.mxu1 %v11136_v49  ;;  %v11148_v49 = vld [vmem:[#allocation17 + $0x8] sm:$0xff]  }
 0x422   : > { %2497 = vmatprep.subr.bf16.mxu1 %v11141_v57  ;;  %v11149_v57 = vld [vmem:[#allocation17] sm:$0xff]  }
 0x423   : > { %2323 = vmatpush1.bf16.msra.mxu0 %v11096_v22 }
 0x424   : > { %2324 = vmatprep.subr.bf16.mxu0 %v11101_v23 }
 0x425   : > { %2498 = vmatpush1.bf16.msra.mxu1 %v11139_v58  ;;  %v11150_v58 = vld [vmem:[#allocation8 + $0x78] sm:$0xff]  }
 0x426   : > { %10389 = vmatprep.subr.bf16.mxu1 %v12738_v0 }
 0x427   : > { %2325 = vmatpush1.bf16.msra.mxu0 %v11099_v24 }
 0x428   : > { %2326 = vmatprep.subr.bf16.mxu0 %v11104_v26 }
 0x42b   : > { %2327 = vmatpush1.bf16.msra.mxu0 %v11102_v33 }
 0x42c   : > { %2328 = vmatprep.subr.bf16.mxu0 %v11107_v34 }
 0x42f   : > { %2329 = vmatpush1.bf16.msra.mxu0 %v11105_v37 }
 0x430   : > { %2330 = vmatprep.subr.bf16.mxu0 %v11110_v31 }
 0x433   : > { %2331 = vmatpush1.bf16.msra.mxu0 %v11108_v36 }
 0x434   : > { %2332 = vmatprep.subr.bf16.mxu0 %v11113_v38 }
 0x437   : > { %2333 = vmatpush1.bf16.msra.mxu0 %v11111_v40 }
 0x438   : > { %2334 = vmatprep.subr.bf16.mxu0 %v11116_v27 }
 0x43b   : > { %2335 = vmatpush1.bf16.msra.mxu0 %v11114_v28 }
 0x43c   : > { %10369 = vmatprep.subr.bf16.mxu0 %v12738_v0 }
 0x43e   : > { %2353 = vmatmul.mubr.bf16.vlgmr.msra.gmra.mxu0 %v1738_v45 }
 0x43f   : > { %10385 = vmatprep.mubr.msk.bf16.mxu0 %vm12739_vm0, %v12738_v0  ;;  %10370 = vmatpush3.bf16.msra.mxu0 %v11142_v59  ;;  %v11151_v59 = vld [vmem:[#allocation8 + $0x70] sm:$0xff]  }
 0x440   : > { %10371 = vmatprep.subr.bf16.mxu0 %v12738_v0 }
 0x443   : > { %10372 = vmatpush3.bf16.msra.mxu0 %v11143_v60  ;;  %v11152_v60 = vld [vmem:[#allocation8 + $0x68] sm:$0xff]  }
 0x444   : > { %10373 = vmatprep.subr.bf16.mxu0 %v12738_v0 }
 0x447   : > { %10374 = vmatpush3.bf16.msra.mxu0 %v11144_v61  ;;  %v11153_v61 = vld [vmem:[#allocation8 + $0x60] sm:$0xff]  }
 0x448   : > { %10375 = vmatprep.subr.bf16.mxu0 %v12738_v0 }
 0x44b   : > { %10376 = vmatpush3.bf16.msra.mxu0 %v11145_v62  ;;  %v11154_v62 = vld [vmem:[#allocation8 + $0x58] sm:$0xff]  }
 0x44c   : > { %10377 = vmatprep.subr.bf16.mxu0 %v12738_v0 }
 0x44f   : > { %10378 = vmatpush3.bf16.msra.mxu0 %v11146_v63  ;;  %v2396_v63 = vld [vmem:[#allocation15 + $0x6] sm:$0x3] }
 0x450   : > { %10379 = vmatprep.subr.bf16.mxu0 %v12738_v0 }
 0x453   : > { %10380 = vmatpush3.bf16.msra.mxu0 %v11147_v56 }
 0x454   : > { %10381 = vmatprep.subr.bf16.mxu0 %v12738_v0 }
 0x457   : > { %10382 = vmatpush3.bf16.msra.mxu0 %v11148_v49 }
 0x458   : > { %10383 = vmatprep.subr.bf16.mxu0 %v12738_v0 }
 0x45b   : > { %10384 = vmatpush3.bf16.msra.mxu0 %v11149_v57 }
 0x4c7   : > { %v2311_v7 = vpop.f32.mrf.mxu1 }
 0x4c9   : > { %v2313_v11 = vpop.f32.mrf.mxu1 }
 0x4cb   : > { %v2315_v17 = vpop.f32.mrf.mxu1 }
 0x4cd   : > { %v2317_v23 = vpop.f32.mrf.mxu1 }
 0x4de   : > { %v2268_v4 = vpop.f32.mrf.mxu0 }
 0x4df   : > { %v2269_v27 = vadd.f32 %v2268_v4, %v1827_v42  ;;  %v2401_v4 = vrot.slane %v2396_v63, %v13292_v41 }
 0x4e0   : > { %v2270_v6 = vpop.f32.mrf.mxu0 }
 0x4e1   : > { %v2271_v13 = vadd.f32 %v2270_v6, %v1831_v8  ;;  %v2312_v29 = vadd.f32 %v2311_v7, %v2269_v27 }
 0x4e2   : > { %v2272_v10 = vpop.f32.mrf.mxu0 }
 0x4e3   : > { %v2314_v20 = vadd.f32 %v2313_v11, %v2271_v13  ;;  %v2273_v28 = vadd.f32 %v2272_v10, %v1827_v42 }
 0x4e4   : > { %v2274_v16 = vpop.f32.mrf.mxu0 }
 0x4e5   : > { %v2275_v22 = vadd.f32 %v2274_v16, %v1831_v8  ;;  %v2316_v45 = vadd.f32 %v2315_v17, %v2273_v28 }
 0x4e7   : > { %v2318_v34 = vadd.f32 %v2317_v23, %v2275_v22  ;;  %v11155_v22 = vld [vmem:[#allocation8 + $0x50] sm:$0xff]   ;;  %v11156_v23 = vld [vmem:[#allocation8 + $0x48] sm:$0xff]  }
 0x4fe   : > { %v2354_v19 = vpop.f32.mrf.mxu0 }
 0x4ff   : > { %v2355_v46 = vadd.f32 %v2354_v19, %v2312_v29  ;;  %v9271_v29 = vld [vmem:[#allocation9 + $0x1] ss:$0 sm:$0xff] }
 0x500   : > { %v2356_v24 = vpop.f32.mrf.mxu0 }
 0x501   : > { %v2357_v26 = vadd.f32 %v2356_v24, %v2314_v20  ;;  %v11157_v24 = vld [vmem:[#allocation8 + $0x40] sm:$0xff]  }
 0x502   : > { %v2358_v33 = vpop.f32.mrf.mxu0 }
 0x503   : > { %v2365_v37 = vsub.f32 0.0, %v2357_v26  ;;  %v2359_v30 = vadd.f32 %v2358_v33, %v2316_v45 }
 0x504   : > { %v2360_v31 = vpop.f32.mrf.mxu0 }
 0x505   : > { %v2367_v36 = vmul.f32 1.442695, %v2365_v37  ;;  %v2361_v38 = vadd.f32 %v2360_v31, %v2318_v34  ;;  %v2643_v31 = vmul.f32 %v13132_v18, %v13108_v2 }
 0x507   : > { %11158 = vpow2.f32 %v2367_v36  ;;  %v2366_v39 = vsub.f32 0.0, %v2361_v38  ;;  %v2644_v38 = vmul.f32 %v13135_v25, %v13110_v3 }
 0x509   : > { %v2369_v40 = vmul.f32 1.442695, %v2366_v39 }
 0x50b   : > { %11160 = vpow2.f32 %v2369_v40 }
 0x50c   : > { %11162 = vtanh.f32 %v2355_v46 }
 0x514   : > { %v11159_v43 = vpop.eup %11158 }
 0x515   : > { %v2371_v47 = vadd.f32 1.0, %v11159_v43 }
 0x517   : > { %11164 = vrcp.f32 %v2371_v47 }
 0x518   : > { %v11161_v48 = vpop.eup %11160  ;;  %11166 = vtanh.f32 %v2359_v30 }
 0x519   : > { %v2372_v50 = vadd.f32 1.0, %v11161_v48  ;;  %v11163_v44 = vpop.eup %11162 }
 0x51b   : > { %11168 = vrcp.f32 %v2372_v50  ;;  %v13390_v50 = vmov 0.0  }
 0x524   : > { %v11165_v51 = vpop.eup %11164 }
 0x525   : > { %v11167_v52 = vpop.eup %11166  ;;  %v2375_v35 = vmul.f32 %v11165_v51, %v11163_v44  ;;  %v13392_v44 = vmov 0.0  }
 0x528   : > { %v11169_v53 = vpop.eup %11168 }
 0x529   : > { %v2376_v54 = vmul.f32 %v11169_v53, %v11167_v52 }
 0x52b   : > { %v2377_v55 = vpack.c.bf16 %v2376_v54, %v2375_v35 }
 0x52d   : > { %2516 = vmatmul.mubr.bf16.vlgmr.msra.gmra.mxu1 %v2377_v55 }
 0x52e   : > { %10405 = vmatprep.mubr.msk.bf16.mxu1 %vm12739_vm0, %v12738_v0  ;;  %10390 = vmatpush3.bf16.msra.mxu1 %v11150_v58 }
 0x52f   : > { %10391 = vmatprep.subr.bf16.mxu1 %v12738_v0 }
 0x532   : > { %10392 = vmatpush3.bf16.msra.mxu1 %v11151_v59 }
 0x533   : > { %10393 = vmatprep.subr.bf16.mxu1 %v12738_v0 }
 0x536   : > { %10394 = vmatpush3.bf16.msra.mxu1 %v11152_v60 }
 0x537   : > { %10395 = vmatprep.subr.bf16.mxu1 %v12738_v0 }
 0x53a   : > { %10396 = vmatpush3.bf16.msra.mxu1 %v11153_v61 }
 0x53b   : > { %10397 = vmatprep.subr.bf16.mxu1 %v12738_v0 }
 0x53e   : > { %10398 = vmatpush3.bf16.msra.mxu1 %v11154_v62 }
 0x53f   : > { %10399 = vmatprep.subr.bf16.mxu1 %v12738_v0 }
 0x542   : > { %10400 = vmatpush3.bf16.msra.mxu1 %v11155_v22 }
 0x543   : > { %10401 = vmatprep.subr.bf16.mxu1 %v12738_v0 }
 0x546   : > { %10402 = vmatpush3.bf16.msra.mxu1 %v11156_v23 }
 0x547   : > { %10403 = vmatprep.subr.bf16.mxu1 %v12738_v0 }
 0x54a   : > { %10404 = vmatpush3.bf16.msra.mxu1 %v11157_v24 }
 0x5ed   : > { %v2517_v5 = vpop.f32.mrf.mxu1 }
 0x5ee   : > { %v2518_v6 = vadd.f32 %v2517_v5, %v2401_v4 }
 0x5ef   : > { %v2519_v7 = vpop.f32.mrf.mxu1 }
 0x5f0   : > { %v2524_v10 = vadd.f32 %v2518_v6, %v14251_v12  ;;  %v9262_v12 = vld [vmem:[#allocation18] ss:$0 sm:$0xff] }
 0x5f1   : > { %v2520_v8 = vpop.f32.mrf.mxu1 }
 0x5f2   : > { %v2521_v11 = vadd.f32 %v2520_v8, %v2401_v4  ;;  %v2526_v17 = vmul.f32 %v2524_v10, %v13132_v18 }
 0x5f3   : > { %v2522_v13 = vpop.f32.mrf.mxu1 }
 0x5f4   : > { %v2525_v16 = vadd.f32 %v2521_v11, %v14252_v21 }
 0x5f6   : > { %v2527_v19 = vmul.f32 %v2525_v16, %v13135_v25 }
 0x5f8   : > { %v2528_v20 = vpack.c.bf16 %v2527_v19, %v2526_v17 }
 0x5fa   : > { %10386 = vmatmul.mubr.bf16.vlgmr.msra.gmra.mxu0 %v2528_v20 }
 0x6ba   : > { %v2634_v26 = vpop.f32.mrf.mxu0 }
 0x6bb   : > { %v2635_v33 = vadd.f32 %v9262_v12, %v2634_v26 }
 0x6bc   : > { %v10387_v21 = vpop.f32.mrf.mxu0 }
 0x6bd   : > { %v2641_v37 = vmul.f32 %v2635_v33, %v13132_v18 }
 0x6be   : > { %v2637_v34 = vpop.f32.mrf.mxu0 }
 0x6bf   : > { %v2638_v36 = vadd.f32 %v9262_v12, %v2637_v34  ;;  %v13382_v42 = vadd.f32 %v2643_v31, %v2641_v37 }
 0x6c0   : > { %v10388_v39 = vpop.f32.mrf.mxu0 }
 0x6c1   : > { %v2642_v40 = vmul.f32 %v2638_v36, %v13135_v25 }
 0x6c3   : > { %v13384_v27 = vadd.f32 %v2644_v38, %v2642_v40 }
 0x6c5   : > { %v2647_v28 = vpack.c.bf16 %v13384_v27, %v13382_v42 }
 0x6c7   : > { %10406 = vmatmul.mubr.bf16.vlgmr.msra.gmra.mxu1 %v2647_v28 }
 0x787   : > { %v2755_v43 = vpop.f32.mrf.mxu1 }
 0x788   : > { %v2756_v45 = vadd.f32 %v9271_v29, %v2755_v43 }
 0x789   : > { %v10407_v46 = vpop.f32.mrf.mxu1 }
 0x78a   : > { %v2762_v2 = vmul.f32 %v2756_v45, %v13132_v18  }
 0x78b   : > { %v2758_v47 = vpop.f32.mrf.mxu1 }
 0x78c   : > { %v2759_v30 = vadd.f32 %v9271_v29, %v2758_v47 }
 0x78d   : > { %v10408_v3 = vpop.f32.mrf.mxu1 }
 0x78e   : > { %v2763_v48 = vmul.f32 %v2759_v30, %v13135_v25  }
 0x78f LB: >> { %s8771_s29 = smul.u32 640, %s12678_s28  ;;  %v10263_v51 = vpack.c.bf16 %v12674_v2, %v12674_v2  ;;  %v10264_v52 = vpack.c.bf16 %v12670_v48, %v12670_v48  ;;  %s9449_s13 = sshll.u32 %s12678_s28, 7  ;;  %s12678_s28 = sphi %s13398_s28, %s2769_s28   ;;  %v12674_v2 = vphi %v2762_v2, %v14262_v2   ;;  %v12670_v48 = vphi %v2763_v48, %v14261_v48   ;;  %v12666_v44 = vphi %v13392_v44, %v14260_v44   ;;  %v12662_v50 = vphi %v13390_v50, %v14259_v50  }
 0x790   : >> { %s8778_s26 = scalar_lea.vmem [#allocation14], %s9449_s13  ;;  %s9367_s7 = sshll.u32 %s12678_s28, 1 }
 0x791   : >> { %v2781_v53 = vrot.slane %v10263_v51, 7  ;;  %v2783_v35 = vrot.slane %v10264_v52, 7  ;;  %s13420_s19 = scalar_lea.vmem [#allocation11], %s8771_s29  ;;  %s8775_s10 = scalar_lea.vmem [#allocation12], %s9367_s7 }
 0x792   : >> { %v11170_v54 = vld [vmem:[%s13420_s19 + $0xa74] ss:$8 sps:$4 sm:$0xff]   ;;  %v11172_v55 = vld [vmem:[%s13420_s19 + $0xa70] ss:$8 sps:$4 sm:$0xff]   ;;  %v11176_v59 = vld [vmem:[%s13420_s19 + $0xa64] ss:$8 sps:$4 sm:$0xff]  }
 0x793   : >> { %v2782_v56 = vrot.slane %v2781_v53, 4  ;;  %v2785_v49 = vrot.slane %v2783_v35, 4  ;;  %2789 = vst [vmem:[#allocation2] sm:$0xe] %v2781_v53  ;;  %3352 = vmatprep.subr.bf16.mxu0 %v11170_v54  ;;  %v11173_v57 = vld [vmem:[%s13420_s19 + $0xb74] ss:$8 sps:$4 sm:$0xff]  }
 0x794   : >> { %v11175_v58 = vld [vmem:[%s13420_s19 + $0xb70] ss:$8 sps:$4 sm:$0xff]   ;;  %3353 = vmatpush1.bf16.msra.mxu0 %v11172_v55  ;;  %v11178_v60 = vld [vmem:[%s13420_s19 + $0xa60] ss:$8 sps:$4 sm:$0xff]   ;;  %3395 = vmatprep.subr.bf16.mxu1 %v11173_v57  ;;  %v11179_v62 = vld [vmem:[%s13420_s19 + $0xb64] ss:$8 sps:$4 sm:$0xff]  }
 0x795   : >> { %v2784_v61 = vsel %vm13174_vm3, %v2782_v56, %v2783_v35  ;;  %2791 = vst [vmem:[#allocation2 + $0x8] sm:$0x1] %v2785_v49  ;;  %3396 = vmatpush1.bf16.msra.mxu1 %v11175_v58  ;;  %3354 = vmatprep.subr.bf16.mxu0 %v11176_v59  ;;  %v11181_v63 = vld [vmem:[%s13420_s19 + $0xb60] ss:$8 sps:$4 sm:$0xff]   ;;  %v11182_v4 = vld [vmem:[%s13420_s19 + $0xa54] ss:$8 sps:$4 sm:$0xff]  }
 0x796   : >> { %2790 = vst [vmem:[#allocation2 + $0x4] sm:$0xf] %v2784_v61  ;;  %3397 = vmatprep.subr.bf16.mxu1 %v11179_v62  ;;  %v11184_v5 = vld [vmem:[%s13420_s19 + $0xa50] ss:$8 sps:$4 sm:$0xff]   ;;  %v11185_v6 = vld [vmem:[%s13420_s19 + $0xb54] ss:$8 sps:$4 sm:$0xff]  }
 0x797   : >> { %v11188_v7 = vld [vmem:[%s13420_s19 + $0xa44] ss:$8 sps:$4 sm:$0xff]   ;;  %v11187_v8 = vld [vmem:[%s13420_s19 + $0xb50] ss:$8 sps:$4 sm:$0xff]   ;;  %v11190_v11 = vld [vmem:[%s13420_s19 + $0xa40] ss:$8 sps:$4 sm:$0xff]  }
 0x798   : >> { %3355 = vmatpush1.bf16.msra.mxu0 %v11178_v60  ;;  %v11191_v10 = vld [vmem:[%s13420_s19 + $0xb44] ss:$8 sps:$4 sm:$0xff]   ;;  %v11194_v13 = vld [vmem:[%s13420_s19 + $0xa34] ss:$8 sps:$4 sm:$0xff]   ;;  %v11193_v16 = vld [vmem:[%s13420_s19 + $0xb40] ss:$8 sps:$4 sm:$0xff]  }
 0x799   : >> { %3356 = vmatprep.subr.bf16.mxu0 %v11182_v4  ;;  %3398 = vmatpush1.bf16.msra.mxu1 %v11181_v63  ;;  %v11197_v17 = vld [vmem:[%s13420_s19 + $0xb34] ss:$8 sps:$4 sm:$0xff]   ;;  %v11196_v19 = vld [vmem:[%s13420_s19 + $0xa30] ss:$8 sps:$4 sm:$0xff]   ;;  %v11200_v20 = vld [vmem:[%s13420_s19 + $0xa24] ss:$8 sps:$4 sm:$0xff]  }
 0x79a   : >> { %3399 = vmatprep.subr.bf16.mxu1 %v11185_v6  ;;  %v11199_v22 = vld [vmem:[%s13420_s19 + $0xb30] ss:$8 sps:$4 sm:$0xff]   ;;  %v11203_v23 = vld [vmem:[%s13420_s19 + $0xb24] ss:$8 sps:$4 sm:$0xff]   ;;  %v11202_v24 = vld [vmem:[%s13420_s19 + $0xa20] ss:$8 sps:$4 sm:$0xff]  }
 0x79b   : >> { %v11206_v12 = vld [vmem:[%s13420_s19 + $0xa14] ss:$8 sps:$4 sm:$0xff]   ;;  %v11205_v26 = vld [vmem:[%s13420_s19 + $0xb20] ss:$8 sps:$4 sm:$0xff]   ;;  %v11208_v21 = vld [vmem:[%s13420_s19 + $0xa10] ss:$8 sps:$4 sm:$0xff]  }
 0x79c   : >> { %3357 = vmatpush1.bf16.msra.mxu0 %v11184_v5  ;;  %v11209_v33 = vld [vmem:[%s13420_s19 + $0xb14] ss:$8 sps:$4 sm:$0xff]   ;;  %v11212_v34 = vld [vmem:[%s13420_s19 + $0xa04] ss:$8 sps:$4 sm:$0xff]   ;;  %v11211_v37 = vld [vmem:[%s13420_s19 + $0xb10] ss:$8 sps:$4 sm:$0xff]  }
 0x79d   : >> { %3358 = vmatprep.subr.bf16.mxu0 %v11188_v7  ;;  %3400 = vmatpush1.bf16.msra.mxu1 %v11187_v8  ;;  %v11215_v31 = vld [vmem:[%s13420_s19 + $0xb04] ss:$8 sps:$4 sm:$0xff]   ;;  %v11214_v36 = vld [vmem:[%s13420_s19 + $0xa00] ss:$8 sps:$4 sm:$0xff]   ;;  %v11218_v38 = vld [vmem:[%s13420_s19 + $0xaf4] ss:$8 sps:$4 sm:$0xff]  }
 0x79e   : >> { %3401 = vmatprep.subr.bf16.mxu1 %v11191_v10  ;;  %v11217_v39 = vld [vmem:[%s13420_s19 + $0xb00] ss:$8 sps:$4 sm:$0xff]   ;;  %v11221_v40 = vld [vmem:[%s13420_s19 + $0xbf4] ss:$8 sps:$4 sm:$0xff]   ;;  %v11220_v28 = vld [vmem:[%s13420_s19 + $0xaf0] ss:$8 sps:$4 sm:$0xff]  }
 0x79f   : >> { %v11224_v29 = vld [vmem:[%s13420_s19 + $0xae4] ss:$8 sps:$4 sm:$0xff]   ;;  %v11223_v43 = vld [vmem:[%s13420_s19 + $0xbf0] ss:$8 sps:$4 sm:$0xff]   ;;  %v11226_v46 = vld [vmem:[%s13420_s19 + $0xae0] ss:$8 sps:$4 sm:$0xff]  }
 0x7a0   : >> { %3359 = vmatpush1.bf16.msra.mxu0 %v11190_v11  ;;  %v11227_v45 = vld [vmem:[%s13420_s19 + $0xbe4] ss:$8 sps:$4 sm:$0xff]   ;;  %v11230_v47 = vld [vmem:[%s13420_s19 + $0xad4] ss:$8 sps:$4 sm:$0xff]   ;;  %v11229_v30 = vld [vmem:[%s13420_s19 + $0xbe0] ss:$8 sps:$4 sm:$0xff]  }
 0x7a1   : >> { %3360 = vmatprep.subr.bf16.mxu0 %v11194_v13  ;;  %3402 = vmatpush1.bf16.msra.mxu1 %v11193_v16  ;;  %v11233_v3 = vld [vmem:[%s13420_s19 + $0xbd4] ss:$8 sps:$4 sm:$0xff]   ;;  %v11232_v51 = vld [vmem:[%s13420_s19 + $0xad0] ss:$8 sps:$4 sm:$0xff]   ;;  %v11236_v53 = vld [vmem:[%s13420_s19 + $0xac4] ss:$8 sps:$4 sm:$0xff]  }
 0x7a2   : >> { %3403 = vmatprep.subr.bf16.mxu1 %v11197_v17  ;;  %v11235_v52 = vld [vmem:[%s13420_s19 + $0xbd0] ss:$8 sps:$4 sm:$0xff]   ;;  %v11238_v35 = vld [vmem:[%s13420_s19 + $0xac0] ss:$8 sps:$4 sm:$0xff]   ;;  %v11239_v54 = vld [vmem:[%s13420_s19 + $0xbc4] ss:$8 sps:$4 sm:$0xff]  }
 0x7a3   : >> { %v2792_v55 = vld [vmem:[#allocation2] sm:$0xf]  ;;  %v13471_v56 = vld [vmem:[#allocation2 + $0x4] sm:$0xf]  ;;  %v11242_v59 = vld [vmem:[%s13420_s19 + $0xab4] ss:$8 sps:$4 sm:$0xff]  }
 0x7a4   : >> { %3361 = vmatpush1.bf16.msra.mxu0 %v11196_v19  ;;  %v13474_v49 = vcombine.low %v2792_v55, %v13471_v56  ;;  %v13476_v57 = vld [vmem:[#allocation2 + $0x8] ss:$0 sps:$4 sm:$0x11]   ;;  %v11244_v60 = vld [vmem:[%s13420_s19 + $0xab0] ss:$8 sps:$4 sm:$0xff]   ;;  %v12742_v55 = vmov 0  }
 0x7a5   : >> { %3362 = vmatprep.subr.bf16.mxu0 %v11200_v20  ;;  %3404 = vmatpush1.bf16.msra.mxu1 %v11199_v22  ;;  %v11241_v58 = vld [vmem:[%s13420_s19 + $0xbc0] ss:$8 sps:$4 sm:$0xff]   ;;  %v11245_v61 = vld [vmem:[%s13420_s19 + $0xbb4] ss:$8 sps:$4 sm:$0xff]   ;;  %v2815_v4 = vshll.u32 %v13476_v57, 16  ;;  %s8781_s4 = scalar_lea.vmem [#allocation15], %s9367_s7 }
 0x7a6   : >> { %3405 = vmatprep.subr.bf16.mxu1 %v11203_v23  ;;  %v2808_v62 = vshrl.u32 %v13474_v49, 16  ;;  %v2810_v63 = vshll.u32 %v13474_v49, 16  ;;  %v2795_v5 = vld [vmem:[#allocation2] sm:$0xe]  ;;  %v11248_v11 = vld [vmem:[%s13420_s19 + $0xaa4] ss:$8 sps:$4 sm:$0xff]  }
 0x7a7   : >> { %v2817_v7 = vrot.slane %v2815_v4, 1  ;;  %v9284_v8 = vcombine.low %v2795_v5, %v13471_v56  ;;  %v13486_v10 = vld [vmem:[#allocation2 + $0x8] ss:$0 sps:$4 sm:$0x33]   ;;  %v11247_v13 = vld [vmem:[%s13420_s19 + $0xbb0] ss:$8 sps:$4 sm:$0xff]  }
 0x7a8   : >> { %3363 = vmatpush1.bf16.msra.mxu0 %v11202_v24  ;;  %v2812_v6 = vrot.slane %v2810_v63, 1  ;;  %v2839_v20 = vshrl.u32 %v13486_v10, 16  ;;  %v11251_v22 = vld [vmem:[%s13420_s19 + $0xba4] ss:$8 sps:$4 sm:$0xff]   ;;  %v2842_v23 = vshll.u32 %v13486_v10, 16  ;;  %s2769_s28 = sadd.s32 1, %s12678_s28  }
 0x7a9   : >> { %3364 = vmatprep.subr.bf16.mxu0 %v11206_v12  ;;  %3406 = vmatpush1.bf16.msra.mxu1 %v11205_v26  ;;  %v2831_v17 = vshrl.u32 %v9284_v8, 16  ;;  %v2834_v19 = vshll.u32 %v9284_v8, 16  ;;  %v11250_v24 = vld [vmem:[%s13420_s19 + $0xaa0] ss:$8 sps:$4 sm:$0xff]   ;;  %v11290_v4 = vld [vmem:[%s13420_s19 + $0xc14] ss:$8 sps:$4 sm:$0xff]  }
 0x7aa   : >> { %3407 = vmatprep.subr.bf16.mxu1 %v11209_v33  ;;  %v2813_v16 = vor.u32 %v2812_v6, %v2808_v62  ;;  %v11287_v62 = vld [vmem:[%s13420_s19 + $0xc24] ss:$8 sps:$4 sm:$0xff]   ;;  %v11285_v63 = vld [vmem:[%s13420_s19 + $0xc20] ss:$8 sps:$4 sm:$0xff]   ;;  %v11288_v6 = vld [vmem:[%s13420_s19 + $0xc10] ss:$8 sps:$4 sm:$0xff]  }
 0x7ab   : >> { %v2833_v26 = vrot.slane %v2831_v17, 1  ;;  %v2836_v33 = vrot.slane %v2834_v19, 2  ;;  %v2797_v5 = vld [vmem:[#allocation2] sm:$0xc]  ;;  %v11297_v19 = vld [vmem:[%s8778_s26 + $0x274] ss:$8 sps:$4 sm:$0xff]  }
 0x7ac   : >> { %3365 = vmatpush1.bf16.msra.mxu0 %v11208_v21  ;;  %v2818_v12 = vsel %vm799_vm4, %v2813_v16, %v2817_v7  ;;  %v2841_v21 = vrot.slane %v2839_v20, 1  ;;  %v9286_v7 = vcombine.low %v2797_v5, %v13471_v56  ;;  %v2852_v16 = vrot.slane %v13486_v10, 2  ;;  %v11295_v20 = vld [vmem:[%s8778_s26 + $0x270] ss:$8 sps:$4 sm:$0xff]   ;;  %v11298_v56 = vld [vmem:[%s8778_s26 + $0x260] ss:$8 sps:$4 sm:$0xff]  }
 0x7ad   : >> { %3366 = vmatprep.subr.bf16.mxu0 %v11212_v34  ;;  %3408 = vmatpush1.bf16.msra.mxu1 %v11211_v37  ;;  %v11254_v34 = vld [vmem:[%s13420_s19 + $0xa94] ss:$8 sps:$4 sm:$0xff]   ;;  %v2844_v37 = vrot.slane %v2842_v23, 2  ;;  %v11306_v10 = vld [vmem:[%s8778_s26 + $0x244] ss:$8 sps:$4 sm:$0xff]   ;;  %p2766_p1 = scmp.ge.s32.totalorder %s2769_s28, 3  }
 0x7ae   : >> { %3409 = vmatprep.subr.bf16.mxu1 %v11215_v31  ;;  %3384 = vmatprep.mubr.bf16.mxu0 %v2818_v12  ;;  %v11253_v31 = vld [vmem:[%s13420_s19 + $0xba0] ss:$8 sps:$4 sm:$0xff]   ;;  %v11303_v23 = vld [vmem:[%s8778_s26 + $0x254] ss:$8 sps:$4 sm:$0xff]   ;;  %s13636_s9 = smov (%p2766_p1), 0  }
 0x7af   : >> { %v11304_v12 = vld [vmem:[%s8778_s26 + $0x240] ss:$8 sps:$4 sm:$0xff]  }
 0x7b0   : >> { %3367 = vmatpush1.bf16.msra.mxu0 %v11214_v36  ;;  %v2837_v36 = vor.u32 %v2836_v33, %v2833_v26  ;;  %v11307_v26 = vld [vmem:[%s8778_s26 + $0x230] ss:$8 sps:$4 sm:$0xff]   ;;  %v11309_v33 = vld [vmem:[%s8778_s26 + $0x234] ss:$8 sps:$4 sm:$0xff]  }
 0x7b1   : >> { %3368 = vmatprep.subr.bf16.mxu0 %v11218_v38  ;;  %3410 = vmatpush1.bf16.msra.mxu1 %v11217_v39  ;;  %v11257_v38 = vld [vmem:[%s13420_s19 + $0xb94] ss:$8 sps:$4 sm:$0xff]   ;;  %v2845_v39 = vor.u32 %v2844_v37, %v2841_v21  ;;  %v11312_v21 = vld [vmem:[%s8778_s26 + $0x224] ss:$8 sps:$4 sm:$0xff]  }
 0x7b2   : >> { %3411 = vmatprep.subr.bf16.mxu1 %v11221_v40  ;;  %v11256_v40 = vld [vmem:[%s13420_s19 + $0xa90] ss:$8 sps:$4 sm:$0xff]   ;;  %v11315_v37 = vld [vmem:[%s8778_s26 + $0x214] ss:$8 sps:$4 sm:$0xff]  }
 0x7b4   : >> { %3369 = vmatpush2.bf16.msra.mxu0 %v11220_v28  ;;  %v11260_v28 = vld [vmem:[%s13420_s19 + $0xa84] ss:$8 sps:$4 sm:$0xff]  }
 0x7b5   : >> { %3370 = vmatprep.subr.bf16.mxu0 %v11224_v29  ;;  %3412 = vmatpush2.bf16.msra.mxu1 %v11223_v43  ;;  %v2846_v29 = vsel %vm824_vm5, %v2837_v36, %v2845_v39  ;;  %v11259_v43 = vld [vmem:[%s13420_s19 + $0xb90] ss:$8 sps:$4 sm:$0xff]   ;;  %v11318_v36 = vld [vmem:[%s8778_s26 + $0x204] ss:$8 sps:$4 sm:$0xff]  }
 0x7b6   : >> { %3413 = vmatprep.subr.bf16.mxu1 %v11227_v45  ;;  %3427 = vmatprep.mubr.bf16.mxu1 %v2846_v29  ;;  %v11263_v45 = vld [vmem:[%s13420_s19 + $0xb84] ss:$8 sps:$4 sm:$0xff]  }
 0x7b8   : >> { %3371 = vmatpush2.bf16.msra.mxu0 %v11226_v46  ;;  %v11262_v46 = vld [vmem:[%s13420_s19 + $0xa80] ss:$8 sps:$4 sm:$0xff]  }
 0x7b9   : >> { %3372 = vmatprep.subr.bf16.mxu0 %v11230_v47  ;;  %3414 = vmatpush2.bf16.msra.mxu1 %v11229_v30  ;;  %v11270_v47 = vld [vmem:[%s13420_s19 + $0xc74] ss:$8 sps:$4 sm:$0xff]   ;;  %v11267_v30 = vld [vmem:[%s13420_s19 + $0xb80] ss:$8 sps:$4 sm:$0xff]  }
 0x7ba   : >> { %3415 = vmatprep.subr.bf16.mxu1 %v11233_v3  ;;  %v2823_v3 = vrot.slane %v9284_v8, 1  ;;  %v11293_v8 = vld [vmem:[%s13420_s19 + $0xc04] ss:$8 sps:$4 sm:$0xff]  }
 0x7bc   : >> { %3373 = vmatpush2.bf16.msra.mxu0 %v11232_v51  ;;  %v2824_v51 = vrot.slane %v13476_v57, 1  ;;  %v11278_v57 = vld [vmem:[%s13420_s19 + $0xc54] ss:$8 sps:$4 sm:$0xff]  }
 0x7bd   : >> { %3374 = vmatprep.subr.bf16.mxu0 %v11236_v53  ;;  %3416 = vmatpush2.bf16.msra.mxu1 %v11235_v52  ;;  %v11268_v52 = vld [vmem:[%s13420_s19 + $0xc70] ss:$8 sps:$4 sm:$0xff]   ;;  %v11275_v53 = vld [vmem:[%s13420_s19 + $0xc64] ss:$8 sps:$4 sm:$0xff]  }
 0x7be   : >> { %3417 = vmatprep.subr.bf16.mxu1 %v11239_v54  ;;  %v11273_v54 = vld [vmem:[%s13420_s19 + $0xc60] ss:$8 sps:$4 sm:$0xff]  }
 0x7c0   : >> { %3375 = vmatpush2.bf16.msra.mxu0 %v11238_v35  ;;  %v2825_v35 = vsel %vm816_vm6, %v2823_v3, %v2824_v51 }
 0x7c1   : >> { %3376 = vmatprep.subr.bf16.mxu0 %v11242_v59  ;;  %3418 = vmatpush2.bf16.msra.mxu1 %v11241_v58  ;;  %v11276_v58 = vld [vmem:[%s13420_s19 + $0xc50] ss:$8 sps:$4 sm:$0xff]   ;;  %v11281_v59 = vld [vmem:[%s13420_s19 + $0xc44] ss:$8 sps:$4 sm:$0xff]  }
 0x7c2   : >> { %3419 = vmatprep.subr.bf16.mxu1 %v11245_v61  ;;  %v11282_v61 = vld [vmem:[%s13420_s19 + $0xc30] ss:$8 sps:$4 sm:$0xff]  }
 0x7c4   : >> { %3377 = vmatpush2.bf16.msra.mxu0 %v11244_v60  ;;  %v11284_v60 = vld [vmem:[%s13420_s19 + $0xc34] ss:$8 sps:$4 sm:$0xff]  }
 0x7c5   : >> { %3378 = vmatprep.subr.bf16.mxu0 %v11248_v11  ;;  %3420 = vmatpush2.bf16.msra.mxu1 %v11247_v13  ;;  %v11291_v11 = vld [vmem:[%s13420_s19 + $0xc00] ss:$8 sps:$4 sm:$0xff]   ;;  %v2851_v13 = vrot.slane %v9286_v7, 2 }
 0x7c6   : >> { %3421 = vmatprep.subr.bf16.mxu1 %v11251_v22  ;;  %v11300_v22 = vld [vmem:[%s8778_s26 + $0x264] ss:$8 sps:$4 sm:$0xff]  }
 0x7c7   : >> { %v2853_v17 = vsel %vm846_vm7, %v2851_v13, %v2852_v16 }
 0x7c8   : >> { %3379 = vmatpush2.bf16.msra.mxu0 %v11250_v24  ;;  %v11301_v24 = vld [vmem:[%s8778_s26 + $0x250] ss:$8 sps:$4 sm:$0xff]  }
 0x7c9   : >> { %3380 = vmatprep.subr.bf16.mxu0 %v11254_v34  ;;  %3422 = vmatpush2.bf16.msra.mxu1 %v11253_v31  ;;  %v11310_v34 = vld [vmem:[%s8778_s26 + $0x220] ss:$8 sps:$4 sm:$0xff]   ;;  %v11313_v31 = vld [vmem:[%s8778_s26 + $0x210] ss:$8 sps:$4 sm:$0xff]  }
 0x7ca   : >> { %3423 = vmatprep.subr.bf16.mxu1 %v11257_v38  ;;  %v11316_v38 = vld [vmem:[%s8778_s26 + $0x200] ss:$8 sps:$4 sm:$0xff]  }
 0x7cc   : >> { %3381 = vmatpush2.bf16.msra.mxu0 %v11256_v40  ;;  %v9368_v40 = vld [vmem:[%s8775_s10 + $0x8] sm:$0x3] }
 0x7cd   : >> { %3382 = vmatprep.subr.bf16.mxu0 %v11260_v28  ;;  %3424 = vmatpush2.bf16.msra.mxu1 %v11259_v43  ;;  %v2949_v43 = vrot.slane %v9368_v40, %v13287_v9 }
 0x7ce   : >> { %3425 = vmatprep.subr.bf16.mxu1 %v11263_v45 }
 0x7d0   : >> { %3383 = vmatpush2.bf16.msra.mxu0 %v11262_v46 }
 0x7d1   : >> { %3438 = vmatprep.subr.bf16.mxu0 %v11270_v47  ;;  %3426 = vmatpush2.bf16.msra.mxu1 %v11267_v30 }
 0x7d2   : >> { %3608 = vmatprep.subr.bf16.mxu1 %v11297_v19 }
 0x7d3   : >> { %3385 = vmatmul.mubr.bf16.vlgmr.msra.gmra.mxu0 %v13474_v49  ;;  %v11279_v49 = vld [vmem:[%s13420_s19 + $0xc40] ss:$8 sps:$4 sm:$0xff]  }
 0x7d4   : >> { %3439 = vmatpush1.bf16.msra.mxu0 %v11268_v52  ;;  %3470 = vmatprep.mubr.bf16.mxu0 %v12742_v55 }
 0x7d5   : >> { %3428 = vmatmul.mubr.bf16.vlgmr.msra.gmra.mxu1 %v2825_v35  ;;  %3440 = vmatprep.subr.bf16.mxu0 %v11275_v53 }
 0x7d6   : >> { %3640 = vmatprep.mubr.bf16.mxu1 %v12742_v55  ;;  %3609 = vmatpush1.bf16.msra.mxu1 %v11295_v20 }
 0x7d7   : >> { %3610 = vmatprep.subr.bf16.mxu1 %v11300_v22 }
 0x7d8   : >> { %3441 = vmatpush1.bf16.msra.mxu0 %v11273_v54 }
 0x7d9   : >> { %3442 = vmatprep.subr.bf16.mxu0 %v11278_v57 }
 0x7da   : >> { %3611 = vmatpush1.bf16.msra.mxu1 %v11298_v56 }
 0x7db   : >> { %3612 = vmatprep.subr.bf16.mxu1 %v11303_v23 }
 0x7dc   : >> { %3443 = vmatpush1.bf16.msra.mxu0 %v11276_v58 }
 0x7dd   : >> { %3444 = vmatprep.subr.bf16.mxu0 %v11281_v59 }
 0x7de   : >> { %3613 = vmatpush1.bf16.msra.mxu1 %v11301_v24 }
 0x7df   : >> { %3614 = vmatprep.subr.bf16.mxu1 %v11306_v10 }
 0x7e0   : >> { %3445 = vmatpush1.bf16.msra.mxu0 %v11279_v49 }
 0x7e1   : >> { %3446 = vmatprep.subr.bf16.mxu0 %v11284_v60 }
 0x7e2   : >> { %3615 = vmatpush1.bf16.msra.mxu1 %v11304_v12 }
 0x7e3   : >> { %3616 = vmatprep.subr.bf16.mxu1 %v11309_v33  ;;  %v9467_v33 = vld [vmem:[%s8781_s4 + $0x8] sm:$0x3] }
 0x7e4   : >> { %3447 = vmatpush1.bf16.msra.mxu0 %v11282_v61 }
 0x7e5   : >> { %3448 = vmatprep.subr.bf16.mxu0 %v11287_v62 }
 0x7e6   : >> { %3617 = vmatpush1.bf16.msra.mxu1 %v11307_v26 }
 0x7e7   : >> { %3618 = vmatprep.subr.bf16.mxu1 %v11312_v21  ;;  %v3521_v21 = vrot.slane %v9467_v33, %v13292_v41 }
 0x7e8   : >> { %3449 = vmatpush1.bf16.msra.mxu0 %v11285_v63 }
 0x7e9   : >> { %3450 = vmatprep.subr.bf16.mxu0 %v11290_v4  ;;  %v2945_v4 = vrot.slane %v9368_v40, %v13292_v41 }
 0x7ea   : >> { %3619 = vmatpush1.bf16.msra.mxu1 %v11310_v34  ;;  %v3525_v34 = vrot.slane %v9467_v33, %v13287_v9  ;;  %v11376_v33 = vld [vmem:[#allocation11 + $0x1284] ss:$8 sps:$4 sm:$0xff] (%p2766_p1)  }
 0x7eb   : >> { %3620 = vmatprep.subr.bf16.mxu1 %v11315_v37 }
 0x7ec   : >> { %3451 = vmatpush1.bf16.msra.mxu0 %v11288_v6 }
 0x7ed   : >> { %3452 = vmatprep.subr.bf16.mxu0 %v11293_v8 }
 0x7ee   : >> { %3621 = vmatpush1.bf16.msra.mxu1 %v11313_v31 }
 0x7ef   : >> { %3622 = vmatprep.subr.bf16.mxu1 %v11318_v36 }
 0x7f0   : >> { %3453 = vmatpush1.bf16.msra.mxu0 %v11291_v11 }
 0x7f2   : >> { %3623 = vmatpush1.bf16.msra.mxu1 %v11316_v38 }
 0x7f3   : >> { %3471 = vmatmul.mubr.bf16.vlgmr.msra.gmra.mxu0 %v2853_v17 }
 0x893   : >> { %v3386_v39 = vpop.f32.mrf.mxu0 }
 0x894   : >> { %v3387_v5 = vadd.f32 %v3386_v39, %v2945_v4 }
 0x895   : >> { %v3388_v28 = vpop.f32.mrf.mxu0  ;;  %v3429_v29 = vpop.f32.mrf.mxu1 }
 0x896   : >> { %v3389_v47 = vadd.f32 %v3388_v28, %v2949_v43  ;;  %v3430_v7 = vadd.f32 %v3429_v29, %v3387_v5  ;;  %v11348_v5 = vld [vmem:[#allocation11 + $0x12d0] ss:$8 sps:$4 sm:$0xff] (%p2766_p1)  }
 0x897   : >> { %v3390_v45 = vpop.f32.mrf.mxu0  ;;  %v3431_v46 = vpop.f32.mrf.mxu1 }
 0x898   : >> { %v3432_v52 = vadd.f32 %v3431_v46, %v3389_v47  ;;  %v3391_v6 = vadd.f32 %v3390_v45, %v2945_v4  ;;  %v11349_v4 = vld [vmem:[#allocation11 + $0x11c4] ss:$8 sps:$4 sm:$0xff] (%p2766_p1)  }
 0x899   : >> { %v3392_v30 = vpop.f32.mrf.mxu0  ;;  %v3433_v3 = vpop.f32.mrf.mxu1 }
 0x89a   : >> { %v3393_v53 = vadd.f32 %v3392_v30, %v2949_v43  ;;  %v3434_v11 = vadd.f32 %v3433_v3, %v3391_v6  ;;  %v11352_v6 = vld [vmem:[#allocation11 + $0x12c4] ss:$8 sps:$4 sm:$0xff] (%p2766_p1)  }
 0x89b   : >> { %v3435_v35 = vpop.f32.mrf.mxu1 }
 0x89c   : >> { %v3436_v58 = vadd.f32 %v3435_v35, %v3393_v53  ;;  %v11333_v53 = vld [vmem:[#allocation11 + $0x11f0] ss:$8 sps:$4 sm:$0xff] (%p2766_p1)   ;;  %v11334_v35 = vld [vmem:[#allocation11 + $0x12f4] ss:$8 sps:$4 sm:$0xff] (%p2766_p1)  }
 0x89d   : > { %4274 = vmatprep.subr.bf16.mxu1 (%p2766_p1), %v11334_v35 }
 0x8b3   : >> { %v3472_v51 = vpop.f32.mrf.mxu0 }
 0x8b4   : >> { %v3473_v13 = vadd.f32 %v3472_v51, %v3430_v7  ;;  %v11351_v7 = vld [vmem:[#allocation11 + $0x11c0] ss:$8 sps:$4 sm:$0xff] (%p2766_p1)  }
 0x8b5   : >> { %v3474_v54 = vpop.f32.mrf.mxu0 }
 0x8b6   : >> { %v3475_v55 = vadd.f32 %v3474_v54, %v3432_v52  ;;  %v11336_v54 = vld [vmem:[#allocation11 + $0x12f0] ss:$8 sps:$4 sm:$0xff] (%p2766_p1)  }
 0x8b7   : >> { %v3476_v57 = vpop.f32.mrf.mxu0 }
 0x8b8   : >> { %v3483_v59 = vsub.f32 0.0, %v3475_v55  ;;  %v3477_v17 = vadd.f32 %v3476_v57, %v3434_v11  ;;  %v11337_v57 = vld [vmem:[#allocation11 + $0x11e4] ss:$8 sps:$4 sm:$0xff] (%p2766_p1)   ;;  %v11354_v11 = vld [vmem:[#allocation11 + $0x12c0] ss:$8 sps:$4 sm:$0xff] (%p2766_p1)  }
 0x8b9   : >> { %v3478_v49 = vpop.f32.mrf.mxu0 }
 0x8ba   : >> { %v3485_v60 = vmul.f32 1.442695, %v3483_v59  ;;  %v3479_v61 = vadd.f32 %v3478_v49, %v3436_v58  ;;  %v11339_v58 = vld [vmem:[#allocation11 + $0x11e0] ss:$8 sps:$4 sm:$0xff] (%p2766_p1)   ;;  %v11340_v49 = vld [vmem:[#allocation11 + $0x12e4] ss:$8 sps:$4 sm:$0xff] (%p2766_p1)  }
 0x8bc   : >> { %11319 = vpow2.f32 %v3485_v60  ;;  %v3484_v62 = vsub.f32 0.0, %v3479_v61  ;;  %v11342_v61 = vld [vmem:[#allocation11 + $0x12e0] ss:$8 sps:$4 sm:$0xff] (%p2766_p1)  }
 0x8be   : >> { %v3487_v63 = vmul.f32 1.442695, %v3484_v62 }
 0x8c0   : >> { %11321 = vpow2.f32 %v3487_v63  ;;  %v11346_v63 = vld [vmem:[#allocation11 + $0x12d4] ss:$8 sps:$4 sm:$0xff] (%p2766_p1)  }
 0x8c1   : >> { %11323 = vtanh.f32 %v3473_v13  ;;  %v11358_v13 = vld [vmem:[#allocation11 + $0x12b4] ss:$8 sps:$4 sm:$0xff] (%p2766_p1)  }
 0x8c9   : >> { %v11320_v8 = vpop.eup %11319 }
 0x8ca   : >> { %v3489_v16 = vadd.f32 1.0, %v11320_v8  ;;  %v11355_v8 = vld [vmem:[#allocation11 + $0x11b4] ss:$8 sps:$4 sm:$0xff] (%p2766_p1)  }
 0x8cc   : >> { %11325 = vrcp.f32 %v3489_v16  ;;  %v11357_v16 = vld [vmem:[#allocation11 + $0x11b0] ss:$8 sps:$4 sm:$0xff] (%p2766_p1)  }
 0x8cd   : >> { %v11322_v19 = vpop.eup %11321  ;;  %11327 = vtanh.f32 %v3477_v17  ;;  %v11361_v17 = vld [vmem:[#allocation11 + $0x11a4] ss:$8 sps:$4 sm:$0xff] (%p2766_p1)  }
 0x8ce   : >> { %v3490_v20 = vadd.f32 1.0, %v11322_v19  ;;  %v11324_v22 = vpop.eup %11323  ;;  %v11360_v19 = vld [vmem:[#allocation11 + $0x12b0] ss:$8 sps:$4 sm:$0xff] (%p2766_p1)  }
 0x8d0   : >> { %11329 = vrcp.f32 %v3490_v20  ;;  %v11364_v20 = vld [vmem:[#allocation11 + $0x12a4] ss:$8 sps:$4 sm:$0xff] (%p2766_p1)  }
 0x8d9   : >> { %v11326_v56 = vpop.eup %11325 }
 0x8da   : >> { %v11328_v23 = vpop.eup %11327  ;;  %v3493_v10 = vmul.f32 %v11326_v56, %v11324_v22  ;;  %v11363_v22 = vld [vmem:[#allocation11 + $0x11a0] ss:$8 sps:$4 sm:$0xff] (%p2766_p1)   ;;  %v11367_v56 = vld [vmem:[#allocation11 + $0x1194] ss:$8 sps:$4 sm:$0xff] (%p2766_p1)  }
 0x8dd   : >> { %v11330_v24 = vpop.eup %11329 }
 0x8de   : >> { %v3494_v12 = vmul.f32 %v11330_v24, %v11328_v23  ;;  %v11366_v23 = vld [vmem:[#allocation11 + $0x12a0] ss:$8 sps:$4 sm:$0xff] (%p2766_p1)   ;;  %v11370_v24 = vld [vmem:[#allocation11 + $0x1294] ss:$8 sps:$4 sm:$0xff] (%p2766_p1)  }
 0x8e0   : >> { %v3495_v26 = vpack.c.bf16 %v3494_v12, %v3493_v10  ;;  %v11369_v10 = vld [vmem:[#allocation11 + $0x1190] ss:$8 sps:$4 sm:$0xff] (%p2766_p1)   ;;  %v11373_v12 = vld [vmem:[#allocation11 + $0x1184] ss:$8 sps:$4 sm:$0xff] (%p2766_p1)  }
 0x8e2   : >> { %3641 = vmatmul.mubr.bf16.vlgmr.msra.gmra.mxu1 %v3495_v26  ;;  %v11372_v26 = vld [vmem:[#allocation11 + $0x1290] ss:$8 sps:$4 sm:$0xff] (%p2766_p1)  }
 0x8e3   : > { %4275 = vmatpush1.bf16.msra.mxu1 (%p2766_p1), %v11336_v54 }
 0x8e4   : > { %4276 = vmatprep.subr.bf16.mxu1 (%p2766_p1), %v11340_v49  ;;  %v11406_v49 = vld [vmem:[#allocation11 + $0x1334] ss:$8 sps:$4 sm:$0xff] (%p2766_p1)  }
 0x8e7   : > { %4277 = vmatpush1.bf16.msra.mxu1 (%p2766_p1), %v11342_v61 }
 0x8e8   : > { %4278 = vmatprep.subr.bf16.mxu1 (%p2766_p1), %v11346_v63 }
 0x8eb   : > { %4279 = vmatpush1.bf16.msra.mxu1 (%p2766_p1), %v11348_v5  ;;  %v11409_v5 = vld [vmem:[#allocation11 + $0x1224] ss:$8 sps:$4 sm:$0xff] (%p2766_p1)  }
 0x8ec   : > { %4280 = vmatprep.subr.bf16.mxu1 (%p2766_p1), %v11352_v6  ;;  %v11408_v6 = vld [vmem:[#allocation11 + $0x1330] ss:$8 sps:$4 sm:$0xff] (%p2766_p1)  }
 0x8ef   : > { %4281 = vmatpush1.bf16.msra.mxu1 (%p2766_p1), %v11354_v11 }
 0x8f0   : > { %4282 = vmatprep.subr.bf16.mxu1 (%p2766_p1), %v11358_v13 }
 0x8f3   : > { %4283 = vmatpush1.bf16.msra.mxu1 (%p2766_p1), %v11360_v19  ;;  %v11411_v19 = vld [vmem:[#allocation11 + $0x1220] ss:$8 sps:$4 sm:$0xff] (%p2766_p1)  }
 0x8f4   : > { %4284 = vmatprep.subr.bf16.mxu1 (%p2766_p1), %v11364_v20 }
 0x8f7   : > { %4285 = vmatpush1.bf16.msra.mxu1 (%p2766_p1), %v11366_v23 }
 0x8f8   : > { %4286 = vmatprep.subr.bf16.mxu1 (%p2766_p1), %v11370_v24  ;;  %v11415_v24 = vld [vmem:[#allocation11 + $0x1214] ss:$8 sps:$4 sm:$0xff] (%p2766_p1)  }
 0x8fb   : > { %4287 = vmatpush1.bf16.msra.mxu1 (%p2766_p1), %v11372_v26 }
 0x8fc   : > { %4288 = vmatprep.subr.bf16.mxu1 (%p2766_p1), %v11376_v33  ;;  %v11418_v33 = vld [vmem:[#allocation11 + $0x1314] ss:$8 sps:$4 sm:$0xff] (%p2766_p1)  }
 0x9a2   : >> { %v3642_v37 = vpop.f32.mrf.mxu1 }
 0x9a3   : >> { %v3643_v31 = vadd.f32 %v3642_v37, %v3521_v21  ;;  %v11378_v37 = vld [vmem:[#allocation11 + $0x1280] ss:$8 sps:$4 sm:$0xff] (%p2766_p1)  }
 0x9a4   : >> { %v3644_v36 = vpop.f32.mrf.mxu1  ;;  %4289 = vmatpush1.bf16.msra.mxu1 (%p2766_p1), %v11378_v37  ;;  %v11421_v37 = vld [vmem:[#allocation11 + $0x1204] ss:$8 sps:$4 sm:$0xff] (%p2766_p1)  }
 0x9a5   : >> { %v3651_v38 = vadd.f32 %v12674_v2, %v3643_v31  ;;  %v3645_v39 = vadd.f32 %v3644_v36, %v3525_v34  ;;  %v11382_v31 = vld [vmem:[#allocation11 + $0x1374] ss:$8 sps:$4 sm:$0xff] (%p2766_p1)   ;;  %v11381_v36 = vld [vmem:[#allocation11 + $0x1270] ss:$8 sps:$4 sm:$0xff] (%p2766_p1)  }
 0x9a6   : >> { %v3646_v40 = vpop.f32.mrf.mxu1  ;;  %4290 = vmatprep.subr.bf16.mxu1 (%p2766_p1), %v11382_v31 }
 0x9a7   : >> { %v3653_v28 = vmul.f32 %v3651_v38, %v13132_v18   ;;  %v13540_v44 = vadd.f32 %v12666_v44, %v3645_v39   ;;  %v3647_v43 = vadd.f32 %v3646_v40, %v3521_v21  ;;  %v11375_v21 = vld [vmem:[#allocation11 + $0x1180] ss:$8 sps:$4 sm:$0xff] (%p2766_p1)   ;;  %v11385_v38 = vld [vmem:[#allocation11 + $0x1264] ss:$8 sps:$4 sm:$0xff] (%p2766_p1)   ;;  %v11384_v39 = vld [vmem:[#allocation11 + $0x1370] ss:$8 sps:$4 sm:$0xff] (%p2766_p1)  }
 0x9a8   : >> { %v3648_v45 = vpop.f32.mrf.mxu1  ;;  %v11388_v40 = vld [vmem:[#allocation11 + $0x1364] ss:$8 sps:$4 sm:$0xff] (%p2766_p1)   ;;  %4291 = vmatpush2.bf16.msra.mxu1 (%p2766_p1), %v11384_v39 }
 0x9a9   : >> { %v14257_v29 = vmov %v13540_v44  ;;  %v3652_v46 = vadd.f32 %v12670_v48, %v3647_v43  ;;  %v3649_v47 = vadd.f32 %v3648_v45, %v3525_v34  ;;  %v14262_v2 = vmov %v3653_v28  ;;  %v11379_v34 = vld [vmem:[#allocation11 + $0x1274] ss:$8 sps:$4 sm:$0xff] (%p2766_p1)   ;;  %v11390_v45 = vld [vmem:[#allocation11 + $0x1360] ss:$8 sps:$4 sm:$0xff] (%p2766_p1)   ;;  %4292 = vmatprep.subr.bf16.mxu1 (%p2766_p1), %v11388_v40  ;;  %v11424_v39 = vld [vmem:[#allocation11 + $0x1304] ss:$8 sps:$4 sm:$0xff] (%p2766_p1)  }
 0x9aa   : >> { %v14260_v44 = vmov %v14257_v29  ;;  %2768 = sbr.rel (!%p2766_p1) target bundleno = 1935 (0x78f), region = 257  ;;  %v11331_v2 = vld [vmem:[#allocation11 + $0x11f4] ss:$8 sps:$4 sm:$0xff] (%p2766_p1)   ;;  %v10265_v51 = vpack.c.bf16 (%p2766_p1), %v3653_v28, %v3653_v28  ;;  %v11387_v28 = vld [vmem:[#allocation11 + $0x1260] ss:$8 sps:$4 sm:$0xff] (%p2766_p1)  }
 0x9ab   : >> { %v3654_v30 = vmul.f32 %v3652_v46, %v13135_v25   ;;  %v13545_v50 = vadd.f32 %v12662_v50, %v3649_v47   ;;  %4231 = vmatprep.subr.bf16.mxu0 (%p2766_p1), %v11331_v2  ;;  %v11345_v44 = vld [vmem:[#allocation11 + $0x11d0] ss:$8 sps:$4 sm:$0xff] (%p2766_p1)   ;;  %v11391_v43 = vld [vmem:[#allocation11 + $0x1254] ss:$8 sps:$4 sm:$0xff] (%p2766_p1)   ;;  %v11397_v2 = vld [vmem:[#allocation11 + $0x1244] ss:$8 sps:$4 sm:$0xff] (%p2766_p1)  }
 0x9ac   : > { %v3663_v55 = vrot.slane (%p2766_p1), %v10265_v51, 7  ;;  %4232 = vmatpush1.bf16.msra.mxu0 (%p2766_p1), %v11333_v53  ;;  %v11394_v46 = vld [vmem:[#allocation11 + $0x1354] ss:$8 sps:$4 sm:$0xff] (%p2766_p1)   ;;  %v11393_v47 = vld [vmem:[#allocation11 + $0x1250] ss:$8 sps:$4 sm:$0xff] (%p2766_p1)   ;;  %4293 = vmatpush2.bf16.msra.mxu1 (%p2766_p1), %v11390_v45 }
 0x9ad   : >> { %v14258_v3 = vmov %v13545_v50  ;;  %v14261_v48 = vmov %v3654_v30  ;;  %v10266_v52 = vpack.c.bf16 (%p2766_p1), %v3654_v30, %v3654_v30  ;;  %4233 = vmatprep.subr.bf16.mxu0 (%p2766_p1), %v11337_v57  ;;  %v11396_v30 = vld [vmem:[#allocation11 + $0x1350] ss:$8 sps:$4 sm:$0xff] (%p2766_p1)   ;;  %v11399_v51 = vld [vmem:[#allocation11 + $0x1240] ss:$8 sps:$4 sm:$0xff] (%p2766_p1)   ;;  %4294 = vmatprep.subr.bf16.mxu1 (%p2766_p1), %v11394_v46  ;;  %v11431_v40 = vld [vmem:[#allocation11 + $0x13f4] ss:$8 sps:$4 sm:$0xff] (%p2766_p1)  }
 0x9ae   : >> { %v14259_v50 = vmov %v14258_v3  ;;  %v3664_v60 = vrot.slane (%p2766_p1), %v3663_v55, 4  ;;  %3671 = vst [vmem:[#allocation2] sm:$0xe] (%p2766_p1), %v3663_v55  ;;  %v11343_v48 = vld [vmem:[#allocation11 + $0x11d4] ss:$8 sps:$4 sm:$0xff] (%p2766_p1)  }
 0x9af   : > { %v3665_v59 = vrot.slane %v10266_v52, 7  ;;  %v11400_v52 = vld [vmem:[#allocation11 + $0x1344] ss:$8 sps:$4 sm:$0xff]   ;;  %v11402_v57 = vld [vmem:[#allocation11 + $0x1340] ss:$8 sps:$4 sm:$0xff]  }
 0x9b0   : > { %4234 = vmatpush1.bf16.msra.mxu0 %v11339_v58  ;;  %v11403_v58 = vld [vmem:[#allocation11 + $0x1234] ss:$8 sps:$4 sm:$0xff]   ;;  %4295 = vmatpush2.bf16.msra.mxu1 %v11396_v30 }
 0x9b1   : > { %v3667_v62 = vrot.slane %v3665_v59, 4  ;;  %v3666_v50 = vsel %vm13174_vm3, %v3664_v60, %v3665_v59  ;;  %4235 = vmatprep.subr.bf16.mxu0 %v11343_v48  ;;  %v11405_v59 = vld [vmem:[#allocation11 + $0x1230] ss:$8 sps:$4 sm:$0xff]   ;;  %4296 = vmatprep.subr.bf16.mxu1 %v11400_v52 }
 0x9b2   : > { %3672 = vst [vmem:[#allocation2 + $0x4] sm:$0xf] %v3666_v50  ;;  %v11437_v52 = vld [vmem:[#allocation11 + $0x13d0] ss:$8 sps:$4 sm:$0xff]  }
 0x9b3   : > { %3673 = vst [vmem:[#allocation2 + $0x8] sm:$0x1] %v3667_v62 }
 0x9b4   : > { %4236 = vmatpush1.bf16.msra.mxu0 %v11345_v44  ;;  %4297 = vmatpush2.bf16.msra.mxu1 %v11402_v57  ;;  %v11445_v57 = vld [vmem:[#allocation11 + $0x13b4] ss:$8 sps:$4 sm:$0xff]  }
 0x9b5   : > { %4237 = vmatprep.subr.bf16.mxu0 %v11349_v4  ;;  %v3674_v53 = vld [vmem:[#allocation2] sm:$0xf]  ;;  %4298 = vmatprep.subr.bf16.mxu1 %v11406_v49  ;;  %v11451_v49 = vld [vmem:[#allocation11 + $0x1394] ss:$8 sps:$4 sm:$0xff]  }
 0x9b6   : > { %v3677_v48 = vld [vmem:[#allocation2] sm:$0xe] }
 0x9b8   : > { %4238 = vmatpush1.bf16.msra.mxu0 %v11351_v7  ;;  %4299 = vmatpush2.bf16.msra.mxu1 %v11408_v6  ;;  %v11458_v6 = vld [vmem:[#allocation14 + $0x3f4] ss:$8 sps:$4 sm:$0xff]  }
 0x9b9   : > { %4239 = vmatprep.subr.bf16.mxu0 %v11355_v8  ;;  %v13562_v35 = vld [vmem:[#allocation2 + $0x4] sm:$0xf] }
 0x9ba   : > { %v13565_v54 = vcombine.low %v3674_v53, %v13562_v35  ;;  %v13567_v55 = vld [vmem:[#allocation2 + $0x8] ss:$0 sps:$4 sm:$0x11]   ;;  %v9488_v63 = vcombine.low %v3677_v48, %v13562_v35  ;;  %v11442_v53 = vld [vmem:[#allocation11 + $0x13c4] ss:$8 sps:$4 sm:$0xff]  }
 0x9bb   : > { %v3697_v62 = vshll.u32 %v13567_v55, 16  ;;  %v13573_v4 = vld [vmem:[#allocation2 + $0x8] ss:$0 sps:$4 sm:$0x33]   ;;  %v3706_v46 = vrot.slane %v13567_v55, 1 }
 0x9bc   : > { %4240 = vmatpush1.bf16.msra.mxu0 %v11357_v16  ;;  %v3690_v60 = vshrl.u32 %v13565_v54, 16  ;;  %v3692_v61 = vshll.u32 %v13565_v54, 16  ;;  %v3713_v8 = vshrl.u32 %v9488_v63, 16  ;;  %v3716_v11 = vshll.u32 %v9488_v63, 16  ;;  %v11412_v16 = vld [vmem:[#allocation11 + $0x1324] ss:$8 sps:$4 sm:$0xff]  }
 0x9bd   : > { %4241 = vmatprep.subr.bf16.mxu0 %v11361_v17  ;;  %v3699_v44 = vrot.slane %v3697_v62, 1  ;;  %v3721_v13 = vshrl.u32 %v13573_v4, 16  ;;  %v3724_v17 = vshll.u32 %v13573_v4, 16  ;;  %4300 = vmatprep.subr.bf16.mxu1 %v11412_v16  ;;  %v3705_v45 = vrot.slane %v9488_v63, 1  ;;  %v11440_v55 = vld [vmem:[#allocation11 + $0x13c0] ss:$8 sps:$4 sm:$0xff]  }
 0x9be   : > { %v3694_v50 = vrot.slane %v3692_v61, 1  ;;  %v11449_v61 = vld [vmem:[#allocation11 + $0x1390] ss:$8 sps:$4 sm:$0xff]   ;;  %v11454_v48 = vld [vmem:[#allocation11 + $0x1384] ss:$8 sps:$4 sm:$0xff]   ;;  %v3734_v63 = vrot.slane %v13573_v4, 2 }
 0x9bf   : > { %v3723_v23 = vrot.slane %v3721_v13, 1  ;;  %v3707_v30 = vsel %vm816_vm6, %v3705_v45, %v3706_v46  ;;  %v11462_v4 = vld [vmem:[#allocation14 + $0x3d0] ss:$8 sps:$4 sm:$0xff]   ;;  %v11467_v13 = vld [vmem:[#allocation14 + $0x3c4] ss:$8 sps:$4 sm:$0xff]  }
 0x9c0   : > { %4242 = vmatpush1.bf16.msra.mxu0 %v11363_v22  ;;  %v3695_v7 = vor.u32 %v3694_v50, %v3690_v60  ;;  %v3715_v22 = vrot.slane %v3713_v8, 1  ;;  %v3679_v60 = vld [vmem:[#allocation2] sm:$0xc]  ;;  %v11452_v50 = vld [vmem:[#allocation11 + $0x1380] ss:$8 sps:$4 sm:$0xff]  }
 0x9c1   : > { %4243 = vmatprep.subr.bf16.mxu0 %v11367_v56  ;;  %v3718_v56 = vrot.slane %v3716_v11, 2  ;;  %v9490_v62 = vcombine.low %v3679_v60, %v13562_v35  ;;  %v11461_v35 = vld [vmem:[#allocation14 + $0x3e4] ss:$8 sps:$4 sm:$0xff]   ;;  %v11459_v8 = vld [vmem:[#allocation14 + $0x3e0] ss:$8 sps:$4 sm:$0xff]  }
 0x9c2   : > { %v3700_v20 = vsel %vm799_vm4, %v3695_v7, %v3699_v44  ;;  %v11456_v7 = vld [vmem:[#allocation14 + $0x3f0] ss:$8 sps:$4 sm:$0xff]   ;;  %v11464_v11 = vld [vmem:[#allocation14 + $0x3d4] ss:$8 sps:$4 sm:$0xff]   ;;  %v11465_v16 = vld [vmem:[#allocation14 + $0x3c0] ss:$8 sps:$4 sm:$0xff]  }
 0x9c3   : > { %4263 = vmatprep.mubr.bf16.mxu0 %v3700_v20  ;;  %v3719_v26 = vor.u32 %v3718_v56, %v3715_v22  ;;  %v3733_v44 = vrot.slane %v9490_v62, 2  ;;  %v11473_v20 = vld [vmem:[#allocation14 + $0x3a4] ss:$8 sps:$4 sm:$0xff]   ;;  %v11471_v22 = vld [vmem:[#allocation14 + $0x3a0] ss:$8 sps:$4 sm:$0xff]  }
 0x9c4   : > { %4244 = vmatpush1.bf16.msra.mxu0 %v11369_v10  ;;  %v3726_v10 = vrot.slane %v3724_v17, 2  ;;  %v11468_v17 = vld [vmem:[#allocation14 + $0x3b0] ss:$8 sps:$4 sm:$0xff]   ;;  %v11476_v56 = vld [vmem:[#allocation14 + $0x394] ss:$8 sps:$4 sm:$0xff]  }
 0x9c5   : > { %4245 = vmatprep.subr.bf16.mxu0 %v11373_v12  ;;  %v11414_v12 = vld [vmem:[#allocation11 + $0x1320] ss:$8 sps:$4 sm:$0xff]  }
 0x9c6   : > { %4301 = vmatpush2.bf16.msra.mxu1 %v11414_v12  ;;  %v11480_v12 = vld [vmem:[#allocation17 + $0x78] sm:$0xff]  }
 0x9c7   : > { %4302 = vmatprep.subr.bf16.mxu1 %v11418_v33  ;;  %v11482_v33 = vld [vmem:[#allocation17 + $0x68] sm:$0xff]  }
 0x9c8   : > { %4246 = vmatpush1.bf16.msra.mxu0 %v11375_v21  ;;  %v3727_v21 = vor.u32 %v3726_v10, %v3723_v23  ;;  %v11474_v23 = vld [vmem:[#allocation14 + $0x390] ss:$8 sps:$4 sm:$0xff]   ;;  %v11477_v10 = vld [vmem:[#allocation14 + $0x380] ss:$8 sps:$4 sm:$0xff]  }
 0x9c9   : > { %4247 = vmatprep.subr.bf16.mxu0 %v11379_v34  ;;  %v11417_v34 = vld [vmem:[#allocation11 + $0x1210] ss:$8 sps:$4 sm:$0xff]  }
 0x9ca   : > { %v3728_v31 = vsel %vm824_vm5, %v3719_v26, %v3727_v21  ;;  %v11481_v26 = vld [vmem:[#allocation17 + $0x70] sm:$0xff]   ;;  %v11483_v21 = vld [vmem:[#allocation17 + $0x60] sm:$0xff]  }
 0x9cb   : > { %4306 = vmatprep.mubr.bf16.mxu1 %v3728_v31  ;;  %v3819_v31 = vld [vmem:[#allocation12 + $0xe] sm:$0x3] }
 0x9cc   : > { %4248 = vmatpush2.bf16.msra.mxu0 %v11381_v36  ;;  %v11420_v36 = vld [vmem:[#allocation11 + $0x1310] ss:$8 sps:$4 sm:$0xff]   ;;  %v3824_v62 = vrot.slane %v3819_v31, %v13292_v41 }
 0x9cd   : > { %4249 = vmatprep.subr.bf16.mxu0 %v11385_v38  ;;  %v11423_v38 = vld [vmem:[#allocation11 + $0x1200] ss:$8 sps:$4 sm:$0xff]   ;;  %4303 = vmatpush2.bf16.msra.mxu1 %v11420_v36 }
 0x9ce   : > { %4304 = vmatprep.subr.bf16.mxu1 %v11424_v39  ;;  %v3828_v39 = vrot.slane %v3819_v31, %v13287_v9 }
 0x9d0   : > { %4250 = vmatpush2.bf16.msra.mxu0 %v11387_v28  ;;  %v11428_v28 = vld [vmem:[#allocation11 + $0x1300] ss:$8 sps:$4 sm:$0xff]  }
 0x9d1   : > { %4251 = vmatprep.subr.bf16.mxu0 %v11391_v43  ;;  %v11429_v43 = vld [vmem:[#allocation11 + $0x13f0] ss:$8 sps:$4 sm:$0xff]   ;;  %4305 = vmatpush2.bf16.msra.mxu1 %v11428_v28 }
 0x9d2   : > { %4480 = vmatprep.subr.bf16.mxu1 %v11458_v6 }
 0x9d4   : > { %4252 = vmatpush2.bf16.msra.mxu0 %v11393_v47  ;;  %v11436_v47 = vld [vmem:[#allocation11 + $0x13e4] ss:$8 sps:$4 sm:$0xff]   ;;  %4307 = vmatmul.mubr.bf16.vlgmr.msra.gmra.mxu1 %v3707_v30 }
 0x9d5   : > { %4253 = vmatprep.subr.bf16.mxu0 %v11397_v2  ;;  %v11434_v2 = vld [vmem:[#allocation11 + $0x13e0] ss:$8 sps:$4 sm:$0xff]   ;;  %4512 = vmatprep.mubr.bf16.mxu1 %v12740_v1 }
 0x9d6   : > { %4481 = vmatpush1.bf16.msra.mxu1 %v11456_v7 }
 0x9d7   : > { %4482 = vmatprep.subr.bf16.mxu1 %v11461_v35 }
 0x9d8   : > { %4254 = vmatpush2.bf16.msra.mxu0 %v11399_v51  ;;  %v11439_v51 = vld [vmem:[#allocation11 + $0x13d4] ss:$8 sps:$4 sm:$0xff]  }
 0x9d9   : > { %4255 = vmatprep.subr.bf16.mxu0 %v11403_v58  ;;  %v11443_v58 = vld [vmem:[#allocation11 + $0x13b0] ss:$8 sps:$4 sm:$0xff]  }
 0x9da   : > { %4483 = vmatpush1.bf16.msra.mxu1 %v11459_v8 }
 0x9db   : > { %4484 = vmatprep.subr.bf16.mxu1 %v11464_v11 }
 0x9dc   : > { %4256 = vmatpush2.bf16.msra.mxu0 %v11405_v59  ;;  %v11446_v59 = vld [vmem:[#allocation11 + $0x13a0] ss:$8 sps:$4 sm:$0xff]  }
 0x9dd   : > { %4257 = vmatprep.subr.bf16.mxu0 %v11409_v5  ;;  %v3735_v5 = vsel %vm846_vm7, %v3733_v44, %v3734_v63 }
 0x9de   : > { %4485 = vmatpush1.bf16.msra.mxu1 %v11462_v4 }
 0x9df   : > { %4486 = vmatprep.subr.bf16.mxu1 %v11467_v13 }
 0x9e0   : > { %4258 = vmatpush2.bf16.msra.mxu0 %v11411_v19  ;;  %v11470_v19 = vld [vmem:[#allocation14 + $0x3b4] ss:$8 sps:$4 sm:$0xff]  }
 0x9e1   : > { %4259 = vmatprep.subr.bf16.mxu0 %v11415_v24  ;;  %v11479_v24 = vld [vmem:[#allocation14 + $0x384] ss:$8 sps:$4 sm:$0xff]  }
 0x9e2   : > { %4487 = vmatpush1.bf16.msra.mxu1 %v11465_v16 }
 0x9e3   : > { %4488 = vmatprep.subr.bf16.mxu1 %v11470_v19 }
 0x9e4   : > { %4260 = vmatpush2.bf16.msra.mxu0 %v11417_v34  ;;  %v11484_v34 = vld [vmem:[#allocation17 + $0x58] sm:$0xff]  }
 0x9e5   : > { %4261 = vmatprep.subr.bf16.mxu0 %v11421_v37 }
 0x9e6   : > { %4489 = vmatpush1.bf16.msra.mxu1 %v11468_v17 }
 0x9e7   : > { %4490 = vmatprep.subr.bf16.mxu1 %v11473_v20 }
 0x9e8   : > { %4262 = vmatpush2.bf16.msra.mxu0 %v11423_v38 }
 0x9e9   : > { %4317 = vmatprep.subr.bf16.mxu0 %v11431_v40 }
 0x9ea   : > { %4491 = vmatpush1.bf16.msra.mxu1 %v11471_v22 }
 0x9eb   : > { %4264 = vmatmul.mubr.bf16.vlgmr.msra.gmra.mxu0 %v13565_v54  ;;  %v11448_v54 = vld [vmem:[#allocation11 + $0x13a4] ss:$8 sps:$4 sm:$0xff]   ;;  %4492 = vmatprep.subr.bf16.mxu1 %v11476_v56  ;;  %v11485_v56 = vld [vmem:[#allocation17 + $0x50] sm:$0xff]  }
 0x9ec   : > { %4318 = vmatpush1.bf16.msra.mxu0 %v11429_v43  ;;  %4349 = vmatprep.mubr.bf16.mxu0 %v12740_v1 }
 0x9ed   : > { %4319 = vmatprep.subr.bf16.mxu0 %v11436_v47 }
 0x9ee   : > { %4493 = vmatpush1.bf16.msra.mxu1 %v11474_v23  ;;  %v11486_v23 = vld [vmem:[#allocation17 + $0x48] sm:$0xff]  }
 0x9ef   : > { %4494 = vmatprep.subr.bf16.mxu1 %v11479_v24  ;;  %v11487_v24 = vld [vmem:[#allocation17 + $0x40] sm:$0xff]  }
 0x9f0   : > { %4320 = vmatpush1.bf16.msra.mxu0 %v11434_v2 }
 0x9f1   : > { %4321 = vmatprep.subr.bf16.mxu0 %v11439_v51 }
 0x9f2   : > { %4495 = vmatpush1.bf16.msra.mxu1 %v11477_v10  ;;  %v11488_v10 = vld [vmem:[#allocation8 + $0xb8] sm:$0xff]  }
 0x9f3   : > { %10429 = vmatprep.subr.bf16.mxu1 %v12738_v0 }
 0x9f4   : > { %4322 = vmatpush1.bf16.msra.mxu0 %v11437_v52 }
 0x9f5   : > { %4323 = vmatprep.subr.bf16.mxu0 %v11442_v53 }
 0x9f8   : > { %4324 = vmatpush1.bf16.msra.mxu0 %v11440_v55 }
 0x9f9   : > { %4325 = vmatprep.subr.bf16.mxu0 %v11445_v57 }
 0x9fc   : > { %4326 = vmatpush1.bf16.msra.mxu0 %v11443_v58 }
 0x9fd   : > { %4327 = vmatprep.subr.bf16.mxu0 %v11448_v54 }
 0xa00   : > { %4328 = vmatpush1.bf16.msra.mxu0 %v11446_v59 }
 0xa01   : > { %4329 = vmatprep.subr.bf16.mxu0 %v11451_v49 }
 0xa04   : > { %4330 = vmatpush1.bf16.msra.mxu0 %v11449_v61 }
 0xa05   : > { %4331 = vmatprep.subr.bf16.mxu0 %v11454_v48 }
 0xa08   : > { %4332 = vmatpush1.bf16.msra.mxu0 %v11452_v50 }
 0xa09   : > { %10409 = vmatprep.subr.bf16.mxu0 %v12738_v0 }
 0xa0b   : > { %4350 = vmatmul.mubr.bf16.vlgmr.msra.gmra.mxu0 %v3735_v5 }
 0xa0c   : > { %10425 = vmatprep.mubr.msk.bf16.mxu0 %vm12739_vm0, %v12738_v0  ;;  %10410 = vmatpush3.bf16.msra.mxu0 %v11480_v12  ;;  %v11489_v12 = vld [vmem:[#allocation8 + $0xb0] sm:$0xff]  }
 0xa0d   : > { %10411 = vmatprep.subr.bf16.mxu0 %v12738_v0 }
 0xa10   : > { %10412 = vmatpush3.bf16.msra.mxu0 %v11481_v26  ;;  %v11490_v26 = vld [vmem:[#allocation8 + $0xa8] sm:$0xff]  }
 0xa11   : > { %10413 = vmatprep.subr.bf16.mxu0 %v12738_v0 }
 0xa14   : > { %10414 = vmatpush3.bf16.msra.mxu0 %v11482_v33  ;;  %v11491_v33 = vld [vmem:[#allocation8 + $0xa0] sm:$0xff]  }
 0xa15   : > { %10415 = vmatprep.subr.bf16.mxu0 %v12738_v0 }
 0xa18   : > { %10416 = vmatpush3.bf16.msra.mxu0 %v11483_v21  ;;  %v11492_v21 = vld [vmem:[#allocation8 + $0x98] sm:$0xff]  }
 0xa19   : > { %10417 = vmatprep.subr.bf16.mxu0 %v12738_v0 }
 0xa1c   : > { %10418 = vmatpush3.bf16.msra.mxu0 %v11484_v34  ;;  %v4393_v34 = vld [vmem:[#allocation15 + $0xe] sm:$0x3] }
 0xa1d   : > { %10419 = vmatprep.subr.bf16.mxu0 %v12738_v0 }
 0xa20   : > { %10420 = vmatpush3.bf16.msra.mxu0 %v11485_v56 }
 0xa21   : > { %10421 = vmatprep.subr.bf16.mxu0 %v12738_v0 }
 0xa24   : > { %10422 = vmatpush3.bf16.msra.mxu0 %v11486_v23 }
 0xa25   : > { %10423 = vmatprep.subr.bf16.mxu0 %v12738_v0 }
 0xa28   : > { %10424 = vmatpush3.bf16.msra.mxu0 %v11487_v24 }
 0xa94   : > { %v4308_v38 = vpop.f32.mrf.mxu1 }
 0xa96   : > { %v4310_v28 = vpop.f32.mrf.mxu1 }
 0xa98   : > { %v4312_v46 = vpop.f32.mrf.mxu1 }
 0xa9a   : > { %v4314_v51 = vpop.f32.mrf.mxu1 }
 0xaab   : > { %v4265_v37 = vpop.f32.mrf.mxu0 }
 0xaac   : > { %v4266_v48 = vadd.f32 %v4265_v37, %v3824_v62  ;;  %v4398_v37 = vrot.slane %v4393_v34, %v13292_v41 }
 0xaad   : > { %v4267_v36 = vpop.f32.mrf.mxu0 }
 0xaae   : > { %v4268_v43 = vadd.f32 %v4267_v36, %v3828_v39  ;;  %v4309_v44 = vadd.f32 %v4308_v38, %v4266_v48 }
 0xaaf   : > { %v4269_v40 = vpop.f32.mrf.mxu0 }
 0xab0   : > { %v4311_v30 = vadd.f32 %v4310_v28, %v4268_v43  ;;  %v4270_v50 = vadd.f32 %v4269_v40, %v3824_v62 }
 0xab1   : > { %v4271_v45 = vpop.f32.mrf.mxu0 }
 0xab2   : > { %v4272_v2 = vadd.f32 %v4271_v45, %v3828_v39  ;;  %v4313_v5 = vadd.f32 %v4312_v46, %v4270_v50 }
 0xab4   : > { %v4315_v57 = vadd.f32 %v4314_v51, %v4272_v2  ;;  %v11493_v2 = vld [vmem:[#allocation8 + $0x90] sm:$0xff]   ;;  %v11494_v51 = vld [vmem:[#allocation8 + $0x88] sm:$0xff]  }
 0xacb   : > { %v4351_v47 = vpop.f32.mrf.mxu0 }
 0xacc   : > { %v4352_v6 = vadd.f32 %v4351_v47, %v4309_v44  ;;  %v9596_v44 = vld [vmem:[#allocation9 + $0x2] ss:$0 sm:$0xff] }
 0xacd   : > { %v4353_v52 = vpop.f32.mrf.mxu0 }
 0xace   : > { %v4354_v53 = vadd.f32 %v4353_v52, %v4311_v30  ;;  %v11495_v52 = vld [vmem:[#allocation8 + $0x80] sm:$0xff]  }
 0xacf   : > { %v4355_v55 = vpop.f32.mrf.mxu0 }
 0xad0   : > { %v4362_v58 = vsub.f32 0.0, %v4354_v53  ;;  %v4356_v35 = vadd.f32 %v4355_v55, %v4313_v5 }
 0xad1   : > { %v4357_v54 = vpop.f32.mrf.mxu0 }
 0xad2   : > { %v4364_v59 = vmul.f32 1.442695, %v4362_v58  ;;  %v4358_v49 = vadd.f32 %v4357_v54, %v4315_v57  ;;  %v4642_v54 = vmul.f32 %v13132_v18, %v13123_v14 }
 0xad4   : > { %11496 = vpow2.f32 %v4364_v59  ;;  %v4363_v60 = vsub.f32 0.0, %v4358_v49  ;;  %v4643_v49 = vmul.f32 %v13135_v25, %v13127_v15 }
 0xad6   : > { %v4366_v61 = vmul.f32 1.442695, %v4363_v60 }
 0xad8   : > { %11498 = vpow2.f32 %v4366_v61 }
 0xad9   : > { %11500 = vtanh.f32 %v4352_v6 }
 0xae1   : > { %v11497_v63 = vpop.eup %11496 }
 0xae2   : > { %v4368_v7 = vadd.f32 1.0, %v11497_v63 }
 0xae4   : > { %11502 = vrcp.f32 %v4368_v7 }
 0xae5   : > { %v11499_v8 = vpop.eup %11498  ;;  %11504 = vtanh.f32 %v4356_v35 }
 0xae6   : > { %v4369_v11 = vadd.f32 1.0, %v11499_v8  ;;  %v11501_v4 = vpop.eup %11500 }
 0xae8   : > { %11506 = vrcp.f32 %v4369_v11  ;;  %v13628_v11 = vmov 0.0  }
 0xaf1   : > { %v11503_v13 = vpop.eup %11502 }
 0xaf2   : > { %v11505_v16 = vpop.eup %11504  ;;  %v4372_v19 = vmul.f32 %v11503_v13, %v11501_v4  ;;  %v13630_v4 = vmov 0.0  }
 0xaf5   : > { %v11507_v17 = vpop.eup %11506 }
 0xaf6   : > { %v4373_v20 = vmul.f32 %v11507_v17, %v11505_v16 }
 0xaf8   : > { %v4374_v22 = vpack.c.bf16 %v4373_v20, %v4372_v19 }
 0xafa   : > { %4513 = vmatmul.mubr.bf16.vlgmr.msra.gmra.mxu1 %v4374_v22 }
 0xafb   : > { %10445 = vmatprep.mubr.msk.bf16.mxu1 %vm12739_vm0, %v12738_v0  ;;  %10430 = vmatpush3.bf16.msra.mxu1 %v11488_v10 }
 0xafc   : > { %10431 = vmatprep.subr.bf16.mxu1 %v12738_v0 }
 0xaff   : > { %10432 = vmatpush3.bf16.msra.mxu1 %v11489_v12 }
 0xb00   : > { %10433 = vmatprep.subr.bf16.mxu1 %v12738_v0 }
 0xb03   : > { %10434 = vmatpush3.bf16.msra.mxu1 %v11490_v26 }
 0xb04   : > { %10435 = vmatprep.subr.bf16.mxu1 %v12738_v0 }
 0xb07   : > { %10436 = vmatpush3.bf16.msra.mxu1 %v11491_v33 }
 0xb08   : > { %10437 = vmatprep.subr.bf16.mxu1 %v12738_v0 }
 0xb0b   : > { %10438 = vmatpush3.bf16.msra.mxu1 %v11492_v21 }
 0xb0c   : > { %10439 = vmatprep.subr.bf16.mxu1 %v12738_v0 }
 0xb0f   : > { %10440 = vmatpush3.bf16.msra.mxu1 %v11493_v2 }
 0xb10   : > { %10441 = vmatprep.subr.bf16.mxu1 %v12738_v0 }
 0xb13   : > { %10442 = vmatpush3.bf16.msra.mxu1 %v11494_v51 }
 0xb14   : > { %10443 = vmatprep.subr.bf16.mxu1 %v12738_v0 }
 0xb17   : > { %10444 = vmatpush3.bf16.msra.mxu1 %v11495_v52 }
 0xbba   : > { %v4514_v31 = vpop.f32.mrf.mxu1 }
 0xbbb   : > { %v4515_v36 = vadd.f32 %v4514_v31, %v4398_v37 }
 0xbbc   : > { %v4516_v38 = vpop.f32.mrf.mxu1 }
 0xbbd   : > { %v4521_v40 = vadd.f32 %v4515_v36, %v14257_v29  ;;  %v9587_v29 = vld [vmem:[#allocation18 + $0x1] ss:$0 sm:$0xff] }
 0xbbe   : > { %v4517_v39 = vpop.f32.mrf.mxu1 }
 0xbbf   : > { %v4518_v28 = vadd.f32 %v4517_v39, %v4398_v37  ;;  %v4523_v46 = vmul.f32 %v4521_v40, %v13132_v18 }
 0xbc0   : > { %v4519_v43 = vpop.f32.mrf.mxu1 }
 0xbc1   : > { %v4522_v45 = vadd.f32 %v4518_v28, %v14258_v3 }
 0xbc3   : > { %v4524_v47 = vmul.f32 %v4522_v45, %v13135_v25 }
 0xbc5   : > { %v4525_v30 = vpack.c.bf16 %v4524_v47, %v4523_v46 }
 0xbc7   : > { %10426 = vmatmul.mubr.bf16.vlgmr.msra.gmra.mxu0 %v4525_v30 }
 0xc87   : > { %v4633_v53 = vpop.f32.mrf.mxu0 }
 0xc88   : > { %v4634_v55 = vadd.f32 %v9587_v29, %v4633_v53 }
 0xc89   : > { %v10427_v3 = vpop.f32.mrf.mxu0 }
 0xc8a   : > { %v4640_v58 = vmul.f32 %v4634_v55, %v13132_v18 }
 0xc8b   : > { %v4636_v57 = vpop.f32.mrf.mxu0 }
 0xc8c   : > { %v4637_v59 = vadd.f32 %v9587_v29, %v4636_v57  ;;  %v13620_v62 = vadd.f32 %v4642_v54, %v4640_v58 }
 0xc8d   : > { %v10428_v60 = vpop.f32.mrf.mxu0 }
 0xc8e   : > { %v4641_v61 = vmul.f32 %v4637_v59, %v13135_v25 }
 0xc90   : > { %v13622_v48 = vadd.f32 %v4643_v49, %v4641_v61 }
 0xc92   : > { %v4646_v50 = vpack.c.bf16 %v13622_v48, %v13620_v62 }
 0xc94   : > { %10446 = vmatmul.mubr.bf16.vlgmr.msra.gmra.mxu1 %v4646_v50 }
 0xd54   : > { %v4754_v63 = vpop.f32.mrf.mxu1 }
 0xd55   : > { %v4755_v5 = vadd.f32 %v9596_v44, %v4754_v63 }
 0xd56   : > { %v10447_v6 = vpop.f32.mrf.mxu1 }
 0xd57   : > { %v4761_v14 = vmul.f32 %v4755_v5, %v13132_v18  }
 0xd58   : > { %v4757_v7 = vpop.f32.mrf.mxu1 }
 0xd59   : > { %v4758_v35 = vadd.f32 %v9596_v44, %v4757_v7 }
 0xd5a   : > { %v10448_v15 = vpop.f32.mrf.mxu1 }
 0xd5b   : > { %v4762_v8 = vmul.f32 %v4758_v35, %v13135_v25  }
 0xd5c LB: >> { %s8783_s17 = smul.u32 640, %s12698_s9  ;;  %v10267_v13 = vpack.c.bf16 %v12694_v14, %v12694_v14  ;;  %v10268_v16 = vpack.c.bf16 %v12690_v8, %v12690_v8  ;;  %s9774_s25 = sshll.u32 %s12698_s9, 7  ;;  %s12698_s9 = sphi %s13636_s9, %s4768_s9   ;;  %v12694_v14 = vphi %v4761_v14, %v14268_v14   ;;  %v12690_v8 = vphi %v4762_v8, %v14267_v8   ;;  %v12686_v4 = vphi %v13630_v4, %v14266_v4   ;;  %v12682_v11 = vphi %v13628_v11, %v14265_v11  }
 0xd5d   : >> { %s8790_s14 = scalar_lea.vmem [#allocation14], %s9774_s25  ;;  %s9692_s5 = sshll.u32 %s12698_s9, 1 }
 0xd5e   : >> { %v4780_v17 = vrot.slane %v10267_v13, 7  ;;  %v4782_v19 = vrot.slane %v10268_v16, 7  ;;  %s13658_s6 = scalar_lea.vmem [#allocation11], %s8783_s17  ;;  %s8787_s8 = scalar_lea.vmem [#allocation12], %s9692_s5 }
 0xd5f   : >> { %v11508_v20 = vld [vmem:[%s13658_s6 + $0x1474] ss:$8 sps:$4 sm:$0xff]   ;;  %v11510_v22 = vld [vmem:[%s13658_s6 + $0x1470] ss:$8 sps:$4 sm:$0xff]   ;;  %v11514_v12 = vld [vmem:[%s13658_s6 + $0x1464] ss:$8 sps:$4 sm:$0xff]  }
 0xd60   : >> { %v4781_v56 = vrot.slane %v4780_v17, 4  ;;  %v4784_v23 = vrot.slane %v4782_v19, 4  ;;  %4788 = vst [vmem:[#allocation2] sm:$0xe] %v4780_v17  ;;  %5351 = vmatprep.subr.bf16.mxu0 %v11508_v20  ;;  %v11511_v24 = vld [vmem:[%s13658_s6 + $0x1574] ss:$8 sps:$4 sm:$0xff]  }
 0xd61   : >> { %v11513_v10 = vld [vmem:[%s13658_s6 + $0x1570] ss:$8 sps:$4 sm:$0xff]   ;;  %5352 = vmatpush1.bf16.msra.mxu0 %v11510_v22  ;;  %v11516_v26 = vld [vmem:[%s13658_s6 + $0x1460] ss:$8 sps:$4 sm:$0xff]   ;;  %5394 = vmatprep.subr.bf16.mxu1 %v11511_v24  ;;  %v11517_v21 = vld [vmem:[%s13658_s6 + $0x1564] ss:$8 sps:$4 sm:$0xff]  }
 0xd62   : >> { %v4783_v33 = vsel %vm13174_vm3, %v4781_v56, %v4782_v19  ;;  %4790 = vst [vmem:[#allocation2 + $0x8] sm:$0x1] %v4784_v23  ;;  %5395 = vmatpush1.bf16.msra.mxu1 %v11513_v10  ;;  %5353 = vmatprep.subr.bf16.mxu0 %v11514_v12  ;;  %v11519_v34 = vld [vmem:[%s13658_s6 + $0x1560] ss:$8 sps:$4 sm:$0xff]   ;;  %v11520_v37 = vld [vmem:[%s13658_s6 + $0x1454] ss:$8 sps:$4 sm:$0xff]  }
 0xd63   : >> { %4789 = vst [vmem:[#allocation2 + $0x4] sm:$0xf] %v4783_v33  ;;  %5396 = vmatprep.subr.bf16.mxu1 %v11517_v21  ;;  %v11522_v31 = vld [vmem:[%s13658_s6 + $0x1450] ss:$8 sps:$4 sm:$0xff]   ;;  %v11523_v36 = vld [vmem:[%s13658_s6 + $0x1554] ss:$8 sps:$4 sm:$0xff]  }
 0xd64   : >> { %v11526_v38 = vld [vmem:[%s13658_s6 + $0x1444] ss:$8 sps:$4 sm:$0xff]   ;;  %v11525_v39 = vld [vmem:[%s13658_s6 + $0x1550] ss:$8 sps:$4 sm:$0xff]   ;;  %v11528_v28 = vld [vmem:[%s13658_s6 + $0x1440] ss:$8 sps:$4 sm:$0xff]  }
 0xd65   : >> { %5354 = vmatpush1.bf16.msra.mxu0 %v11516_v26  ;;  %v11529_v40 = vld [vmem:[%s13658_s6 + $0x1544] ss:$8 sps:$4 sm:$0xff]   ;;  %v11532_v43 = vld [vmem:[%s13658_s6 + $0x1434] ss:$8 sps:$4 sm:$0xff]   ;;  %v11531_v45 = vld [vmem:[%s13658_s6 + $0x1540] ss:$8 sps:$4 sm:$0xff]  }
 0xd66   : >> { %5355 = vmatprep.subr.bf16.mxu0 %v11520_v37  ;;  %5397 = vmatpush1.bf16.msra.mxu1 %v11519_v34  ;;  %v11535_v46 = vld [vmem:[%s13658_s6 + $0x1534] ss:$8 sps:$4 sm:$0xff]   ;;  %v11534_v47 = vld [vmem:[%s13658_s6 + $0x1430] ss:$8 sps:$4 sm:$0xff]   ;;  %v11538_v30 = vld [vmem:[%s13658_s6 + $0x1424] ss:$8 sps:$4 sm:$0xff]  }
 0xd67   : >> { %5398 = vmatprep.subr.bf16.mxu1 %v11523_v36  ;;  %v11537_v2 = vld [vmem:[%s13658_s6 + $0x1530] ss:$8 sps:$4 sm:$0xff]   ;;  %v11541_v51 = vld [vmem:[%s13658_s6 + $0x1524] ss:$8 sps:$4 sm:$0xff]   ;;  %v11540_v52 = vld [vmem:[%s13658_s6 + $0x1420] ss:$8 sps:$4 sm:$0xff]  }
 0xd68   : >> { %v11544_v29 = vld [vmem:[%s13658_s6 + $0x1414] ss:$8 sps:$4 sm:$0xff]   ;;  %v11543_v53 = vld [vmem:[%s13658_s6 + $0x1520] ss:$8 sps:$4 sm:$0xff]   ;;  %v11546_v3 = vld [vmem:[%s13658_s6 + $0x1410] ss:$8 sps:$4 sm:$0xff]  }
 0xd69   : >> { %5356 = vmatpush1.bf16.msra.mxu0 %v11522_v31  ;;  %v11547_v55 = vld [vmem:[%s13658_s6 + $0x1514] ss:$8 sps:$4 sm:$0xff]   ;;  %v11550_v57 = vld [vmem:[%s13658_s6 + $0x1404] ss:$8 sps:$4 sm:$0xff]   ;;  %v11549_v58 = vld [vmem:[%s13658_s6 + $0x1510] ss:$8 sps:$4 sm:$0xff]  }
 0xd6a   : >> { %5357 = vmatprep.subr.bf16.mxu0 %v11526_v38  ;;  %5399 = vmatpush1.bf16.msra.mxu1 %v11525_v39  ;;  %v11553_v54 = vld [vmem:[%s13658_s6 + $0x1504] ss:$8 sps:$4 sm:$0xff]   ;;  %v11552_v59 = vld [vmem:[%s13658_s6 + $0x1400] ss:$8 sps:$4 sm:$0xff]   ;;  %v11556_v49 = vld [vmem:[%s13658_s6 + $0x14f4] ss:$8 sps:$4 sm:$0xff]  }
 0xd6b   : >> { %5400 = vmatprep.subr.bf16.mxu1 %v11529_v40  ;;  %v11555_v60 = vld [vmem:[%s13658_s6 + $0x1500] ss:$8 sps:$4 sm:$0xff]   ;;  %v11559_v61 = vld [vmem:[%s13658_s6 + $0x15f4] ss:$8 sps:$4 sm:$0xff]   ;;  %v11558_v50 = vld [vmem:[%s13658_s6 + $0x14f0] ss:$8 sps:$4 sm:$0xff]  }
 0xd6c   : >> { %v11562_v44 = vld [vmem:[%s13658_s6 + $0x14e4] ss:$8 sps:$4 sm:$0xff]   ;;  %v11561_v63 = vld [vmem:[%s13658_s6 + $0x15f0] ss:$8 sps:$4 sm:$0xff]   ;;  %v11564_v6 = vld [vmem:[%s13658_s6 + $0x14e0] ss:$8 sps:$4 sm:$0xff]  }
 0xd6d   : >> { %5358 = vmatpush1.bf16.msra.mxu0 %v11528_v28  ;;  %v11565_v5 = vld [vmem:[%s13658_s6 + $0x15e4] ss:$8 sps:$4 sm:$0xff]   ;;  %v11568_v7 = vld [vmem:[%s13658_s6 + $0x14d4] ss:$8 sps:$4 sm:$0xff]   ;;  %v11567_v35 = vld [vmem:[%s13658_s6 + $0x15e0] ss:$8 sps:$4 sm:$0xff]  }
 0xd6e   : >> { %5359 = vmatprep.subr.bf16.mxu0 %v11532_v43  ;;  %5401 = vmatpush1.bf16.msra.mxu1 %v11531_v45  ;;  %v11571_v15 = vld [vmem:[%s13658_s6 + $0x15d4] ss:$8 sps:$4 sm:$0xff]   ;;  %v11570_v13 = vld [vmem:[%s13658_s6 + $0x14d0] ss:$8 sps:$4 sm:$0xff]   ;;  %v11574_v17 = vld [vmem:[%s13658_s6 + $0x14c4] ss:$8 sps:$4 sm:$0xff]  }
 0xd6f   : >> { %5402 = vmatprep.subr.bf16.mxu1 %v11535_v46  ;;  %v11573_v16 = vld [vmem:[%s13658_s6 + $0x15d0] ss:$8 sps:$4 sm:$0xff]   ;;  %v11576_v19 = vld [vmem:[%s13658_s6 + $0x14c0] ss:$8 sps:$4 sm:$0xff]   ;;  %v11577_v20 = vld [vmem:[%s13658_s6 + $0x15c4] ss:$8 sps:$4 sm:$0xff]  }
 0xd70   : >> { %v4791_v22 = vld [vmem:[#allocation2] sm:$0xf]  ;;  %v13709_v56 = vld [vmem:[#allocation2 + $0x4] sm:$0xf]  ;;  %v11580_v12 = vld [vmem:[%s13658_s6 + $0x14b4] ss:$8 sps:$4 sm:$0xff]  }
 0xd71   : >> { %5360 = vmatpush1.bf16.msra.mxu0 %v11534_v47  ;;  %v13712_v23 = vcombine.low %v4791_v22, %v13709_v56  ;;  %v13714_v24 = vld [vmem:[#allocation2 + $0x8] ss:$0 sps:$4 sm:$0x11]   ;;  %v11582_v26 = vld [vmem:[%s13658_s6 + $0x14b0] ss:$8 sps:$4 sm:$0xff]   ;;  %v12743_v22 = vmov 0  }
 0xd72   : >> { %5361 = vmatprep.subr.bf16.mxu0 %v11538_v30  ;;  %5403 = vmatpush1.bf16.msra.mxu1 %v11537_v2  ;;  %v11579_v10 = vld [vmem:[%s13658_s6 + $0x15c0] ss:$8 sps:$4 sm:$0xff]   ;;  %v11583_v33 = vld [vmem:[%s13658_s6 + $0x15b4] ss:$8 sps:$4 sm:$0xff]   ;;  %v4814_v37 = vshll.u32 %v13714_v24, 16  ;;  %s8793_s28 = scalar_lea.vmem [#allocation15], %s9692_s5 }
 0xd73   : >> { %5404 = vmatprep.subr.bf16.mxu1 %v11541_v51  ;;  %v4807_v21 = vshrl.u32 %v13712_v23, 16  ;;  %v4809_v34 = vshll.u32 %v13712_v23, 16  ;;  %v4794_v31 = vld [vmem:[#allocation2] sm:$0xe]  ;;  %v11586_v28 = vld [vmem:[%s13658_s6 + $0x14a4] ss:$8 sps:$4 sm:$0xff]  }
 0xd74   : >> { %v4816_v38 = vrot.slane %v4814_v37, 1  ;;  %v9609_v39 = vcombine.low %v4794_v31, %v13709_v56  ;;  %v13724_v40 = vld [vmem:[#allocation2 + $0x8] ss:$0 sps:$4 sm:$0x33]   ;;  %v11585_v43 = vld [vmem:[%s13658_s6 + $0x15b0] ss:$8 sps:$4 sm:$0xff]  }
 0xd75   : >> { %5362 = vmatpush1.bf16.msra.mxu0 %v11540_v52  ;;  %v4811_v36 = vrot.slane %v4809_v34, 1  ;;  %v4838_v30 = vshrl.u32 %v13724_v40, 16  ;;  %v11589_v2 = vld [vmem:[%s13658_s6 + $0x15a4] ss:$8 sps:$4 sm:$0xff]   ;;  %v4841_v51 = vshll.u32 %v13724_v40, 16  ;;  %s4768_s9 = sadd.s32 1, %s12698_s9  }
 0xd76   : >> { %5363 = vmatprep.subr.bf16.mxu0 %v11544_v29  ;;  %5405 = vmatpush1.bf16.msra.mxu1 %v11543_v53  ;;  %v4830_v46 = vshrl.u32 %v9609_v39, 16  ;;  %v4833_v47 = vshll.u32 %v9609_v39, 16  ;;  %v11588_v52 = vld [vmem:[%s13658_s6 + $0x14a0] ss:$8 sps:$4 sm:$0xff]   ;;  %v11628_v37 = vld [vmem:[%s13658_s6 + $0x1614] ss:$8 sps:$4 sm:$0xff]  }
 0xd77   : >> { %5406 = vmatprep.subr.bf16.mxu1 %v11547_v55  ;;  %v4812_v45 = vor.u32 %v4811_v36, %v4807_v21  ;;  %v11625_v21 = vld [vmem:[%s13658_s6 + $0x1624] ss:$8 sps:$4 sm:$0xff]   ;;  %v11623_v34 = vld [vmem:[%s13658_s6 + $0x1620] ss:$8 sps:$4 sm:$0xff]   ;;  %v11626_v36 = vld [vmem:[%s13658_s6 + $0x1610] ss:$8 sps:$4 sm:$0xff]  }
 0xd78   : >> { %v4832_v53 = vrot.slane %v4830_v46, 1  ;;  %v4835_v55 = vrot.slane %v4833_v47, 2  ;;  %v4796_v31 = vld [vmem:[#allocation2] sm:$0xc]  ;;  %v11635_v47 = vld [vmem:[%s8790_s14 + $0x474] ss:$8 sps:$4 sm:$0xff]  }
 0xd79   : >> { %5364 = vmatpush1.bf16.msra.mxu0 %v11546_v3  ;;  %v4817_v29 = vsel %vm799_vm4, %v4812_v45, %v4816_v38  ;;  %v4840_v3 = vrot.slane %v4838_v30, 1  ;;  %v9611_v38 = vcombine.low %v4796_v31, %v13709_v56  ;;  %v4851_v45 = vrot.slane %v13724_v40, 2  ;;  %v11633_v30 = vld [vmem:[%s8790_s14 + $0x470] ss:$8 sps:$4 sm:$0xff]   ;;  %v11636_v56 = vld [vmem:[%s8790_s14 + $0x460] ss:$8 sps:$4 sm:$0xff]  }
 0xd7a   : >> { %5365 = vmatprep.subr.bf16.mxu0 %v11550_v57  ;;  %5407 = vmatpush1.bf16.msra.mxu1 %v11549_v58  ;;  %v11592_v57 = vld [vmem:[%s13658_s6 + $0x1494] ss:$8 sps:$4 sm:$0xff]   ;;  %v4843_v58 = vrot.slane %v4841_v51, 2  ;;  %v11644_v40 = vld [vmem:[%s8790_s14 + $0x444] ss:$8 sps:$4 sm:$0xff]   ;;  %p4765_p7 = scmp.ge.s32.totalorder %s4768_s9, 3  }
 0xd7b   : >> { %5408 = vmatprep.subr.bf16.mxu1 %v11553_v54  ;;  %5383 = vmatprep.mubr.bf16.mxu0 %v4817_v29  ;;  %v11591_v54 = vld [vmem:[%s13658_s6 + $0x15a0] ss:$8 sps:$4 sm:$0xff]   ;;  %v11641_v51 = vld [vmem:[%s8790_s14 + $0x454] ss:$8 sps:$4 sm:$0xff]   ;;  %s13874_s29 = smov (%p4765_p7), 0  }
 0xd7c   : >> { %v11642_v29 = vld [vmem:[%s8790_s14 + $0x440] ss:$8 sps:$4 sm:$0xff]  }
 0xd7d   : >> { %5366 = vmatpush1.bf16.msra.mxu0 %v11552_v59  ;;  %v4836_v59 = vor.u32 %v4835_v55, %v4832_v53  ;;  %v11645_v53 = vld [vmem:[%s8790_s14 + $0x430] ss:$8 sps:$4 sm:$0xff]   ;;  %v11647_v55 = vld [vmem:[%s8790_s14 + $0x434] ss:$8 sps:$4 sm:$0xff]  }
 0xd7e   : >> { %5367 = vmatprep.subr.bf16.mxu0 %v11556_v49  ;;  %5409 = vmatpush1.bf16.msra.mxu1 %v11555_v60  ;;  %v11595_v49 = vld [vmem:[%s13658_s6 + $0x1594] ss:$8 sps:$4 sm:$0xff]   ;;  %v4844_v60 = vor.u32 %v4843_v58, %v4840_v3  ;;  %v11650_v3 = vld [vmem:[%s8790_s14 + $0x424] ss:$8 sps:$4 sm:$0xff]  }
 0xd7f   : >> { %5410 = vmatprep.subr.bf16.mxu1 %v11559_v61  ;;  %v11594_v61 = vld [vmem:[%s13658_s6 + $0x1490] ss:$8 sps:$4 sm:$0xff]   ;;  %v11653_v58 = vld [vmem:[%s8790_s14 + $0x414] ss:$8 sps:$4 sm:$0xff]  }
 0xd81   : >> { %5368 = vmatpush2.bf16.msra.mxu0 %v11558_v50  ;;  %v11598_v50 = vld [vmem:[%s13658_s6 + $0x1484] ss:$8 sps:$4 sm:$0xff]  }
 0xd82   : >> { %5369 = vmatprep.subr.bf16.mxu0 %v11562_v44  ;;  %5411 = vmatpush2.bf16.msra.mxu1 %v11561_v63  ;;  %v4845_v44 = vsel %vm824_vm5, %v4836_v59, %v4844_v60  ;;  %v11597_v63 = vld [vmem:[%s13658_s6 + $0x1590] ss:$8 sps:$4 sm:$0xff]   ;;  %v11656_v59 = vld [vmem:[%s8790_s14 + $0x404] ss:$8 sps:$4 sm:$0xff]  }
 0xd83   : >> { %5412 = vmatprep.subr.bf16.mxu1 %v11565_v5  ;;  %5426 = vmatprep.mubr.bf16.mxu1 %v4845_v44  ;;  %v11601_v5 = vld [vmem:[%s13658_s6 + $0x1584] ss:$8 sps:$4 sm:$0xff]  }
 0xd85   : >> { %5370 = vmatpush2.bf16.msra.mxu0 %v11564_v6  ;;  %v11600_v6 = vld [vmem:[%s13658_s6 + $0x1480] ss:$8 sps:$4 sm:$0xff]  }
 0xd86   : >> { %5371 = vmatprep.subr.bf16.mxu0 %v11568_v7  ;;  %5413 = vmatpush2.bf16.msra.mxu1 %v11567_v35  ;;  %v11608_v7 = vld [vmem:[%s13658_s6 + $0x1674] ss:$8 sps:$4 sm:$0xff]   ;;  %v11605_v35 = vld [vmem:[%s13658_s6 + $0x1580] ss:$8 sps:$4 sm:$0xff]  }
 0xd87   : >> { %5414 = vmatprep.subr.bf16.mxu1 %v11571_v15  ;;  %v4822_v15 = vrot.slane %v9609_v39, 1  ;;  %v11631_v39 = vld [vmem:[%s13658_s6 + $0x1604] ss:$8 sps:$4 sm:$0xff]  }
 0xd89   : >> { %5372 = vmatpush2.bf16.msra.mxu0 %v11570_v13  ;;  %v4823_v13 = vrot.slane %v13714_v24, 1  ;;  %v11616_v24 = vld [vmem:[%s13658_s6 + $0x1654] ss:$8 sps:$4 sm:$0xff]  }
 0xd8a   : >> { %5373 = vmatprep.subr.bf16.mxu0 %v11574_v17  ;;  %5415 = vmatpush2.bf16.msra.mxu1 %v11573_v16  ;;  %v11606_v16 = vld [vmem:[%s13658_s6 + $0x1670] ss:$8 sps:$4 sm:$0xff]   ;;  %v11613_v17 = vld [vmem:[%s13658_s6 + $0x1664] ss:$8 sps:$4 sm:$0xff]  }
 0xd8b   : >> { %5416 = vmatprep.subr.bf16.mxu1 %v11577_v20  ;;  %v11611_v20 = vld [vmem:[%s13658_s6 + $0x1660] ss:$8 sps:$4 sm:$0xff]  }
 0xd8d   : >> { %5374 = vmatpush2.bf16.msra.mxu0 %v11576_v19  ;;  %v4824_v19 = vsel %vm816_vm6, %v4822_v15, %v4823_v13 }
 0xd8e   : >> { %5375 = vmatprep.subr.bf16.mxu0 %v11580_v12  ;;  %5417 = vmatpush2.bf16.msra.mxu1 %v11579_v10  ;;  %v11614_v10 = vld [vmem:[%s13658_s6 + $0x1650] ss:$8 sps:$4 sm:$0xff]   ;;  %v11619_v12 = vld [vmem:[%s13658_s6 + $0x1644] ss:$8 sps:$4 sm:$0xff]  }
 0xd8f   : >> { %5418 = vmatprep.subr.bf16.mxu1 %v11583_v33  ;;  %v11620_v33 = vld [vmem:[%s13658_s6 + $0x1630] ss:$8 sps:$4 sm:$0xff]  }
 0xd91   : >> { %5376 = vmatpush2.bf16.msra.mxu0 %v11582_v26  ;;  %v11622_v26 = vld [vmem:[%s13658_s6 + $0x1634] ss:$8 sps:$4 sm:$0xff]  }
 0xd92   : >> { %5377 = vmatprep.subr.bf16.mxu0 %v11586_v28  ;;  %5419 = vmatpush2.bf16.msra.mxu1 %v11585_v43  ;;  %v11629_v28 = vld [vmem:[%s13658_s6 + $0x1600] ss:$8 sps:$4 sm:$0xff]   ;;  %v4850_v43 = vrot.slane %v9611_v38, 2 }
 0xd93   : >> { %5420 = vmatprep.subr.bf16.mxu1 %v11589_v2  ;;  %v11638_v2 = vld [vmem:[%s8790_s14 + $0x464] ss:$8 sps:$4 sm:$0xff]  }
 0xd94   : >> { %v4852_v46 = vsel %vm846_vm7, %v4850_v43, %v4851_v45 }
 0xd95   : >> { %5378 = vmatpush2.bf16.msra.mxu0 %v11588_v52  ;;  %v11639_v52 = vld [vmem:[%s8790_s14 + $0x450] ss:$8 sps:$4 sm:$0xff]  }
 0xd96   : >> { %5379 = vmatprep.subr.bf16.mxu0 %v11592_v57  ;;  %5421 = vmatpush2.bf16.msra.mxu1 %v11591_v54  ;;  %v11648_v57 = vld [vmem:[%s8790_s14 + $0x420] ss:$8 sps:$4 sm:$0xff]   ;;  %v11651_v54 = vld [vmem:[%s8790_s14 + $0x410] ss:$8 sps:$4 sm:$0xff]  }
 0xd97   : >> { %5422 = vmatprep.subr.bf16.mxu1 %v11595_v49  ;;  %v11654_v49 = vld [vmem:[%s8790_s14 + $0x400] ss:$8 sps:$4 sm:$0xff]  }
 0xd99   : >> { %5380 = vmatpush2.bf16.msra.mxu0 %v11594_v61  ;;  %v9693_v61 = vld [vmem:[%s8787_s8 + $0x10] sm:$0x3] }
 0xd9a   : >> { %5381 = vmatprep.subr.bf16.mxu0 %v11598_v50  ;;  %5423 = vmatpush2.bf16.msra.mxu1 %v11597_v63  ;;  %v4948_v63 = vrot.slane %v9693_v61, %v13287_v9 }
 0xd9b   : >> { %5424 = vmatprep.subr.bf16.mxu1 %v11601_v5 }
 0xd9d   : >> { %5382 = vmatpush2.bf16.msra.mxu0 %v11600_v6 }
 0xd9e   : >> { %5437 = vmatprep.subr.bf16.mxu0 %v11608_v7  ;;  %5425 = vmatpush2.bf16.msra.mxu1 %v11605_v35 }
 0xd9f   : >> { %5607 = vmatprep.subr.bf16.mxu1 %v11635_v47 }
 0xda0   : >> { %5384 = vmatmul.mubr.bf16.vlgmr.msra.gmra.mxu0 %v13712_v23  ;;  %v11617_v23 = vld [vmem:[%s13658_s6 + $0x1640] ss:$8 sps:$4 sm:$0xff]  }
 0xda1   : >> { %5438 = vmatpush1.bf16.msra.mxu0 %v11606_v16  ;;  %5469 = vmatprep.mubr.bf16.mxu0 %v12743_v22 }
 0xda2   : >> { %5427 = vmatmul.mubr.bf16.vlgmr.msra.gmra.mxu1 %v4824_v19  ;;  %5439 = vmatprep.subr.bf16.mxu0 %v11613_v17 }
 0xda3   : >> { %5639 = vmatprep.mubr.bf16.mxu1 %v12743_v22  ;;  %5608 = vmatpush1.bf16.msra.mxu1 %v11633_v30 }
 0xda4   : >> { %5609 = vmatprep.subr.bf16.mxu1 %v11638_v2 }
 0xda5   : >> { %5440 = vmatpush1.bf16.msra.mxu0 %v11611_v20 }
 0xda6   : >> { %5441 = vmatprep.subr.bf16.mxu0 %v11616_v24 }
 0xda7   : >> { %5610 = vmatpush1.bf16.msra.mxu1 %v11636_v56 }
 0xda8   : >> { %5611 = vmatprep.subr.bf16.mxu1 %v11641_v51 }
 0xda9   : >> { %5442 = vmatpush1.bf16.msra.mxu0 %v11614_v10 }
 0xdaa   : >> { %5443 = vmatprep.subr.bf16.mxu0 %v11619_v12 }
 0xdab   : >> { %5612 = vmatpush1.bf16.msra.mxu1 %v11639_v52 }
 0xdac   : >> { %5613 = vmatprep.subr.bf16.mxu1 %v11644_v40 }
 0xdad   : >> { %5444 = vmatpush1.bf16.msra.mxu0 %v11617_v23 }
 0xdae   : >> { %5445 = vmatprep.subr.bf16.mxu0 %v11622_v26 }
 0xdaf   : >> { %5614 = vmatpush1.bf16.msra.mxu1 %v11642_v29 }
 0xdb0   : >> { %5615 = vmatprep.subr.bf16.mxu1 %v11647_v55  ;;  %v9792_v55 = vld [vmem:[%s8793_s28 + $0x10] sm:$0x3] }
 0xdb1   : >> { %5446 = vmatpush1.bf16.msra.mxu0 %v11620_v33 }
 0xdb2   : >> { %5447 = vmatprep.subr.bf16.mxu0 %v11625_v21 }
 0xdb3   : >> { %5616 = vmatpush1.bf16.msra.mxu1 %v11645_v53 }
 0xdb4   : >> { %5617 = vmatprep.subr.bf16.mxu1 %v11650_v3  ;;  %v5520_v3 = vrot.slane %v9792_v55, %v13292_v41 }
 0xdb5   : >> { %5448 = vmatpush1.bf16.msra.mxu0 %v11623_v34 }
 0xdb6   : >> { %5449 = vmatprep.subr.bf16.mxu0 %v11628_v37  ;;  %v4944_v37 = vrot.slane %v9693_v61, %v13292_v41 }
 0xdb7   : >> { %5618 = vmatpush1.bf16.msra.mxu1 %v11648_v57  ;;  %v5524_v57 = vrot.slane %v9792_v55, %v13287_v9  ;;  %v11714_v55 = vld [vmem:[#allocation11 + $0x1c84] ss:$8 sps:$4 sm:$0xff] (%p4765_p7)  }
 0xdb8   : >> { %5619 = vmatprep.subr.bf16.mxu1 %v11653_v58 }
 0xdb9   : >> { %5450 = vmatpush1.bf16.msra.mxu0 %v11626_v36 }
 0xdba   : >> { %5451 = vmatprep.subr.bf16.mxu0 %v11631_v39 }
 0xdbb   : >> { %5620 = vmatpush1.bf16.msra.mxu1 %v11651_v54 }
 0xdbc   : >> { %5621 = vmatprep.subr.bf16.mxu1 %v11656_v59 }
 0xdbd   : >> { %5452 = vmatpush1.bf16.msra.mxu0 %v11629_v28 }
 0xdbf   : >> { %5622 = vmatpush1.bf16.msra.mxu1 %v11654_v49 }
 0xdc0   : >> { %5470 = vmatmul.mubr.bf16.vlgmr.msra.gmra.mxu0 %v4852_v46 }
 0xe60   : >> { %v5385_v60 = vpop.f32.mrf.mxu0 }
 0xe61   : >> { %v5386_v31 = vadd.f32 %v5385_v60, %v4944_v37 }
 0xe62   : >> { %v5387_v50 = vpop.f32.mrf.mxu0  ;;  %v5428_v44 = vpop.f32.mrf.mxu1 }
 0xe63   : >> { %v5388_v7 = vadd.f32 %v5387_v50, %v4948_v63  ;;  %v5429_v38 = vadd.f32 %v5428_v44, %v5386_v31  ;;  %v11686_v31 = vld [vmem:[#allocation11 + $0x1cd0] ss:$8 sps:$4 sm:$0xff] (%p4765_p7)  }
 0xe64   : >> { %v5389_v5 = vpop.f32.mrf.mxu0  ;;  %v5430_v6 = vpop.f32.mrf.mxu1 }
 0xe65   : >> { %v5431_v16 = vadd.f32 %v5430_v6, %v5388_v7  ;;  %v5390_v36 = vadd.f32 %v5389_v5, %v4944_v37  ;;  %v11687_v37 = vld [vmem:[#allocation11 + $0x1bc4] ss:$8 sps:$4 sm:$0xff] (%p4765_p7)  }
 0xe66   : >> { %v5391_v35 = vpop.f32.mrf.mxu0  ;;  %v5432_v15 = vpop.f32.mrf.mxu1 }
 0xe67   : >> { %v5392_v17 = vadd.f32 %v5391_v35, %v4948_v63  ;;  %v5433_v28 = vadd.f32 %v5432_v15, %v5390_v36  ;;  %v11690_v36 = vld [vmem:[#allocation11 + $0x1cc4] ss:$8 sps:$4 sm:$0xff] (%p4765_p7)  }
 0xe68   : >> { %v5434_v19 = vpop.f32.mrf.mxu1 }
 0xe69   : >> { %v5435_v10 = vadd.f32 %v5434_v19, %v5392_v17  ;;  %v11671_v17 = vld [vmem:[#allocation11 + $0x1bf0] ss:$8 sps:$4 sm:$0xff] (%p4765_p7)   ;;  %v11672_v19 = vld [vmem:[#allocation11 + $0x1cf4] ss:$8 sps:$4 sm:$0xff] (%p4765_p7)  }
 0xe6a   : > { %6273 = vmatprep.subr.bf16.mxu1 (%p4765_p7), %v11672_v19 }
 0xe80   : >> { %v5471_v13 = vpop.f32.mrf.mxu0 }
 0xe81   : >> { %v5472_v43 = vadd.f32 %v5471_v13, %v5429_v38  ;;  %v11689_v38 = vld [vmem:[#allocation11 + $0x1bc0] ss:$8 sps:$4 sm:$0xff] (%p4765_p7)  }
 0xe82   : >> { %v5473_v20 = vpop.f32.mrf.mxu0 }
 0xe83   : >> { %v5474_v22 = vadd.f32 %v5473_v20, %v5431_v16  ;;  %v11674_v20 = vld [vmem:[#allocation11 + $0x1cf0] ss:$8 sps:$4 sm:$0xff] (%p4765_p7)  }
 0xe84   : >> { %v5475_v24 = vpop.f32.mrf.mxu0 }
 0xe85   : >> { %v5482_v12 = vsub.f32 0.0, %v5474_v22  ;;  %v5476_v46 = vadd.f32 %v5475_v24, %v5433_v28  ;;  %v11675_v24 = vld [vmem:[#allocation11 + $0x1be4] ss:$8 sps:$4 sm:$0xff] (%p4765_p7)   ;;  %v11692_v28 = vld [vmem:[#allocation11 + $0x1cc0] ss:$8 sps:$4 sm:$0xff] (%p4765_p7)  }
 0xe86   : >> { %v5477_v23 = vpop.f32.mrf.mxu0 }
 0xe87   : >> { %v5484_v26 = vmul.f32 1.442695, %v5482_v12  ;;  %v5478_v33 = vadd.f32 %v5477_v23, %v5435_v10  ;;  %v11677_v10 = vld [vmem:[#allocation11 + $0x1be0] ss:$8 sps:$4 sm:$0xff] (%p4765_p7)   ;;  %v11678_v23 = vld [vmem:[#allocation11 + $0x1ce4] ss:$8 sps:$4 sm:$0xff] (%p4765_p7)  }
 0xe89   : >> { %11657 = vpow2.f32 %v5484_v26  ;;  %v5483_v21 = vsub.f32 0.0, %v5478_v33  ;;  %v11680_v33 = vld [vmem:[#allocation11 + $0x1ce0] ss:$8 sps:$4 sm:$0xff] (%p4765_p7)  }
 0xe8b   : >> { %v5486_v34 = vmul.f32 1.442695, %v5483_v21 }
 0xe8d   : >> { %11659 = vpow2.f32 %v5486_v34  ;;  %v11684_v34 = vld [vmem:[#allocation11 + $0x1cd4] ss:$8 sps:$4 sm:$0xff] (%p4765_p7)  }
 0xe8e   : >> { %11661 = vtanh.f32 %v5472_v43  ;;  %v11696_v43 = vld [vmem:[#allocation11 + $0x1cb4] ss:$8 sps:$4 sm:$0xff] (%p4765_p7)  }
 0xe96   : >> { %v11658_v39 = vpop.eup %11657 }
 0xe97   : >> { %v5488_v45 = vadd.f32 1.0, %v11658_v39  ;;  %v11693_v39 = vld [vmem:[#allocation11 + $0x1bb4] ss:$8 sps:$4 sm:$0xff] (%p4765_p7)  }
 0xe99   : >> { %11663 = vrcp.f32 %v5488_v45  ;;  %v11695_v45 = vld [vmem:[#allocation11 + $0x1bb0] ss:$8 sps:$4 sm:$0xff] (%p4765_p7)  }
 0xe9a   : >> { %v11660_v47 = vpop.eup %11659  ;;  %11665 = vtanh.f32 %v5476_v46  ;;  %v11699_v46 = vld [vmem:[#allocation11 + $0x1ba4] ss:$8 sps:$4 sm:$0xff] (%p4765_p7)  }
 0xe9b   : >> { %v5489_v30 = vadd.f32 1.0, %v11660_v47  ;;  %v11662_v2 = vpop.eup %11661  ;;  %v11698_v47 = vld [vmem:[#allocation11 + $0x1cb0] ss:$8 sps:$4 sm:$0xff] (%p4765_p7)  }
 0xe9d   : >> { %11667 = vrcp.f32 %v5489_v30  ;;  %v11702_v30 = vld [vmem:[#allocation11 + $0x1ca4] ss:$8 sps:$4 sm:$0xff] (%p4765_p7)  }
 0xea6   : >> { %v11664_v56 = vpop.eup %11663 }
 0xea7   : >> { %v11666_v51 = vpop.eup %11665  ;;  %v5492_v40 = vmul.f32 %v11664_v56, %v11662_v2  ;;  %v11701_v2 = vld [vmem:[#allocation11 + $0x1ba0] ss:$8 sps:$4 sm:$0xff] (%p4765_p7)   ;;  %v11705_v56 = vld [vmem:[#allocation11 + $0x1b94] ss:$8 sps:$4 sm:$0xff] (%p4765_p7)  }
 0xeaa   : >> { %v11668_v52 = vpop.eup %11667 }
 0xeab   : >> { %v5493_v29 = vmul.f32 %v11668_v52, %v11666_v51  ;;  %v11704_v51 = vld [vmem:[#allocation11 + $0x1ca0] ss:$8 sps:$4 sm:$0xff] (%p4765_p7)   ;;  %v11708_v52 = vld [vmem:[#allocation11 + $0x1c94] ss:$8 sps:$4 sm:$0xff] (%p4765_p7)  }
 0xead   : >> { %v5494_v53 = vpack.c.bf16 %v5493_v29, %v5492_v40  ;;  %v11707_v40 = vld [vmem:[#allocation11 + $0x1b90] ss:$8 sps:$4 sm:$0xff] (%p4765_p7)   ;;  %v11711_v29 = vld [vmem:[#allocation11 + $0x1b84] ss:$8 sps:$4 sm:$0xff] (%p4765_p7)  }
 0xeaf   : >> { %5640 = vmatmul.mubr.bf16.vlgmr.msra.gmra.mxu1 %v5494_v53  ;;  %v11710_v53 = vld [vmem:[#allocation11 + $0x1c90] ss:$8 sps:$4 sm:$0xff] (%p4765_p7)  }
 0xeb0   : > { %6274 = vmatpush1.bf16.msra.mxu1 (%p4765_p7), %v11674_v20 }
 0xeb1   : > { %6275 = vmatprep.subr.bf16.mxu1 (%p4765_p7), %v11678_v23  ;;  %v11744_v23 = vld [vmem:[#allocation11 + $0x1d34] ss:$8 sps:$4 sm:$0xff] (%p4765_p7)  }
 0xeb4   : > { %6276 = vmatpush1.bf16.msra.mxu1 (%p4765_p7), %v11680_v33 }
 0xeb5   : > { %6277 = vmatprep.subr.bf16.mxu1 (%p4765_p7), %v11684_v34 }
 0xeb8   : > { %6278 = vmatpush1.bf16.msra.mxu1 (%p4765_p7), %v11686_v31  ;;  %v11747_v31 = vld [vmem:[#allocation11 + $0x1c24] ss:$8 sps:$4 sm:$0xff] (%p4765_p7)  }
 0xeb9   : > { %6279 = vmatprep.subr.bf16.mxu1 (%p4765_p7), %v11690_v36  ;;  %v11746_v36 = vld [vmem:[#allocation11 + $0x1d30] ss:$8 sps:$4 sm:$0xff] (%p4765_p7)  }
 0xebc   : > { %6280 = vmatpush1.bf16.msra.mxu1 (%p4765_p7), %v11692_v28 }
 0xebd   : > { %6281 = vmatprep.subr.bf16.mxu1 (%p4765_p7), %v11696_v43 }
 0xec0   : > { %6282 = vmatpush1.bf16.msra.mxu1 (%p4765_p7), %v11698_v47  ;;  %v11749_v47 = vld [vmem:[#allocation11 + $0x1c20] ss:$8 sps:$4 sm:$0xff] (%p4765_p7)  }
 0xec1   : > { %6283 = vmatprep.subr.bf16.mxu1 (%p4765_p7), %v11702_v30 }
 0xec4   : > { %6284 = vmatpush1.bf16.msra.mxu1 (%p4765_p7), %v11704_v51 }
 0xec5   : > { %6285 = vmatprep.subr.bf16.mxu1 (%p4765_p7), %v11708_v52  ;;  %v11753_v52 = vld [vmem:[#allocation11 + $0x1c14] ss:$8 sps:$4 sm:$0xff] (%p4765_p7)  }
 0xec8   : > { %6286 = vmatpush1.bf16.msra.mxu1 (%p4765_p7), %v11710_v53 }
 0xec9   : > { %6287 = vmatprep.subr.bf16.mxu1 (%p4765_p7), %v11714_v55  ;;  %v11756_v55 = vld [vmem:[#allocation11 + $0x1d14] ss:$8 sps:$4 sm:$0xff] (%p4765_p7)  }
 0xf6f   : >> { %v5641_v58 = vpop.f32.mrf.mxu1 }
 0xf70   : >> { %v5642_v54 = vadd.f32 %v5641_v58, %v5520_v3  ;;  %v11716_v58 = vld [vmem:[#allocation11 + $0x1c80] ss:$8 sps:$4 sm:$0xff] (%p4765_p7)  }
 0xf71   : >> { %v5643_v59 = vpop.f32.mrf.mxu1  ;;  %6288 = vmatpush1.bf16.msra.mxu1 (%p4765_p7), %v11716_v58  ;;  %v11759_v58 = vld [vmem:[#allocation11 + $0x1c04] ss:$8 sps:$4 sm:$0xff] (%p4765_p7)  }
 0xf72   : >> { %v5650_v49 = vadd.f32 %v12694_v14, %v5642_v54  ;;  %v5644_v60 = vadd.f32 %v5643_v59, %v5524_v57  ;;  %v11720_v54 = vld [vmem:[#allocation11 + $0x1d74] ss:$8 sps:$4 sm:$0xff] (%p4765_p7)   ;;  %v11719_v59 = vld [vmem:[#allocation11 + $0x1c70] ss:$8 sps:$4 sm:$0xff] (%p4765_p7)  }
 0xf73   : >> { %v5645_v61 = vpop.f32.mrf.mxu1  ;;  %6289 = vmatprep.subr.bf16.mxu1 (%p4765_p7), %v11720_v54 }
 0xf74   : >> { %v5652_v50 = vmul.f32 %v5650_v49, %v13132_v18   ;;  %v13778_v4 = vadd.f32 %v12686_v4, %v5644_v60   ;;  %v5646_v63 = vadd.f32 %v5645_v61, %v5520_v3  ;;  %v11713_v3 = vld [vmem:[#allocation11 + $0x1b80] ss:$8 sps:$4 sm:$0xff] (%p4765_p7)   ;;  %v11723_v49 = vld [vmem:[#allocation11 + $0x1c64] ss:$8 sps:$4 sm:$0xff] (%p4765_p7)   ;;  %v11722_v60 = vld [vmem:[#allocation11 + $0x1d70] ss:$8 sps:$4 sm:$0xff] (%p4765_p7)  }
 0xf75   : >> { %v5647_v5 = vpop.f32.mrf.mxu1  ;;  %v11726_v61 = vld [vmem:[#allocation11 + $0x1d64] ss:$8 sps:$4 sm:$0xff] (%p4765_p7)   ;;  %6290 = vmatpush2.bf16.msra.mxu1 (%p4765_p7), %v11722_v60 }
 0xf76   : >> { %v14263_v44 = vmov %v13778_v4  ;;  %v5651_v6 = vadd.f32 %v12690_v8, %v5646_v63  ;;  %v5648_v7 = vadd.f32 %v5647_v5, %v5524_v57  ;;  %v14268_v14 = vmov %v5652_v50  ;;  %v11717_v57 = vld [vmem:[#allocation11 + $0x1c74] ss:$8 sps:$4 sm:$0xff] (%p4765_p7)   ;;  %v11728_v5 = vld [vmem:[#allocation11 + $0x1d60] ss:$8 sps:$4 sm:$0xff] (%p4765_p7)   ;;  %6291 = vmatprep.subr.bf16.mxu1 (%p4765_p7), %v11726_v61  ;;  %v11762_v60 = vld [vmem:[#allocation11 + $0x1d04] ss:$8 sps:$4 sm:$0xff] (%p4765_p7)  }
 0xf77   : >> { %v14266_v4 = vmov %v14263_v44  ;;  %4767 = sbr.rel (!%p4765_p7) target bundleno = 3420 (0xd5c), region = 268  ;;  %v11669_v14 = vld [vmem:[#allocation11 + $0x1bf4] ss:$8 sps:$4 sm:$0xff] (%p4765_p7)   ;;  %v10269_v13 = vpack.c.bf16 (%p4765_p7), %v5652_v50, %v5652_v50  ;;  %v11725_v50 = vld [vmem:[#allocation11 + $0x1c60] ss:$8 sps:$4 sm:$0xff] (%p4765_p7)  }
 0xf78   : >> { %v5653_v35 = vmul.f32 %v5651_v6, %v13135_v25   ;;  %v13783_v11 = vadd.f32 %v12682_v11, %v5648_v7   ;;  %6230 = vmatprep.subr.bf16.mxu0 (%p4765_p7), %v11669_v14  ;;  %v11683_v4 = vld [vmem:[#allocation11 + $0x1bd0] ss:$8 sps:$4 sm:$0xff] (%p4765_p7)   ;;  %v11729_v63 = vld [vmem:[#allocation11 + $0x1c54] ss:$8 sps:$4 sm:$0xff] (%p4765_p7)   ;;  %v11735_v14 = vld [vmem:[#allocation11 + $0x1c44] ss:$8 sps:$4 sm:$0xff] (%p4765_p7)  }
 0xf79   : > { %v5662_v22 = vrot.slane (%p4765_p7), %v10269_v13, 7  ;;  %6231 = vmatpush1.bf16.msra.mxu0 (%p4765_p7), %v11671_v17  ;;  %v11732_v6 = vld [vmem:[#allocation11 + $0x1d54] ss:$8 sps:$4 sm:$0xff] (%p4765_p7)   ;;  %v11731_v7 = vld [vmem:[#allocation11 + $0x1c50] ss:$8 sps:$4 sm:$0xff] (%p4765_p7)   ;;  %6292 = vmatpush2.bf16.msra.mxu1 (%p4765_p7), %v11728_v5 }
 0xf7a   : >> { %v14264_v15 = vmov %v13783_v11  ;;  %v14267_v8 = vmov %v5653_v35  ;;  %v10270_v16 = vpack.c.bf16 (%p4765_p7), %v5653_v35, %v5653_v35  ;;  %6232 = vmatprep.subr.bf16.mxu0 (%p4765_p7), %v11675_v24  ;;  %v11734_v35 = vld [vmem:[#allocation11 + $0x1d50] ss:$8 sps:$4 sm:$0xff] (%p4765_p7)   ;;  %v11737_v13 = vld [vmem:[#allocation11 + $0x1c40] ss:$8 sps:$4 sm:$0xff] (%p4765_p7)   ;;  %6293 = vmatprep.subr.bf16.mxu1 (%p4765_p7), %v11732_v6  ;;  %v11769_v61 = vld [vmem:[#allocation11 + $0x1df4] ss:$8 sps:$4 sm:$0xff] (%p4765_p7)  }
 0xf7b   : >> { %v14265_v11 = vmov %v14264_v15  ;;  %v5663_v26 = vrot.slane (%p4765_p7), %v5662_v22, 4  ;;  %5670 = vst [vmem:[#allocation2] sm:$0xe] (%p4765_p7), %v5662_v22  ;;  %v11681_v8 = vld [vmem:[#allocation11 + $0x1bd4] ss:$8 sps:$4 sm:$0xff] (%p4765_p7)  }
 0xf7c   : > { %v5664_v12 = vrot.slane %v10270_v16, 7  ;;  %v11738_v16 = vld [vmem:[#allocation11 + $0x1d44] ss:$8 sps:$4 sm:$0xff]   ;;  %v11740_v24 = vld [vmem:[#allocation11 + $0x1d40] ss:$8 sps:$4 sm:$0xff]  }
 0xf7d   : > { %6233 = vmatpush1.bf16.msra.mxu0 %v11677_v10  ;;  %v11741_v10 = vld [vmem:[#allocation11 + $0x1c34] ss:$8 sps:$4 sm:$0xff]   ;;  %6294 = vmatpush2.bf16.msra.mxu1 %v11734_v35 }
 0xf7e   : > { %v5666_v21 = vrot.slane %v5664_v12, 4  ;;  %v5665_v11 = vsel %vm13174_vm3, %v5663_v26, %v5664_v12  ;;  %6234 = vmatprep.subr.bf16.mxu0 %v11681_v8  ;;  %v11743_v12 = vld [vmem:[#allocation11 + $0x1c30] ss:$8 sps:$4 sm:$0xff]   ;;  %6295 = vmatprep.subr.bf16.mxu1 %v11738_v16 }
 0xf7f   : > { %5671 = vst [vmem:[#allocation2 + $0x4] sm:$0xf] %v5665_v11  ;;  %v11775_v16 = vld [vmem:[#allocation11 + $0x1dd0] ss:$8 sps:$4 sm:$0xff]  }
 0xf80   : > { %5672 = vst [vmem:[#allocation2 + $0x8] sm:$0x1] %v5666_v21 }
 0xf81   : > { %6235 = vmatpush1.bf16.msra.mxu0 %v11683_v4  ;;  %6296 = vmatpush2.bf16.msra.mxu1 %v11740_v24  ;;  %v11783_v24 = vld [vmem:[#allocation11 + $0x1db4] ss:$8 sps:$4 sm:$0xff]  }
 0xf82   : > { %6236 = vmatprep.subr.bf16.mxu0 %v11687_v37  ;;  %v5673_v17 = vld [vmem:[#allocation2] sm:$0xf]  ;;  %6297 = vmatprep.subr.bf16.mxu1 %v11744_v23  ;;  %v11789_v23 = vld [vmem:[#allocation11 + $0x1d94] ss:$8 sps:$4 sm:$0xff]  }
 0xf83   : > { %v5676_v8 = vld [vmem:[#allocation2] sm:$0xe] }
 0xf85   : > { %6237 = vmatpush1.bf16.msra.mxu0 %v11689_v38  ;;  %6298 = vmatpush2.bf16.msra.mxu1 %v11746_v36  ;;  %v11796_v36 = vld [vmem:[#allocation14 + $0x5f4] ss:$8 sps:$4 sm:$0xff]  }
 0xf86   : > { %6238 = vmatprep.subr.bf16.mxu0 %v11693_v39  ;;  %v13800_v19 = vld [vmem:[#allocation2 + $0x4] sm:$0xf] }
 0xf87   : > { %v13803_v20 = vcombine.low %v5673_v17, %v13800_v19  ;;  %v13805_v22 = vld [vmem:[#allocation2 + $0x8] ss:$0 sps:$4 sm:$0x11]   ;;  %v9813_v34 = vcombine.low %v5676_v8, %v13800_v19  ;;  %v11780_v17 = vld [vmem:[#allocation11 + $0x1dc4] ss:$8 sps:$4 sm:$0xff]  }
 0xf88   : > { %v5696_v21 = vshll.u32 %v13805_v22, 16  ;;  %v13811_v37 = vld [vmem:[#allocation2 + $0x8] ss:$0 sps:$4 sm:$0x33]   ;;  %v5705_v6 = vrot.slane %v13805_v22, 1 }
 0xf89   : > { %6239 = vmatpush1.bf16.msra.mxu0 %v11695_v45  ;;  %v5689_v26 = vshrl.u32 %v13803_v20, 16  ;;  %v5691_v33 = vshll.u32 %v13803_v20, 16  ;;  %v5712_v39 = vshrl.u32 %v9813_v34, 16  ;;  %v5715_v28 = vshll.u32 %v9813_v34, 16  ;;  %v11750_v45 = vld [vmem:[#allocation11 + $0x1d24] ss:$8 sps:$4 sm:$0xff]  }
 0xf8a   : > { %6240 = vmatprep.subr.bf16.mxu0 %v11699_v46  ;;  %v5698_v4 = vrot.slane %v5696_v21, 1  ;;  %v5720_v43 = vshrl.u32 %v13811_v37, 16  ;;  %v5723_v46 = vshll.u32 %v13811_v37, 16  ;;  %6299 = vmatprep.subr.bf16.mxu1 %v11750_v45  ;;  %v5704_v5 = vrot.slane %v9813_v34, 1  ;;  %v11778_v22 = vld [vmem:[#allocation11 + $0x1dc0] ss:$8 sps:$4 sm:$0xff]  }
 0xf8b   : > { %v5693_v11 = vrot.slane %v5691_v33, 1  ;;  %v11787_v33 = vld [vmem:[#allocation11 + $0x1d90] ss:$8 sps:$4 sm:$0xff]   ;;  %v11792_v8 = vld [vmem:[#allocation11 + $0x1d84] ss:$8 sps:$4 sm:$0xff]   ;;  %v5733_v34 = vrot.slane %v13811_v37, 2 }
 0xf8c   : > { %v5722_v51 = vrot.slane %v5720_v43, 1  ;;  %v5706_v35 = vsel %vm816_vm6, %v5704_v5, %v5705_v6  ;;  %v11800_v37 = vld [vmem:[#allocation14 + $0x5d0] ss:$8 sps:$4 sm:$0xff]   ;;  %v11805_v43 = vld [vmem:[#allocation14 + $0x5c4] ss:$8 sps:$4 sm:$0xff]  }
 0xf8d   : > { %6241 = vmatpush1.bf16.msra.mxu0 %v11701_v2  ;;  %v5694_v38 = vor.u32 %v5693_v11, %v5689_v26  ;;  %v5714_v2 = vrot.slane %v5712_v39, 1  ;;  %v5678_v26 = vld [vmem:[#allocation2] sm:$0xc]  ;;  %v11790_v11 = vld [vmem:[#allocation11 + $0x1d80] ss:$8 sps:$4 sm:$0xff]  }
 0xf8e   : > { %6242 = vmatprep.subr.bf16.mxu0 %v11705_v56  ;;  %v5717_v56 = vrot.slane %v5715_v28, 2  ;;  %v9815_v21 = vcombine.low %v5678_v26, %v13800_v19  ;;  %v11799_v19 = vld [vmem:[#allocation14 + $0x5e4] ss:$8 sps:$4 sm:$0xff]   ;;  %v11797_v39 = vld [vmem:[#allocation14 + $0x5e0] ss:$8 sps:$4 sm:$0xff]  }
 0xf8f   : > { %v5699_v30 = vsel %vm799_vm4, %v5694_v38, %v5698_v4  ;;  %v11794_v38 = vld [vmem:[#allocation14 + $0x5f0] ss:$8 sps:$4 sm:$0xff]   ;;  %v11802_v28 = vld [vmem:[#allocation14 + $0x5d4] ss:$8 sps:$4 sm:$0xff]   ;;  %v11803_v45 = vld [vmem:[#allocation14 + $0x5c0] ss:$8 sps:$4 sm:$0xff]  }
 0xf90   : > { %6262 = vmatprep.mubr.bf16.mxu0 %v5699_v30  ;;  %v5718_v53 = vor.u32 %v5717_v56, %v5714_v2  ;;  %v5732_v4 = vrot.slane %v9815_v21, 2  ;;  %v11811_v30 = vld [vmem:[#allocation14 + $0x5a4] ss:$8 sps:$4 sm:$0xff]   ;;  %v11809_v2 = vld [vmem:[#allocation14 + $0x5a0] ss:$8 sps:$4 sm:$0xff]  }
 0xf91   : > { %6243 = vmatpush1.bf16.msra.mxu0 %v11707_v40  ;;  %v5725_v40 = vrot.slane %v5723_v46, 2  ;;  %v11806_v46 = vld [vmem:[#allocation14 + $0x5b0] ss:$8 sps:$4 sm:$0xff]   ;;  %v11814_v56 = vld [vmem:[#allocation14 + $0x594] ss:$8 sps:$4 sm:$0xff]  }
 0xf92   : > { %6244 = vmatprep.subr.bf16.mxu0 %v11711_v29  ;;  %v11752_v29 = vld [vmem:[#allocation11 + $0x1d20] ss:$8 sps:$4 sm:$0xff]  }
 0xf93   : > { %6300 = vmatpush2.bf16.msra.mxu1 %v11752_v29  ;;  %v11818_v29 = vld [vmem:[#allocation17 + $0xb8] sm:$0xff]  }
 0xf94   : > { %6301 = vmatprep.subr.bf16.mxu1 %v11756_v55  ;;  %v11820_v55 = vld [vmem:[#allocation17 + $0xa8] sm:$0xff]  }
 0xf95   : > { %6245 = vmatpush1.bf16.msra.mxu0 %v11713_v3  ;;  %v5726_v3 = vor.u32 %v5725_v40, %v5722_v51  ;;  %v11812_v51 = vld [vmem:[#allocation14 + $0x590] ss:$8 sps:$4 sm:$0xff]   ;;  %v11815_v40 = vld [vmem:[#allocation14 + $0x580] ss:$8 sps:$4 sm:$0xff]  }
 0xf96   : > { %6246 = vmatprep.subr.bf16.mxu0 %v11717_v57  ;;  %v11755_v57 = vld [vmem:[#allocation11 + $0x1c10] ss:$8 sps:$4 sm:$0xff]  }
 0xf97   : > { %v5727_v54 = vsel %vm824_vm5, %v5718_v53, %v5726_v3  ;;  %v11819_v53 = vld [vmem:[#allocation17 + $0xb0] sm:$0xff]   ;;  %v11821_v3 = vld [vmem:[#allocation17 + $0xa0] sm:$0xff]  }
 0xf98   : > { %6305 = vmatprep.mubr.bf16.mxu1 %v5727_v54  ;;  %v5818_v54 = vld [vmem:[#allocation12 + $0x16] sm:$0x3] }
 0xf99   : > { %6247 = vmatpush2.bf16.msra.mxu0 %v11719_v59  ;;  %v11758_v59 = vld [vmem:[#allocation11 + $0x1d10] ss:$8 sps:$4 sm:$0xff]   ;;  %v5823_v21 = vrot.slane %v5818_v54, %v13292_v41 }
 0xf9a   : > { %6248 = vmatprep.subr.bf16.mxu0 %v11723_v49  ;;  %v11761_v49 = vld [vmem:[#allocation11 + $0x1c00] ss:$8 sps:$4 sm:$0xff]   ;;  %6302 = vmatpush2.bf16.msra.mxu1 %v11758_v59 }
 0xf9b   : > { %6303 = vmatprep.subr.bf16.mxu1 %v11762_v60  ;;  %v5827_v60 = vrot.slane %v5818_v54, %v13287_v9 }
 0xf9d   : > { %6249 = vmatpush2.bf16.msra.mxu0 %v11725_v50  ;;  %v11766_v50 = vld [vmem:[#allocation11 + $0x1d00] ss:$8 sps:$4 sm:$0xff]  }
 0xf9e   : > { %6250 = vmatprep.subr.bf16.mxu0 %v11729_v63  ;;  %v11767_v63 = vld [vmem:[#allocation11 + $0x1df0] ss:$8 sps:$4 sm:$0xff]   ;;  %6304 = vmatpush2.bf16.msra.mxu1 %v11766_v50 }
 0xf9f   : > { %6479 = vmatprep.subr.bf16.mxu1 %v11796_v36 }
 0xfa1   : > { %6251 = vmatpush2.bf16.msra.mxu0 %v11731_v7  ;;  %v11774_v7 = vld [vmem:[#allocation11 + $0x1de4] ss:$8 sps:$4 sm:$0xff]   ;;  %6306 = vmatmul.mubr.bf16.vlgmr.msra.gmra.mxu1 %v5706_v35 }
 0xfa2   : > { %6252 = vmatprep.subr.bf16.mxu0 %v11735_v14  ;;  %v11772_v14 = vld [vmem:[#allocation11 + $0x1de0] ss:$8 sps:$4 sm:$0xff]   ;;  %6511 = vmatprep.mubr.bf16.mxu1 %v12740_v1 }
 0xfa3   : > { %6480 = vmatpush1.bf16.msra.mxu1 %v11794_v38 }
 0xfa4   : > { %6481 = vmatprep.subr.bf16.mxu1 %v11799_v19 }
 0xfa5   : > { %6253 = vmatpush2.bf16.msra.mxu0 %v11737_v13  ;;  %v11777_v13 = vld [vmem:[#allocation11 + $0x1dd4] ss:$8 sps:$4 sm:$0xff]  }
 0xfa6   : > { %6254 = vmatprep.subr.bf16.mxu0 %v11741_v10  ;;  %v11781_v10 = vld [vmem:[#allocation11 + $0x1db0] ss:$8 sps:$4 sm:$0xff]  }
 0xfa7   : > { %6482 = vmatpush1.bf16.msra.mxu1 %v11797_v39 }
 0xfa8   : > { %6483 = vmatprep.subr.bf16.mxu1 %v11802_v28 }
 0xfa9   : > { %6255 = vmatpush2.bf16.msra.mxu0 %v11743_v12  ;;  %v11784_v12 = vld [vmem:[#allocation11 + $0x1da0] ss:$8 sps:$4 sm:$0xff]  }
 0xfaa   : > { %6256 = vmatprep.subr.bf16.mxu0 %v11747_v31  ;;  %v5734_v31 = vsel %vm846_vm7, %v5732_v4, %v5733_v34 }
 0xfab   : > { %6484 = vmatpush1.bf16.msra.mxu1 %v11800_v37 }
 0xfac   : > { %6485 = vmatprep.subr.bf16.mxu1 %v11805_v43 }
 0xfad   : > { %6257 = vmatpush2.bf16.msra.mxu0 %v11749_v47  ;;  %v11808_v47 = vld [vmem:[#allocation14 + $0x5b4] ss:$8 sps:$4 sm:$0xff]  }
 0xfae   : > { %6258 = vmatprep.subr.bf16.mxu0 %v11753_v52  ;;  %v11817_v52 = vld [vmem:[#allocation14 + $0x584] ss:$8 sps:$4 sm:$0xff]  }
 0xfaf   : > { %6486 = vmatpush1.bf16.msra.mxu1 %v11803_v45 }
 0xfb0   : > { %6487 = vmatprep.subr.bf16.mxu1 %v11808_v47 }
 0xfb1   : > { %6259 = vmatpush2.bf16.msra.mxu0 %v11755_v57  ;;  %v11822_v57 = vld [vmem:[#allocation17 + $0x98] sm:$0xff]  }
 0xfb2   : > { %6260 = vmatprep.subr.bf16.mxu0 %v11759_v58 }
 0xfb3   : > { %6488 = vmatpush1.bf16.msra.mxu1 %v11806_v46 }
 0xfb4   : > { %6489 = vmatprep.subr.bf16.mxu1 %v11811_v30 }
 0xfb5   : > { %6261 = vmatpush2.bf16.msra.mxu0 %v11761_v49 }
 0xfb6   : > { %6316 = vmatprep.subr.bf16.mxu0 %v11769_v61 }
 0xfb7   : > { %6490 = vmatpush1.bf16.msra.mxu1 %v11809_v2 }
 0xfb8   : > { %6263 = vmatmul.mubr.bf16.vlgmr.msra.gmra.mxu0 %v13803_v20  ;;  %v11786_v20 = vld [vmem:[#allocation11 + $0x1da4] ss:$8 sps:$4 sm:$0xff]   ;;  %6491 = vmatprep.subr.bf16.mxu1 %v11814_v56  ;;  %v11823_v56 = vld [vmem:[#allocation17 + $0x90] sm:$0xff]  }
 0xfb9   : > { %6317 = vmatpush1.bf16.msra.mxu0 %v11767_v63  ;;  %6348 = vmatprep.mubr.bf16.mxu0 %v12740_v1 }
 0xfba   : > { %6318 = vmatprep.subr.bf16.mxu0 %v11774_v7 }
 0xfbb   : > { %6492 = vmatpush1.bf16.msra.mxu1 %v11812_v51  ;;  %v11824_v51 = vld [vmem:[#allocation17 + $0x88] sm:$0xff]  }
 0xfbc   : > { %6493 = vmatprep.subr.bf16.mxu1 %v11817_v52  ;;  %v11825_v52 = vld [vmem:[#allocation17 + $0x80] sm:$0xff]  }
 0xfbd   : > { %6319 = vmatpush1.bf16.msra.mxu0 %v11772_v14 }
 0xfbe   : > { %6320 = vmatprep.subr.bf16.mxu0 %v11777_v13 }
 0xfbf   : > { %6494 = vmatpush1.bf16.msra.mxu1 %v11815_v40  ;;  %v11826_v40 = vld [vmem:[#allocation8 + $0xf8] sm:$0xff]  }
 0xfc0   : > { %10469 = vmatprep.subr.bf16.mxu1 %v12738_v0 }
 0xfc1   : > { %6321 = vmatpush1.bf16.msra.mxu0 %v11775_v16 }
 0xfc2   : > { %6322 = vmatprep.subr.bf16.mxu0 %v11780_v17 }
 0xfc5   : > { %6323 = vmatpush1.bf16.msra.mxu0 %v11778_v22 }
 0xfc6   : > { %6324 = vmatprep.subr.bf16.mxu0 %v11783_v24 }
 0xfc9   : > { %6325 = vmatpush1.bf16.msra.mxu0 %v11781_v10 }
 0xfca   : > { %6326 = vmatprep.subr.bf16.mxu0 %v11786_v20 }
 0xfcd   : > { %6327 = vmatpush1.bf16.msra.mxu0 %v11784_v12 }
 0xfce   : > { %6328 = vmatprep.subr.bf16.mxu0 %v11789_v23 }
 0xfd1   : > { %6329 = vmatpush1.bf16.msra.mxu0 %v11787_v33 }
 0xfd2   : > { %6330 = vmatprep.subr.bf16.mxu0 %v11792_v8 }
 0xfd5   : > { %6331 = vmatpush1.bf16.msra.mxu0 %v11790_v11 }
 0xfd6   : > { %10449 = vmatprep.subr.bf16.mxu0 %v12738_v0 }
 0xfd8   : > { %6349 = vmatmul.mubr.bf16.vlgmr.msra.gmra.mxu0 %v5734_v31 }
 0xfd9   : > { %10465 = vmatprep.mubr.msk.bf16.mxu0 %vm12739_vm0, %v12738_v0  ;;  %10450 = vmatpush3.bf16.msra.mxu0 %v11818_v29  ;;  %v11827_v29 = vld [vmem:[#allocation8 + $0xf0] sm:$0xff]  }
 0xfda   : > { %10451 = vmatprep.subr.bf16.mxu0 %v12738_v0 }
 0xfdd   : > { %10452 = vmatpush3.bf16.msra.mxu0 %v11819_v53  ;;  %v11828_v53 = vld [vmem:[#allocation8 + $0xe8] sm:$0xff]  }
 0xfde   : > { %10453 = vmatprep.subr.bf16.mxu0 %v12738_v0 }
 0xfe1   : > { %10454 = vmatpush3.bf16.msra.mxu0 %v11820_v55  ;;  %v11829_v55 = vld [vmem:[#allocation8 + $0xe0] sm:$0xff]  }
 0xfe2   : > { %10455 = vmatprep.subr.bf16.mxu0 %v12738_v0 }
 0xfe5   : > { %10456 = vmatpush3.bf16.msra.mxu0 %v11821_v3  ;;  %v11830_v3 = vld [vmem:[#allocation8 + $0xd8] sm:$0xff]  }
 0xfe6   : > { %10457 = vmatprep.subr.bf16.mxu0 %v12738_v0 }
 0xfe9   : > { %10458 = vmatpush3.bf16.msra.mxu0 %v11822_v57  ;;  %v6392_v57 = vld [vmem:[#allocation15 + $0x16] sm:$0x3] }
 0xfea   : > { %10459 = vmatprep.subr.bf16.mxu0 %v12738_v0 }
 0xfed   : > { %10460 = vmatpush3.bf16.msra.mxu0 %v11823_v56 }
 0xfee   : > { %10461 = vmatprep.subr.bf16.mxu0 %v12738_v0 }
 0xff1   : > { %10462 = vmatpush3.bf16.msra.mxu0 %v11824_v51 }
 0xff2   : > { %10463 = vmatprep.subr.bf16.mxu0 %v12738_v0 }
 0xff5   : > { %10464 = vmatpush3.bf16.msra.mxu0 %v11825_v52 }
0x1061   : > { %v6307_v49 = vpop.f32.mrf.mxu1 }
0x1063   : > { %v6309_v50 = vpop.f32.mrf.mxu1 }
0x1065   : > { %v6311_v6 = vpop.f32.mrf.mxu1 }
0x1067   : > { %v6313_v13 = vpop.f32.mrf.mxu1 }
0x1078   : > { %v6264_v58 = vpop.f32.mrf.mxu0 }
0x1079   : > { %v6265_v8 = vadd.f32 %v6264_v58, %v5823_v21  ;;  %v6397_v58 = vrot.slane %v6392_v57, %v13292_v41 }
0x107a   : > { %v6266_v59 = vpop.f32.mrf.mxu0 }
0x107b   : > { %v6267_v63 = vadd.f32 %v6266_v59, %v5827_v60  ;;  %v6308_v4 = vadd.f32 %v6307_v49, %v6265_v8 }
0x107c   : > { %v6268_v61 = vpop.f32.mrf.mxu0 }
0x107d   : > { %v6310_v35 = vadd.f32 %v6309_v50, %v6267_v63  ;;  %v6269_v11 = vadd.f32 %v6268_v61, %v5823_v21 }
0x107e   : > { %v6270_v5 = vpop.f32.mrf.mxu0 }
0x107f   : > { %v6271_v14 = vadd.f32 %v6270_v5, %v5827_v60  ;;  %v6312_v31 = vadd.f32 %v6311_v6, %v6269_v11 }
0x1081   : > { %v6314_v24 = vadd.f32 %v6313_v13, %v6271_v14  ;;  %v11831_v14 = vld [vmem:[#allocation8 + $0xd0] sm:$0xff]   ;;  %v11832_v13 = vld [vmem:[#allocation8 + $0xc8] sm:$0xff]  }
0x1098   : > { %v6350_v7 = vpop.f32.mrf.mxu0 }
0x1099   : > { %v6351_v36 = vadd.f32 %v6350_v7, %v6308_v4  ;;  %v9921_v4 = vld [vmem:[#allocation9 + $0x3] ss:$0 sm:$0xff] }
0x109a   : > { %v6352_v16 = vpop.f32.mrf.mxu0 }
0x109b   : > { %v6353_v17 = vadd.f32 %v6352_v16, %v6310_v35  ;;  %v11833_v16 = vld [vmem:[#allocation8 + $0xc0] sm:$0xff]  }
0x109c   : > { %v6354_v22 = vpop.f32.mrf.mxu0 }
0x109d   : > { %v6361_v10 = vsub.f32 0.0, %v6353_v17  ;;  %v6355_v19 = vadd.f32 %v6354_v22, %v6312_v31 }
0x109e   : > { %v6356_v20 = vpop.f32.mrf.mxu0 }
0x109f   : > { %v6363_v12 = vmul.f32 1.442695, %v6361_v10  ;;  %v6357_v23 = vadd.f32 %v6356_v20, %v6314_v24  ;;  %v6641_v20 = vmul.f32 %v13382_v42, %v13132_v18 }
0x10a1   : > { %11834 = vpow2.f32 %v6363_v12  ;;  %v6362_v26 = vsub.f32 0.0, %v6357_v23  ;;  %v6642_v23 = vmul.f32 %v13384_v27, %v13135_v25 }
0x10a3   : > { %v6365_v33 = vmul.f32 1.442695, %v6362_v26 }
0x10a5   : > { %11836 = vpow2.f32 %v6365_v33 }
0x10a6   : > { %11838 = vtanh.f32 %v6351_v36 }
0x10ae   : > { %v11835_v34 = vpop.eup %11834 }
0x10af   : > { %v6367_v38 = vadd.f32 1.0, %v11835_v34 }
0x10b1   : > { %11840 = vrcp.f32 %v6367_v38 }
0x10b2   : > { %v11837_v39 = vpop.eup %11836  ;;  %11842 = vtanh.f32 %v6355_v19 }
0x10b3   : > { %v6368_v28 = vadd.f32 1.0, %v11837_v39  ;;  %v11839_v37 = vpop.eup %11838 }
0x10b5   : > { %11844 = vrcp.f32 %v6368_v28  ;;  %v13866_v28 = vmov 0.0  }
0x10be   : > { %v11841_v43 = vpop.eup %11840 }
0x10bf   : > { %v11843_v45 = vpop.eup %11842  ;;  %v6371_v47 = vmul.f32 %v11841_v43, %v11839_v37  ;;  %v13868_v37 = vmov 0.0  }
0x10c2   : > { %v11845_v46 = vpop.eup %11844 }
0x10c3   : > { %v6372_v30 = vmul.f32 %v11845_v46, %v11843_v45 }
0x10c5   : > { %v6373_v2 = vpack.c.bf16 %v6372_v30, %v6371_v47 }
0x10c7   : > { %6512 = vmatmul.mubr.bf16.vlgmr.msra.gmra.mxu1 %v6373_v2 }
0x10c8   : > { %10485 = vmatprep.mubr.msk.bf16.mxu1 %vm12739_vm0, %v12738_v0  ;;  %10470 = vmatpush3.bf16.msra.mxu1 %v11826_v40 }
0x10c9   : > { %10471 = vmatprep.subr.bf16.mxu1 %v12738_v0 }
0x10cc   : > { %10472 = vmatpush3.bf16.msra.mxu1 %v11827_v29 }
0x10cd   : > { %10473 = vmatprep.subr.bf16.mxu1 %v12738_v0 }
0x10d0   : > { %10474 = vmatpush3.bf16.msra.mxu1 %v11828_v53 }
0x10d1   : > { %10475 = vmatprep.subr.bf16.mxu1 %v12738_v0 }
0x10d4   : > { %10476 = vmatpush3.bf16.msra.mxu1 %v11829_v55 }
0x10d5   : > { %10477 = vmatprep.subr.bf16.mxu1 %v12738_v0 }
0x10d8   : > { %10478 = vmatpush3.bf16.msra.mxu1 %v11830_v3 }
0x10d9   : > { %10479 = vmatprep.subr.bf16.mxu1 %v12738_v0 }
0x10dc   : > { %10480 = vmatpush3.bf16.msra.mxu1 %v11831_v14 }
0x10dd   : > { %10481 = vmatprep.subr.bf16.mxu1 %v12738_v0 }
0x10e0   : > { %10482 = vmatpush3.bf16.msra.mxu1 %v11832_v13 }
0x10e1   : > { %10483 = vmatprep.subr.bf16.mxu1 %v12738_v0 }
0x10e4   : > { %10484 = vmatpush3.bf16.msra.mxu1 %v11833_v16 }
0x1187   : > { %v6513_v54 = vpop.f32.mrf.mxu1 }
0x1188   : > { %v6514_v59 = vadd.f32 %v6513_v54, %v6397_v58 }
0x1189   : > { %v6515_v49 = vpop.f32.mrf.mxu1 }
0x118a   : > { %v6520_v61 = vadd.f32 %v6514_v59, %v14263_v44  ;;  %v9912_v44 = vld [vmem:[#allocation18 + $0x2] ss:$0 sm:$0xff] }
0x118b   : > { %v6516_v60 = vpop.f32.mrf.mxu1 }
0x118c   : > { %v6517_v50 = vadd.f32 %v6516_v60, %v6397_v58  ;;  %v6522_v6 = vmul.f32 %v6520_v61, %v13132_v18 }
0x118d   : > { %v6518_v63 = vpop.f32.mrf.mxu1 }
0x118e   : > { %v6521_v5 = vadd.f32 %v6517_v50, %v14264_v15 }
0x1190   : > { %v6523_v7 = vmul.f32 %v6521_v5, %v13135_v25 }
0x1192   : > { %v6524_v35 = vpack.c.bf16 %v6523_v7, %v6522_v6 }
0x1194   : > { %10466 = vmatmul.mubr.bf16.vlgmr.msra.gmra.mxu0 %v6524_v35 }
0x1254   : > { %v6632_v17 = vpop.f32.mrf.mxu0 }
0x1255   : > { %v6633_v22 = vadd.f32 %v9912_v44, %v6632_v17 }
0x1256   : > { %v10467_v15 = vpop.f32.mrf.mxu0 }
0x1257   : > { %v6639_v10 = vmul.f32 %v6633_v22, %v13132_v18 }
0x1258   : > { %v6635_v24 = vpop.f32.mrf.mxu0 }
0x1259   : > { %v6636_v12 = vadd.f32 %v9912_v44, %v6635_v24  ;;  %v13858_v21 = vadd.f32 %v6641_v20, %v6639_v10 }
0x125a   : > { %v10468_v26 = vpop.f32.mrf.mxu0 }
0x125b   : > { %v6640_v33 = vmul.f32 %v6636_v12, %v13135_v25 }
0x125d   : > { %v13860_v8 = vadd.f32 %v6642_v23, %v6640_v33 }
0x125f   : > { %v6645_v11 = vpack.c.bf16 %v13860_v8, %v13858_v21 }
0x1261   : > { %10486 = vmatmul.mubr.bf16.vlgmr.msra.gmra.mxu1 %v6645_v11 }
0x1321   : > { %v6753_v34 = vpop.f32.mrf.mxu1 }
0x1322   : > { %v6754_v31 = vadd.f32 %v9921_v4, %v6753_v34 }
0x1323   : > { %v10487_v36 = vpop.f32.mrf.mxu1 }
0x1324   : > { %v6760_v42 = vmul.f32 %v6754_v31, %v13132_v18  }
0x1325   : > { %v6756_v38 = vpop.f32.mrf.mxu1 }
0x1326   : > { %v6757_v19 = vadd.f32 %v9921_v4, %v6756_v38 }
0x1327   : > { %v10488_v27 = vpop.f32.mrf.mxu1 }
0x1328   : > { %v6761_v39 = vmul.f32 %v6757_v19, %v13135_v25  }
0x1329 LB: >> { %s8795_s19 = smul.u32 640, %s12718_s29  ;;  %v10271_v43 = vpack.c.bf16 %v12714_v42, %v12714_v42  ;;  %v10272_v45 = vpack.c.bf16 %v12710_v39, %v12710_v39  ;;  %s10099_s26 = sshll.u32 %s12718_s29, 7  ;;  %s12718_s29 = sphi %s13874_s29, %s6767_s29   ;;  %v12714_v42 = vphi %v6760_v42, %v14274_v42   ;;  %v12710_v39 = vphi %v6761_v39, %v14273_v39   ;;  %v12706_v37 = vphi %v13868_v37, %v14272_v37   ;;  %v12702_v28 = vphi %v13866_v28, %v14271_v28  }
0x132a   : >> { %s8802_s7 = scalar_lea.vmem [#allocation14], %s10099_s26  ;;  %s10017_s10 = sshll.u32 %s12718_s29, 1 }
0x132b   : >> { %v6779_v46 = vrot.slane %v10271_v43, 7  ;;  %v6781_v47 = vrot.slane %v10272_v45, 7  ;;  %s13896_s13 = scalar_lea.vmem [#allocation11], %s8795_s19  ;;  %s8799_s4 = scalar_lea.vmem [#allocation12], %s10017_s10 }
0x132c   : >> { %v11846_v30 = vld [vmem:[%s13896_s13 + $0x1e74] ss:$8 sps:$4 sm:$0xff]   ;;  %v11848_v2 = vld [vmem:[%s13896_s13 + $0x1e70] ss:$8 sps:$4 sm:$0xff]   ;;  %v11852_v29 = vld [vmem:[%s13896_s13 + $0x1e64] ss:$8 sps:$4 sm:$0xff]  }
0x132d   : >> { %v6780_v56 = vrot.slane %v6779_v46, 4  ;;  %v6783_v51 = vrot.slane %v6781_v47, 4  ;;  %6787 = vst [vmem:[#allocation2] sm:$0xe] %v6779_v46  ;;  %7350 = vmatprep.subr.bf16.mxu0 %v11846_v30  ;;  %v11849_v52 = vld [vmem:[%s13896_s13 + $0x1f74] ss:$8 sps:$4 sm:$0xff]  }
0x132e   : >> { %v11851_v40 = vld [vmem:[%s13896_s13 + $0x1f70] ss:$8 sps:$4 sm:$0xff]   ;;  %7351 = vmatpush1.bf16.msra.mxu0 %v11848_v2  ;;  %v11854_v53 = vld [vmem:[%s13896_s13 + $0x1e60] ss:$8 sps:$4 sm:$0xff]   ;;  %7393 = vmatprep.subr.bf16.mxu1 %v11849_v52  ;;  %v11855_v3 = vld [vmem:[%s13896_s13 + $0x1f64] ss:$8 sps:$4 sm:$0xff]  }
0x132f   : >> { %v6782_v55 = vsel %vm13174_vm3, %v6780_v56, %v6781_v47  ;;  %6789 = vst [vmem:[#allocation2 + $0x8] sm:$0x1] %v6783_v51  ;;  %7394 = vmatpush1.bf16.msra.mxu1 %v11851_v40  ;;  %7352 = vmatprep.subr.bf16.mxu0 %v11852_v29  ;;  %v11857_v57 = vld [vmem:[%s13896_s13 + $0x1f60] ss:$8 sps:$4 sm:$0xff]   ;;  %v11858_v58 = vld [vmem:[%s13896_s13 + $0x1e54] ss:$8 sps:$4 sm:$0xff]  }
0x1330   : >> { %6788 = vst [vmem:[#allocation2 + $0x4] sm:$0xf] %v6782_v55  ;;  %7395 = vmatprep.subr.bf16.mxu1 %v11855_v3  ;;  %v11860_v54 = vld [vmem:[%s13896_s13 + $0x1e50] ss:$8 sps:$4 sm:$0xff]   ;;  %v11861_v59 = vld [vmem:[%s13896_s13 + $0x1f54] ss:$8 sps:$4 sm:$0xff]  }
0x1331   : >> { %v11864_v49 = vld [vmem:[%s13896_s13 + $0x1e44] ss:$8 sps:$4 sm:$0xff]   ;;  %v11863_v60 = vld [vmem:[%s13896_s13 + $0x1f50] ss:$8 sps:$4 sm:$0xff]   ;;  %v11866_v50 = vld [vmem:[%s13896_s13 + $0x1e40] ss:$8 sps:$4 sm:$0xff]  }
0x1332   : >> { %7353 = vmatpush1.bf16.msra.mxu0 %v11854_v53  ;;  %v11867_v61 = vld [vmem:[%s13896_s13 + $0x1f44] ss:$8 sps:$4 sm:$0xff]   ;;  %v11870_v63 = vld [vmem:[%s13896_s13 + $0x1e34] ss:$8 sps:$4 sm:$0xff]   ;;  %v11869_v5 = vld [vmem:[%s13896_s13 + $0x1f40] ss:$8 sps:$4 sm:$0xff]  }
0x1333   : >> { %7354 = vmatprep.subr.bf16.mxu0 %v11858_v58  ;;  %7396 = vmatpush1.bf16.msra.mxu1 %v11857_v57  ;;  %v11873_v6 = vld [vmem:[%s13896_s13 + $0x1f34] ss:$8 sps:$4 sm:$0xff]   ;;  %v11872_v7 = vld [vmem:[%s13896_s13 + $0x1e30] ss:$8 sps:$4 sm:$0xff]   ;;  %v11876_v35 = vld [vmem:[%s13896_s13 + $0x1e24] ss:$8 sps:$4 sm:$0xff]  }
0x1334   : >> { %7397 = vmatprep.subr.bf16.mxu1 %v11861_v59  ;;  %v11875_v14 = vld [vmem:[%s13896_s13 + $0x1f30] ss:$8 sps:$4 sm:$0xff]   ;;  %v11879_v13 = vld [vmem:[%s13896_s13 + $0x1f24] ss:$8 sps:$4 sm:$0xff]   ;;  %v11878_v16 = vld [vmem:[%s13896_s13 + $0x1e20] ss:$8 sps:$4 sm:$0xff]  }
0x1335   : >> { %v11882_v44 = vld [vmem:[%s13896_s13 + $0x1e14] ss:$8 sps:$4 sm:$0xff]   ;;  %v11881_v17 = vld [vmem:[%s13896_s13 + $0x1f20] ss:$8 sps:$4 sm:$0xff]   ;;  %v11884_v15 = vld [vmem:[%s13896_s13 + $0x1e10] ss:$8 sps:$4 sm:$0xff]  }
0x1336   : >> { %7355 = vmatpush1.bf16.msra.mxu0 %v11860_v54  ;;  %v11885_v22 = vld [vmem:[%s13896_s13 + $0x1f14] ss:$8 sps:$4 sm:$0xff]   ;;  %v11888_v24 = vld [vmem:[%s13896_s13 + $0x1e04] ss:$8 sps:$4 sm:$0xff]   ;;  %v11887_v10 = vld [vmem:[%s13896_s13 + $0x1f10] ss:$8 sps:$4 sm:$0xff]  }
0x1337   : >> { %7356 = vmatprep.subr.bf16.mxu0 %v11864_v49  ;;  %7398 = vmatpush1.bf16.msra.mxu1 %v11863_v60  ;;  %v11891_v20 = vld [vmem:[%s13896_s13 + $0x1f04] ss:$8 sps:$4 sm:$0xff]   ;;  %v11890_v12 = vld [vmem:[%s13896_s13 + $0x1e00] ss:$8 sps:$4 sm:$0xff]   ;;  %v11894_v23 = vld [vmem:[%s13896_s13 + $0x1ef4] ss:$8 sps:$4 sm:$0xff]  }
0x1338   : >> { %7399 = vmatprep.subr.bf16.mxu1 %v11867_v61  ;;  %v11893_v26 = vld [vmem:[%s13896_s13 + $0x1f00] ss:$8 sps:$4 sm:$0xff]   ;;  %v11897_v33 = vld [vmem:[%s13896_s13 + $0x1ff4] ss:$8 sps:$4 sm:$0xff]   ;;  %v11896_v11 = vld [vmem:[%s13896_s13 + $0x1ef0] ss:$8 sps:$4 sm:$0xff]  }
0x1339   : >> { %v11900_v4 = vld [vmem:[%s13896_s13 + $0x1ee4] ss:$8 sps:$4 sm:$0xff]   ;;  %v11899_v34 = vld [vmem:[%s13896_s13 + $0x1ff0] ss:$8 sps:$4 sm:$0xff]   ;;  %v11902_v36 = vld [vmem:[%s13896_s13 + $0x1ee0] ss:$8 sps:$4 sm:$0xff]  }
0x133a   : >> { %7357 = vmatpush1.bf16.msra.mxu0 %v11866_v50  ;;  %v11903_v31 = vld [vmem:[%s13896_s13 + $0x1fe4] ss:$8 sps:$4 sm:$0xff]   ;;  %v11906_v38 = vld [vmem:[%s13896_s13 + $0x1ed4] ss:$8 sps:$4 sm:$0xff]   ;;  %v11905_v19 = vld [vmem:[%s13896_s13 + $0x1fe0] ss:$8 sps:$4 sm:$0xff]  }
0x133b   : >> { %7358 = vmatprep.subr.bf16.mxu0 %v11870_v63  ;;  %7400 = vmatpush1.bf16.msra.mxu1 %v11869_v5  ;;  %v11909_v27 = vld [vmem:[%s13896_s13 + $0x1fd4] ss:$8 sps:$4 sm:$0xff]   ;;  %v11908_v43 = vld [vmem:[%s13896_s13 + $0x1ed0] ss:$8 sps:$4 sm:$0xff]   ;;  %v11912_v46 = vld [vmem:[%s13896_s13 + $0x1ec4] ss:$8 sps:$4 sm:$0xff]  }
0x133c   : >> { %7401 = vmatprep.subr.bf16.mxu1 %v11873_v6  ;;  %v11911_v45 = vld [vmem:[%s13896_s13 + $0x1fd0] ss:$8 sps:$4 sm:$0xff]   ;;  %v11914_v47 = vld [vmem:[%s13896_s13 + $0x1ec0] ss:$8 sps:$4 sm:$0xff]   ;;  %v11915_v30 = vld [vmem:[%s13896_s13 + $0x1fc4] ss:$8 sps:$4 sm:$0xff]  }
0x133d   : >> { %v6790_v2 = vld [vmem:[#allocation2] sm:$0xf]  ;;  %v13947_v56 = vld [vmem:[#allocation2 + $0x4] sm:$0xf]  ;;  %v11918_v29 = vld [vmem:[%s13896_s13 + $0x1eb4] ss:$8 sps:$4 sm:$0xff]  }
0x133e   : >> { %7359 = vmatpush1.bf16.msra.mxu0 %v11872_v7  ;;  %v13950_v51 = vcombine.low %v6790_v2, %v13947_v56  ;;  %v13952_v52 = vld [vmem:[#allocation2 + $0x8] ss:$0 sps:$4 sm:$0x11]   ;;  %v11920_v53 = vld [vmem:[%s13896_s13 + $0x1eb0] ss:$8 sps:$4 sm:$0xff]   ;;  %v12744_v2 = vmov 0  }
0x133f   : >> { %7360 = vmatprep.subr.bf16.mxu0 %v11876_v35  ;;  %7402 = vmatpush1.bf16.msra.mxu1 %v11875_v14  ;;  %v11917_v40 = vld [vmem:[%s13896_s13 + $0x1fc0] ss:$8 sps:$4 sm:$0xff]   ;;  %v11921_v55 = vld [vmem:[%s13896_s13 + $0x1fb4] ss:$8 sps:$4 sm:$0xff]   ;;  %v6813_v58 = vshll.u32 %v13952_v52, 16  ;;  %s8805_s9 = scalar_lea.vmem [#allocation15], %s10017_s10 }
0x1340   : >> { %7403 = vmatprep.subr.bf16.mxu1 %v11879_v13  ;;  %v6806_v3 = vshrl.u32 %v13950_v51, 16  ;;  %v6808_v57 = vshll.u32 %v13950_v51, 16  ;;  %v6793_v54 = vld [vmem:[#allocation2] sm:$0xe]  ;;  %v11924_v50 = vld [vmem:[%s13896_s13 + $0x1ea4] ss:$8 sps:$4 sm:$0xff]  }
0x1341   : >> { %v6815_v49 = vrot.slane %v6813_v58, 1  ;;  %v9934_v60 = vcombine.low %v6793_v54, %v13947_v56  ;;  %v13962_v61 = vld [vmem:[#allocation2 + $0x8] ss:$0 sps:$4 sm:$0x33]   ;;  %v11923_v63 = vld [vmem:[%s13896_s13 + $0x1fb0] ss:$8 sps:$4 sm:$0xff]  }
0x1342   : >> { %7361 = vmatpush1.bf16.msra.mxu0 %v11878_v16  ;;  %v6810_v59 = vrot.slane %v6808_v57, 1  ;;  %v6837_v35 = vshrl.u32 %v13962_v61, 16  ;;  %v11927_v14 = vld [vmem:[%s13896_s13 + $0x1fa4] ss:$8 sps:$4 sm:$0xff]   ;;  %v6840_v13 = vshll.u32 %v13962_v61, 16  ;;  %s6767_s29 = sadd.s32 1, %s12718_s29  }
0x1343   : >> { %7362 = vmatprep.subr.bf16.mxu0 %v11882_v44  ;;  %7404 = vmatpush1.bf16.msra.mxu1 %v11881_v17  ;;  %v6829_v6 = vshrl.u32 %v9934_v60, 16  ;;  %v6832_v7 = vshll.u32 %v9934_v60, 16  ;;  %v11926_v16 = vld [vmem:[%s13896_s13 + $0x1ea0] ss:$8 sps:$4 sm:$0xff]   ;;  %v11966_v58 = vld [vmem:[%s13896_s13 + $0x2014] ss:$8 sps:$4 sm:$0xff]  }
0x1344   : >> { %7405 = vmatprep.subr.bf16.mxu1 %v11885_v22  ;;  %v6811_v5 = vor.u32 %v6810_v59, %v6806_v3  ;;  %v11963_v3 = vld [vmem:[%s13896_s13 + $0x2024] ss:$8 sps:$4 sm:$0xff]   ;;  %v11961_v57 = vld [vmem:[%s13896_s13 + $0x2020] ss:$8 sps:$4 sm:$0xff]   ;;  %v11964_v59 = vld [vmem:[%s13896_s13 + $0x2010] ss:$8 sps:$4 sm:$0xff]  }
0x1345   : >> { %v6831_v17 = vrot.slane %v6829_v6, 1  ;;  %v6834_v22 = vrot.slane %v6832_v7, 2  ;;  %v6795_v54 = vld [vmem:[#allocation2] sm:$0xc]  ;;  %v11973_v7 = vld [vmem:[%s8802_s7 + $0x674] ss:$8 sps:$4 sm:$0xff]  }
0x1346   : >> { %7363 = vmatpush1.bf16.msra.mxu0 %v11884_v15  ;;  %v6816_v44 = vsel %vm799_vm4, %v6811_v5, %v6815_v49  ;;  %v6839_v15 = vrot.slane %v6837_v35, 1  ;;  %v9936_v49 = vcombine.low %v6795_v54, %v13947_v56  ;;  %v6850_v5 = vrot.slane %v13962_v61, 2  ;;  %v11971_v35 = vld [vmem:[%s8802_s7 + $0x670] ss:$8 sps:$4 sm:$0xff]   ;;  %v11974_v56 = vld [vmem:[%s8802_s7 + $0x660] ss:$8 sps:$4 sm:$0xff]  }
0x1347   : >> { %7364 = vmatprep.subr.bf16.mxu0 %v11888_v24  ;;  %7406 = vmatpush1.bf16.msra.mxu1 %v11887_v10  ;;  %v11930_v24 = vld [vmem:[%s13896_s13 + $0x1e94] ss:$8 sps:$4 sm:$0xff]   ;;  %v6842_v10 = vrot.slane %v6840_v13, 2  ;;  %v11982_v61 = vld [vmem:[%s8802_s7 + $0x644] ss:$8 sps:$4 sm:$0xff]   ;;  %p6764_p8 = scmp.ge.s32.totalorder %s6767_s29, 3  }
0x1348   : >> { %7407 = vmatprep.subr.bf16.mxu1 %v11891_v20  ;;  %7382 = vmatprep.mubr.bf16.mxu0 %v6816_v44  ;;  %v11929_v20 = vld [vmem:[%s13896_s13 + $0x1fa0] ss:$8 sps:$4 sm:$0xff]   ;;  %v11979_v13 = vld [vmem:[%s8802_s7 + $0x654] ss:$8 sps:$4 sm:$0xff]   ;;  %8646 = vst [vmem:[%s13142_s30] sm:$0xff] (%p6764_p8), %v13858_v21  ;;  %8647 = vst [vmem:[%s13142_s30 + $0x8] sm:$0xff] (%p6764_p8), %v13860_v8  ;;  %s10275_s17 = sshll.u32 (%p6764_p8), %s12835_s27, 8 }
0x1349   : >> { %v11980_v44 = vld [vmem:[%s8802_s7 + $0x640] ss:$8 sps:$4 sm:$0xff]   ;;  %v12019_v21 = vld [vmem:[#allocation11 + $0x25d4] ss:$8 sps:$4 sm:$0xff] (%p6764_p8)   ;;  %s14090_s14 = scalar_lea.hbm (%p6764_p8), %s14193_s12, %s10275_s17  ;;  %s8683_s5 = sshll.u32 (%p6764_p8), %s13142_s30, 4  ;;  %s14093_s5 = int_to_ptr.vmem [resolvable:$true] %s8683_s5 }
0x134a   : >> { %7365 = vmatpush1.bf16.msra.mxu0 %v11890_v12  ;;  %v6835_v12 = vor.u32 %v6834_v22, %v6831_v17  ;;  %v11983_v17 = vld [vmem:[%s8802_s7 + $0x630] ss:$8 sps:$4 sm:$0xff]   ;;  %v11985_v22 = vld [vmem:[%s8802_s7 + $0x634] ss:$8 sps:$4 sm:$0xff]   ;;  %v12034_v32 = vld [vmem:[#allocation11 + $0x26b4] ss:$8 sps:$4 sm:$0xff] (%p6764_p8)  }
0x134b   : >> { %7366 = vmatprep.subr.bf16.mxu0 %v11894_v23  ;;  %7408 = vmatpush1.bf16.msra.mxu1 %v11893_v26  ;;  %v11933_v23 = vld [vmem:[%s13896_s13 + $0x1f94] ss:$8 sps:$4 sm:$0xff]   ;;  %v6843_v26 = vor.u32 %v6842_v10, %v6839_v15  ;;  %v11988_v15 = vld [vmem:[%s8802_s7 + $0x624] ss:$8 sps:$4 sm:$0xff]   ;;  %s8654_s8 = scalar_lea.sflag (%p6764_p8), [#allocation22], %s13062_s0  ;;  %s12440_s28 = scalar_lea.vmem (%p6764_p8), %s14093_s5, 256 }
0x134c   : >> { %7409 = vmatprep.subr.bf16.mxu1 %v11897_v33  ;;  %v11932_v33 = vld [vmem:[%s13896_s13 + $0x1e90] ss:$8 sps:$4 sm:$0xff]   ;;  %v11991_v10 = vld [vmem:[%s8802_s7 + $0x614] ss:$8 sps:$4 sm:$0xff]   ;;  %p12441_p11 = scmp.ne.s32.totalorder (%p6764_p8), %s14093_s5, %s12440_s28  ;;  %p14275_p3 = scmp.ne.s32.totalorder (%p6764_p8), %s14232_s15, 0 }
0x134d   : > { %s12745_s29 = smov (%p6764_p8), [#allocation21]  }
0x134e   : >> { %7367 = vmatpush2.bf16.msra.mxu0 %v11896_v11  ;;  %v11936_v11 = vld [vmem:[%s13896_s13 + $0x1e84] ss:$8 sps:$4 sm:$0xff]   ;;  %p12442_p4 = pnand (%p6764_p8), %p12441_p11, %p14275_p3  ;;  %s12444_s19 = sshll.u32 (%p6764_p8), %s12745_s29, 4  ;;  %s12445_s19 = int_to_ptr.vmem [resolvable:$false] %s12444_s19 }
0x134f   : >> { %7368 = vmatprep.subr.bf16.mxu0 %v11900_v4  ;;  %7410 = vmatpush2.bf16.msra.mxu1 %v11899_v34  ;;  %v6844_v4 = vsel %vm824_vm5, %v6835_v12, %v6843_v26  ;;  %v11935_v34 = vld [vmem:[%s13896_s13 + $0x1f90] ss:$8 sps:$4 sm:$0xff]   ;;  %v11994_v12 = vld [vmem:[%s8802_s7 + $0x604] ss:$8 sps:$4 sm:$0xff]   ;;  %p12447_p0 = scmp.lt.s32.totalorder (%p6764_p8), %s14093_s5, %s12445_s19 }
0x1350   : >> { %7411 = vmatprep.subr.bf16.mxu1 %v11903_v31  ;;  %7425 = vmatprep.mubr.bf16.mxu1 %v6844_v4  ;;  %v11939_v31 = vld [vmem:[%s13896_s13 + $0x1f84] ss:$8 sps:$4 sm:$0xff]   ;;  %p12443_p13 = pneg (%p6764_p8), %p12442_p4 }
0x1352   : >> { %7369 = vmatpush2.bf16.msra.mxu0 %v11902_v36  ;;  %v11938_v36 = vld [vmem:[%s13896_s13 + $0x1e80] ss:$8 sps:$4 sm:$0xff]  }
0x1353   : >> { %7370 = vmatprep.subr.bf16.mxu0 %v11906_v38  ;;  %7412 = vmatpush2.bf16.msra.mxu1 %v11905_v19  ;;  %v11946_v38 = vld [vmem:[%s13896_s13 + $0x2074] ss:$8 sps:$4 sm:$0xff]   ;;  %v11943_v19 = vld [vmem:[%s13896_s13 + $0x1f80] ss:$8 sps:$4 sm:$0xff]  }
0x1354   : >> { %7413 = vmatprep.subr.bf16.mxu1 %v11909_v27  ;;  %v6821_v27 = vrot.slane %v9934_v60, 1  ;;  %v11969_v60 = vld [vmem:[%s13896_s13 + $0x2004] ss:$8 sps:$4 sm:$0xff]  }
0x1356   : >> { %7371 = vmatpush2.bf16.msra.mxu0 %v11908_v43  ;;  %v6822_v43 = vrot.slane %v13952_v52, 1  ;;  %v11954_v52 = vld [vmem:[%s13896_s13 + $0x2054] ss:$8 sps:$4 sm:$0xff]  }
0x1357   : >> { %7372 = vmatprep.subr.bf16.mxu0 %v11912_v46  ;;  %7414 = vmatpush2.bf16.msra.mxu1 %v11911_v45  ;;  %v11944_v45 = vld [vmem:[%s13896_s13 + $0x2070] ss:$8 sps:$4 sm:$0xff]   ;;  %v11951_v46 = vld [vmem:[%s13896_s13 + $0x2064] ss:$8 sps:$4 sm:$0xff]  }
0x1358   : >> { %7415 = vmatprep.subr.bf16.mxu1 %v11915_v30  ;;  %v11949_v30 = vld [vmem:[%s13896_s13 + $0x2060] ss:$8 sps:$4 sm:$0xff]  }
0x135a   : >> { %7373 = vmatpush2.bf16.msra.mxu0 %v11914_v47  ;;  %v6823_v47 = vsel %vm816_vm6, %v6821_v27, %v6822_v43 }
0x135b   : >> { %7374 = vmatprep.subr.bf16.mxu0 %v11918_v29  ;;  %7416 = vmatpush2.bf16.msra.mxu1 %v11917_v40  ;;  %v11952_v40 = vld [vmem:[%s13896_s13 + $0x2050] ss:$8 sps:$4 sm:$0xff]   ;;  %v11957_v29 = vld [vmem:[%s13896_s13 + $0x2044] ss:$8 sps:$4 sm:$0xff]  }
0x135c   : >> { %7417 = vmatprep.subr.bf16.mxu1 %v11921_v55  ;;  %v11958_v55 = vld [vmem:[%s13896_s13 + $0x2030] ss:$8 sps:$4 sm:$0xff]  }
0x135e   : >> { %7375 = vmatpush2.bf16.msra.mxu0 %v11920_v53  ;;  %v11960_v53 = vld [vmem:[%s13896_s13 + $0x2034] ss:$8 sps:$4 sm:$0xff]  }
0x135f   : >> { %7376 = vmatprep.subr.bf16.mxu0 %v11924_v50  ;;  %7418 = vmatpush2.bf16.msra.mxu1 %v11923_v63  ;;  %v11967_v50 = vld [vmem:[%s13896_s13 + $0x2000] ss:$8 sps:$4 sm:$0xff]   ;;  %v6849_v63 = vrot.slane %v9936_v49, 2 }
0x1360   : >> { %7419 = vmatprep.subr.bf16.mxu1 %v11927_v14  ;;  %v11976_v14 = vld [vmem:[%s8802_s7 + $0x664] ss:$8 sps:$4 sm:$0xff]  }
0x1361   : >> { %v6851_v6 = vsel %vm846_vm7, %v6849_v63, %v6850_v5 }
0x1362   : >> { %7377 = vmatpush2.bf16.msra.mxu0 %v11926_v16  ;;  %v11977_v16 = vld [vmem:[%s8802_s7 + $0x650] ss:$8 sps:$4 sm:$0xff]  }
0x1363   : >> { %7378 = vmatprep.subr.bf16.mxu0 %v11930_v24  ;;  %7420 = vmatpush2.bf16.msra.mxu1 %v11929_v20  ;;  %v11986_v24 = vld [vmem:[%s8802_s7 + $0x620] ss:$8 sps:$4 sm:$0xff]   ;;  %v11989_v20 = vld [vmem:[%s8802_s7 + $0x610] ss:$8 sps:$4 sm:$0xff]  }
0x1364   : >> { %7421 = vmatprep.subr.bf16.mxu1 %v11933_v23  ;;  %v11992_v23 = vld [vmem:[%s8802_s7 + $0x600] ss:$8 sps:$4 sm:$0xff]  }
0x1366   : >> { %7379 = vmatpush2.bf16.msra.mxu0 %v11932_v33  ;;  %v10018_v33 = vld [vmem:[%s8799_s4 + $0x18] sm:$0x3] }
0x1367   : >> { %7380 = vmatprep.subr.bf16.mxu0 %v11936_v11  ;;  %7422 = vmatpush2.bf16.msra.mxu1 %v11935_v34  ;;  %v6947_v34 = vrot.slane %v10018_v33, %v13287_v9 }
0x1368   : >> { %7423 = vmatprep.subr.bf16.mxu1 %v11939_v31 }
0x136a   : >> { %7381 = vmatpush2.bf16.msra.mxu0 %v11938_v36 }
0x136b   : >> { %7436 = vmatprep.subr.bf16.mxu0 %v11946_v38  ;;  %7424 = vmatpush2.bf16.msra.mxu1 %v11943_v19 }
0x136c   : >> { %7606 = vmatprep.subr.bf16.mxu1 %v11973_v7 }
0x136d   : >> { %7383 = vmatmul.mubr.bf16.vlgmr.msra.gmra.mxu0 %v13950_v51  ;;  %v11955_v51 = vld [vmem:[%s13896_s13 + $0x2040] ss:$8 sps:$4 sm:$0xff]   ;;  %s12446_s13 = scalar_lea.vmem (%p6764_p8), %s12445_s19, 512 }
0x136e   : >> { %7437 = vmatpush1.bf16.msra.mxu0 %v11944_v45  ;;  %7468 = vmatprep.mubr.bf16.mxu0 %v12744_v2  ;;  %p12448_p6 = scmp.lt.s32.totalorder (%p6764_p8), %s12446_s13, %s12440_s28 }
0x136f   : >> { %7426 = vmatmul.mubr.bf16.vlgmr.msra.gmra.mxu1 %v6823_v47  ;;  %7438 = vmatprep.subr.bf16.mxu0 %v11951_v46 }
0x1370   : >> { %7638 = vmatprep.mubr.bf16.mxu1 %v12744_v2  ;;  %7607 = vmatpush1.bf16.msra.mxu1 %v11971_v35  ;;  %p12449_p9 = por (%p6764_p8), %p12448_p6, %p12447_p0 }
0x1371   : >> { %7608 = vmatprep.subr.bf16.mxu1 %v11976_v14 }
0x1372   : >> { %7439 = vmatpush1.bf16.msra.mxu0 %v11949_v30  ;;  %p12450_p10 = pnand (%p6764_p8), %p12449_p9, %p12443_p13 }
0x1373   : >> { %7440 = vmatprep.subr.bf16.mxu0 %v11954_v52 }
0x1374   : >> { %7609 = vmatpush1.bf16.msra.mxu1 %v11974_v56 }
0x1375   : >> { %7610 = vmatprep.subr.bf16.mxu1 %v11979_v13 }
0x1376   : >> { %7441 = vmatpush1.bf16.msra.mxu0 %v11952_v40 }
0x1377   : >> { %7442 = vmatprep.subr.bf16.mxu0 %v11957_v29 }
0x1378   : >> { %7611 = vmatpush1.bf16.msra.mxu1 %v11977_v16 }
0x1379   : >> { %7612 = vmatprep.subr.bf16.mxu1 %v11982_v61 }
0x137a   : >> { %7443 = vmatpush1.bf16.msra.mxu0 %v11955_v51 }
0x137b   : >> { %7444 = vmatprep.subr.bf16.mxu0 %v11960_v53 }
0x137c   : >> { %7613 = vmatpush1.bf16.msra.mxu1 %v11980_v44 }
0x137d   : >> { %7614 = vmatprep.subr.bf16.mxu1 %v11985_v22  ;;  %v10117_v22 = vld [vmem:[%s8805_s9 + $0x18] sm:$0x3] }
0x137e   : >> { %7445 = vmatpush1.bf16.msra.mxu0 %v11958_v55 }
0x137f   : >> { %7446 = vmatprep.subr.bf16.mxu0 %v11963_v3 }
0x1380   : >> { %7615 = vmatpush1.bf16.msra.mxu1 %v11983_v17 }
0x1381   : >> { %7616 = vmatprep.subr.bf16.mxu1 %v11988_v15  ;;  %v7519_v15 = vrot.slane %v10117_v22, %v13292_v41 }
0x1382   : >> { %7447 = vmatpush1.bf16.msra.mxu0 %v11961_v57 }
0x1383   : >> { %7448 = vmatprep.subr.bf16.mxu0 %v11966_v58  ;;  %v6943_v58 = vrot.slane %v10018_v33, %v13292_v41 }
0x1384   : >> { %7617 = vmatpush1.bf16.msra.mxu1 %v11986_v24  ;;  %v7523_v24 = vrot.slane %v10117_v22, %v13287_v9  ;;  %v12054_v22 = vld [vmem:[#allocation11 + $0x2680] ss:$8 sps:$4 sm:$0xff] (%p6764_p8)  }
0x1385   : >> { %7618 = vmatprep.subr.bf16.mxu1 %v11991_v10 }
0x1386   : >> { %7449 = vmatpush1.bf16.msra.mxu0 %v11964_v59 }
0x1387   : >> { %7450 = vmatprep.subr.bf16.mxu0 %v11969_v60 }
0x1388   : >> { %7619 = vmatpush1.bf16.msra.mxu1 %v11989_v20 }
0x1389   : >> { %7620 = vmatprep.subr.bf16.mxu1 %v11994_v12 }
0x138a   : >> { %7451 = vmatpush1.bf16.msra.mxu0 %v11967_v50 }
0x138c   : >> { %7621 = vmatpush1.bf16.msra.mxu1 %v11992_v23 }
0x138d   : >> { %7469 = vmatmul.mubr.bf16.vlgmr.msra.gmra.mxu0 %v6851_v6 }
0x142d   : >> { %v7384_v26 = vpop.f32.mrf.mxu0 }
0x142e   : >> { %v7385_v54 = vadd.f32 %v7384_v26, %v6943_v58 }
0x142f   : >> { %v7386_v11 = vpop.f32.mrf.mxu0  ;;  %v7427_v4 = vpop.f32.mrf.mxu1 }
0x1430   : >> { %v7387_v38 = vadd.f32 %v7386_v11, %v6947_v34  ;;  %v7428_v49 = vadd.f32 %v7427_v4, %v7385_v54  ;;  %v12027_v54 = vld [vmem:[#allocation11 + $0x25c0] ss:$8 sps:$4 sm:$0xff] (%p6764_p8)  }
0x1431   : >> { %v7388_v31 = vpop.f32.mrf.mxu0  ;;  %v7429_v36 = vpop.f32.mrf.mxu1 }
0x1432   : >> { %v7430_v45 = vadd.f32 %v7429_v36, %v7387_v38  ;;  %v7389_v59 = vadd.f32 %v7388_v31, %v6943_v58  ;;  %v12028_v58 = vld [vmem:[#allocation11 + $0x26c4] ss:$8 sps:$4 sm:$0xff] (%p6764_p8)  }
0x1433   : >> { %v7390_v19 = vpop.f32.mrf.mxu0  ;;  %v7431_v27 = vpop.f32.mrf.mxu1 }
0x1434   : >> { %v7391_v46 = vadd.f32 %v7390_v19, %v6947_v34  ;;  %v7432_v50 = vadd.f32 %v7431_v27, %v7389_v59  ;;  %v12031_v59 = vld [vmem:[#allocation11 + $0x25b4] ss:$8 sps:$4 sm:$0xff] (%p6764_p8)  }
0x1435   : >> { %v7433_v47 = vpop.f32.mrf.mxu1 }
0x1436   : >> { %v7434_v40 = vadd.f32 %v7433_v47, %v7391_v46  ;;  %v12009_v46 = vld [vmem:[#allocation11 + $0x25f0] ss:$8 sps:$4 sm:$0xff] (%p6764_p8)   ;;  %v12010_v47 = vld [vmem:[#allocation11 + $0x26f4] ss:$8 sps:$4 sm:$0xff] (%p6764_p8)  }
0x1437   : > { %8272 = vmatprep.subr.bf16.mxu1 (%p6764_p8), %v12010_v47  ;;  %v12078_v47 = vld [vmem:[#allocation11 + $0x2740] ss:$8 sps:$4 sm:$0xff] (%p6764_p8)  }
0x144d   : >> { %v7470_v43 = vpop.f32.mrf.mxu0 }
0x144e   : >> { %v7471_v63 = vadd.f32 %v7470_v43, %v7428_v49  ;;  %v12030_v49 = vld [vmem:[#allocation11 + $0x26c0] ss:$8 sps:$4 sm:$0xff] (%p6764_p8)  }
0x144f   : >> { %v7472_v30 = vpop.f32.mrf.mxu0 }
0x1450   : >> { %v7473_v2 = vadd.f32 %v7472_v30, %v7430_v45  ;;  %v12012_v30 = vld [vmem:[#allocation11 + $0x26f0] ss:$8 sps:$4 sm:$0xff] (%p6764_p8)  }
0x1451   : >> { %v7474_v52 = vpop.f32.mrf.mxu0 }
0x1452   : >> { %v7481_v29 = vsub.f32 0.0, %v7473_v2  ;;  %v7475_v6 = vadd.f32 %v7474_v52, %v7432_v50  ;;  %v12013_v52 = vld [vmem:[#allocation11 + $0x25e4] ss:$8 sps:$4 sm:$0xff] (%p6764_p8)  }
0x1453   : >> { %v7476_v51 = vpop.f32.mrf.mxu0  ;;  %v12037_v50 = vld [vmem:[#allocation11 + $0x25a4] ss:$8 sps:$4 sm:$0xff] (%p6764_p8)  }
0x1454   : >> { %v7483_v53 = vmul.f32 1.442695, %v7481_v29  ;;  %v7477_v55 = vadd.f32 %v7476_v51, %v7434_v40  ;;  %v12015_v40 = vld [vmem:[#allocation11 + $0x25e0] ss:$8 sps:$4 sm:$0xff] (%p6764_p8)   ;;  %v12016_v51 = vld [vmem:[#allocation11 + $0x26e4] ss:$8 sps:$4 sm:$0xff] (%p6764_p8)  }
0x1456   : >> { %11995 = vpow2.f32 %v7483_v53  ;;  %v7482_v3 = vsub.f32 0.0, %v7477_v55  ;;  %v12021_v53 = vld [vmem:[#allocation11 + $0x25d0] ss:$8 sps:$4 sm:$0xff] (%p6764_p8)   ;;  %v12022_v55 = vld [vmem:[#allocation11 + $0x26d4] ss:$8 sps:$4 sm:$0xff] (%p6764_p8)  }
0x1458   : >> { %v7485_v57 = vmul.f32 1.442695, %v7482_v3  ;;  %v12025_v3 = vld [vmem:[#allocation11 + $0x25c4] ss:$8 sps:$4 sm:$0xff] (%p6764_p8)  }
0x145a   : >> { %11997 = vpow2.f32 %v7485_v57  ;;  %v12024_v57 = vld [vmem:[#allocation11 + $0x26d0] ss:$8 sps:$4 sm:$0xff] (%p6764_p8)  }
0x145b   : >> { %11999 = vtanh.f32 %v7471_v63  ;;  %v12036_v63 = vld [vmem:[#allocation11 + $0x26b0] ss:$8 sps:$4 sm:$0xff] (%p6764_p8)  }
0x1463   : >> { %v11996_v60 = vpop.eup %11995 }
0x1464   : >> { %v7487_v5 = vadd.f32 1.0, %v11996_v60  ;;  %v12033_v60 = vld [vmem:[#allocation11 + $0x25b0] ss:$8 sps:$4 sm:$0xff] (%p6764_p8)  }
0x1466   : >> { %12001 = vrcp.f32 %v7487_v5  ;;  %v12040_v5 = vld [vmem:[#allocation11 + $0x26a4] ss:$8 sps:$4 sm:$0xff] (%p6764_p8)  }
0x1467   : >> { %v11998_v7 = vpop.eup %11997  ;;  %12003 = vtanh.f32 %v7475_v6  ;;  %v12039_v6 = vld [vmem:[#allocation11 + $0x25a0] ss:$8 sps:$4 sm:$0xff] (%p6764_p8)  }
0x1468   : >> { %v7488_v35 = vadd.f32 1.0, %v11998_v7  ;;  %v12000_v14 = vpop.eup %11999  ;;  %v12043_v7 = vld [vmem:[#allocation11 + $0x2594] ss:$8 sps:$4 sm:$0xff] (%p6764_p8)  }
0x146a   : >> { %12005 = vrcp.f32 %v7488_v35  ;;  %v12042_v35 = vld [vmem:[#allocation11 + $0x26a0] ss:$8 sps:$4 sm:$0xff] (%p6764_p8)  }
0x1473   : >> { %v12002_v56 = vpop.eup %12001 }
0x1474   : >> { %v12004_v13 = vpop.eup %12003  ;;  %v7491_v61 = vmul.f32 %v12002_v56, %v12000_v14  ;;  %v12046_v14 = vld [vmem:[#allocation11 + $0x2694] ss:$8 sps:$4 sm:$0xff] (%p6764_p8)   ;;  %v12045_v56 = vld [vmem:[#allocation11 + $0x2590] ss:$8 sps:$4 sm:$0xff] (%p6764_p8)  }
0x1477   : >> { %v12006_v16 = vpop.eup %12005 }
0x1478   : >> { %v7492_v44 = vmul.f32 %v12006_v16, %v12004_v13  ;;  %v12049_v13 = vld [vmem:[#allocation11 + $0x2584] ss:$8 sps:$4 sm:$0xff] (%p6764_p8)   ;;  %v12048_v16 = vld [vmem:[#allocation11 + $0x2690] ss:$8 sps:$4 sm:$0xff] (%p6764_p8)  }
0x147a   : >> { %v7493_v17 = vpack.c.bf16 %v7492_v44, %v7491_v61  ;;  %v12052_v61 = vld [vmem:[#allocation11 + $0x2684] ss:$8 sps:$4 sm:$0xff] (%p6764_p8)   ;;  %v12051_v44 = vld [vmem:[#allocation11 + $0x2580] ss:$8 sps:$4 sm:$0xff] (%p6764_p8)  }
0x147c   : >> { %7639 = vmatmul.mubr.bf16.vlgmr.msra.gmra.mxu1 %v7493_v17  ;;  %v12055_v17 = vld [vmem:[#allocation11 + $0x2674] ss:$8 sps:$4 sm:$0xff] (%p6764_p8)  }
0x147d   : > { %8273 = vmatpush1.bf16.msra.mxu1 (%p6764_p8), %v12012_v30  ;;  %v12079_v30 = vld [vmem:[#allocation11 + $0x2634] ss:$8 sps:$4 sm:$0xff] (%p6764_p8)  }
0x147e   : > { %8274 = vmatprep.subr.bf16.mxu1 (%p6764_p8), %v12016_v51 }
0x153c   : >> { %v7640_v10 = vpop.f32.mrf.mxu1 }
0x153d   : >> { %v7641_v20 = vadd.f32 %v7640_v10, %v7519_v15  ;;  %v12061_v10 = vld [vmem:[#allocation11 + $0x2664] ss:$8 sps:$4 sm:$0xff] (%p6764_p8)  }
0x153e   : >> { %v7642_v12 = vpop.f32.mrf.mxu1 }
0x153f   : >> { %v7649_v23 = vadd.f32 %v12714_v42, %v7641_v20  ;;  %v7643_v26 = vadd.f32 %v7642_v12, %v7523_v24  ;;  %v12060_v20 = vld [vmem:[#allocation11 + $0x2770] ss:$8 sps:$4 sm:$0xff] (%p6764_p8)   ;;  %v12064_v12 = vld [vmem:[#allocation11 + $0x2764] ss:$8 sps:$4 sm:$0xff] (%p6764_p8)  }
0x1540   : >> { %v7644_v33 = vpop.f32.mrf.mxu1 }
0x1541   : >> { %v7651_v11 = vmul.f32 %v7649_v23, %v13132_v18   ;;  %v14016_v37 = vadd.f32 %v12706_v37, %v7643_v26   ;;  %v7645_v34 = vadd.f32 %v7644_v33, %v7519_v15  ;;  %v12058_v15 = vld [vmem:[#allocation11 + $0x2774] ss:$8 sps:$4 sm:$0xff] (%p6764_p8)   ;;  %v12063_v23 = vld [vmem:[#allocation11 + $0x2660] ss:$8 sps:$4 sm:$0xff] (%p6764_p8)  }
0x1542   : >> { %v7646_v31 = vpop.f32.mrf.mxu1  ;;  %v12067_v26 = vld [vmem:[#allocation11 + $0x2654] ss:$8 sps:$4 sm:$0xff] (%p6764_p8)   ;;  %v12066_v33 = vld [vmem:[#allocation11 + $0x2760] ss:$8 sps:$4 sm:$0xff] (%p6764_p8)  }
0x1543   : >> { %v14269_v4 = vmov %v14016_v37  ;;  %v7650_v36 = vadd.f32 %v12710_v39, %v7645_v34  ;;  %v7647_v38 = vadd.f32 %v7646_v31, %v7523_v24  ;;  %v14274_v42 = vmov %v7651_v11  ;;  %v12057_v24 = vld [vmem:[#allocation11 + $0x2670] ss:$8 sps:$4 sm:$0xff] (%p6764_p8)  }
0x1544   : >> { %v14272_v37 = vmov %v14269_v4  ;;  %6766 = sbr.rel (!%p6764_p8) target bundleno = 4905 (0x1329), region = 279  ;;  %v12007_v42 = vld [vmem:[#allocation11 + $0x25f4] ss:$8 sps:$4 sm:$0xff] (%p6764_p8)   ;;  %v10273_v43 = vpack.c.bf16 (%p6764_p8), %v7651_v11, %v7651_v11  ;;  %v12069_v34 = vld [vmem:[#allocation11 + $0x2650] ss:$8 sps:$4 sm:$0xff] (%p6764_p8)  }
0x1545   : >> { %v7652_v19 = vmul.f32 %v7650_v36, %v13135_v25   ;;  %v14021_v28 = vadd.f32 %v12702_v28, %v7647_v38   ;;  %8229 = vmatprep.subr.bf16.mxu0 (%p6764_p8), %v12007_v42  ;;  %v12070_v11 = vld [vmem:[#allocation11 + $0x2754] ss:$8 sps:$4 sm:$0xff] (%p6764_p8)   ;;  %v12072_v31 = vld [vmem:[#allocation11 + $0x2750] ss:$8 sps:$4 sm:$0xff] (%p6764_p8)   ;;  %v12073_v36 = vld [vmem:[#allocation11 + $0x2644] ss:$8 sps:$4 sm:$0xff] (%p6764_p8)  }
0x1546   : > { %v7661_v2 = vrot.slane (%p6764_p8), %v10273_v43, 7  ;;  %8230 = vmatpush1.bf16.msra.mxu0 (%p6764_p8), %v12009_v46  ;;  %v12075_v38 = vld [vmem:[#allocation11 + $0x2640] ss:$8 sps:$4 sm:$0xff] (%p6764_p8)  }
0x1547   : >> { %v14270_v27 = vmov %v14021_v28  ;;  %v14273_v39 = vmov %v7652_v19  ;;  %v10274_v45 = vpack.c.bf16 (%p6764_p8), %v7652_v19, %v7652_v19  ;;  %8231 = vmatprep.subr.bf16.mxu0 (%p6764_p8), %v12013_v52  ;;  %v12076_v19 = vld [vmem:[#allocation11 + $0x2744] ss:$8 sps:$4 sm:$0xff] (%p6764_p8)   ;;  %v12082_v52 = vld [vmem:[#allocation11 + $0x2734] ss:$8 sps:$4 sm:$0xff] (%p6764_p8)  }
0x1548   : >> { %v14271_v28 = vmov %v14270_v27  ;;  %v7662_v39 = vrot.slane (%p6764_p8), %v7661_v2, 4  ;;  %7669 = vst [vmem:[#allocation2] sm:$0xe] (%p6764_p8), %v7661_v2  ;;  %v12081_v2 = vld [vmem:[#allocation11 + $0x2630] ss:$8 sps:$4 sm:$0xff] (%p6764_p8)  }
0x1549   : > { %v7663_v29 = vrot.slane %v10274_v45, 7  ;;  %v12018_v28 = vld [vmem:[#allocation11 + $0x26e0] ss:$8 sps:$4 sm:$0xff]  }
0x154a   : > { %8232 = vmatpush1.bf16.msra.mxu0 %v12015_v40  ;;  %8275 = vmatpush1.bf16.msra.mxu1 %v12018_v28 }
0x154b   : > { %v7665_v37 = vrot.slane %v7663_v29, 4  ;;  %v7664_v8 = vsel %vm13174_vm3, %v7662_v39, %v7663_v29  ;;  %8233 = vmatprep.subr.bf16.mxu0 %v12019_v21  ;;  %8276 = vmatprep.subr.bf16.mxu1 %v12022_v55  ;;  %v12084_v55 = vld [vmem:[#allocation11 + $0x2730] ss:$8 sps:$4 sm:$0xff]  }
0x154c   : > { %7670 = vst [vmem:[#allocation2 + $0x4] sm:$0xf] %v7664_v8 }
0x154d   : > { %7671 = vst [vmem:[#allocation2 + $0x8] sm:$0x1] %v7665_v37 }
0x154e   : > { %8234 = vmatpush1.bf16.msra.mxu0 %v12021_v53  ;;  %8277 = vmatpush1.bf16.msra.mxu1 %v12024_v57  ;;  %v12085_v53 = vld [vmem:[#allocation11 + $0x2624] ss:$8 sps:$4 sm:$0xff]  }
0x154f   : > { %8235 = vmatprep.subr.bf16.mxu0 %v12025_v3  ;;  %8278 = vmatprep.subr.bf16.mxu1 %v12028_v58  ;;  %v7672_v42 = vld [vmem:[#allocation2] sm:$0xf] }
0x1550   : > { %v7675_v39 = vld [vmem:[#allocation2] sm:$0xe] }
0x1552   : > { %8236 = vmatpush1.bf16.msra.mxu0 %v12027_v54  ;;  %8279 = vmatpush1.bf16.msra.mxu1 %v12030_v49 }
0x1553   : > { %8237 = vmatprep.subr.bf16.mxu0 %v12031_v59  ;;  %8280 = vmatprep.subr.bf16.mxu1 %v12034_v32  ;;  %v14042_v43 = vld [vmem:[#allocation2 + $0x4] sm:$0xf]  ;;  %v12088_v59 = vld [vmem:[#allocation11 + $0x2724] ss:$8 sps:$4 sm:$0xff]   ;;  %v12087_v32 = vld [vmem:[#allocation11 + $0x2620] ss:$8 sps:$4 sm:$0xff]  }
0x1554   : > { %v14045_v45 = vcombine.low %v7672_v42, %v14042_v43  ;;  %v14047_v46 = vld [vmem:[#allocation2 + $0x8] ss:$0 sps:$4 sm:$0x11]   ;;  %v10138_v21 = vcombine.low %v7675_v39, %v14042_v43 }
0x1555   : > { %v7695_v51 = vshll.u32 %v14047_v46, 16  ;;  %v14053_v8 = vld [vmem:[#allocation2 + $0x8] ss:$0 sps:$4 sm:$0x33]  }
0x1556   : > { %8238 = vmatpush1.bf16.msra.mxu0 %v12033_v60  ;;  %8281 = vmatpush1.bf16.msra.mxu1 %v12036_v63  ;;  %v7688_v40 = vshrl.u32 %v14045_v45, 16  ;;  %v7690_v29 = vshll.u32 %v14045_v45, 16  ;;  %v7711_v57 = vshrl.u32 %v10138_v21, 16  ;;  %v7714_v58 = vshll.u32 %v10138_v21, 16  ;;  %v12119_v42 = vld [vmem:[#allocation11 + $0x27b0] ss:$8 sps:$4 sm:$0xff]  }
0x1557   : > { %8239 = vmatprep.subr.bf16.mxu0 %v12037_v50  ;;  %8282 = vmatprep.subr.bf16.mxu1 %v12040_v5  ;;  %v7697_v37 = vrot.slane %v7695_v51, 1  ;;  %v7719_v54 = vshrl.u32 %v14053_v8, 16  ;;  %v7722_v49 = vshll.u32 %v14053_v8, 16  ;;  %v7732_v51 = vrot.slane %v14053_v8, 2  ;;  %v12138_v8 = vld [vmem:[#allocation14 + $0x7d0] ss:$8 sps:$4 sm:$0xff]  }
0x1558   : > { %v7692_v28 = vrot.slane %v7690_v29, 1  ;;  %v7713_v50 = vrot.slane %v7711_v57, 1  ;;  %v7716_v63 = vrot.slane %v7714_v58, 2  ;;  %v12144_v57 = vld [vmem:[#allocation14 + $0x7b0] ss:$8 sps:$4 sm:$0xff]  }
0x1559   : > { %v7721_v5 = vrot.slane %v7719_v54, 1  ;;  %v12146_v58 = vld [vmem:[#allocation14 + $0x7b4] ss:$8 sps:$4 sm:$0xff]   ;;  %v12149_v54 = vld [vmem:[#allocation14 + $0x7a4] ss:$8 sps:$4 sm:$0xff]  }
0x155a   : > { %8240 = vmatpush1.bf16.msra.mxu0 %v12039_v6  ;;  %8283 = vmatpush1.bf16.msra.mxu1 %v12042_v35  ;;  %v7693_v3 = vor.u32 %v7692_v28, %v7688_v40  ;;  %v12091_v6 = vld [vmem:[#allocation11 + $0x2614] ss:$8 sps:$4 sm:$0xff]   ;;  %v12090_v35 = vld [vmem:[#allocation11 + $0x2720] ss:$8 sps:$4 sm:$0xff]  }
0x155b   : > { %8241 = vmatprep.subr.bf16.mxu0 %v12043_v7  ;;  %8284 = vmatprep.subr.bf16.mxu1 %v12046_v14  ;;  %v7724_v7 = vrot.slane %v7722_v49, 2  ;;  %v7717_v14 = vor.u32 %v7716_v63, %v7713_v50  ;;  %v12128_v40 = vld [vmem:[#allocation11 + $0x2780] ss:$8 sps:$4 sm:$0xff]   ;;  %v12134_v28 = vld [vmem:[#allocation14 + $0x7f4] ss:$8 sps:$4 sm:$0xff]  }
0x155c   : > { %v7698_v60 = vsel %vm799_vm4, %v7693_v3, %v7697_v37  ;;  %v12132_v37 = vld [vmem:[#allocation14 + $0x7f0] ss:$8 sps:$4 sm:$0xff]   ;;  %v12141_v3 = vld [vmem:[#allocation14 + $0x7c0] ss:$8 sps:$4 sm:$0xff]   ;;  %v12152_v49 = vld [vmem:[#allocation14 + $0x794] ss:$8 sps:$4 sm:$0xff]  }
0x155d   : > { %8261 = vmatprep.mubr.bf16.mxu0 %v7698_v60  ;;  %v12155_v60 = vld [vmem:[#allocation14 + $0x784] ss:$8 sps:$4 sm:$0xff]   ;;  %v12153_v50 = vld [vmem:[#allocation14 + $0x780] ss:$8 sps:$4 sm:$0xff]   ;;  %v12156_v63 = vld [vmem:[#allocation17 + $0xf8] sm:$0xff]  }
0x155e   : > { %8242 = vmatpush1.bf16.msra.mxu0 %v12045_v56  ;;  %8285 = vmatpush1.bf16.msra.mxu1 %v12048_v16  ;;  %v12094_v56 = vld [vmem:[#allocation11 + $0x2714] ss:$8 sps:$4 sm:$0xff]   ;;  %v12093_v16 = vld [vmem:[#allocation11 + $0x2610] ss:$8 sps:$4 sm:$0xff]  }
0x155f   : > { %8243 = vmatprep.subr.bf16.mxu0 %v12049_v13  ;;  %8286 = vmatprep.subr.bf16.mxu1 %v12052_v61  ;;  %v7725_v13 = vor.u32 %v7724_v7, %v7721_v5  ;;  %v12097_v61 = vld [vmem:[#allocation11 + $0x2604] ss:$8 sps:$4 sm:$0xff]   ;;  %v12157_v5 = vld [vmem:[#allocation17 + $0xf0] sm:$0xff]  }
0x1560   : > { %v12159_v7 = vld [vmem:[#allocation17 + $0xe0] sm:$0xff]  }
0x1562   : > { %8244 = vmatpush1.bf16.msra.mxu0 %v12051_v44  ;;  %8287 = vmatpush1.bf16.msra.mxu1 %v12054_v22  ;;  %v7726_v44 = vsel %vm824_vm5, %v7717_v14, %v7725_v13  ;;  %v12099_v22 = vld [vmem:[#allocation11 + $0x2600] ss:$8 sps:$4 sm:$0xff]  }
0x1563   : > { %8245 = vmatprep.subr.bf16.mxu0 %v12055_v17  ;;  %8288 = vmatprep.subr.bf16.mxu1 %v12058_v15  ;;  %v12096_v17 = vld [vmem:[#allocation11 + $0x2710] ss:$8 sps:$4 sm:$0xff]   ;;  %v12100_v15 = vld [vmem:[#allocation11 + $0x2704] ss:$8 sps:$4 sm:$0xff]  }
0x1564   : > { %8304 = vmatprep.mubr.bf16.mxu1 %v7726_v44 }
0x1566   : > { %8246 = vmatpush2.bf16.msra.mxu0 %v12057_v24  ;;  %8289 = vmatpush2.bf16.msra.mxu1 %v12060_v20  ;;  %v12107_v24 = vld [vmem:[#allocation11 + $0x27f4] ss:$8 sps:$4 sm:$0xff]   ;;  %v12105_v20 = vld [vmem:[#allocation11 + $0x27f0] ss:$8 sps:$4 sm:$0xff]  }
0x1567   : > { %8247 = vmatprep.subr.bf16.mxu0 %v12061_v10  ;;  %8290 = vmatprep.subr.bf16.mxu1 %v12064_v12  ;;  %v12104_v10 = vld [vmem:[#allocation11 + $0x2700] ss:$8 sps:$4 sm:$0xff]   ;;  %v7703_v12 = vrot.slane %v10138_v21, 1 }
0x1568   : > { %v12135_v21 = vld [vmem:[#allocation14 + $0x7e0] ss:$8 sps:$4 sm:$0xff]  }
0x156a   : > { %8248 = vmatpush2.bf16.msra.mxu0 %v12063_v23  ;;  %8291 = vmatpush2.bf16.msra.mxu1 %v12066_v33  ;;  %v7704_v23 = vrot.slane %v14047_v46, 1  ;;  %v12122_v46 = vld [vmem:[#allocation11 + $0x27a0] ss:$8 sps:$4 sm:$0xff]  }
0x156b   : > { %8249 = vmatprep.subr.bf16.mxu0 %v12067_v26  ;;  %8292 = vmatprep.subr.bf16.mxu1 %v12070_v11  ;;  %v12112_v26 = vld [vmem:[#allocation11 + $0x27e4] ss:$8 sps:$4 sm:$0xff]   ;;  %v12110_v11 = vld [vmem:[#allocation11 + $0x27e0] ss:$8 sps:$4 sm:$0xff]  }
0x156c   : > { %v7705_v33 = vsel %vm816_vm6, %v7703_v12, %v7704_v23 }
0x156e   : > { %8250 = vmatpush2.bf16.msra.mxu0 %v12069_v34  ;;  %8293 = vmatpush2.bf16.msra.mxu1 %v12072_v31  ;;  %v12115_v34 = vld [vmem:[#allocation11 + $0x27d4] ss:$8 sps:$4 sm:$0xff]   ;;  %v12113_v31 = vld [vmem:[#allocation11 + $0x27d0] ss:$8 sps:$4 sm:$0xff]  }
0x156f   : > { %8251 = vmatprep.subr.bf16.mxu0 %v12073_v36  ;;  %8294 = vmatprep.subr.bf16.mxu1 %v12076_v19  ;;  %v12118_v36 = vld [vmem:[#allocation11 + $0x27c4] ss:$8 sps:$4 sm:$0xff]   ;;  %v12121_v19 = vld [vmem:[#allocation11 + $0x27b4] ss:$8 sps:$4 sm:$0xff]  }
0x1572   : > { %8252 = vmatpush2.bf16.msra.mxu0 %v12075_v38  ;;  %8295 = vmatpush2.bf16.msra.mxu1 %v12078_v47  ;;  %v12116_v38 = vld [vmem:[#allocation11 + $0x27c0] ss:$8 sps:$4 sm:$0xff]   ;;  %v12127_v47 = vld [vmem:[#allocation11 + $0x2794] ss:$8 sps:$4 sm:$0xff]  }
0x1573   : > { %8253 = vmatprep.subr.bf16.mxu0 %v12079_v30  ;;  %8296 = vmatprep.subr.bf16.mxu1 %v12082_v52  ;;  %v7677_v30 = vld [vmem:[#allocation2] sm:$0xc]  ;;  %v12130_v52 = vld [vmem:[#allocation11 + $0x2784] ss:$8 sps:$4 sm:$0xff]  }
0x1576   : > { %8254 = vmatpush2.bf16.msra.mxu0 %v12081_v2  ;;  %8297 = vmatpush2.bf16.msra.mxu1 %v12084_v55  ;;  %v12125_v2 = vld [vmem:[#allocation11 + $0x2790] ss:$8 sps:$4 sm:$0xff]   ;;  %v12143_v55 = vld [vmem:[#allocation14 + $0x7c4] ss:$8 sps:$4 sm:$0xff]  }
0x1577   : > { %8255 = vmatprep.subr.bf16.mxu0 %v12085_v53  ;;  %8298 = vmatprep.subr.bf16.mxu1 %v12088_v59  ;;  %v12140_v53 = vld [vmem:[#allocation14 + $0x7d4] ss:$8 sps:$4 sm:$0xff]   ;;  %v12147_v59 = vld [vmem:[#allocation14 + $0x7a0] ss:$8 sps:$4 sm:$0xff]  }
0x157a   : > { %8256 = vmatpush2.bf16.msra.mxu0 %v12087_v32  ;;  %8299 = vmatpush2.bf16.msra.mxu1 %v12090_v35  ;;  %v12150_v32 = vld [vmem:[#allocation14 + $0x790] ss:$8 sps:$4 sm:$0xff]  }
0x157b   : > { %8257 = vmatprep.subr.bf16.mxu0 %v12091_v6  ;;  %8300 = vmatprep.subr.bf16.mxu1 %v12094_v56  ;;  %v12158_v6 = vld [vmem:[#allocation17 + $0xe8] sm:$0xff]   ;;  %v12160_v35 = vld [vmem:[#allocation17 + $0xd8] sm:$0xff]  }
0x157c   : > { %v7817_v56 = vld [vmem:[#allocation12 + $0x1e] sm:$0x3] }
0x157e   : > { %8258 = vmatpush2.bf16.msra.mxu0 %v12093_v16  ;;  %8301 = vmatpush2.bf16.msra.mxu1 %v12096_v17 }
0x157f   : > { %8259 = vmatprep.subr.bf16.mxu0 %v12097_v61  ;;  %8302 = vmatprep.subr.bf16.mxu1 %v12100_v15  ;;  %v7826_v61 = vrot.slane %v7817_v56, %v13287_v9 }
0x1582   : > { %8260 = vmatpush2.bf16.msra.mxu0 %v12099_v22  ;;  %8303 = vmatpush2.bf16.msra.mxu1 %v12104_v10 }
0x1583   : > { %8315 = vmatprep.subr.bf16.mxu0 %v12107_v24  ;;  %8478 = vmatprep.subr.bf16.mxu1 %v12134_v28 }
0x1585   : > { %8262 = vmatmul.mubr.bf16.vlgmr.msra.gmra.mxu0 %v14045_v45  ;;  %8305 = vmatmul.mubr.bf16.vlgmr.msra.gmra.mxu1 %v7705_v33  ;;  %v12124_v45 = vld [vmem:[#allocation11 + $0x27a4] ss:$8 sps:$4 sm:$0xff]  }
0x1586   : > { %8316 = vmatpush1.bf16.msra.mxu0 %v12105_v20  ;;  %8347 = vmatprep.mubr.bf16.mxu0 %v12740_v1 }
0x1587   : > { %8317 = vmatprep.subr.bf16.mxu0 %v12112_v26  ;;  %8510 = vmatprep.mubr.bf16.mxu1 %v12740_v1  ;;  %v10140_v1 = vcombine.low %v7677_v30, %v14042_v43  ;;  %v12137_v43 = vld [vmem:[#allocation14 + $0x7e4] ss:$8 sps:$4 sm:$0xff]  }
0x1588   : > { %8479 = vmatpush1.bf16.msra.mxu1 %v12132_v37 }
0x1589   : > { %v7731_v29 = vrot.slane %v10140_v1, 2  ;;  %8480 = vmatprep.subr.bf16.mxu1 %v12137_v43 }
0x158a   : > { %8318 = vmatpush1.bf16.msra.mxu0 %v12110_v11 }
0x158b   : > { %8319 = vmatprep.subr.bf16.mxu0 %v12115_v34  ;;  %v7733_v39 = vsel %vm846_vm7, %v7731_v29, %v7732_v51 }
0x158c   : > { %8481 = vmatpush1.bf16.msra.mxu1 %v12135_v21 }
0x158d   : > { %8482 = vmatprep.subr.bf16.mxu1 %v12140_v53 }
0x158e   : > { %8320 = vmatpush1.bf16.msra.mxu0 %v12113_v31 }
0x158f   : > { %8321 = vmatprep.subr.bf16.mxu0 %v12118_v36 }
0x1590   : > { %8483 = vmatpush1.bf16.msra.mxu1 %v12138_v8 }
0x1591   : > { %8484 = vmatprep.subr.bf16.mxu1 %v12143_v55 }
0x1592   : > { %8322 = vmatpush1.bf16.msra.mxu0 %v12116_v38 }
0x1593   : > { %8323 = vmatprep.subr.bf16.mxu0 %v12121_v19 }
0x1594   : > { %8485 = vmatpush1.bf16.msra.mxu1 %v12141_v3  ;;  %v12161_v3 = vld [vmem:[#allocation17 + $0xd0] sm:$0xff]  }
0x1595   : > { %8486 = vmatprep.subr.bf16.mxu1 %v12146_v58  ;;  %v12163_v58 = vld [vmem:[#allocation17 + $0xc0] sm:$0xff]  }
0x1596   : > { %8324 = vmatpush1.bf16.msra.mxu0 %v12119_v42 }
0x1597   : > { %8325 = vmatprep.subr.bf16.mxu0 %v12124_v45  ;;  %v7822_v45 = vrot.slane %v7817_v56, %v13292_v41 }
0x1598   : > { %8487 = vmatpush1.bf16.msra.mxu1 %v12144_v57  ;;  %v12162_v57 = vld [vmem:[#allocation17 + $0xc8] sm:$0xff]  }
0x1599   : > { %8488 = vmatprep.subr.bf16.mxu1 %v12149_v54  ;;  %v8391_v54 = vld [vmem:[#allocation15 + $0x1e] sm:$0x3] }
0x159a   : > { %8326 = vmatpush1.bf16.msra.mxu0 %v12122_v46 }
0x159b   : > { %8327 = vmatprep.subr.bf16.mxu0 %v12127_v47 }
0x159c   : > { %8489 = vmatpush1.bf16.msra.mxu1 %v12147_v59  ;;  %v8396_v59 = vrot.slane %v8391_v54, %v13292_v41 }
0x159d   : > { %8490 = vmatprep.subr.bf16.mxu1 %v12152_v49 }
0x159e   : > { %8328 = vmatpush1.bf16.msra.mxu0 %v12125_v2 }
0x159f   : > { %8329 = vmatprep.subr.bf16.mxu0 %v12130_v52 }
0x15a0   : > { %8491 = vmatpush1.bf16.msra.mxu1 %v12150_v32 }
0x15a1   : > { %8492 = vmatprep.subr.bf16.mxu1 %v12155_v60 }
0x15a2   : > { %8330 = vmatpush1.bf16.msra.mxu0 %v12128_v40 }
0x15a3   : > { %10489 = vmatprep.subr.bf16.mxu0 %v12738_v0 }
0x15a4   : > { %8493 = vmatpush1.bf16.msra.mxu1 %v12153_v50 }
0x15a5   : > { %8348 = vmatmul.mubr.bf16.vlgmr.msra.gmra.mxu0 %v7733_v39 }
0x15a6   : > { %10505 = vmatprep.mubr.msk.bf16.mxu0 %vm12739_vm0, %v12738_v0  ;;  %10490 = vmatpush3.bf16.msra.mxu0 %v12156_v63 }
0x15a7   : > { %10491 = vmatprep.subr.bf16.mxu0 %v12738_v0 }
0x15aa   : > { %10492 = vmatpush3.bf16.msra.mxu0 %v12157_v5 }
0x15ab   : > { %10493 = vmatprep.subr.bf16.mxu0 %v12738_v0 }
0x15ae   : > { %10494 = vmatpush3.bf16.msra.mxu0 %v12158_v6 }
0x15af   : > { %10495 = vmatprep.subr.bf16.mxu0 %v12738_v0 }
0x15b2   : > { %10496 = vmatpush3.bf16.msra.mxu0 %v12159_v7 }
0x15b3   : > { %10497 = vmatprep.subr.bf16.mxu0 %v12738_v0 }
0x15b6   : > { %10498 = vmatpush3.bf16.msra.mxu0 %v12160_v35 }
0x15b7   : > { %10499 = vmatprep.subr.bf16.mxu0 %v12738_v0 }
0x15ba   : > { %10500 = vmatpush3.bf16.msra.mxu0 %v12161_v3 }
0x15bb   : > { %10501 = vmatprep.subr.bf16.mxu0 %v12738_v0 }
0x15be   : > { %10502 = vmatpush3.bf16.msra.mxu0 %v12162_v57 }
0x15bf   : > { %10503 = vmatprep.subr.bf16.mxu0 %v12738_v0 }
0x15c2   : > { %10504 = vmatpush3.bf16.msra.mxu0 %v12163_v58 }
0x1645   : > { %v8263_v14 = vpop.f32.mrf.mxu0  ;;  %v8306_v16 = vpop.f32.mrf.mxu1 }
0x1646   : > { %v8264_v46 = vadd.f32 %v8263_v14, %v7822_v45 }
0x1647   : > { %v8265_v13 = vpop.f32.mrf.mxu0  ;;  %v8308_v17 = vpop.f32.mrf.mxu1 }
0x1648   : > { %v8266_v22 = vadd.f32 %v8265_v13, %v7826_v61  ;;  %v8307_v30 = vadd.f32 %v8306_v16, %v8264_v46 }
0x1649   : > { %v8267_v44 = vpop.f32.mrf.mxu0  ;;  %v8310_v24 = vpop.f32.mrf.mxu1 }
0x164a   : > { %v8309_v20 = vadd.f32 %v8308_v17, %v8266_v22  ;;  %v8268_v47 = vadd.f32 %v8267_v44, %v7822_v45 }
0x164b   : > { %v8269_v15 = vpop.f32.mrf.mxu0  ;;  %v8312_v23 = vpop.f32.mrf.mxu1 }
0x164c   : > { %v8270_v12 = vadd.f32 %v8269_v15, %v7826_v61  ;;  %v8311_v1 = vadd.f32 %v8310_v24, %v8268_v47 }
0x164e   : > { %v8313_v34 = vadd.f32 %v8312_v23, %v8270_v12 }
0x1665   : > { %v8349_v10 = vpop.f32.mrf.mxu0 }
0x1666   : > { %v8350_v52 = vadd.f32 %v8349_v10, %v8307_v30 }
0x1667   : > { %v8351_v26 = vpop.f32.mrf.mxu0 }
0x1668   : > { %v8352_v33 = vadd.f32 %v8351_v26, %v8309_v20 }
0x1669   : > { %v8353_v11 = vpop.f32.mrf.mxu0 }
0x166a   : > { %v8360_v31 = vsub.f32 0.0, %v8352_v33  ;;  %v8354_v29 = vadd.f32 %v8353_v11, %v8311_v1 }
0x166b   : > { %v8355_v36 = vpop.f32.mrf.mxu0 }
0x166c   : > { %v8362_v38 = vmul.f32 1.442695, %v8360_v31  ;;  %v8356_v19 = vadd.f32 %v8355_v36, %v8313_v34 }
0x166e   : > { %12164 = vpow2.f32 %v8362_v38  ;;  %v8361_v42 = vsub.f32 0.0, %v8356_v19 }
0x1670   : > { %v8364_v9 = vmul.f32 1.442695, %v8361_v42 }
0x1672   : > { %12166 = vpow2.f32 %v8364_v9 }
0x1673   : > { %12168 = vtanh.f32 %v8350_v52 }
0x167b   : > { %v12165_v2 = vpop.eup %12164 }
0x167c   : > { %v8366_v40 = vadd.f32 1.0, %v12165_v2 }
0x167e   : > { %12170 = vrcp.f32 %v8366_v40 }
0x167f   : > { %v12167_v51 = vpop.eup %12166  ;;  %12172 = vtanh.f32 %v8354_v29 }
0x1680   : > { %v8367_v39 = vadd.f32 1.0, %v12167_v51  ;;  %v12169_v28 = vpop.eup %12168 }
0x1682   : > { %12174 = vrcp.f32 %v8367_v39 }
0x168b   : > { %v12171_v37 = vpop.eup %12170 }
0x168c   : > { %v12173_v43 = vpop.eup %12172  ;;  %v8370_v53 = vmul.f32 %v12171_v37, %v12169_v28 }
0x168f   : > { %v12175_v21 = vpop.eup %12174 }
0x1690   : > { %v8371_v8 = vmul.f32 %v12175_v21, %v12173_v43 }
0x1692   : > { %v8372_v55 = vpack.c.bf16 %v8371_v8, %v8370_v53 }
0x1694   : > { %8511 = vmatmul.mubr.bf16.vlgmr.msra.gmra.mxu1 %v8372_v55 }
0x1754   : > { %v8512_v49 = vpop.f32.mrf.mxu1 }
0x1755   : > { %v8513_v32 = vadd.f32 %v8512_v49, %v8396_v59 }
0x1756   : > { %v8514_v60 = vpop.f32.mrf.mxu1 }
0x1757   : > { %v8519_v63 = vadd.f32 %v8513_v32, %v14269_v4 }
0x1758   : > { %v8515_v50 = vpop.f32.mrf.mxu1 }
0x1759   : > { %v8516_v5 = vadd.f32 %v8515_v50, %v8396_v59  ;;  %v8521_v7 = vmul.f32 %v8519_v63, %v13132_v18 }
0x175a   : > { %v8517_v6 = vpop.f32.mrf.mxu1 }
0x175b   : > { %v8520_v0 = vadd.f32 %v8516_v5, %v14270_v27 }
0x175d   : > { %v8522_v35 = vmul.f32 %v8520_v0, %v13135_v25 }
0x175f   : > { %v8523_v14 = vpack.c.bf16 %v8522_v35, %v8521_v7 }
0x1761   : > { %10506 = vmatmul.mubr.bf16.vlgmr.msra.gmra.mxu0 %v8523_v14 }
0x1762   : > { %12453 = shalt.err (!%p12450_p10)
}
0x1763   : > { %s12454_s30 = scalar_lea.hbm %s14090_s14, 256  ;;  %s12458_s10 = scalar_lea.hbm %s14193_s12, 512 }
0x1764   : > { %p12455_p12 = scmp.ne.s32.totalorder %s14090_s14, %s12454_s30  ;;  %p12459_p1 = scmp.lt.s32.totalorder %s14090_s14, %s14193_s12 }
0x1765   : > { %p12460_p7 = scmp.lt.s32.totalorder %s12458_s10, %s12454_s30 }
0x1766   : > { %p12456_p2 = pnand %p12455_p12, %p14275_p3 }
0x1767   : > { %p12461_p8 = por %p12460_p7, %p12459_p1 }
0x1768   : > { %p12457_p5 = pneg %p12456_p2 }
0x176a   : > { %p12462_p11 = pnand %p12461_p8, %p12457_p5 }
0x176c   : > { %12465 = shalt.err (!%p12462_p11)
}
0x176d   : > { %s12746_s6 = smov 128   ;;  %s12747_s25 = smov 8   ;;  %v10237_v41 = vld [vmem:[#allocation18 + $0x3] ss:$0 sm:$0xff]  ;;  %v8640_v56 = vmul.f32 %v13620_v62, %v13132_v18  ;;  %v8641_v22 = vmul.f32 %v13622_v48, %v13135_v25 }
0x176e   : > { %10546 = dma.vmem_to_hbm [thread:$0]  (%p14275_p3), %s14093_s5, 256, %s14090_s14, %s8654_s8, %s12746_s6, %s12746_s6, %s12747_s25  }
0x176f   : > { %s8667_s14 = sshll.u32 %s13139_s20, 4  ;;  %s14134_s28 = scalar_lea.hbm %s14192_s11, %s10275_s17  ;;  %s14136_s14 = int_to_ptr.vmem [resolvable:$true] %s8667_s14 }
0x1770   : > { %s8649_s29 = scalar_lea.sflag [#allocation5], %s13062_s0  ;;  %s12466_s19 = scalar_lea.vmem %s14136_s14, 256 }
0x1771   : > { %p12467_p4 = scmp.ne.s32.totalorder %s14136_s14, %s12466_s19  ;;  %s12748_s13 = smov [#allocation20]  }
0x1772   : > { %s12470_s30 = sshll.u32 %s12748_s13, 4  ;;  %s12471_s30 = int_to_ptr.vmem [resolvable:$false] %s12470_s30 }
0x1773   : > { %p12468_p13 = pnand %p12467_p4, %p14275_p3  ;;  %s12472_s27 = scalar_lea.vmem %s12471_s30, 512 }
0x1774   : > { %p12473_p6 = scmp.lt.s32.totalorder %s14136_s14, %s12471_s30  ;;  %p12474_p9 = scmp.lt.s32.totalorder %s12472_s27, %s12466_s19 }
0x1775   : > { %p12469_p0 = pneg %p12468_p13 }
0x1776   : > { %p12475_p10 = por %p12474_p9, %p12473_p6 }
0x1778   : > { %p12476_p12 = pnand %p12475_p10, %p12469_p0 }
0x1821   : > { %v8631_v4 = vpop.f32.mrf.mxu0 }
0x1822   : > { %v8632_v27 = vadd.f32 %v10237_v41, %v8631_v4 }
0x1823   : > { %v10507_v13 = vpop.f32.mrf.mxu0 }
0x1824   : > { %v8638_v16 = vmul.f32 %v8632_v27, %v13132_v18 }
0x1825   : > { %v8634_v61 = vpop.f32.mrf.mxu0 }
0x1826   : > { %v8642_v44 = vadd.f32 %v8640_v56, %v8638_v16  ;;  %v8635_v17 = vadd.f32 %v10237_v41, %v8634_v61 }
0x1827   : > { %v10508_v15 = vpop.f32.mrf.mxu0 }
0x1828   : > { %8644 = vst [vmem:[%s13139_s20] sm:$0xff] %v8642_v44  ;;  %v8639_v24 = vmul.f32 %v8635_v17, %v13135_v25 }
0x182a   : > { %v8643_v10 = vadd.f32 %v8641_v22, %v8639_v24 }
0x182c   : > { %8645 = vst [vmem:[%s13139_s20 + $0x8] sm:$0xff] %v8643_v10 }
0x182d   : > { %12479 = shalt.err (!%p12476_p12)
}
0x182e   : > { %s12480_s20 = scalar_lea.hbm %s14134_s28, 256  ;;  %s12484_s26 = scalar_lea.hbm %s14192_s11, 512 }
0x182f   : > { %p12481_p2 = scmp.ne.s32.totalorder %s14134_s28, %s12480_s20  ;;  %p12485_p7 = scmp.lt.s32.totalorder %s14134_s28, %s14192_s11 }
0x1830   : > { %p12486_p8 = scmp.lt.s32.totalorder %s12484_s26, %s12480_s20 }
0x1831   : > { %p12482_p5 = pnand %p12481_p2, %p14275_p3 }
0x1832   : > { %p12487_p11 = por %p12486_p8, %p12485_p7 }
0x1833   : > { %p12483_p1 = pneg %p12482_p5 }
0x1835   : > { %p12488_p4 = pnand %p12487_p11, %p12483_p1 }
0x1837   : > { %12491 = shalt.err (!%p12488_p4)
}
0x1838   : > { %10545 = dma.vmem_to_hbm [thread:$0]  (%p14275_p3), %s14136_s14, 256, %s14134_s28, %s8649_s29, %s12746_s6, %s12746_s6, %s12747_s25  }
0x1839 PF: > { %s8698_s4 = sand.u32 1, %s12626_s21   ;;  %p14276_p13 = scmp.ne.s32.totalorder %s14233_s18, 0 }
0x183a   : > { %p14277_p0 = scmp.ge.s32.totalorder %s12638_s24, 2  ;;  %s8699_s9 = scalar_lea.sflag [#allocation5], %s8698_s4 }
0x183c   : > { %p10582_p6 = pnand %p14277_p0, %p14276_p13 }
0x183e   : > { %p10583_p9 = pneg %p10582_p6 }
0x1840   : > { %12617 = dma.done.wait (%p10583_p9), %s8699_s9, 256  }
0x1841   : > { %12619 = vsyncadd (%p10583_p9), %s8699_s9, 4294967040  ;;  %s8708_s5 = scalar_lea.sflag [#allocation22], %s8698_s4 }
0x1842   : > { %12621 = dma.done.wait (%p10583_p9), %s8708_s5, 256  }
0x1843   : > { %12623 = vsyncadd (%p10583_p9), %s8708_s5, 4294967040  ;;  %p36_p3 = scmp.ge.s32.totalorder %s12945_s16, 4   ;;  %s14278_s21 = smov %s12630_s22 }
0x1844   : > { %s14279_s22 = smov %s12634_s23  ;;  %s14280_s23 = smov %s12956_s3 }
0x1845   : > { %s14281_s24 = smov %s12945_s16  ;;  %38 = sbr.rel (!%p36_p3) target bundleno = 23 (0x17), region = 290 }
0x184a   :  { %8713 = vsyncpa [#allocation4], 1 }
0x184b   :  { %8715 = vsyncpa [#allocation4 + $0x1], 1 }
0x184c   :  { %8716 = vsyncpa [#allocation7], 1 }
0x184d   :  { %8718 = vsyncpa [#allocation7 + $0x1], 1 }
0x184e   :  { %8719 = vsyncpa [#allocation10], 1 }
0x184f   :  { %8720 = vsyncpa [#allocation13], 1 }
0x1850   :  { %8721 = vsyncpa [#allocation16], 1 }
0x1851   :  { %8722 = vsyncpa [#allocation19], 1 }
0x1852   :  { %8723 = vsyncpa [#allocation5], 1 }
0x1853   :  { %8725 = vsyncpa [#allocation5 + $0x1], 1 }
0x1854   :  { %8726 = vsyncpa [#allocation22], 1 }
0x1855   :  { %8728 = vsyncpa [#allocation22 + $0x1], 1 }

</bundles_post_ra>
